<compile_context>
chip_gen: v6e
topology: v6e:2x2x1
jax: 0.10.0
libtpu: 0.0.40
codegen_flags: <defaults>
</compile_context>

<pallas_src>
import functools

import jax
import jax.numpy as jnp
from jax import lax
from jax.experimental import pallas as pl
from jax.experimental.pallas import tpu as pltpu


# ----------------------------------------------------------------------------
# Fused kernel
# ----------------------------------------------------------------------------
def _even_row_selector(rows, cols, bt):
    """[bt, rows, cols] f32 with sel[., r, 2r] = 1 (picks even rows via matmul)."""
    r = lax.broadcasted_iota(jnp.int32, (rows, cols), 0)
    c = lax.broadcasted_iota(jnp.int32, (rows, cols), 1)
    s = (c == 2 * r).astype(jnp.float32)
    return jnp.broadcast_to(s, (bt, rows, cols))


def _scnn_kernel(x_ref, wb1_ref, b1_ref, wb2_ref, b2_ref,
                 wf1_ref, bf1_ref, wf2_ref, bf2_ref, wf3_ref, bf3_ref, o_ref):
    f32 = jnp.float32
    bt = x_ref.shape[0]
    x = x_ref[...].astype(f32)                                        # [bt,32,96]

    def conv_bands(inp, wb_ref, out_h):
        # inp [bt, H, K]; wb_ref [KH, K, N]  ->  [bt, out_h, N]
        kh, k, n = wb_ref.shape
        acc = None
        for di in range(kh):
            band = inp[:, di:di + out_h, :]                           # [bt,out_h,K]
            w = jnp.broadcast_to(wb_ref[di], (bt, k, n))
            part = jnp.einsum('bhk,bkn->bhn', band, w,
                              preferred_element_type=f32)
            acc = part if acc is None else acc + part
        return acc

    # conv1 (5x5, 3->6) + bias + ReLU; output cols = ow*6 + co, ow in [0,28)
    y1 = jnp.maximum(conv_bands(x, wb1_ref, 28) + b1_ref[...], 0.0)   # [bt,28,168]

    # 2x2/2 max-pool #1: pair-max over W (lane offset 6) and H (sublane offset
    # 1), then keep even rows via a selection matmul.  Odd-W columns remain as
    # finite junk and are zero-weighted inside wb2.
    y1 = jnp.maximum(y1[:, :, :162], y1[:, :, 6:])                    # [bt,28,162]
    y1 = jnp.maximum(y1[:, :27, :], y1[:, 1:, :])                     # [bt,27,162]
    p1 = jnp.einsum('brh,bhn->brn', _even_row_selector(14, 27, bt), y1,
                    preferred_element_type=f32)                       # [bt,14,162]

    # conv2 (5x5, 6->16) + bias + ReLU; output cols = ow2*16 + co2, ow2 in [0,10)
    y2 = jnp.maximum(conv_bands(p1, wb2_ref, 10) + b2_ref[...], 0.0)  # [bt,10,160]

    # 2x2/2 max-pool #2
    y2 = jnp.maximum(y2[:, :, :144], y2[:, :, 16:])                   # [bt,10,144]
    y2 = jnp.maximum(y2[:, :9, :], y2[:, 1:, :])                      # [bt,9,144]
    p2 = jnp.einsum('brh,bhn->brn', _even_row_selector(5, 9, bt), y2,
                    preferred_element_type=f32)                       # [bt,5,144]

    # fc1 (NCHW flatten + W-pool column selection folded into wf1) + ReLU
    acc = None
    for r in range(5):
        part = jnp.dot(p2[:, r, :], wf1_ref[r], preferred_element_type=f32)
        acc = part if acc is None else acc + part
    h = jnp.maximum(acc + bf1_ref[...], 0.0)                          # [bt,120]

    # fc2 + ReLU, fc3 (intermediates never leave VMEM)
    h = jnp.maximum(jnp.dot(h, wf2_ref[...], preferred_element_type=f32)
                    + bf2_ref[...], 0.0)                              # [bt,84]
    out = jnp.dot(h, wf3_ref[...], preferred_element_type=f32) + bf3_ref[...]
    o_ref[...] = out.astype(o_ref.dtype)                              # [bt,10]


# ----------------------------------------------------------------------------
# One-time wrapper-side weight preparation (banded conv matrices, tiled biases,
# fc1 permutation).  Pure layout work on the parameters; no per-step cost.
# ----------------------------------------------------------------------------
def _banded_weights(w_hwio, in_w, out_w, in_group):
    """Wb[kh, j*in_group + c, ow*Cout + co] = w[kh, j-ow, c, co] (valid, c<Cin) else 0."""
    KH, KW, Cin, Cout = w_hwio.shape
    j = jnp.arange(in_w)
    ow = jnp.arange(out_w)
    dj = j[:, None] - ow[None, :]                                  # [in_w,out_w]
    valid = (dj >= 0) & (dj < KW)
    g = w_hwio[:, jnp.clip(dj, 0, KW - 1)]                         # [KH,in_w,out_w,Cin,Cout]
    g = jnp.where(valid[None, :, :, None, None], g, 0.0)
    g = jnp.transpose(g, (0, 1, 3, 2, 4))                          # [KH,in_w,Cin,out_w,Cout]
    if in_group > Cin:
        pad = jnp.zeros((KH, in_w, in_group - Cin, out_w, Cout), g.dtype)
        g = jnp.concatenate([g, pad], axis=2)
    return g.reshape(KH, in_w * in_group, out_w * Cout)


def prepare_params(params):
    (w1, b1), (w2, b2), (wf1, bf1), (wf2, bf2), (wf3, bf3) = params
    wb1 = _banded_weights(w1, in_w=32, out_w=28, in_group=3)            # [5,96,168]
    b1t = jnp.tile(b1.reshape(1, 6), (1, 28))                           # [1,168]
    # conv2 reads the inflated pool-1 layout (k = 12*j + c, c<6 valid)
    wb2 = _banded_weights(w2, in_w=14, out_w=10, in_group=12)[:, :162]  # [5,162,160]
    b2t = jnp.tile(b2.reshape(1, 16), (1, 10))                          # [1,160]
    # fc1: torch NCHW-flatten rows re-addressed by the inflated pool-2 layout
    # (k = 32*w + c2, c2<16 valid), one [144,120] block per output row h.
    wf1_hwc = jnp.transpose(wf1.reshape(16, 5, 5, 120), (1, 2, 0, 3))   # [h,w,c2,o]
    wf1_pad = jnp.concatenate(
        [wf1_hwc, jnp.zeros((5, 5, 16, 120), wf1.dtype)], axis=2)       # [h,w,32,o]
    wf1i = wf1_pad.reshape(5, 160, 120)[:, :144, :]                     # [5,144,120]
    return (wb1, b1t, wb2, b2t, wf1i, bf1, wf2, bf2, wf3, bf3)


def scnn_forward(x_nchw, prep, *, block_b=32):
    """Fused Pallas forward. x_nchw: [B, 3, 32, 32] f32 -> [B, 10]."""
    assert x_nchw.shape[1:] == (3, 32, 32), "sCNN expects 3x32x32 inputs"
    wb1, b1t, wb2, b2t, wf1i, bf1, wf2, bf2, wf3, bf3 = prep
    B = x_nchw.shape[0]
    # layout-only: NCHW -> packed [B, H, W*C] (lane-dense minor dim = 96)
    x = jnp.transpose(x_nchw, (0, 2, 3, 1)).reshape(B, 32, 96)

    bt = B if B <= block_b else block_b
    if bt != B and bt % 8 != 0:                      # keep tile sublane-aligned
        bt = max(8, (bt // 8) * 8)
    grid = (pl.cdiv(B, bt),)

    def xmap(i):
        return (i, 0, 0)

    def omap(i):
        return (i, 0)

    def c3(i):
        return (0, 0, 0)

    def c2(i):
        return (0, 0)

    weights = (wb1, b1t, wb2, b2t, wf1i, bf1, wf2, bf2, wf3, bf3)
    w_specs = [pl.BlockSpec(w.shape, c3 if w.ndim == 3 else c2) for w in weights]

    per_img_flops = 2 * (5 * 28 * 96 * 168 + 14 * 27 * 162
                         + 5 * 10 * 162 * 160 + 5 * 9 * 144
                         + 5 * 144 * 120 + 120 * 84 + 84 * 10)
    bytes_accessed = 4 * (x.size + sum(w.size for w in weights) + B * 10)

    return pl.pallas_call(
        _scnn_kernel,
        out_shape=jax.ShapeDtypeStruct((B, 10), x_nchw.dtype),
        grid=grid,
        in_specs=[pl.BlockSpec((bt, 32, 96), xmap)] + w_specs,
        out_specs=pl.BlockSpec((bt, 10), omap),
        compiler_params=pltpu.CompilerParams(
            dimension_semantics=("parallel",),
            vmem_limit_bytes=48 * 1024 * 1024,       # fits v7x's 64 MiB/TC
        ),
        cost_estimate=pl.CostEstimate(
            flops=B * per_img_flops, transcendentals=0,
            bytes_accessed=bytes_accessed),
    )(x, *weights)


# ----------------------------------------------------------------------------
# Parameters (PyTorch-like uniform init), pure-JAX reference, demo
# ----------------------------------------------------------------------------
def init_params(key, dtype=jnp.float32):
    ks = jax.random.split(key, 10)

    def u(k, shape, fan_in):
        bound = 1.0 / (fan_in ** 0.5)
        return jax.random.uniform(k, shape, dtype, -bound, bound)

    w1 = u(ks[0], (5, 5, 3, 6), 5 * 5 * 3)            # HWIO
    b1 = u(ks[1], (1, 6), 5 * 5 * 3)
    w2 = u(ks[2], (5, 5, 6, 16), 5 * 5 * 6)
    b2 = u(ks[3], (1, 16), 5 * 5 * 6)
    wf1 = u(ks[4], (400, 120), 400); bf1 = u(ks[5], (1, 120), 400)
    wf2 = u(ks[6], (120, 84), 120);  bf2 = u(ks[7], (1, 84), 120)
    wf3 = u(ks[8], (84, 10), 84);    bf3 = u(ks[9], (1, 10), 84)
    return (w1, b1), (w2, b2), (wf1, bf1), (wf2, bf2), (wf3, bf3)


def scnn_ref(x_nchw, params):
    """Pure-JAX reference mirroring the PyTorch forward."""
    (w1, b1), (w2, b2), (wf1, bf1), (wf2, bf2), (wf3, bf3) = params
    dn = ("NHWC", "HWIO", "NHWC")
    hp = lax.Precision.HIGHEST
    x = jnp.transpose(x_nchw, (0, 2, 3, 1))
    y = lax.conv_general_dilated(x, w1, (1, 1), "VALID",
                                 dimension_numbers=dn, precision=hp) + b1
    y = jax.nn.relu(y)
    y = lax.reduce_window(y, -jnp.inf, lax.max, (1, 2, 2, 1), (1, 2, 2, 1), "VALID")
    y = lax.conv_general_dilated(y, w2, (1, 1), "VALID",
                                 dimension_numbers=dn, precision=hp) + b2
    y = jax.nn.relu(y)
    y = lax.reduce_window(y, -jnp.inf, lax.max, (1, 2, 2, 1), (1, 2, 2, 1), "VALID")
    feat = jnp.transpose(y, (0, 3, 1, 2)).reshape(x.shape[0], -1)   # NCHW flatten
    h = jax.nn.relu(jnp.dot(feat, wf1, precision=hp) + bf1)
    h = jax.nn.relu(jnp.dot(h, wf2, precision=hp) + bf2)
    return jnp.dot(h, wf3, precision=hp) + bf3


if __name__ == "__main__":
    key = jax.random.PRNGKey(0)
    k_x, k_p = jax.random.split(key)

    B = 16
    x = jax.random.normal(k_x, (B, 3, 32, 32), jnp.float32)     # CIFAR-sized input
    params = init_params(k_p)
    prep = prepare_params(params)                                # one-time weight prep

    fwd = jax.jit(functools.partial(scnn_forward, block_b=8))   # grid of 2 tiles
    out = jax.block_until_ready(fwd(x, prep))

    ref = scnn_ref(x, params)
    assert out.shape == (B, 10)
    err = float(jnp.max(jnp.abs(out - ref)))
    assert err < 5e-3, f"mismatch vs reference (max abs err {err})"

    print("KERNEL_OK")
</pallas_src>

<mosaic_0001>
module attributes {stable_mosaic.version = 11 : i64} {
  func.func @_scnn_kernel(%arg0: i32, %arg1: memref<8x32x96xf32, #tpu.memory_space<vmem>>, %arg2: memref<5x96x168xf32, #tpu.memory_space<vmem>>, %arg3: memref<1x168xf32, #tpu.memory_space<vmem>>, %arg4: memref<5x162x160xf32, #tpu.memory_space<vmem>>, %arg5: memref<1x160xf32, #tpu.memory_space<vmem>>, %arg6: memref<5x144x120xf32, #tpu.memory_space<vmem>>, %arg7: memref<1x120xf32, #tpu.memory_space<vmem>>, %arg8: memref<120x84xf32, #tpu.memory_space<vmem>>, %arg9: memref<1x84xf32, #tpu.memory_space<vmem>>, %arg10: memref<84x10xf32, #tpu.memory_space<vmem>>, %arg11: memref<1x10xf32, #tpu.memory_space<vmem>>, %arg12: memref<8x10xf32, #tpu.memory_space<vmem>>) attributes {dimension_semantics = [#tpu.dimension_semantics<parallel>], iteration_bounds = array<i64: 2>, scalar_prefetch = 0 : i64, scratch_operands = 0 : i64, tpu.core_type = #tpu.core_type<tc>, window_params = [{transform_indices = @transform_0, window_bounds = array<i64: 8, 32, 96>}, {pipeline_mode = #tpu.pipeline_mode<synchronous>, transform_indices = @transform_1, window_bounds = array<i64: 5, 96, 168>}, {pipeline_mode = #tpu.pipeline_mode<synchronous>, transform_indices = @transform_2, window_bounds = array<i64: 1, 168>}, {pipeline_mode = #tpu.pipeline_mode<synchronous>, transform_indices = @transform_3, window_bounds = array<i64: 5, 162, 160>}, {pipeline_mode = #tpu.pipeline_mode<synchronous>, transform_indices = @transform_4, window_bounds = array<i64: 1, 160>}, {pipeline_mode = #tpu.pipeline_mode<synchronous>, transform_indices = @transform_5, window_bounds = array<i64: 5, 144, 120>}, {pipeline_mode = #tpu.pipeline_mode<synchronous>, transform_indices = @transform_6, window_bounds = array<i64: 1, 120>}, {pipeline_mode = #tpu.pipeline_mode<synchronous>, transform_indices = @transform_7, window_bounds = array<i64: 120, 84>}, {pipeline_mode = #tpu.pipeline_mode<synchronous>, transform_indices = @transform_8, window_bounds = array<i64: 1, 84>}, {pipeline_mode = #tpu.pipeline_mode<synchronous>, transform_indices = @transform_9, window_bounds = array<i64: 84, 10>}, {pipeline_mode = #tpu.pipeline_mode<synchronous>, transform_indices = @transform_10, window_bounds = array<i64: 1, 10>}, {transform_indices = @transform_11, window_bounds = array<i64: 8, 10>}]} {
    %c0 = arith.constant 0 : index
    %c0_0 = arith.constant 0 : index
    %c0_1 = arith.constant 0 : index
    %0 = vector.load %arg1[%c0, %c0_0, %c0_1] : memref<8x32x96xf32, #tpu.memory_space<vmem>>, vector<8x32x96xf32>
    %1 = vector.extract_strided_slice %0 {offsets = [0, 0, 0], sizes = [8, 28, 96], strides = [1, 1, 1]} : vector<8x32x96xf32> to vector<8x28x96xf32>
    %c0_2 = arith.constant 0 : index
    %c0_3 = arith.constant 0 : index
    %c0_4 = arith.constant 0 : index
    %2 = vector.load %arg2[%c0_2, %c0_3, %c0_4] : memref<5x96x168xf32, #tpu.memory_space<vmem>>, vector<1x96x168xf32>
    %3 = vector.shape_cast %2 : vector<1x96x168xf32> to vector<96x168xf32>
    %4 = vector.shape_cast %3 : vector<96x168xf32> to vector<1x96x168xf32>
    %5 = vector.broadcast %4 : vector<1x96x168xf32> to vector<8x96x168xf32>
    "tpu.trace_start"() <{level = 10 : i32, message = "bhk,bkn->bhn"}> : () -> ()
    %cst = arith.constant dense<0.000000e+00> : vector<8x28x168xf32>
    %6 = tpu.matmul %1, %5, %cst {dimension_numbers = #tpu.dot_dimension_numbers<[2], [1], [1], [2], [0, 0, 0, 1, 1, 2], [0], [0]>} : vector<8x28x96xf32>, vector<8x96x168xf32>, vector<8x28x168xf32> -> vector<8x28x168xf32>
    "tpu.trace_stop"() : () -> ()
    %7 = vector.extract_strided_slice %0 {offsets = [0, 1, 0], sizes = [8, 28, 96], strides = [1, 1, 1]} : vector<8x32x96xf32> to vector<8x28x96xf32>
    %c1 = arith.constant 1 : index
    %c0_5 = arith.constant 0 : index
    %c0_6 = arith.constant 0 : index
    %8 = vector.load %arg2[%c1, %c0_5, %c0_6] : memref<5x96x168xf32, #tpu.memory_space<vmem>>, vector<1x96x168xf32>
    %9 = vector.shape_cast %8 : vector<1x96x168xf32> to vector<96x168xf32>
    %10 = vector.shape_cast %9 : vector<96x168xf32> to vector<1x96x168xf32>
    %11 = vector.broadcast %10 : vector<1x96x168xf32> to vector<8x96x168xf32>
    "tpu.trace_start"() <{level = 10 : i32, message = "bhk,bkn->bhn"}> : () -> ()
    %cst_7 = arith.constant dense<0.000000e+00> : vector<8x28x168xf32>
    %12 = tpu.matmul %7, %11, %cst_7 {dimension_numbers = #tpu.dot_dimension_numbers<[2], [1], [1], [2], [0, 0, 0, 1, 1, 2], [0], [0]>} : vector<8x28x96xf32>, vector<8x96x168xf32>, vector<8x28x168xf32> -> vector<8x28x168xf32>
    "tpu.trace_stop"() : () -> ()
    %13 = arith.addf %6, %12 : vector<8x28x168xf32>
    %14 = vector.extract_strided_slice %0 {offsets = [0, 2, 0], sizes = [8, 28, 96], strides = [1, 1, 1]} : vector<8x32x96xf32> to vector<8x28x96xf32>
    %c2 = arith.constant 2 : index
    %c0_8 = arith.constant 0 : index
    %c0_9 = arith.constant 0 : index
    %15 = vector.load %arg2[%c2, %c0_8, %c0_9] : memref<5x96x168xf32, #tpu.memory_space<vmem>>, vector<1x96x168xf32>
    %16 = vector.shape_cast %15 : vector<1x96x168xf32> to vector<96x168xf32>
    %17 = vector.shape_cast %16 : vector<96x168xf32> to vector<1x96x168xf32>
    %18 = vector.broadcast %17 : vector<1x96x168xf32> to vector<8x96x168xf32>
    "tpu.trace_start"() <{level = 10 : i32, message = "bhk,bkn->bhn"}> : () -> ()
    %cst_10 = arith.constant dense<0.000000e+00> : vector<8x28x168xf32>
    %19 = tpu.matmul %14, %18, %cst_10 {dimension_numbers = #tpu.dot_dimension_numbers<[2], [1], [1], [2], [0, 0, 0, 1, 1, 2], [0], [0]>} : vector<8x28x96xf32>, vector<8x96x168xf32>, vector<8x28x168xf32> -> vector<8x28x168xf32>
    "tpu.trace_stop"() : () -> ()
    %20 = arith.addf %13, %19 : vector<8x28x168xf32>
    %21 = vector.extract_strided_slice %0 {offsets = [0, 3, 0], sizes = [8, 28, 96], strides = [1, 1, 1]} : vector<8x32x96xf32> to vector<8x28x96xf32>
    %c3 = arith.constant 3 : index
    %c0_11 = arith.constant 0 : index
    %c0_12 = arith.constant 0 : index
    %22 = vector.load %arg2[%c3, %c0_11, %c0_12] : memref<5x96x168xf32, #tpu.memory_space<vmem>>, vector<1x96x168xf32>
    %23 = vector.shape_cast %22 : vector<1x96x168xf32> to vector<96x168xf32>
    %24 = vector.shape_cast %23 : vector<96x168xf32> to vector<1x96x168xf32>
    %25 = vector.broadcast %24 : vector<1x96x168xf32> to vector<8x96x168xf32>
    "tpu.trace_start"() <{level = 10 : i32, message = "bhk,bkn->bhn"}> : () -> ()
    %cst_13 = arith.constant dense<0.000000e+00> : vector<8x28x168xf32>
    %26 = tpu.matmul %21, %25, %cst_13 {dimension_numbers = #tpu.dot_dimension_numbers<[2], [1], [1], [2], [0, 0, 0, 1, 1, 2], [0], [0]>} : vector<8x28x96xf32>, vector<8x96x168xf32>, vector<8x28x168xf32> -> vector<8x28x168xf32>
    "tpu.trace_stop"() : () -> ()
    %27 = arith.addf %20, %26 : vector<8x28x168xf32>
    %28 = vector.extract_strided_slice %0 {offsets = [0, 4, 0], sizes = [8, 28, 96], strides = [1, 1, 1]} : vector<8x32x96xf32> to vector<8x28x96xf32>
    %c4 = arith.constant 4 : index
    %c0_14 = arith.constant 0 : index
    %c0_15 = arith.constant 0 : index
    %29 = vector.load %arg2[%c4, %c0_14, %c0_15] : memref<5x96x168xf32, #tpu.memory_space<vmem>>, vector<1x96x168xf32>
    %30 = vector.shape_cast %29 : vector<1x96x168xf32> to vector<96x168xf32>
    %31 = vector.shape_cast %30 : vector<96x168xf32> to vector<1x96x168xf32>
    %32 = vector.broadcast %31 : vector<1x96x168xf32> to vector<8x96x168xf32>
    "tpu.trace_start"() <{level = 10 : i32, message = "bhk,bkn->bhn"}> : () -> ()
    %cst_16 = arith.constant dense<0.000000e+00> : vector<8x28x168xf32>
    %33 = tpu.matmul %28, %32, %cst_16 {dimension_numbers = #tpu.dot_dimension_numbers<[2], [1], [1], [2], [0, 0, 0, 1, 1, 2], [0], [0]>} : vector<8x28x96xf32>, vector<8x96x168xf32>, vector<8x28x168xf32> -> vector<8x28x168xf32>
    "tpu.trace_stop"() : () -> ()
    %34 = arith.addf %27, %33 : vector<8x28x168xf32>
    %c0_17 = arith.constant 0 : index
    %c0_18 = arith.constant 0 : index
    %35 = vector.load %arg3[%c0_17, %c0_18] : memref<1x168xf32, #tpu.memory_space<vmem>>, vector<1x168xf32>
    %36 = vector.shape_cast %35 : vector<1x168xf32> to vector<1x1x168xf32>
    %37 = vector.broadcast %36 : vector<1x1x168xf32> to vector<8x28x168xf32>
    %38 = arith.addf %34, %37 : vector<8x28x168xf32>
    %cst_19 = arith.constant 0.000000e+00 : f32
    %39 = vector.broadcast %cst_19 : f32 to vector<8x28x168xf32>
    %40 = arith.maximumf %38, %39 : vector<8x28x168xf32>
    %41 = vector.extract_strided_slice %40 {offsets = [0, 0, 0], sizes = [8, 28, 162], strides = [1, 1, 1]} : vector<8x28x168xf32> to vector<8x28x162xf32>
    %42 = vector.extract_strided_slice %40 {offsets = [0, 0, 6], sizes = [8, 28, 162], strides = [1, 1, 1]} : vector<8x28x168xf32> to vector<8x28x162xf32>
    %43 = arith.maximumf %41, %42 : vector<8x28x162xf32>
    %44 = vector.extract_strided_slice %43 {offsets = [0, 0, 0], sizes = [8, 27, 162], strides = [1, 1, 1]} : vector<8x28x162xf32> to vector<8x27x162xf32>
    %45 = vector.extract_strided_slice %43 {offsets = [0, 1, 0], sizes = [8, 27, 162], strides = [1, 1, 1]} : vector<8x28x162xf32> to vector<8x27x162xf32>
    %46 = arith.maximumf %44, %45 : vector<8x27x162xf32>
    %47 = tpu.iota {dimensions = array<i32: 0>} : vector<14x27xi32>
    %48 = tpu.iota {dimensions = array<i32: 1>} : vector<14x27xi32>
    %c2_i32 = arith.constant 2 : i32
    %49 = vector.broadcast %c2_i32 : i32 to vector<14x27xi32>
    %50 = arith.muli %49, %47 : vector<14x27xi32>
    %51 = arith.cmpi eq, %48, %50 : vector<14x27xi32>
    %52 = arith.extui %51 : vector<14x27xi1> to vector<14x27xi32>
    %53 = arith.sitofp %52 : vector<14x27xi32> to vector<14x27xf32>
    %54 = vector.shape_cast %53 : vector<14x27xf32> to vector<1x14x27xf32>
    %55 = vector.broadcast %54 : vector<1x14x27xf32> to vector<8x14x27xf32>
    "tpu.trace_start"() <{level = 10 : i32, message = "brh,bhn->brn"}> : () -> ()
    %cst_20 = arith.constant dense<0.000000e+00> : vector<8x14x162xf32>
    %56 = tpu.matmul %55, %46, %cst_20 {dimension_numbers = #tpu.dot_dimension_numbers<[2], [1], [1], [2], [0, 0, 0, 1, 1, 2], [0], [0]>} : vector<8x14x27xf32>, vector<8x27x162xf32>, vector<8x14x162xf32> -> vector<8x14x162xf32>
    "tpu.trace_stop"() : () -> ()
    %57 = vector.extract_strided_slice %56 {offsets = [0, 0, 0], sizes = [8, 10, 162], strides = [1, 1, 1]} : vector<8x14x162xf32> to vector<8x10x162xf32>
    %c0_21 = arith.constant 0 : index
    %c0_22 = arith.constant 0 : index
    %c0_23 = arith.constant 0 : index
    %58 = vector.load %arg4[%c0_21, %c0_22, %c0_23] : memref<5x162x160xf32, #tpu.memory_space<vmem>>, vector<1x162x160xf32>
    %59 = vector.shape_cast %58 : vector<1x162x160xf32> to vector<162x160xf32>
    %60 = vector.shape_cast %59 : vector<162x160xf32> to vector<1x162x160xf32>
    %61 = vector.broadcast %60 : vector<1x162x160xf32> to vector<8x162x160xf32>
    "tpu.trace_start"() <{level = 10 : i32, message = "bhk,bkn->bhn"}> : () -> ()
    %cst_24 = arith.constant dense<0.000000e+00> : vector<8x10x160xf32>
    %62 = tpu.matmul %57, %61, %cst_24 {dimension_numbers = #tpu.dot_dimension_numbers<[2], [1], [1], [2], [0, 0, 0, 1, 1, 2], [0], [0]>} : vector<8x10x162xf32>, vector<8x162x160xf32>, vector<8x10x160xf32> -> vector<8x10x160xf32>
    "tpu.trace_stop"() : () -> ()
    %63 = vector.extract_strided_slice %56 {offsets = [0, 1, 0], sizes = [8, 10, 162], strides = [1, 1, 1]} : vector<8x14x162xf32> to vector<8x10x162xf32>
    %c1_25 = arith.constant 1 : index
    %c0_26 = arith.constant 0 : index
    %c0_27 = arith.constant 0 : index
    %64 = vector.load %arg4[%c1_25, %c0_26, %c0_27] : memref<5x162x160xf32, #tpu.memory_space<vmem>>, vector<1x162x160xf32>
    %65 = vector.shape_cast %64 : vector<1x162x160xf32> to vector<162x160xf32>
    %66 = vector.shape_cast %65 : vector<162x160xf32> to vector<1x162x160xf32>
    %67 = vector.broadcast %66 : vector<1x162x160xf32> to vector<8x162x160xf32>
    "tpu.trace_start"() <{level = 10 : i32, message = "bhk,bkn->bhn"}> : () -> ()
    %cst_28 = arith.constant dense<0.000000e+00> : vector<8x10x160xf32>
    %68 = tpu.matmul %63, %67, %cst_28 {dimension_numbers = #tpu.dot_dimension_numbers<[2], [1], [1], [2], [0, 0, 0, 1, 1, 2], [0], [0]>} : vector<8x10x162xf32>, vector<8x162x160xf32>, vector<8x10x160xf32> -> vector<8x10x160xf32>
    "tpu.trace_stop"() : () -> ()
    %69 = arith.addf %62, %68 : vector<8x10x160xf32>
    %70 = vector.extract_strided_slice %56 {offsets = [0, 2, 0], sizes = [8, 10, 162], strides = [1, 1, 1]} : vector<8x14x162xf32> to vector<8x10x162xf32>
    %c2_29 = arith.constant 2 : index
    %c0_30 = arith.constant 0 : index
    %c0_31 = arith.constant 0 : index
    %71 = vector.load %arg4[%c2_29, %c0_30, %c0_31] : memref<5x162x160xf32, #tpu.memory_space<vmem>>, vector<1x162x160xf32>
    %72 = vector.shape_cast %71 : vector<1x162x160xf32> to vector<162x160xf32>
    %73 = vector.shape_cast %72 : vector<162x160xf32> to vector<1x162x160xf32>
    %74 = vector.broadcast %73 : vector<1x162x160xf32> to vector<8x162x160xf32>
    "tpu.trace_start"() <{level = 10 : i32, message = "bhk,bkn->bhn"}> : () -> ()
    %cst_32 = arith.constant dense<0.000000e+00> : vector<8x10x160xf32>
    %75 = tpu.matmul %70, %74, %cst_32 {dimension_numbers = #tpu.dot_dimension_numbers<[2], [1], [1], [2], [0, 0, 0, 1, 1, 2], [0], [0]>} : vector<8x10x162xf32>, vector<8x162x160xf32>, vector<8x10x160xf32> -> vector<8x10x160xf32>
    "tpu.trace_stop"() : () -> ()
    %76 = arith.addf %69, %75 : vector<8x10x160xf32>
    %77 = vector.extract_strided_slice %56 {offsets = [0, 3, 0], sizes = [8, 10, 162], strides = [1, 1, 1]} : vector<8x14x162xf32> to vector<8x10x162xf32>
    %c3_33 = arith.constant 3 : index
    %c0_34 = arith.constant 0 : index
    %c0_35 = arith.constant 0 : index
    %78 = vector.load %arg4[%c3_33, %c0_34, %c0_35] : memref<5x162x160xf32, #tpu.memory_space<vmem>>, vector<1x162x160xf32>
    %79 = vector.shape_cast %78 : vector<1x162x160xf32> to vector<162x160xf32>
    %80 = vector.shape_cast %79 : vector<162x160xf32> to vector<1x162x160xf32>
    %81 = vector.broadcast %80 : vector<1x162x160xf32> to vector<8x162x160xf32>
    "tpu.trace_start"() <{level = 10 : i32, message = "bhk,bkn->bhn"}> : () -> ()
    %cst_36 = arith.constant dense<0.000000e+00> : vector<8x10x160xf32>
    %82 = tpu.matmul %77, %81, %cst_36 {dimension_numbers = #tpu.dot_dimension_numbers<[2], [1], [1], [2], [0, 0, 0, 1, 1, 2], [0], [0]>} : vector<8x10x162xf32>, vector<8x162x160xf32>, vector<8x10x160xf32> -> vector<8x10x160xf32>
    "tpu.trace_stop"() : () -> ()
    %83 = arith.addf %76, %82 : vector<8x10x160xf32>
    %84 = vector.extract_strided_slice %56 {offsets = [0, 4, 0], sizes = [8, 10, 162], strides = [1, 1, 1]} : vector<8x14x162xf32> to vector<8x10x162xf32>
    %c4_37 = arith.constant 4 : index
    %c0_38 = arith.constant 0 : index
    %c0_39 = arith.constant 0 : index
    %85 = vector.load %arg4[%c4_37, %c0_38, %c0_39] : memref<5x162x160xf32, #tpu.memory_space<vmem>>, vector<1x162x160xf32>
    %86 = vector.shape_cast %85 : vector<1x162x160xf32> to vector<162x160xf32>
    %87 = vector.shape_cast %86 : vector<162x160xf32> to vector<1x162x160xf32>
    %88 = vector.broadcast %87 : vector<1x162x160xf32> to vector<8x162x160xf32>
    "tpu.trace_start"() <{level = 10 : i32, message = "bhk,bkn->bhn"}> : () -> ()
    %cst_40 = arith.constant dense<0.000000e+00> : vector<8x10x160xf32>
    %89 = tpu.matmul %84, %88, %cst_40 {dimension_numbers = #tpu.dot_dimension_numbers<[2], [1], [1], [2], [0, 0, 0, 1, 1, 2], [0], [0]>} : vector<8x10x162xf32>, vector<8x162x160xf32>, vector<8x10x160xf32> -> vector<8x10x160xf32>
    "tpu.trace_stop"() : () -> ()
    %90 = arith.addf %83, %89 : vector<8x10x160xf32>
    %c0_41 = arith.constant 0 : index
    %c0_42 = arith.constant 0 : index
    %91 = vector.load %arg5[%c0_41, %c0_42] : memref<1x160xf32, #tpu.memory_space<vmem>>, vector<1x160xf32>
    %92 = vector.shape_cast %91 : vector<1x160xf32> to vector<1x1x160xf32>
    %93 = vector.broadcast %92 : vector<1x1x160xf32> to vector<8x10x160xf32>
    %94 = arith.addf %90, %93 : vector<8x10x160xf32>
    %cst_43 = arith.constant 0.000000e+00 : f32
    %95 = vector.broadcast %cst_43 : f32 to vector<8x10x160xf32>
    %96 = arith.maximumf %94, %95 : vector<8x10x160xf32>
    %97 = vector.extract_strided_slice %96 {offsets = [0, 0, 0], sizes = [8, 10, 144], strides = [1, 1, 1]} : vector<8x10x160xf32> to vector<8x10x144xf32>
    %98 = vector.extract_strided_slice %96 {offsets = [0, 0, 16], sizes = [8, 10, 144], strides = [1, 1, 1]} : vector<8x10x160xf32> to vector<8x10x144xf32>
    %99 = arith.maximumf %97, %98 : vector<8x10x144xf32>
    %100 = vector.extract_strided_slice %99 {offsets = [0, 0, 0], sizes = [8, 9, 144], strides = [1, 1, 1]} : vector<8x10x144xf32> to vector<8x9x144xf32>
    %101 = vector.extract_strided_slice %99 {offsets = [0, 1, 0], sizes = [8, 9, 144], strides = [1, 1, 1]} : vector<8x10x144xf32> to vector<8x9x144xf32>
    %102 = arith.maximumf %100, %101 : vector<8x9x144xf32>
    %103 = tpu.iota {dimensions = array<i32: 0>} : vector<5x9xi32>
    %104 = tpu.iota {dimensions = array<i32: 1>} : vector<5x9xi32>
    %c2_i32_44 = arith.constant 2 : i32
    %105 = vector.broadcast %c2_i32_44 : i32 to vector<5x9xi32>
    %106 = arith.muli %105, %103 : vector<5x9xi32>
    %107 = arith.cmpi eq, %104, %106 : vector<5x9xi32>
    %108 = arith.extui %107 : vector<5x9xi1> to vector<5x9xi32>
    %109 = arith.sitofp %108 : vector<5x9xi32> to vector<5x9xf32>
    %110 = vector.shape_cast %109 : vector<5x9xf32> to vector<1x5x9xf32>
    %111 = vector.broadcast %110 : vector<1x5x9xf32> to vector<8x5x9xf32>
    "tpu.trace_start"() <{level = 10 : i32, message = "brh,bhn->brn"}> : () -> ()
    %cst_45 = arith.constant dense<0.000000e+00> : vector<8x5x144xf32>
    %112 = tpu.matmul %111, %102, %cst_45 {dimension_numbers = #tpu.dot_dimension_numbers<[2], [1], [1], [2], [0, 0, 0, 1, 1, 2], [0], [0]>} : vector<8x5x9xf32>, vector<8x9x144xf32>, vector<8x5x144xf32> -> vector<8x5x144xf32>
    "tpu.trace_stop"() : () -> ()
    %113 = vector.extract_strided_slice %112 {offsets = [0, 0, 0], sizes = [8, 1, 144], strides = [1, 1, 1]} : vector<8x5x144xf32> to vector<8x1x144xf32>
    %114 = vector.shape_cast %113 : vector<8x1x144xf32> to vector<8x144xf32>
    %c0_46 = arith.constant 0 : index
    %c0_47 = arith.constant 0 : index
    %c0_48 = arith.constant 0 : index
    %115 = vector.load %arg6[%c0_46, %c0_47, %c0_48] : memref<5x144x120xf32, #tpu.memory_space<vmem>>, vector<1x144x120xf32>
    %116 = vector.shape_cast %115 : vector<1x144x120xf32> to vector<144x120xf32>
    %cst_49 = arith.constant dense<0.000000e+00> : vector<8x120xf32>
    %117 = tpu.matmul %114, %116, %cst_49 {dimension_numbers = #tpu.dot_dimension_numbers<[1], [0], [0], [1], [0, 0, 1, 1], [], []>} : vector<8x144xf32>, vector<144x120xf32>, vector<8x120xf32> -> vector<8x120xf32>
    %118 = vector.extract_strided_slice %112 {offsets = [0, 1, 0], sizes = [8, 1, 144], strides = [1, 1, 1]} : vector<8x5x144xf32> to vector<8x1x144xf32>
    %119 = vector.shape_cast %118 : vector<8x1x144xf32> to vector<8x144xf32>
    %c1_50 = arith.constant 1 : index
    %c0_51 = arith.constant 0 : index
    %c0_52 = arith.constant 0 : index
    %120 = vector.load %arg6[%c1_50, %c0_51, %c0_52] : memref<5x144x120xf32, #tpu.memory_space<vmem>>, vector<1x144x120xf32>
    %121 = vector.shape_cast %120 : vector<1x144x120xf32> to vector<144x120xf32>
    %cst_53 = arith.constant dense<0.000000e+00> : vector<8x120xf32>
    %122 = tpu.matmul %119, %121, %cst_53 {dimension_numbers = #tpu.dot_dimension_numbers<[1], [0], [0], [1], [0, 0, 1, 1], [], []>} : vector<8x144xf32>, vector<144x120xf32>, vector<8x120xf32> -> vector<8x120xf32>
    %123 = arith.addf %117, %122 : vector<8x120xf32>
    %124 = vector.extract_strided_slice %112 {offsets = [0, 2, 0], sizes = [8, 1, 144], strides = [1, 1, 1]} : vector<8x5x144xf32> to vector<8x1x144xf32>
    %125 = vector.shape_cast %124 : vector<8x1x144xf32> to vector<8x144xf32>
    %c2_54 = arith.constant 2 : index
    %c0_55 = arith.constant 0 : index
    %c0_56 = arith.constant 0 : index
    %126 = vector.load %arg6[%c2_54, %c0_55, %c0_56] : memref<5x144x120xf32, #tpu.memory_space<vmem>>, vector<1x144x120xf32>
    %127 = vector.shape_cast %126 : vector<1x144x120xf32> to vector<144x120xf32>
    %cst_57 = arith.constant dense<0.000000e+00> : vector<8x120xf32>
    %128 = tpu.matmul %125, %127, %cst_57 {dimension_numbers = #tpu.dot_dimension_numbers<[1], [0], [0], [1], [0, 0, 1, 1], [], []>} : vector<8x144xf32>, vector<144x120xf32>, vector<8x120xf32> -> vector<8x120xf32>
    %129 = arith.addf %123, %128 : vector<8x120xf32>
    %130 = vector.extract_strided_slice %112 {offsets = [0, 3, 0], sizes = [8, 1, 144], strides = [1, 1, 1]} : vector<8x5x144xf32> to vector<8x1x144xf32>
    %131 = vector.shape_cast %130 : vector<8x1x144xf32> to vector<8x144xf32>
    %c3_58 = arith.constant 3 : index
    %c0_59 = arith.constant 0 : index
    %c0_60 = arith.constant 0 : index
    %132 = vector.load %arg6[%c3_58, %c0_59, %c0_60] : memref<5x144x120xf32, #tpu.memory_space<vmem>>, vector<1x144x120xf32>
    %133 = vector.shape_cast %132 : vector<1x144x120xf32> to vector<144x120xf32>
    %cst_61 = arith.constant dense<0.000000e+00> : vector<8x120xf32>
    %134 = tpu.matmul %131, %133, %cst_61 {dimension_numbers = #tpu.dot_dimension_numbers<[1], [0], [0], [1], [0, 0, 1, 1], [], []>} : vector<8x144xf32>, vector<144x120xf32>, vector<8x120xf32> -> vector<8x120xf32>
    %135 = arith.addf %129, %134 : vector<8x120xf32>
    %136 = vector.extract_strided_slice %112 {offsets = [0, 4, 0], sizes = [8, 1, 144], strides = [1, 1, 1]} : vector<8x5x144xf32> to vector<8x1x144xf32>
    %137 = vector.shape_cast %136 : vector<8x1x144xf32> to vector<8x144xf32>
    %c4_62 = arith.constant 4 : index
    %c0_63 = arith.constant 0 : index
    %c0_64 = arith.constant 0 : index
    %138 = vector.load %arg6[%c4_62, %c0_63, %c0_64] : memref<5x144x120xf32, #tpu.memory_space<vmem>>, vector<1x144x120xf32>
    %139 = vector.shape_cast %138 : vector<1x144x120xf32> to vector<144x120xf32>
    %cst_65 = arith.constant dense<0.000000e+00> : vector<8x120xf32>
    %140 = tpu.matmul %137, %139, %cst_65 {dimension_numbers = #tpu.dot_dimension_numbers<[1], [0], [0], [1], [0, 0, 1, 1], [], []>} : vector<8x144xf32>, vector<144x120xf32>, vector<8x120xf32> -> vector<8x120xf32>
    %141 = arith.addf %135, %140 : vector<8x120xf32>
    %c0_66 = arith.constant 0 : index
    %c0_67 = arith.constant 0 : index
    %142 = vector.load %arg7[%c0_66, %c0_67] : memref<1x120xf32, #tpu.memory_space<vmem>>, vector<1x120xf32>
    %143 = vector.broadcast %142 : vector<1x120xf32> to vector<8x120xf32>
    %144 = arith.addf %141, %143 : vector<8x120xf32>
    %cst_68 = arith.constant 0.000000e+00 : f32
    %145 = vector.broadcast %cst_68 : f32 to vector<8x120xf32>
    %146 = arith.maximumf %144, %145 : vector<8x120xf32>
    %c0_69 = arith.constant 0 : index
    %c0_70 = arith.constant 0 : index
    %147 = vector.load %arg8[%c0_69, %c0_70] : memref<120x84xf32, #tpu.memory_space<vmem>>, vector<120x84xf32>
    %cst_71 = arith.constant dense<0.000000e+00> : vector<8x84xf32>
    %148 = tpu.matmul %146, %147, %cst_71 {dimension_numbers = #tpu.dot_dimension_numbers<[1], [0], [0], [1], [0, 0, 1, 1], [], []>} : vector<8x120xf32>, vector<120x84xf32>, vector<8x84xf32> -> vector<8x84xf32>
    %c0_72 = arith.constant 0 : index
    %c0_73 = arith.constant 0 : index
    %149 = vector.load %arg9[%c0_72, %c0_73] : memref<1x84xf32, #tpu.memory_space<vmem>>, vector<1x84xf32>
    %150 = vector.broadcast %149 : vector<1x84xf32> to vector<8x84xf32>
    %151 = arith.addf %148, %150 : vector<8x84xf32>
    %cst_74 = arith.constant 0.000000e+00 : f32
    %152 = vector.broadcast %cst_74 : f32 to vector<8x84xf32>
    %153 = arith.maximumf %151, %152 : vector<8x84xf32>
    %c0_75 = arith.constant 0 : index
    %c0_76 = arith.constant 0 : index
    %154 = vector.load %arg10[%c0_75, %c0_76] : memref<84x10xf32, #tpu.memory_space<vmem>>, vector<84x10xf32>
    %cst_77 = arith.constant dense<0.000000e+00> : vector<8x10xf32>
    %155 = tpu.matmul %153, %154, %cst_77 {dimension_numbers = #tpu.dot_dimension_numbers<[1], [0], [0], [1], [0, 0, 1, 1], [], []>} : vector<8x84xf32>, vector<84x10xf32>, vector<8x10xf32> -> vector<8x10xf32>
    %c0_78 = arith.constant 0 : index
    %c0_79 = arith.constant 0 : index
    %156 = vector.load %arg11[%c0_78, %c0_79] : memref<1x10xf32, #tpu.memory_space<vmem>>, vector<1x10xf32>
    %157 = vector.broadcast %156 : vector<1x10xf32> to vector<8x10xf32>
    %158 = arith.addf %155, %157 : vector<8x10xf32>
    %c0_80 = arith.constant 0 : index
    %c0_81 = arith.constant 0 : index
    %159 = vector.load %arg12[%c0_80, %c0_81] : memref<8x10xf32, #tpu.memory_space<vmem>>, vector<8x10xf32>
    tpu.vector_store %arg12[%c0_80, %c0_81], %158 {strides = array<i32>} : memref<8x10xf32, #tpu.memory_space<vmem>>, vector<8x10xf32>,
    return
  }
  func.func @transform_0(%arg0: i32) -> (i32, i32, i32) {
    %c0_i32 = arith.constant 0 : i32
    %c0_i32_0 = arith.constant 0 : i32
    %c0_i32_1 = arith.constant 0 : i32
    return %arg0, %c0_i32, %c0_i32_0 : i32, i32, i32
  }
  func.func @transform_1(%arg0: i32) -> (i32, i32, i32) {
    %c0_i32 = arith.constant 0 : i32
    %c0_i32_0 = arith.constant 0 : i32
    %c0_i32_1 = arith.constant 0 : i32
    %c0_i32_2 = arith.constant 0 : i32
    return %c0_i32, %c0_i32_0, %c0_i32_1 : i32, i32, i32
  }
  func.func @transform_2(%arg0: i32) -> (i32, i32) {
    %c0_i32 = arith.constant 0 : i32
    %c0_i32_0 = arith.constant 0 : i32
    %c0_i32_1 = arith.constant 0 : i32
    return %c0_i32, %c0_i32_0 : i32, i32
  }
  func.func @transform_3(%arg0: i32) -> (i32, i32, i32) {
    %c0_i32 = arith.constant 0 : i32
    %c0_i32_0 = arith.constant 0 : i32
    %c0_i32_1 = arith.constant 0 : i32
    %c0_i32_2 = arith.constant 0 : i32
    return %c0_i32, %c0_i32_0, %c0_i32_1 : i32, i32, i32
  }
  func.func @transform_4(%arg0: i32) -> (i32, i32) {
    %c0_i32 = arith.constant 0 : i32
    %c0_i32_0 = arith.constant 0 : i32
    %c0_i32_1 = arith.constant 0 : i32
    return %c0_i32, %c0_i32_0 : i32, i32
  }
  func.func @transform_5(%arg0: i32) -> (i32, i32, i32) {
    %c0_i32 = arith.constant 0 : i32
    %c0_i32_0 = arith.constant 0 : i32
    %c0_i32_1 = arith.constant 0 : i32
    %c0_i32_2 = arith.constant 0 : i32
    return %c0_i32, %c0_i32_0, %c0_i32_1 : i32, i32, i32
  }
  func.func @transform_6(%arg0: i32) -> (i32, i32) {
    %c0_i32 = arith.constant 0 : i32
    %c0_i32_0 = arith.constant 0 : i32
    %c0_i32_1 = arith.constant 0 : i32
    return %c0_i32, %c0_i32_0 : i32, i32
  }
  func.func @transform_7(%arg0: i32) -> (i32, i32) {
    %c0_i32 = arith.constant 0 : i32
    %c0_i32_0 = arith.constant 0 : i32
    %c0_i32_1 = arith.constant 0 : i32
    return %c0_i32, %c0_i32_0 : i32, i32
  }
  func.func @transform_8(%arg0: i32) -> (i32, i32) {
    %c0_i32 = arith.constant 0 : i32
    %c0_i32_0 = arith.constant 0 : i32
    %c0_i32_1 = arith.constant 0 : i32
    return %c0_i32, %c0_i32_0 : i32, i32
  }
  func.func @transform_9(%arg0: i32) -> (i32, i32) {
    %c0_i32 = arith.constant 0 : i32
    %c0_i32_0 = arith.constant 0 : i32
    %c0_i32_1 = arith.constant 0 : i32
    return %c0_i32, %c0_i32_0 : i32, i32
  }
  func.func @transform_10(%arg0: i32) -> (i32, i32) {
    %c0_i32 = arith.constant 0 : i32
    %c0_i32_0 = arith.constant 0 : i32
    %c0_i32_1 = arith.constant 0 : i32
    return %c0_i32, %c0_i32_0 : i32, i32
  }
  func.func @transform_11(%arg0: i32) -> (i32, i32) {
    %c0_i32 = arith.constant 0 : i32
    %c0_i32_0 = arith.constant 0 : i32
    return %arg0, %c0_i32 : i32, i32
  }
}

</mosaic_0001>

<bundles_post_ra>
// kernel: scnn_forward.1
= control target key start
LH: loop header
LB: loop body
LE: loop exit
PB: predicated region body
PF: predicated region fallthrough
CT: control target
= control target key end

     0   :  { %s21939_s0 = inlined_call_operand.vmem [shape: f32[16,32,96], index: 0, kind: input, shape index: {}]   ;;  %s21940_s1 = inlined_call_operand.vmem [shape: f32[5,96,168], index: 1, kind: input, shape index: {}]   ;;  %s21941_s2 = inlined_call_operand.vmem [shape: f32[1,168], index: 2, kind: input, shape index: {}]   ;;  %s21942_s3 = inlined_call_operand.vmem [shape: f32[5,162,160], index: 3, kind: input, shape index: {}]   ;;  %s21943_s4 = inlined_call_operand.vmem [shape: f32[1,160], index: 4, kind: input, shape index: {}]   ;;  %s21944_s5 = inlined_call_operand.vmem [shape: f32[5,144,120], index: 5, kind: input, shape index: {}]   ;;  %s21945_s6 = inlined_call_operand.vmem [shape: f32[1,120], index: 6, kind: input, shape index: {}]   ;;  %s21946_s7 = inlined_call_operand.vmem [shape: f32[120,84], index: 7, kind: input, shape index: {}]   ;;  %s21947_s8 = inlined_call_operand.vmem [shape: f32[1,84], index: 8, kind: input, shape index: {}]   ;;  %s21948_s9 = inlined_call_operand.vmem [shape: f32[84,10], index: 9, kind: input, shape index: {}]   ;;  %s21949_s10 = inlined_call_operand.vmem [shape: f32[1,10], index: 10, kind: input, shape index: {}]   ;;  %s21950_s11 = inlined_call_operand.hbm [shape: f32[16,10], index: 11, kind: output, shape index: {}]  }
   0x1   :  { %22161 = sst [smem:[#allocation123_spill]] %s21939_s0 }
   0x2   :  { %22162 = sst [smem:[#allocation124_spill]] %s21940_s1 }
   0x3   :  { %16 = vsyncpa [#allocation3], 0 }
   0x4   :  { %18 = vsyncpa [#allocation3 + $0x1], 0  ;;  %s13208_s17 = smov 0   ;;  %s13210_s18 = smov 0  }
   0x5   :  { %s13212_s19 = smov 0   ;;  %s13214_s20 = smov 0  }
   0x6 LB: > { %s13229_s21 = sadd.s32 4294967295, %s13141_s20   ;;  %s12150_s22 = sadd.s32 4294967294, %s13141_s20   ;;  %s13141_s20 = sphi %s13214_s20, %s22964_s20   ;;  %s13137_s19 = sphi %s13212_s19, %s22963_s19   ;;  %s13133_s18 = sphi %s13210_s18, %s22962_s18   ;;  %s13129_s17 = sphi %s13208_s17, %s22961_s17  }
   0x7   : > { %s13233_s23 = sadd.s32 1, %s13141_s20   ;;  %s267_s24 = sadd.s32 1, %s13137_s19 }
   0x8   : > { %s264_s25 = ssub.s32 %s13141_s20, %s13233_s23  ;;  %p277_p0 = scmp.ne.s32.totalorder %s13137_s19, %s13133_s18 }
   0x9   : > { %p265_p1 = scmp.eq.s32.totalorder %s264_s25, 0  ;;  %p278_p2 = scmp.eq.s32.totalorder %s13229_s21, 1 }
   0xa   : > { %p283_p3 = scmp.ne.s32.totalorder %s13133_s18, %s13129_s17  ;;  %p284_p4 = scmp.eq.s32.totalorder %s12150_s22, 1 }
   0xb   : > { %s13244_s26 = scalar_select %p265_p1, %s13137_s19, %s267_s24  }
   0xc   : > { %p13246_p5 = por %p278_p2, %p277_p0  ;;  %p13250_p6 = por %p284_p4, %p283_p3 }
   0xd   : > { %p12153_p7 = scmp.ge.s32.totalorder %s13141_s20, 1  ;;  %p342_p8 = scmp.lt.s32.totalorder %s13141_s20, 3 }
   0xf   : > { %p343_p9 = pnand %p12153_p7, %p342_p8 }
  0x11   : > { %346 = sbr.rel (%p343_p9) target bundleno = 3211 (0xc8b), region = 64 }
  0x16   : > { %s22165_s1 = sld [smem:[#allocation124_spill]]  ;;  %s12155_s16 = sshll.u32 %s13229_s21, 3  ;;  %vm475_vm0 = vcmask 1046528   ;;  %vm483_vm1 = vcmask 785408   ;;  %v21951_v33 = vmov 0.0   ;;  %vm2138_vm2 = vcmask 1045504  }
  0x17   : > { %p384_p10 = scmp.lt.s32.totalorder %s12155_s16, 15  ;;  %s22166_s0 = sld [smem:[#allocation123_spill]]  ;;  %556 = vmatprep.mubr.f32.mxu0 %v21951_v33  ;;  %664 = vmatprep.mubr.f32.mxu1 %v21951_v33  ;;  %vm3060_vm3 = vcmask 1044480   ;;  %vm3982_vm4 = vcmask 1043456   ;;  %vm5211_vm5 = vcmask 998400   ;;  %vm5696_vm6 = vcmask 1042432  }
  0x18   : > { %s13144_s30 = smov 122   ;;  %vm5689_vm8 = vcmask 220160   ;;  %vm6463_vm10 = vcmask 1041408   ;;  %vm6458_vm11 = vcmask 277504   ;;  %s13145_s13 = smov 112   ;;  %vm10403_vm12 = vcmask 916480  }
  0x19   : > { %s22966_s16 = smov (!%p384_p10, %s12155_s16), 15  ;;  %vm10631_vm13 = vcmask 1040384   ;;  %vm10628_vm14 = vcmask 72704   ;;  %vm11302_vm15 = vcmask 1041409   ;;  %s12884_s14 = sshll.u32 %s13229_s21, 7 }
  0x1a   : > { %s12887_s22 = sshll.u32 %s22966_s16, 5  ;;  %s13147_s21 = smov [#allocation2]  }
  0x1c   : > { %v13259_v0 = vld [vmem:[%s22165_s1 + $0x178] sm:$0xff]  ;;  %v13264_v1 = vld [vmem:[%s22165_s1 + $0x170] sm:$0xff]  ;;  %v13269_v2 = vld [vmem:[%s22165_s1 + $0x168] sm:$0xff] }
  0x1d   : > { %500 = vmatprep.subr.mxu0 %v13259_v0  ;;  %608 = vmatprep.subr.mxu1 %v13259_v0  ;;  %v13277_v3 = vld [vmem:[%s22165_s1 + $0x160] sm:$0xff]  ;;  %v13284_v4 = vld [vmem:[%s22165_s1 + $0x158] sm:$0xff]  ;;  %v13291_v5 = vld [vmem:[%s22165_s1 + $0x150] sm:$0xff]  ;;  %s13359_s15 = scalar_lea.vmem %s22166_s0, %s12887_s22  ;;  %s21904_s22 = scalar_lea.hbm %s21950_s11, %s12884_s14 }
  0x1e   : > { %501 = vmatpush1.msra.mxu0 %v13264_v1  ;;  %609 = vmatpush1.msra.mxu1 %v13264_v1  ;;  %v13298_v6 = vld [vmem:[%s22165_s1 + $0x148] sm:$0xff]  ;;  %v13305_v7 = vld [vmem:[%s22165_s1 + $0x140] sm:$0xff]  ;;  %v13312_v8 = vld [vmem:[%s22165_s1 + $0x138] sm:$0xff] }
  0x1f   : > { %502 = vmatprep.subr.mxu0 %v13269_v2  ;;  %610 = vmatprep.subr.mxu1 %v13269_v2  ;;  %v13319_v9 = vld [vmem:[%s22165_s1 + $0x130] sm:$0xff]  ;;  %v13326_v10 = vld [vmem:[%s22165_s1 + $0x128] sm:$0xff]  ;;  %v13333_v11 = vld [vmem:[%s22165_s1 + $0x120] sm:$0xff] }
  0x20   : > { %503 = vmatpush1.msra.mxu0 %v13277_v3  ;;  %611 = vmatpush1.msra.mxu1 %v13277_v3  ;;  %v13340_v12 = vld [vmem:[%s22165_s1 + $0x118] sm:$0xff]  ;;  %v13347_v13 = vld [vmem:[%s22165_s1 + $0x110] sm:$0xff]  ;;  %v13354_v14 = vld [vmem:[%s22165_s1 + $0x108] sm:$0xff] }
  0x21   : > { %504 = vmatprep.subr.mxu0 %v13284_v4  ;;  %612 = vmatprep.subr.mxu1 %v13284_v4  ;;  %v13366_v15 = vld [vmem:[%s22165_s1 + $0x100] sm:$0xff]  ;;  %v13373_v16 = vld [vmem:[%s22165_s1 + $0xf8] sm:$0xff]  ;;  %v13380_v17 = vld [vmem:[%s22165_s1 + $0xf0] sm:$0xff] }
  0x22   : > { %505 = vmatpush1.msra.mxu0 %v13291_v5  ;;  %613 = vmatpush1.msra.mxu1 %v13291_v5  ;;  %v13383_v18 = vld [vmem:[%s13359_s15] sm:$0xff]  ;;  %v13386_v19 = vld [vmem:[%s13359_s15 + $0x8] sm:$0xff]  ;;  %v13413_v24 = vld [vmem:[%s22165_s1 + $0xd8] sm:$0xff] }
  0x23   : > { %506 = vmatprep.subr.mxu0 %v13298_v6  ;;  %614 = vmatprep.subr.mxu1 %v13298_v6  ;;  %v13393_v20 = vld [vmem:[%s22165_s1 + $0xe8] sm:$0xff]  ;;  %v13400_v21 = vld [vmem:[%s22165_s1 + $0xe0] sm:$0xff]  ;;  %v476_v25 = vrot.slane %v13383_v18, 1  ;;  %v477_v26 = vrot.slane %v13386_v19, 1  ;;  %v13422_v27 = vld [vmem:[%s22165_s1 + $0xd0] sm:$0xff] }
  0x24   : > { %507 = vmatpush1.msra.mxu0 %v13305_v7  ;;  %615 = vmatpush1.msra.mxu1 %v13305_v7  ;;  %v13403_v22 = vld [vmem:[%s13359_s15 + $0x20] sm:$0xff]  ;;  %v13406_v23 = vld [vmem:[%s13359_s15 + $0x28] sm:$0xff]  ;;  %v13457_v35 = vld [vmem:[%s13359_s15 + $0x10] sm:$0xff] }
  0x25   : > { %508 = vmatprep.subr.mxu0 %v13312_v8  ;;  %616 = vmatprep.subr.mxu1 %v13312_v8  ;;  %v13429_v28 = vld [vmem:[%s22165_s1 + $0xc8] sm:$0xff]  ;;  %v585_v29 = vrot.slane %v13403_v22, 1  ;;  %v586_v30 = vrot.slane %v13406_v23, 1  ;;  %v13438_v31 = vld [vmem:[%s22165_s1 + $0xc0] sm:$0xff]  ;;  %v478_v32 = vsel %vm475_vm0, %v476_v25, %v477_v26  ;;  %v479_v36 = vrot.slane %v13457_v35, 1  ;;  %v13467_v37 = vld [vmem:[%s13359_s15 + $0x30] sm:$0xff] }
  0x26   : > { %509 = vmatpush1.msra.mxu0 %v13319_v9  ;;  %617 = vmatpush1.msra.mxu1 %v13319_v9  ;;  %v588_v38 = vrot.slane %v13467_v37, 1  ;;  %v13477_v39 = vld [vmem:[%s13359_s15 + $0x18] sm:$0xff]  ;;  %v13515_v47 = vld [vmem:[%s13359_s15 + $0x40] sm:$0xff]  ;;  %v13518_v48 = vld [vmem:[%s13359_s15 + $0x48] sm:$0xff] }
  0x27   : > { %510 = vmatprep.subr.mxu0 %v13326_v10  ;;  %618 = vmatprep.subr.mxu1 %v13326_v10  ;;  %v587_v34 = vsel %vm475_vm0, %v585_v29, %v586_v30  ;;  %v480_v40 = vsel %vm475_vm0, %v477_v26, %v479_v36  ;;  %v481_v41 = vrot.slane %v13477_v39, 1  ;;  %v13488_v42 = vld [vmem:[%s13359_s15 + $0x38] sm:$0xff]  ;;  %v13525_v49 = vld [vmem:[%s13359_s15 + $0x60] sm:$0xff]  ;;  %v13528_v50 = vld [vmem:[%s13359_s15 + $0x68] sm:$0xff]  ;;  %v693_v51 = vrot.slane %v13515_v47, 1 }
  0x28   : > { %511 = vmatpush1.msra.mxu0 %v13333_v11  ;;  %619 = vmatpush1.msra.mxu1 %v13333_v11  ;;  %v589_v43 = vsel %vm475_vm0, %v586_v30, %v588_v38  ;;  %v590_v44 = vrot.slane %v13488_v42, 1  ;;  %v694_v52 = vrot.slane %v13518_v48, 1  ;;  %v801_v53 = vrot.slane %v13525_v49, 1  ;;  %v13559_v57 = vld [vmem:[%s13359_s15 + $0x50] sm:$0xff]  ;;  %v13579_v61 = vld [vmem:[%s13359_s15 + $0x58] sm:$0xff] }
  0x29   : > { %512 = vmatprep.subr.mxu0 %v13340_v12  ;;  %620 = vmatprep.subr.mxu1 %v13340_v12  ;;  %v482_v45 = vsel %vm475_vm0, %v479_v36, %v481_v41  ;;  %v802_v54 = vrot.slane %v13528_v50, 1  ;;  %v696_v58 = vrot.slane %v13559_v57, 1  ;;  %v13569_v59 = vld [vmem:[%s13359_s15 + $0x70] sm:$0xff]  ;;  %v698_v63 = vrot.slane %v13579_v61, 1  ;;  %v13590_v25 = vld [vmem:[%s13359_s15 + $0x78] sm:$0xff]  ;;  %v13620_v36 = vld [vmem:[%s13359_s15 + $0x88] sm:$0xff] }
  0x2a   : > { %513 = vmatpush1.msra.mxu0 %v13347_v13  ;;  %621 = vmatpush1.msra.mxu1 %v13347_v13  ;;  %v591_v46 = vsel %vm475_vm0, %v588_v38, %v590_v44  ;;  %v695_v55 = vsel %vm475_vm0, %v693_v51, %v694_v52  ;;  %v804_v60 = vrot.slane %v13569_v59, 1  ;;  %v806_v29 = vrot.slane %v13590_v25, 1  ;;  %v13627_v38 = vld [vmem:[%s13359_s15 + $0xa0] sm:$0xff] }
  0x2b   : > { %514 = vmatprep.subr.mxu0 %v13354_v14  ;;  %622 = vmatprep.subr.mxu1 %v13354_v14  ;;  %v803_v56 = vsel %vm475_vm0, %v801_v53, %v802_v54  ;;  %v697_v62 = vsel %vm475_vm0, %v694_v52, %v696_v58  ;;  %v699_v30 = vsel %vm475_vm0, %v696_v58, %v698_v63  ;;  %v13661_v52 = vld [vmem:[%s13359_s15 + $0x90] sm:$0xff]  ;;  %v13802_v58 = vld [vmem:[%s22165_s1 + $0x88] sm:$0xff] }
  0x2c   : > { %515 = vmatpush1.msra.mxu0 %v13366_v15  ;;  %623 = vmatpush1.msra.mxu1 %v13366_v15  ;;  %v805_v26 = vsel %vm475_vm0, %v802_v54, %v804_v60  ;;  %v13671_v53 = vld [vmem:[%s13359_s15 + $0xb0] sm:$0xff]  ;;  %v13785_v54 = vld [vmem:[%s22165_s1 + $0x98] sm:$0xff] }
  0x2d   : > { %516 = vmatprep.subr.mxu0 %v13373_v16  ;;  %624 = vmatprep.subr.mxu1 %v13373_v16 }
  0x2e   : > { %517 = vmatpush1.msra.mxu0 %v13380_v17  ;;  %625 = vmatpush1.msra.mxu1 %v13380_v17 }
  0x2f   : > { %518 = vmatprep.subr.mxu0 %v13393_v20  ;;  %626 = vmatprep.subr.mxu1 %v13393_v20 }
  0x30   : > { %519 = vmatpush1.msra.mxu0 %v13400_v21  ;;  %627 = vmatpush1.msra.mxu1 %v13400_v21 }
  0x31   : > { %520 = vmatprep.subr.mxu0 %v13413_v24  ;;  %628 = vmatprep.subr.mxu1 %v13413_v24 }
  0x32   : > { %521 = vmatpush1.msra.mxu0 %v13422_v27  ;;  %629 = vmatpush1.msra.mxu1 %v13422_v27 }
  0x33   : > { %522 = vmatprep.subr.mxu0 %v13429_v28  ;;  %630 = vmatprep.subr.mxu1 %v13429_v28 }
  0x34   : > { %523 = vmatpush1.msra.mxu0 %v13438_v31  ;;  %631 = vmatpush1.msra.mxu1 %v13438_v31 }
  0x35   : > { %12182 = vmatmul.mubr.msk.f32.vlgmr.msra.gmra.mxu0 %vm483_vm1, %v478_v32  ;;  %716 = vmatprep.subr.mxu0 %v13259_v0  ;;  %v807_v32 = vsel %vm475_vm0, %v804_v60, %v806_v29  ;;  %v13809_v60 = vld [vmem:[%s22165_s1 + $0x80] sm:$0xff] }
  0x36   : > { %824 = vmatprep.subr.mxu1 %v13259_v0  ;;  %12186 = vmatmul.mubr.msk.f32.vlgmr.msra.gmra.mxu1 %vm483_vm1, %v587_v34  ;;  %v13617_v34 = vld [vmem:[%s13359_s15 + $0x80] sm:$0xff] }
  0x37   : > { %717 = vmatpush1.msra.mxu0 %v13264_v1  ;;  %825 = vmatpush1.msra.mxu1 %v13264_v1 }
  0x38   : > { %718 = vmatprep.subr.mxu0 %v13269_v2  ;;  %826 = vmatprep.subr.mxu1 %v13269_v2 }
  0x39   : > { %719 = vmatpush1.msra.mxu0 %v13277_v3  ;;  %827 = vmatpush1.msra.mxu1 %v13277_v3 }
  0x3a   : > { %720 = vmatprep.subr.mxu0 %v13284_v4  ;;  %828 = vmatprep.subr.mxu1 %v13284_v4 }
  0x3b   : > { %721 = vmatpush1.msra.mxu0 %v13291_v5  ;;  %829 = vmatpush1.msra.mxu1 %v13291_v5 }
  0x3c   : > { %722 = vmatprep.subr.mxu0 %v13298_v6  ;;  %830 = vmatprep.subr.mxu1 %v13298_v6 }
  0x3d   : > { %723 = vmatpush1.msra.mxu0 %v13305_v7  ;;  %831 = vmatpush1.msra.mxu1 %v13305_v7 }
  0x3e   : > { %724 = vmatprep.subr.mxu0 %v13312_v8  ;;  %832 = vmatprep.subr.mxu1 %v13312_v8 }
  0x3f   : > { %725 = vmatpush1.msra.mxu0 %v13319_v9  ;;  %833 = vmatpush1.msra.mxu1 %v13319_v9 }
  0x40   : > { %562 = vmatprep.mubr.f32.mxu0 %v21951_v33  ;;  %726 = vmatprep.subr.mxu0 %v13326_v10 }
  0x41   : > { %834 = vmatprep.subr.mxu1 %v13326_v10  ;;  %12183 = vmatmul.mubr.msk.f32.gmra.mxu0 %vm483_vm1, %v480_v40  ;;  %v13630_v40 = vld [vmem:[%s13359_s15 + $0xa8] sm:$0xff] }
  0x42   : > { %727 = vmatpush1.msra.mxu0 %v13333_v11  ;;  %835 = vmatpush1.msra.mxu1 %v13333_v11 }
  0x43   : > { %670 = vmatprep.mubr.f32.mxu1 %v21951_v33  ;;  %728 = vmatprep.subr.mxu0 %v13340_v12 }
  0x44   : > { %836 = vmatprep.subr.mxu1 %v13340_v12  ;;  %12187 = vmatmul.mubr.msk.f32.gmra.mxu1 %vm483_vm1, %v589_v43  ;;  %v910_v43 = vrot.slane %v13620_v36, 1 }
  0x45   : > { %729 = vmatpush1.msra.mxu0 %v13347_v13  ;;  %837 = vmatpush1.msra.mxu1 %v13347_v13 }
  0x46   : > { %568 = vmatprep.mubr.f32.mxu0 %v21951_v33  ;;  %730 = vmatprep.subr.mxu0 %v13354_v14 }
  0x47   : > { %838 = vmatprep.subr.mxu1 %v13354_v14  ;;  %12184 = vmatmul.mubr.msk.f32.gmra.mxu0 %vm483_vm1, %v482_v45  ;;  %v1018_v45 = vrot.slane %v13630_v40, 1 }
  0x48   : > { %731 = vmatpush1.msra.mxu0 %v13366_v15  ;;  %839 = vmatpush1.msra.mxu1 %v13366_v15 }
  0x49   : > { %676 = vmatprep.mubr.f32.mxu1 %v21951_v33  ;;  %732 = vmatprep.subr.mxu0 %v13373_v16 }
  0x4a   : > { %840 = vmatprep.subr.mxu1 %v13373_v16  ;;  %12188 = vmatmul.mubr.msk.f32.gmra.mxu1 %vm483_vm1, %v591_v46 }
  0x4b   : > { %733 = vmatpush1.msra.mxu0 %v13380_v17  ;;  %841 = vmatpush1.msra.mxu1 %v13380_v17 }
  0x4c   : > { %574 = vmatprep.mubr.f32.mxu0 %v21951_v33  ;;  %734 = vmatprep.subr.mxu0 %v13393_v20 }
  0x4d   : > { %842 = vmatprep.subr.mxu1 %v13393_v20  ;;  %12185 = vmatmul.mubr.msk.f32.gmra.mxu0 %vm483_vm1, %v481_v41  ;;  %v909_v41 = vrot.slane %v13617_v34, 1 }
  0x4e   : > { %735 = vmatpush1.msra.mxu0 %v13400_v21  ;;  %843 = vmatpush1.msra.mxu1 %v13400_v21 }
  0x4f   : > { %682 = vmatprep.mubr.f32.mxu1 %v21951_v33  ;;  %736 = vmatprep.subr.mxu0 %v13413_v24  ;;  %v911_v46 = vsel %vm475_vm0, %v909_v41, %v910_v43  ;;  %v13838_v41 = vld [vmem:[%s13359_s15 + $0xd8] sm:$0xff] }
  0x50   : > { %844 = vmatprep.subr.mxu1 %v13413_v24  ;;  %12189 = vmatmul.mubr.msk.f32.gmra.mxu1 %vm483_vm1, %v590_v44  ;;  %v1017_v44 = vrot.slane %v13627_v38, 1 }
  0x51   : > { %737 = vmatpush1.msra.mxu0 %v13422_v27  ;;  %845 = vmatpush1.msra.mxu1 %v13422_v27 }
  0x52   : > { %738 = vmatprep.subr.mxu0 %v13429_v28  ;;  %846 = vmatprep.subr.mxu1 %v13429_v28  ;;  %v1019_v51 = vsel %vm475_vm0, %v1017_v44, %v1018_v45  ;;  %v13848_v44 = vld [vmem:[%s22165_s1 + $0x60] sm:$0xff] }
  0x53   : > { %739 = vmatpush1.msra.mxu0 %v13438_v31  ;;  %772 = vmatprep.mubr.f32.mxu0 %v21951_v33 }
  0x54   : > { %847 = vmatpush1.msra.mxu1 %v13438_v31  ;;  %12190 = vmatmul.mubr.msk.f32.vlgmr.msra.gmra.mxu0 %vm483_vm1, %v695_v55  ;;  %v13788_v55 = vld [vmem:[%s13359_s15 + $0xd0] sm:$0xff] }
  0x55   : > { %880 = vmatprep.mubr.f32.mxu1 %v21951_v33  ;;  %932 = vmatprep.subr.mxu0 %v13259_v0 }
  0x56   : > { %1040 = vmatprep.subr.mxu1 %v13259_v0  ;;  %12194 = vmatmul.mubr.msk.f32.vlgmr.msra.gmra.mxu1 %vm483_vm1, %v803_v56  ;;  %v13795_v56 = vld [vmem:[%s22165_s1 + $0x90] sm:$0xff] }
  0x57   : > { %933 = vmatpush1.msra.mxu0 %v13264_v1  ;;  %1041 = vmatpush1.msra.mxu1 %v13264_v1 }
  0x58   : > { %934 = vmatprep.subr.mxu0 %v13269_v2  ;;  %1042 = vmatprep.subr.mxu1 %v13269_v2 }
  0x59   : > { %935 = vmatpush1.msra.mxu0 %v13277_v3  ;;  %1043 = vmatpush1.msra.mxu1 %v13277_v3 }
  0x5a   : > { %936 = vmatprep.subr.mxu0 %v13284_v4  ;;  %1044 = vmatprep.subr.mxu1 %v13284_v4 }
  0x5b   : > { %937 = vmatpush1.msra.mxu0 %v13291_v5  ;;  %1045 = vmatpush1.msra.mxu1 %v13291_v5 }
  0x5c   : > { %938 = vmatprep.subr.mxu0 %v13298_v6  ;;  %1046 = vmatprep.subr.mxu1 %v13298_v6 }
  0x5d   : > { %939 = vmatpush1.msra.mxu0 %v13305_v7  ;;  %1047 = vmatpush1.msra.mxu1 %v13305_v7 }
  0x5e   : > { %940 = vmatprep.subr.mxu0 %v13312_v8  ;;  %1048 = vmatprep.subr.mxu1 %v13312_v8 }
  0x5f   : > { %941 = vmatpush1.msra.mxu0 %v13319_v9  ;;  %1049 = vmatpush1.msra.mxu1 %v13319_v9 }
  0x60   : > { %778 = vmatprep.mubr.f32.mxu0 %v21951_v33  ;;  %942 = vmatprep.subr.mxu0 %v13326_v10 }
  0x61   : > { %1050 = vmatprep.subr.mxu1 %v13326_v10  ;;  %12191 = vmatmul.mubr.msk.f32.gmra.mxu0 %vm483_vm1, %v697_v62  ;;  %v1128_v62 = vrot.slane %v13788_v55, 1 }
  0x62   : > { %943 = vmatpush1.msra.mxu0 %v13333_v11  ;;  %1051 = vmatpush1.msra.mxu1 %v13333_v11 }
  0x63   : > { %886 = vmatprep.mubr.f32.mxu1 %v21951_v33  ;;  %944 = vmatprep.subr.mxu0 %v13340_v12 }
  0x64   : > { %1052 = vmatprep.subr.mxu1 %v13340_v12  ;;  %12195 = vmatmul.mubr.msk.f32.gmra.mxu1 %vm483_vm1, %v805_v26  ;;  %v13820_v26 = vld [vmem:[%s22165_s1 + $0x78] sm:$0xff] }
  0x65   : > { %945 = vmatpush1.msra.mxu0 %v13347_v13  ;;  %1053 = vmatpush1.msra.mxu1 %v13347_v13 }
  0x66   : > { %784 = vmatprep.mubr.f32.mxu0 %v21951_v33  ;;  %946 = vmatprep.subr.mxu0 %v13354_v14 }
  0x67   : > { %1054 = vmatprep.subr.mxu1 %v13354_v14  ;;  %12192 = vmatmul.mubr.msk.f32.gmra.mxu0 %vm483_vm1, %v699_v30  ;;  %v13834_v30 = vld [vmem:[%s22165_s1 + $0x68] sm:$0xff] }
  0x68   : > { %947 = vmatpush1.msra.mxu0 %v13366_v15  ;;  %1055 = vmatpush1.msra.mxu1 %v13366_v15 }
  0x69   : > { %892 = vmatprep.mubr.f32.mxu1 %v21951_v33  ;;  %948 = vmatprep.subr.mxu0 %v13373_v16 }
  0x6a   : > { %1056 = vmatprep.subr.mxu1 %v13373_v16  ;;  %12196 = vmatmul.mubr.msk.f32.gmra.mxu1 %vm483_vm1, %v807_v32 }
  0x6b   : > { %949 = vmatpush1.msra.mxu0 %v13380_v17  ;;  %1057 = vmatpush1.msra.mxu1 %v13380_v17 }
  0x6c   : > { %790 = vmatprep.mubr.f32.mxu0 %v21951_v33  ;;  %950 = vmatprep.subr.mxu0 %v13393_v20 }
  0x6d   : > { %1058 = vmatprep.subr.mxu1 %v13393_v20  ;;  %12193 = vmatmul.mubr.msk.f32.gmra.mxu0 %vm483_vm1, %v698_v63  ;;  %v13813_v63 = vld [vmem:[%s13359_s15 + $0xf0] sm:$0xff] }
  0x6e   : > { %951 = vmatpush1.msra.mxu0 %v13400_v21  ;;  %1059 = vmatpush1.msra.mxu1 %v13400_v21  ;;  %v1236_v32 = vrot.slane %v13813_v63, 1 }
  0x6f   : > { %898 = vmatprep.mubr.f32.mxu1 %v21951_v33  ;;  %952 = vmatprep.subr.mxu0 %v13413_v24 }
  0x70   : > { %1060 = vmatprep.subr.mxu1 %v13413_v24  ;;  %12197 = vmatmul.mubr.msk.f32.gmra.mxu1 %vm483_vm1, %v806_v29  ;;  %v13827_v29 = vld [vmem:[%s22165_s1 + $0x70] sm:$0xff] }
  0x71   : > { %953 = vmatpush1.msra.mxu0 %v13422_v27  ;;  %1061 = vmatpush1.msra.mxu1 %v13422_v27 }
  0x72   : > { %954 = vmatprep.subr.mxu0 %v13429_v28  ;;  %1062 = vmatprep.subr.mxu1 %v13429_v28 }
  0x73   : > { %955 = vmatpush1.msra.mxu0 %v13438_v31  ;;  %988 = vmatprep.mubr.f32.mxu0 %v21951_v33 }
  0x74   : > { %1063 = vmatpush1.msra.mxu1 %v13438_v31  ;;  %12198 = vmatmul.mubr.msk.f32.vlgmr.msra.gmra.mxu0 %vm483_vm1, %v911_v46  ;;  %v1130_v46 = vrot.slane %v13838_v41, 1 }
  0x75   : > { %1096 = vmatprep.mubr.f32.mxu1 %v21951_v33  ;;  %1148 = vmatprep.subr.mxu0 %v13259_v0 }
  0x76   : > { %1256 = vmatprep.subr.mxu1 %v13259_v0  ;;  %12202 = vmatmul.mubr.msk.f32.vlgmr.msra.gmra.mxu1 %vm483_vm1, %v1019_v51  ;;  %v912_v0 = vrot.slane %v13661_v52, 1  ;;  %v13859_v51 = vld [vmem:[%s13359_s15 + $0xf8] sm:$0xff] }
  0x77   : > { %1149 = vmatpush1.msra.mxu0 %v13264_v1  ;;  %1257 = vmatpush1.msra.mxu1 %v13264_v1  ;;  %v1020_v1 = vrot.slane %v13671_v53, 1 }
  0x78   : > { %1150 = vmatprep.subr.mxu0 %v13269_v2  ;;  %1258 = vmatprep.subr.mxu1 %v13269_v2  ;;  %v13681_v2 = vld [vmem:[%s13359_s15 + $0x98] sm:$0xff] }
  0x79   : > { %1151 = vmatpush1.msra.mxu0 %v13277_v3  ;;  %1259 = vmatpush1.msra.mxu1 %v13277_v3  ;;  %v913_v3 = vsel %vm475_vm0, %v910_v43, %v912_v0 }
  0x7a   : > { %1152 = vmatprep.subr.mxu0 %v13284_v4  ;;  %1260 = vmatprep.subr.mxu1 %v13284_v4  ;;  %v914_v4 = vrot.slane %v13681_v2, 1 }
  0x7b   : > { %1153 = vmatpush1.msra.mxu0 %v13291_v5  ;;  %1261 = vmatpush1.msra.mxu1 %v13291_v5  ;;  %v13692_v5 = vld [vmem:[%s13359_s15 + $0xb8] sm:$0xff] }
  0x7c   : > { %1154 = vmatprep.subr.mxu0 %v13298_v6  ;;  %1262 = vmatprep.subr.mxu1 %v13298_v6  ;;  %v1021_v6 = vsel %vm475_vm0, %v1018_v45, %v1020_v1  ;;  %v13855_v45 = vld [vmem:[%s22165_s1 + $0x58] sm:$0xff] }
  0x7d   : > { %1155 = vmatpush1.msra.mxu0 %v13305_v7  ;;  %1263 = vmatpush1.msra.mxu1 %v13305_v7  ;;  %v1022_v7 = vrot.slane %v13692_v5, 1 }
  0x7e   : > { %1156 = vmatprep.subr.mxu0 %v13312_v8  ;;  %1264 = vmatprep.subr.mxu1 %v13312_v8  ;;  %v915_v8 = vsel %vm475_vm0, %v912_v0, %v914_v4 }
  0x7f   : > { %1157 = vmatpush1.msra.mxu0 %v13319_v9  ;;  %1265 = vmatpush1.msra.mxu1 %v13319_v9  ;;  %v1023_v9 = vsel %vm475_vm0, %v1020_v1, %v1022_v7  ;;  %v13869_v1 = vld [vmem:[%s22165_s1 + $0x50] sm:$0xff] }
  0x80   : > { %994 = vmatprep.mubr.f32.mxu0 %v21951_v33  ;;  %1158 = vmatprep.subr.mxu0 %v13326_v10 }
  0x81   : > { %1266 = vmatprep.subr.mxu1 %v13326_v10  ;;  %12199 = vmatmul.mubr.msk.f32.gmra.mxu0 %vm483_vm1, %v913_v3  ;;  %v13719_v10 = vld [vmem:[%s13359_s15 + $0xc0] sm:$0xff]  ;;  %v13876_v3 = vld [vmem:[%s22165_s1 + $0x48] sm:$0xff] }
  0x82   : > { %1159 = vmatpush1.msra.mxu0 %v13333_v11  ;;  %1267 = vmatpush1.msra.mxu1 %v13333_v11  ;;  %v13722_v11 = vld [vmem:[%s13359_s15 + $0xc8] sm:$0xff] }
  0x83   : > { %1102 = vmatprep.mubr.f32.mxu1 %v21951_v33  ;;  %1160 = vmatprep.subr.mxu0 %v13340_v12 }
  0x84   : > { %1268 = vmatprep.subr.mxu1 %v13340_v12  ;;  %12203 = vmatmul.mubr.msk.f32.gmra.mxu1 %vm483_vm1, %v1021_v6  ;;  %v13729_v12 = vld [vmem:[%s13359_s15 + $0xe0] sm:$0xff]  ;;  %v1131_v6 = vsel %vm475_vm0, %v1128_v62, %v1130_v46 }
  0x85   : > { %1161 = vmatpush1.msra.mxu0 %v13347_v13  ;;  %1269 = vmatpush1.msra.mxu1 %v13347_v13  ;;  %v13732_v13 = vld [vmem:[%s13359_s15 + $0xe8] sm:$0xff] }
  0x86   : > { %1000 = vmatprep.mubr.f32.mxu0 %v21951_v33  ;;  %1162 = vmatprep.subr.mxu0 %v13354_v14 }
  0x87   : > { %1270 = vmatprep.subr.mxu1 %v13354_v14  ;;  %12200 = vmatmul.mubr.msk.f32.gmra.mxu0 %vm483_vm1, %v915_v8  ;;  %v1125_v14 = vrot.slane %v13719_v10, 1  ;;  %v13894_v8 = vld [vmem:[%s22165_s1 + $0x38] sm:$0xff] }
  0x88   : > { %1163 = vmatpush1.msra.mxu0 %v13366_v15  ;;  %1271 = vmatpush1.msra.mxu1 %v13366_v15  ;;  %v1126_v15 = vrot.slane %v13722_v11, 1 }
  0x89   : > { %1108 = vmatprep.mubr.f32.mxu1 %v21951_v33  ;;  %1164 = vmatprep.subr.mxu0 %v13373_v16 }
  0x8a   : > { %1272 = vmatprep.subr.mxu1 %v13373_v16  ;;  %12204 = vmatmul.mubr.msk.f32.gmra.mxu1 %vm483_vm1, %v1023_v9  ;;  %v1233_v16 = vrot.slane %v13729_v12, 1  ;;  %v1129_v43 = vsel %vm475_vm0, %v1126_v15, %v1128_v62  ;;  %v13950_v62 = vld [vmem:[%s22165_s1] sm:$0xff] }
  0x8b   : > { %1165 = vmatpush1.msra.mxu0 %v13380_v17  ;;  %1273 = vmatpush1.msra.mxu1 %v13380_v17  ;;  %v1234_v17 = vrot.slane %v13732_v13, 1 }
  0x8c   : > { %1006 = vmatprep.mubr.f32.mxu0 %v21951_v33  ;;  %1166 = vmatprep.subr.mxu0 %v13393_v20 }
  0x8d   : > { %1274 = vmatprep.subr.mxu1 %v13393_v20  ;;  %12201 = vmatmul.mubr.msk.f32.gmra.mxu0 %vm483_vm1, %v914_v4  ;;  %v1127_v20 = vsel %vm475_vm0, %v1125_v14, %v1126_v15  ;;  %v1237_v0 = vsel %vm475_vm0, %v1234_v17, %v1236_v32  ;;  %v1238_v4 = vrot.slane %v13859_v51, 1  ;;  %v13904_v14 = vld [vmem:[%s22165_s1 + $0x30] sm:$0xff]  ;;  %v13911_v15 = vld [vmem:[%s22165_s1 + $0x28] sm:$0xff] }
  0x8e   : > { %1167 = vmatpush1.msra.mxu0 %v13400_v21  ;;  %1275 = vmatpush1.msra.mxu1 %v13400_v21  ;;  %v13754_v21 = vld [vmem:[%s22165_s1 + $0xb8] sm:$0xff] }
  0x8f   : > { %1114 = vmatprep.mubr.f32.mxu1 %v21951_v33  ;;  %1168 = vmatprep.subr.mxu0 %v13413_v24  ;;  %v1239_v9 = vsel %vm475_vm0, %v1236_v32, %v1238_v4 }
  0x90   : > { %1276 = vmatprep.subr.mxu1 %v13413_v24  ;;  %12205 = vmatmul.mubr.msk.f32.gmra.mxu1 %vm483_vm1, %v1022_v7  ;;  %v1235_v24 = vsel %vm475_vm0, %v1233_v16, %v1234_v17  ;;  %v13887_v7 = vld [vmem:[%s22165_s1 + $0x40] sm:$0xff]  ;;  %v13927_v17 = vld [vmem:[%s22165_s1 + $0x18] sm:$0xff] }
  0x91   : > { %1169 = vmatpush1.msra.mxu0 %v13422_v27  ;;  %1277 = vmatpush1.msra.mxu1 %v13422_v27  ;;  %v13764_v27 = vld [vmem:[%s22165_s1 + $0xb0] sm:$0xff]  ;;  %v13920_v16 = vld [vmem:[%s22165_s1 + $0x20] sm:$0xff] }
  0x92   : > { %1170 = vmatprep.subr.mxu0 %v13429_v28  ;;  %1278 = vmatprep.subr.mxu1 %v13429_v28  ;;  %v13771_v28 = vld [vmem:[%s22165_s1 + $0xa8] sm:$0xff] }
  0x93   : > { %1171 = vmatpush1.msra.mxu0 %v13438_v31  ;;  %1204 = vmatprep.mubr.f32.mxu0 %v21951_v33 }
  0x94   : > { %1279 = vmatpush1.msra.mxu1 %v13438_v31  ;;  %12206 = vmatmul.mubr.msk.f32.vlgmr.msra.gmra.mxu0 %vm483_vm1, %v1127_v20  ;;  %v13778_v31 = vld [vmem:[%s22165_s1 + $0xa0] sm:$0xff]  ;;  %v13936_v20 = vld [vmem:[%s22165_s1 + $0x10] sm:$0xff] }
  0x95   : > { %1312 = vmatprep.mubr.f32.mxu1 %v21951_v33  ;;  %1353 = vmatprep.subr.mxu0 %v13754_v21 }
  0x96   : > { %1450 = vmatprep.subr.mxu1 %v13754_v21  ;;  %12210 = vmatmul.mubr.msk.f32.vlgmr.msra.gmra.mxu1 %vm483_vm1, %v1235_v24  ;;  %v13943_v24 = vld [vmem:[%s22165_s1 + $0x8] sm:$0xff] }
  0x97   : > { %1354 = vmatpush1.msra.mxu0 %v13764_v27  ;;  %1451 = vmatpush1.msra.mxu1 %v13764_v27 }
  0x98   : > { %1355 = vmatprep.subr.mxu0 %v13771_v28  ;;  %1452 = vmatprep.subr.mxu1 %v13771_v28 }
  0x99   : > { %1356 = vmatpush1.msra.mxu0 %v13778_v31  ;;  %1453 = vmatpush1.msra.mxu1 %v13778_v31 }
  0x9a   : > { %1357 = vmatprep.subr.mxu0 %v13785_v54  ;;  %1454 = vmatprep.subr.mxu1 %v13785_v54 }
  0x9b   : > { %1358 = vmatpush1.msra.mxu0 %v13795_v56  ;;  %1455 = vmatpush1.msra.mxu1 %v13795_v56 }
  0x9c   : > { %1359 = vmatprep.subr.mxu0 %v13802_v58  ;;  %1456 = vmatprep.subr.mxu1 %v13802_v58 }
  0x9d   : > { %1360 = vmatpush1.msra.mxu0 %v13809_v60  ;;  %1457 = vmatpush1.msra.mxu1 %v13809_v60 }
  0x9e   : > { %1361 = vmatprep.subr.mxu0 %v13820_v26  ;;  %1458 = vmatprep.subr.mxu1 %v13820_v26 }
  0x9f   : > { %1362 = vmatpush1.msra.mxu0 %v13827_v29  ;;  %1459 = vmatpush1.msra.mxu1 %v13827_v29 }
  0xa0   : > { %1210 = vmatprep.mubr.f32.mxu0 %v21951_v33  ;;  %1363 = vmatprep.subr.mxu0 %v13834_v30 }
  0xa1   : > { %1460 = vmatprep.subr.mxu1 %v13834_v30  ;;  %12207 = vmatmul.mubr.msk.f32.gmra.mxu0 %vm483_vm1, %v1129_v43  ;;  %v14383_v43 = vld [vmem:[%s22165_s1 + $0x198] sm:$0xff] }
  0xa2   : > { %1318 = vmatprep.mubr.f32.mxu1 %v21951_v33  ;;  %1364 = vmatpush1.msra.mxu0 %v13848_v44 }
  0xa3   : > { %1461 = vmatpush1.msra.mxu1 %v13848_v44  ;;  %1365 = vmatprep.subr.mxu0 %v13855_v45 }
  0xa4   : > { %12211 = vmatmul.mubr.msk.f32.gmra.mxu1 %vm483_vm1, %v1237_v0  ;;  %1462 = vmatprep.subr.mxu1 %v13855_v45  ;;  %v14399_v0 = vld [vmem:[%s13359_s15 + $0x8] sm:$0xff] }
  0xa5   : > { %1366 = vmatpush1.msra.mxu0 %v13869_v1  ;;  %1463 = vmatpush1.msra.mxu1 %v13869_v1 }
  0xa6   : > { %1216 = vmatprep.mubr.f32.mxu0 %v21951_v33  ;;  %1367 = vmatprep.subr.mxu0 %v13876_v3 }
  0xa7   : > { %1464 = vmatprep.subr.mxu1 %v13876_v3  ;;  %12208 = vmatmul.mubr.msk.f32.gmra.mxu0 %vm483_vm1, %v1131_v6  ;;  %v14407_v6 = vld [vmem:[%s13359_s15 + $0x28] sm:$0xff] }
  0xa8   : > { %1324 = vmatprep.mubr.f32.mxu1 %v21951_v33  ;;  %1368 = vmatpush1.msra.mxu0 %v13887_v7 }
  0xa9   : > { %1465 = vmatpush1.msra.mxu1 %v13887_v7  ;;  %1369 = vmatprep.subr.mxu0 %v13894_v8 }
  0xaa   : > { %12212 = vmatmul.mubr.msk.f32.gmra.mxu1 %vm483_vm1, %v1239_v9  ;;  %1466 = vmatprep.subr.mxu1 %v13894_v8 }
  0xab   : > { %1370 = vmatpush1.msra.mxu0 %v13904_v14  ;;  %1467 = vmatpush1.msra.mxu1 %v13904_v14 }
  0xac   : > { %1222 = vmatprep.mubr.f32.mxu0 %v21951_v33  ;;  %1371 = vmatprep.subr.mxu0 %v13911_v15 }
  0xad   : > { %1468 = vmatprep.subr.mxu1 %v13911_v15  ;;  %12209 = vmatmul.mubr.msk.f32.gmra.mxu0 %vm483_vm1, %v1130_v46  ;;  %v14395_v46 = vld [vmem:[%s13359_s15] sm:$0xff] }
  0xae   : > { %1330 = vmatprep.mubr.f32.mxu1 %v21951_v33  ;;  %1372 = vmatpush1.msra.mxu0 %v13920_v16 }
  0xaf   : > { %1469 = vmatpush1.msra.mxu1 %v13920_v16  ;;  %1373 = vmatprep.subr.mxu0 %v13927_v17 }
  0xb0   : > { %12213 = vmatmul.mubr.msk.f32.gmra.mxu1 %vm483_vm1, %v1238_v4  ;;  %1470 = vmatprep.subr.mxu1 %v13927_v17 }
  0xb1   : > { %1374 = vmatpush1.msra.mxu0 %v13936_v20  ;;  %1471 = vmatpush1.msra.mxu1 %v13936_v20 }
  0xb2   : > { %1375 = vmatprep.subr.mxu0 %v13943_v24  ;;  %1472 = vmatprep.subr.mxu1 %v13943_v24 }
  0xb3   : > { %1376 = vmatpush1.msra.mxu0 %v13950_v62  ;;  %1409 = vmatprep.mubr.f32.mxu0 %v21951_v33 }
  0xb4   : > { %1473 = vmatpush1.msra.mxu1 %v13950_v62  ;;  %1506 = vmatprep.mubr.f32.mxu1 %v21951_v33 }
  0xb5   : > { %12214 = vmatmul.mubr.msk.f32.vlgmr.msra.gmra.mxu0 %vm483_vm1, %v13383_v18  ;;  %12218 = vmatmul.mubr.msk.f32.vlgmr.msra.gmra.mxu1 %vm483_vm1, %v13403_v22 }
  0xb6   : > { %1547 = vmatprep.subr.mxu0 %v13754_v21  ;;  %1644 = vmatprep.subr.mxu1 %v13754_v21 }
  0xb7   : > { %1548 = vmatpush1.msra.mxu0 %v13764_v27  ;;  %1645 = vmatpush1.msra.mxu1 %v13764_v27 }
  0xb8   : > { %1549 = vmatprep.subr.mxu0 %v13771_v28  ;;  %1646 = vmatprep.subr.mxu1 %v13771_v28 }
  0xb9   : > { %1415 = vmatprep.mubr.f32.mxu0 %v21951_v33  ;;  %1512 = vmatprep.mubr.f32.mxu1 %v21951_v33 }
  0xba   : > { %1550 = vmatpush1.msra.mxu0 %v13778_v31  ;;  %1647 = vmatpush1.msra.mxu1 %v13778_v31 }
  0xbb   : > { %12215 = vmatmul.mubr.msk.f32.gmra.mxu0 %vm483_vm1, %v13386_v19  ;;  %12219 = vmatmul.mubr.msk.f32.gmra.mxu1 %vm483_vm1, %v13406_v23 }
  0xbc   : > { %1551 = vmatprep.subr.mxu0 %v13785_v54  ;;  %1648 = vmatprep.subr.mxu1 %v13785_v54 }
  0xbd   : > { %1552 = vmatpush1.msra.mxu0 %v13795_v56  ;;  %1649 = vmatpush1.msra.mxu1 %v13795_v56 }
  0xbe   : > { %1553 = vmatprep.subr.mxu0 %v13802_v58  ;;  %1650 = vmatprep.subr.mxu1 %v13802_v58 }
  0xbf   : > { %1421 = vmatprep.mubr.f32.mxu0 %v21951_v33  ;;  %1518 = vmatprep.mubr.f32.mxu1 %v21951_v33 }
  0xc0   : > { %1554 = vmatpush1.msra.mxu0 %v13809_v60  ;;  %1651 = vmatpush1.msra.mxu1 %v13809_v60 }
  0xc1   : > { %12216 = vmatmul.mubr.msk.f32.gmra.mxu0 %vm483_vm1, %v13457_v35  ;;  %12220 = vmatmul.mubr.msk.f32.gmra.mxu1 %vm483_vm1, %v13467_v37 }
  0xc2   : > { %1555 = vmatprep.subr.mxu0 %v13820_v26  ;;  %1652 = vmatprep.subr.mxu1 %v13820_v26 }
  0xc3   : > { %1556 = vmatpush1.msra.mxu0 %v13827_v29  ;;  %1653 = vmatpush1.msra.mxu1 %v13827_v29 }
  0xc4   : > { %1557 = vmatprep.subr.mxu0 %v13834_v30  ;;  %1654 = vmatprep.subr.mxu1 %v13834_v30 }
  0xc5   : > { %1427 = vmatprep.mubr.f32.mxu0 %v21951_v33  ;;  %1524 = vmatprep.mubr.f32.mxu1 %v21951_v33 }
  0xc6   : > { %1558 = vmatpush1.msra.mxu0 %v13848_v44  ;;  %1655 = vmatpush1.msra.mxu1 %v13848_v44 }
  0xc7   : > { %12217 = vmatmul.mubr.msk.f32.gmra.mxu0 %vm483_vm1, %v13477_v39  ;;  %12221 = vmatmul.mubr.msk.f32.gmra.mxu1 %vm483_vm1, %v13488_v42 }
  0xc8   : > { %1559 = vmatprep.subr.mxu0 %v13855_v45  ;;  %1656 = vmatprep.subr.mxu1 %v13855_v45 }
  0xc9   : > { %1560 = vmatpush1.msra.mxu0 %v13869_v1  ;;  %1657 = vmatpush1.msra.mxu1 %v13869_v1 }
  0xca   : > { %1561 = vmatprep.subr.mxu0 %v13876_v3  ;;  %1658 = vmatprep.subr.mxu1 %v13876_v3 }
  0xcb   : > { %1562 = vmatpush1.msra.mxu0 %v13887_v7  ;;  %1659 = vmatpush1.msra.mxu1 %v13887_v7 }
  0xcc   : > { %1563 = vmatprep.subr.mxu0 %v13894_v8  ;;  %1660 = vmatprep.subr.mxu1 %v13894_v8 }
  0xcd   : > { %1564 = vmatpush1.msra.mxu0 %v13904_v14  ;;  %1661 = vmatpush1.msra.mxu1 %v13904_v14 }
  0xce   : > { %1565 = vmatprep.subr.mxu0 %v13911_v15  ;;  %1662 = vmatprep.subr.mxu1 %v13911_v15 }
  0xcf   : > { %1566 = vmatpush1.msra.mxu0 %v13920_v16  ;;  %1663 = vmatpush1.msra.mxu1 %v13920_v16 }
  0xd0   : > { %1567 = vmatprep.subr.mxu0 %v13927_v17  ;;  %1664 = vmatprep.subr.mxu1 %v13927_v17 }
  0xd1   : > { %1568 = vmatpush1.msra.mxu0 %v13936_v20  ;;  %1665 = vmatpush1.msra.mxu1 %v13936_v20 }
  0xd2   : > { %1569 = vmatprep.subr.mxu0 %v13943_v24  ;;  %1666 = vmatprep.subr.mxu1 %v13943_v24 }
  0xd3   : > { %1570 = vmatpush1.msra.mxu0 %v13950_v62  ;;  %1603 = vmatprep.mubr.f32.mxu0 %v21951_v33 }
  0xd4   : > { %1667 = vmatpush1.msra.mxu1 %v13950_v62  ;;  %1700 = vmatprep.mubr.f32.mxu1 %v21951_v33 }
  0xd5   : > { %12222 = vmatmul.mubr.msk.f32.vlgmr.msra.gmra.mxu0 %vm483_vm1, %v13515_v47  ;;  %12226 = vmatmul.mubr.msk.f32.vlgmr.msra.gmra.mxu1 %vm483_vm1, %v13525_v49 }
  0xd6   : > { %1741 = vmatprep.subr.mxu0 %v13754_v21  ;;  %1838 = vmatprep.subr.mxu1 %v13754_v21 }
  0xd7   : > { %1742 = vmatpush1.msra.mxu0 %v13764_v27  ;;  %1839 = vmatpush1.msra.mxu1 %v13764_v27 }
  0xd8   : > { %1743 = vmatprep.subr.mxu0 %v13771_v28  ;;  %1840 = vmatprep.subr.mxu1 %v13771_v28 }
  0xd9   : > { %1609 = vmatprep.mubr.f32.mxu0 %v21951_v33  ;;  %1706 = vmatprep.mubr.f32.mxu1 %v21951_v33 }
  0xda   : > { %1744 = vmatpush1.msra.mxu0 %v13778_v31  ;;  %1841 = vmatpush1.msra.mxu1 %v13778_v31 }
  0xdb   : > { %12223 = vmatmul.mubr.msk.f32.gmra.mxu0 %vm483_vm1, %v13518_v48  ;;  %12227 = vmatmul.mubr.msk.f32.gmra.mxu1 %vm483_vm1, %v13528_v50  ;;  %v14195_v48 = vld [vmem:[%s22165_s1 + $0x238] sm:$0xff]  ;;  %v14204_v50 = vld [vmem:[%s22165_s1 + $0x230] sm:$0xff] }
  0xdc   : > { %1745 = vmatprep.subr.mxu0 %v13785_v54  ;;  %1842 = vmatprep.subr.mxu1 %v13785_v54 }
  0xdd   : > { %1746 = vmatpush1.msra.mxu0 %v13795_v56  ;;  %1843 = vmatpush1.msra.mxu1 %v13795_v56 }
  0xde   : > { %1747 = vmatprep.subr.mxu0 %v13802_v58  ;;  %1844 = vmatprep.subr.mxu1 %v13802_v58 }
  0xdf   : > { %1615 = vmatprep.mubr.f32.mxu0 %v21951_v33  ;;  %1712 = vmatprep.mubr.f32.mxu1 %v21951_v33 }
  0xe0   : > { %1748 = vmatpush1.msra.mxu0 %v13809_v60  ;;  %1845 = vmatpush1.msra.mxu1 %v13809_v60 }
  0xe1   : > { %12224 = vmatmul.mubr.msk.f32.gmra.mxu0 %vm483_vm1, %v13559_v57  ;;  %12228 = vmatmul.mubr.msk.f32.gmra.mxu1 %vm483_vm1, %v13569_v59  ;;  %v14213_v57 = vld [vmem:[%s22165_s1 + $0x228] sm:$0xff] }
  0xe2   : > { %1749 = vmatprep.subr.mxu0 %v13820_v26  ;;  %1846 = vmatprep.subr.mxu1 %v13820_v26 }
  0xe3   : > { %1750 = vmatpush1.msra.mxu0 %v13827_v29  ;;  %1847 = vmatpush1.msra.mxu1 %v13827_v29 }
  0xe4   : > { %1751 = vmatprep.subr.mxu0 %v13834_v30  ;;  %1848 = vmatprep.subr.mxu1 %v13834_v30 }
  0xe5   : > { %1621 = vmatprep.mubr.f32.mxu0 %v21951_v33  ;;  %1718 = vmatprep.mubr.f32.mxu1 %v21951_v33 }
  0xe6   : > { %1752 = vmatpush1.msra.mxu0 %v13848_v44  ;;  %1849 = vmatpush1.msra.mxu1 %v13848_v44 }
  0xe7   : > { %12225 = vmatmul.mubr.msk.f32.gmra.mxu0 %vm483_vm1, %v13579_v61  ;;  %12229 = vmatmul.mubr.msk.f32.gmra.mxu1 %vm483_vm1, %v13590_v25  ;;  %v14224_v61 = vld [vmem:[%s22165_s1 + $0x220] sm:$0xff] }
  0xe8   : > { %1753 = vmatprep.subr.mxu0 %v13855_v45  ;;  %1850 = vmatprep.subr.mxu1 %v13855_v45 }
  0xe9   : > { %1754 = vmatpush1.msra.mxu0 %v13869_v1  ;;  %1851 = vmatpush1.msra.mxu1 %v13869_v1 }
  0xea   : > { %1755 = vmatprep.subr.mxu0 %v13876_v3  ;;  %1852 = vmatprep.subr.mxu1 %v13876_v3 }
  0xeb   : > { %1756 = vmatpush1.msra.mxu0 %v13887_v7  ;;  %1853 = vmatpush1.msra.mxu1 %v13887_v7 }
  0xec   : > { %1757 = vmatprep.subr.mxu0 %v13894_v8  ;;  %1854 = vmatprep.subr.mxu1 %v13894_v8 }
  0xed   : > { %1758 = vmatpush1.msra.mxu0 %v13904_v14  ;;  %1855 = vmatpush1.msra.mxu1 %v13904_v14 }
  0xee   : > { %1759 = vmatprep.subr.mxu0 %v13911_v15  ;;  %1856 = vmatprep.subr.mxu1 %v13911_v15 }
  0xef   : > { %1760 = vmatpush1.msra.mxu0 %v13920_v16  ;;  %1857 = vmatpush1.msra.mxu1 %v13920_v16 }
  0xf0   : > { %1761 = vmatprep.subr.mxu0 %v13927_v17  ;;  %1858 = vmatprep.subr.mxu1 %v13927_v17 }
  0xf1   : > { %1762 = vmatpush1.msra.mxu0 %v13936_v20  ;;  %1859 = vmatpush1.msra.mxu1 %v13936_v20 }
  0xf2   : > { %1763 = vmatprep.subr.mxu0 %v13943_v24  ;;  %1860 = vmatprep.subr.mxu1 %v13943_v24 }
  0xf3   : > { %1764 = vmatpush1.msra.mxu0 %v13950_v62  ;;  %1797 = vmatprep.mubr.f32.mxu0 %v21951_v33 }
  0xf4   : > { %1861 = vmatpush1.msra.mxu1 %v13950_v62  ;;  %1894 = vmatprep.mubr.f32.mxu1 %v21951_v33 }
  0xf5   : > { %12230 = vmatmul.mubr.msk.f32.vlgmr.msra.gmra.mxu0 %vm483_vm1, %v13617_v34  ;;  %12234 = vmatmul.mubr.msk.f32.vlgmr.msra.gmra.mxu1 %vm483_vm1, %v13627_v38  ;;  %v14146_v19 = vpop.f32.mrf.mxu0  ;;  %v14235_v34 = vld [vmem:[%s22165_s1 + $0x218] sm:$0xff]  ;;  %v14244_v38 = vld [vmem:[%s22165_s1 + $0x210] sm:$0xff] }
  0xf6   : > { %1935 = vmatprep.subr.mxu0 %v13754_v21  ;;  %2032 = vmatprep.subr.mxu1 %v13754_v21  ;;  %v14140_v18 = vpop.f32.mrf.mxu1  ;;  %v14304_v21 = vld [vmem:[%s22165_s1 + $0x1e0] sm:$0xff] }
  0xf7   : > { %1936 = vmatpush1.msra.mxu0 %v13764_v27  ;;  %2033 = vmatpush1.msra.mxu1 %v13764_v27  ;;  %v14160_v23 = vpop.f32.mrf.mxu0 }
  0xf8   : > { %1937 = vmatprep.subr.mxu0 %v13771_v28  ;;  %2034 = vmatprep.subr.mxu1 %v13771_v28  ;;  %v14154_v22 = vpop.f32.mrf.mxu1  ;;  %22168 = vst [vmem:[#allocation6_spill] sm:$0xff] %v14160_v23  ;;  %v14315_v28 = vld [vmem:[%s22165_s1 + $0x1d8] sm:$0xff] }
  0xf9   : > { %1803 = vmatprep.mubr.f32.mxu0 %v21951_v33  ;;  %1900 = vmatprep.mubr.f32.mxu1 %v21951_v33  ;;  %22167 = vst [vmem:[#allocation5_spill] sm:$0xff] %v14154_v22 }
  0xfa   : > { %1938 = vmatpush1.msra.mxu0 %v13778_v31  ;;  %2035 = vmatpush1.msra.mxu1 %v13778_v31 }
  0xfb   : > { %12231 = vmatmul.mubr.msk.f32.gmra.mxu0 %vm483_vm1, %v13620_v36  ;;  %12235 = vmatmul.mubr.msk.f32.gmra.mxu1 %vm483_vm1, %v13630_v40  ;;  %v14253_v40 = vld [vmem:[%s22165_s1 + $0x208] sm:$0xff] }
  0xfc   : > { %1939 = vmatprep.subr.mxu0 %v13785_v54  ;;  %2036 = vmatprep.subr.mxu1 %v13785_v54  ;;  %v14324_v54 = vld [vmem:[%s22165_s1 + $0x1d0] sm:$0xff] }
  0xfd   : > { %1940 = vmatpush1.msra.mxu0 %v13795_v56  ;;  %2037 = vmatpush1.msra.mxu1 %v13795_v56 }
  0xfe   : > { %1941 = vmatprep.subr.mxu0 %v13802_v58  ;;  %2038 = vmatprep.subr.mxu1 %v13802_v58 }
  0xff   : > { %1809 = vmatprep.mubr.f32.mxu0 %v21951_v33  ;;  %1906 = vmatprep.mubr.f32.mxu1 %v21951_v33 }
 0x100   : > { %1942 = vmatpush1.msra.mxu0 %v13809_v60  ;;  %2039 = vmatpush1.msra.mxu1 %v13809_v60  ;;  %v14344_v60 = vld [vmem:[%s22165_s1 + $0x1c0] sm:$0xff] }
 0x101   : > { %12232 = vmatmul.mubr.msk.f32.gmra.mxu0 %vm483_vm1, %v13661_v52  ;;  %12236 = vmatmul.mubr.msk.f32.gmra.mxu1 %vm483_vm1, %v13671_v53  ;;  %v14168_v37 = vpop.f32.mrf.mxu0  ;;  %v14264_v53 = vld [vmem:[%s22165_s1 + $0x200] sm:$0xff] }
 0x102   : > { %1943 = vmatprep.subr.mxu0 %v13820_v26  ;;  %2040 = vmatprep.subr.mxu1 %v13820_v26 }
 0x103   : > { %1944 = vmatpush1.msra.mxu0 %v13827_v29  ;;  %2041 = vmatpush1.msra.mxu1 %v13827_v29  ;;  %v14180_v42 = vpop.f32.mrf.mxu0  ;;  %v14360_v29 = vld [vmem:[%s22165_s1 + $0x1b0] sm:$0xff] }
 0x104   : > { %1945 = vmatprep.subr.mxu0 %v13834_v30  ;;  %2042 = vmatprep.subr.mxu1 %v13834_v30  ;;  %v14162_v35 = vpop.f32.mrf.mxu1  ;;  %22170 = vst [vmem:[#allocation8_spill] sm:$0xff] %v14180_v42  ;;  %v14367_v30 = vld [vmem:[%s22165_s1 + $0x1a8] sm:$0xff] }
 0x105   : > { %1815 = vmatprep.mubr.f32.mxu0 %v21951_v33  ;;  %1912 = vmatprep.mubr.f32.mxu1 %v21951_v33 }
 0x106   : > { %1946 = vmatpush1.msra.mxu0 %v13848_v44  ;;  %2043 = vmatpush1.msra.mxu1 %v13848_v44  ;;  %v14174_v39 = vpop.f32.mrf.mxu1 }
 0x107   : > { %12233 = vmatmul.mubr.msk.f32.gmra.mxu0 %vm483_vm1, %v13681_v2  ;;  %12237 = vmatmul.mubr.msk.f32.gmra.mxu1 %vm483_vm1, %v13692_v5  ;;  %22169 = vst [vmem:[#allocation7_spill] sm:$0xff] %v14174_v39  ;;  %v14197_v49 = vpop.f32.mrf.mxu0  ;;  %v14275_v5 = vld [vmem:[%s22165_s1 + $0x1f8] sm:$0xff]  ;;  %v14545_v39 = vld [vmem:[%s13359_s15 + $0x48] sm:$0xff] }
 0x108   : > { %1947 = vmatprep.subr.mxu0 %v13855_v45  ;;  %2044 = vmatprep.subr.mxu1 %v13855_v45  ;;  %v14392_v45 = vld [vmem:[%s22165_s1 + $0x190] sm:$0xff] }
 0x109   : > { %1948 = vmatpush1.msra.mxu0 %v13869_v1  ;;  %2045 = vmatpush1.msra.mxu1 %v13869_v1  ;;  %v14226_v25 = vpop.f32.mrf.mxu0  ;;  %v2140_v1 = vrot.slane %v14399_v0, 2 }
 0x10a   : > { %1949 = vmatprep.subr.mxu0 %v13876_v3  ;;  %2046 = vmatprep.subr.mxu1 %v13876_v3  ;;  %v14186_v47 = vpop.f32.mrf.mxu1  ;;  %22173 = vst [vmem:[#allocation11_spill] sm:$0xff] %v14226_v25  ;;  %v14403_v3 = vld [vmem:[%s13359_s15 + $0x20] sm:$0xff] }
 0x10b   : > { %1950 = vmatpush1.msra.mxu0 %v13887_v7  ;;  %2047 = vmatpush1.msra.mxu1 %v13887_v7  ;;  %22171 = vst [vmem:[#allocation9_spill] sm:$0xff] %v14186_v47  ;;  %v2243_v4 = vrot.slane %v14403_v3, 2  ;;  %v2244_v7 = vrot.slane %v14407_v6, 2 }
 0x10c   : > { %1951 = vmatprep.subr.mxu0 %v13894_v8  ;;  %2048 = vmatprep.subr.mxu1 %v13894_v8  ;;  %v14215_v59 = vpop.f32.mrf.mxu1  ;;  %v14415_v8 = vld [vmem:[%s22165_s1 + $0x188] sm:$0xff] }
 0x10d   : > { %1952 = vmatpush1.msra.mxu0 %v13904_v14  ;;  %2049 = vmatpush1.msra.mxu1 %v13904_v14  ;;  %22172 = vst [vmem:[#allocation10_spill] sm:$0xff] %v14215_v59  ;;  %v14255_v52 = vpop.f32.mrf.mxu0  ;;  %v14424_v14 = vld [vmem:[%s22165_s1 + $0x180] sm:$0xff]  ;;  %v14553_v59 = vld [vmem:[%s13359_s15 + $0x68] sm:$0xff] }
 0x10e   : > { %1953 = vmatprep.subr.mxu0 %v13911_v15  ;;  %2050 = vmatprep.subr.mxu1 %v13911_v15  ;;  %22175 = vst [vmem:[#allocation13_spill] sm:$0xff] %v14255_v52  ;;  %v2452_v25 = vrot.slane %v14553_v59, 2  ;;  %v15063_v52 = vld [vmem:[%s22165_s1 + $0x248] sm:$0xff] }
 0x10f   : > { %1954 = vmatpush1.msra.mxu0 %v13920_v16  ;;  %2051 = vmatpush1.msra.mxu1 %v13920_v16 }
 0x110   : > { %1955 = vmatprep.subr.mxu0 %v13927_v17  ;;  %2052 = vmatprep.subr.mxu1 %v13927_v17  ;;  %v14237_v36 = vpop.f32.mrf.mxu1  ;;  %v2245_v17 = vsel %vm2138_vm2, %v2243_v4, %v2244_v7 }
 0x111   : > { %1956 = vmatpush1.msra.mxu0 %v13936_v20  ;;  %2053 = vmatpush1.msra.mxu1 %v13936_v20  ;;  %22174 = vst [vmem:[#allocation12_spill] sm:$0xff] %v14237_v36  ;;  %v3165_v36 = vrot.slane %v14403_v3, 3 }
 0x112   : > { %1957 = vmatprep.subr.mxu0 %v13943_v24  ;;  %2054 = vmatprep.subr.mxu1 %v13943_v24  ;;  %v14266_v2 = vpop.f32.mrf.mxu1  ;;  %v14441_v24 = vld [vmem:[%s13359_s15 + $0x10] sm:$0xff] }
 0x113   : > { %1958 = vmatpush1.msra.mxu0 %v13950_v62  ;;  %1991 = vmatprep.mubr.f32.mxu0 %v21951_v33  ;;  %22176 = vst [vmem:[#allocation14_spill] sm:$0xff] %v14266_v2  ;;  %v14549_v2 = vld [vmem:[%s13359_s15 + $0x60] sm:$0xff] }
 0x114   : > { %2055 = vmatpush1.msra.mxu1 %v13950_v62  ;;  %2088 = vmatprep.mubr.f32.mxu1 %v21951_v33  ;;  %v2142_v62 = vrot.slane %v14441_v24, 2 }
 0x115   : > { %12238 = vmatmul.mubr.msk.f32.vlgmr.msra.gmra.mxu0 %vm483_vm1, %v13719_v10  ;;  %12242 = vmatmul.mubr.msk.f32.vlgmr.msra.gmra.mxu1 %vm483_vm1, %v13729_v12  ;;  %v14277_v10 = vpop.f32.mrf.mxu0  ;;  %v14293_v12 = vld [vmem:[%s22165_s1 + $0x1e8] sm:$0xff] }
 0x116   : > { %2162 = vmatprep.subr.mxu0 %v14195_v48  ;;  %2266 = vmatprep.subr.mxu1 %v14195_v48  ;;  %22177 = vst [vmem:[#allocation15_spill] sm:$0xff] %v14277_v10  ;;  %v2451_v10 = vrot.slane %v14549_v2, 2 }
 0x117   : > { %2163 = vmatpush1.msra.mxu0 %v14204_v50  ;;  %2267 = vmatpush1.msra.mxu1 %v14204_v50  ;;  %v14306_v27 = vpop.f32.mrf.mxu0 }
 0x118   : > { %2164 = vmatprep.subr.mxu0 %v14213_v57  ;;  %2268 = vmatprep.subr.mxu1 %v14213_v57  ;;  %22179 = vst [vmem:[#allocation17_spill] sm:$0xff] %v14306_v27 }
 0x119   : > { %1997 = vmatprep.mubr.f32.mxu0 %v21951_v33  ;;  %2094 = vmatprep.mubr.f32.mxu1 %v21951_v33  ;;  %v14335_v56 = vpop.f32.mrf.mxu0 }
 0x11a   : > { %2165 = vmatpush1.msra.mxu0 %v14224_v61  ;;  %2269 = vmatpush1.msra.mxu1 %v14224_v61  ;;  %22181 = vst [vmem:[#allocation19_spill] sm:$0xff] %v14335_v56  ;;  %v22191_v56 = vmov 0.0  }
 0x11b   : > { %12239 = vmatmul.mubr.msk.f32.gmra.mxu0 %vm483_vm1, %v13722_v11  ;;  %12243 = vmatmul.mubr.msk.f32.gmra.mxu1 %vm483_vm1, %v13732_v13  ;;  %v14284_v11 = vld [vmem:[%s22165_s1 + $0x1f0] sm:$0xff]  ;;  %v14295_v13 = vpop.f32.mrf.mxu1 }
 0x11c   : > { %2166 = vmatprep.subr.mxu0 %v14235_v34  ;;  %2270 = vmatprep.subr.mxu1 %v14235_v34  ;;  %22178 = vst [vmem:[#allocation16_spill] sm:$0xff] %v14295_v13 }
 0x11d   : > { %2167 = vmatpush1.msra.mxu0 %v14244_v38  ;;  %2271 = vmatpush1.msra.mxu1 %v14244_v38  ;;  %v14317_v31 = vpop.f32.mrf.mxu1 }
 0x11e   : > { %2168 = vmatprep.subr.mxu0 %v14253_v40  ;;  %2272 = vmatprep.subr.mxu1 %v14253_v40  ;;  %22180 = vst [vmem:[#allocation18_spill] sm:$0xff] %v14317_v31  ;;  %v14445_v31 = vld [vmem:[%s13359_s15 + $0x30] sm:$0xff] }
 0x11f   : > { %2003 = vmatprep.mubr.f32.mxu0 %v21951_v33  ;;  %2100 = vmatprep.mubr.f32.mxu1 %v21951_v33 }
 0x120   : > { %2169 = vmatpush1.msra.mxu0 %v14264_v53  ;;  %2273 = vmatpush1.msra.mxu1 %v14264_v53 }
 0x121   : > { %12240 = vmatmul.mubr.msk.f32.gmra.mxu0 %vm483_vm1, %v13788_v55  ;;  %12244 = vmatmul.mubr.msk.f32.gmra.mxu1 %vm483_vm1, %v13813_v63  ;;  %v14333_v55 = vld [vmem:[%s22165_s1 + $0x1c8] sm:$0xff]  ;;  %v14351_v63 = vld [vmem:[%s22165_s1 + $0x1b8] sm:$0xff]  ;;  %v14353_v26 = vpop.f32.mrf.mxu0 }
 0x122   : > { %2170 = vmatprep.subr.mxu0 %v14275_v5  ;;  %2274 = vmatprep.subr.mxu1 %v14275_v5  ;;  %22183 = vst [vmem:[#allocation21_spill] sm:$0xff] %v14353_v26  ;;  %v14711_v26 = vld [vmem:[%s13359_s15 + $0x90] sm:$0xff] }
 0x123   : > { %2171 = vmatpush1.msra.mxu0 %v14284_v11  ;;  %2275 = vmatpush1.msra.mxu1 %v14284_v11  ;;  %v14385_v44 = vpop.f32.mrf.mxu0 }
 0x124   : > { %2172 = vmatprep.subr.mxu0 %v14293_v12  ;;  %2276 = vmatprep.subr.mxu1 %v14293_v12  ;;  %v14337_v58 = vpop.f32.mrf.mxu1  ;;  %22185 = vst [vmem:[#allocation23_spill] sm:$0xff] %v14385_v44  ;;  %v14473_v44 = vld [vmem:[%s13359_s15 + $0x38] sm:$0xff] }
 0x125   : > { %2009 = vmatprep.mubr.f32.mxu0 %v21951_v33  ;;  %2106 = vmatprep.mubr.f32.mxu1 %v21951_v33  ;;  %22182 = vst [vmem:[#allocation20_spill] sm:$0xff] %v14337_v58 }
 0x126   : > { %2173 = vmatpush1.msra.mxu0 %v14304_v21  ;;  %2277 = vmatpush1.msra.mxu1 %v14304_v21  ;;  %v14369_v32 = vpop.f32.mrf.mxu1 }
 0x127   : > { %12241 = vmatmul.mubr.msk.f32.gmra.mxu0 %vm483_vm1, %v13838_v41  ;;  %12245 = vmatmul.mubr.msk.f32.gmra.mxu1 %vm483_vm1, %v13859_v51  ;;  %22184 = vst [vmem:[#allocation22_spill] sm:$0xff] %v14369_v32  ;;  %v14376_v41 = vld [vmem:[%s22165_s1 + $0x1a0] sm:$0xff]  ;;  %v2139_v51 = vrot.slane %v14395_v46, 2  ;;  %v14428_v15 = vpop.f32.mrf.mxu0 }
 0x128   : > { %2174 = vmatprep.subr.mxu0 %v14315_v28  ;;  %2278 = vmatprep.subr.mxu1 %v14315_v28  ;;  %22187 = vst [vmem:[#allocation25_spill] sm:$0xff] %v14428_v15 }
 0x129   : > { %2175 = vmatpush1.msra.mxu0 %v14324_v54  ;;  %2279 = vmatpush1.msra.mxu1 %v14324_v54  ;;  %v2141_v16 = vsel %vm2138_vm2, %v2139_v51, %v2140_v1  ;;  %v2246_v51 = vrot.slane %v14445_v31, 2  ;;  %v14450_v4 = vpop.f32.mrf.mxu0 }
 0x12a   : > { %2176 = vmatprep.subr.mxu0 %v14333_v55  ;;  %2280 = vmatprep.subr.mxu1 %v14333_v55  ;;  %v14417_v9 = vpop.f32.mrf.mxu1  ;;  %22189 = vst [vmem:[#allocation27_spill] sm:$0xff] %v14450_v4  ;;  %v14469_v4 = vld [vmem:[%s13359_s15 + $0x18] sm:$0xff] }
 0x12b   : > { %2177 = vmatpush1.msra.mxu0 %v14344_v60  ;;  %2281 = vmatpush1.msra.mxu1 %v14344_v60  ;;  %22186 = vst [vmem:[#allocation24_spill] sm:$0xff] %v14417_v9  ;;  %v2144_v32 = vrot.slane %v14469_v4, 2 }
 0x12c   : > { %2178 = vmatprep.subr.mxu0 %v14351_v63  ;;  %2282 = vmatprep.subr.mxu1 %v14351_v63  ;;  %v14436_v20 = vpop.f32.mrf.mxu1 }
 0x12d   : > { %2179 = vmatpush1.msra.mxu0 %v14360_v29  ;;  %2283 = vmatpush1.msra.mxu1 %v14360_v29  ;;  %22188 = vst [vmem:[#allocation26_spill] sm:$0xff] %v14436_v20  ;;  %v14464_v20 = vpop.f32.mrf.mxu0 }
 0x12e   : > { %2180 = vmatprep.subr.mxu0 %v14367_v30  ;;  %2284 = vmatprep.subr.mxu1 %v14367_v30  ;;  %22192 = vst [vmem:[#allocation29_spill] sm:$0xff] %v14464_v20  ;;  %v14689_v20 = vld [vmem:[%s13359_s15 + $0xa8] sm:$0xff] }
 0x12f   : > { %2181 = vmatpush1.msra.mxu0 %v14376_v41  ;;  %2285 = vmatpush1.msra.mxu1 %v14376_v41  ;;  %v14484_v22 = vpop.f32.mrf.mxu0 }
 0x130   : > { %2182 = vmatprep.subr.mxu0 %v14383_v43  ;;  %2286 = vmatprep.subr.mxu1 %v14383_v43  ;;  %22194 = vst [vmem:[#allocation31_spill] sm:$0xff] %v14484_v22 }
 0x131   : > { %2183 = vmatpush1.msra.mxu0 %v14392_v45  ;;  %2287 = vmatpush1.msra.mxu1 %v14392_v45 }
 0x132   : > { %2184 = vmatprep.subr.mxu0 %v14415_v8  ;;  %2288 = vmatprep.subr.mxu1 %v14415_v8 }
 0x133   : > { %2185 = vmatpush1.msra.mxu0 %v14424_v14  ;;  %2218 = vmatprep.mubr.f32.mxu0 %v21951_v33 }
 0x134   : > { %2289 = vmatpush1.msra.mxu1 %v14424_v14  ;;  %2322 = vmatprep.mubr.f32.mxu1 %v21951_v33  ;;  %v14456_v33 = vpop.f32.mrf.mxu1  ;;  %v14498_v22 = vpop.f32.mrf.mxu0 }
 0x135   : > { %12270 = vmatmul.mubr.msk.f32.vlgmr.msra.gmra.mxu0 %vm483_vm1, %v2141_v16  ;;  %12274 = vmatmul.mubr.msk.f32.vlgmr.msra.gmra.mxu1 %vm483_vm1, %v2245_v17  ;;  %22190 = vst [vmem:[#allocation28_spill] sm:$0xff] %v14456_v33  ;;  %v2143_v16 = vsel %vm2138_vm2, %v2140_v1, %v2142_v62  ;;  %v2247_v17 = vsel %vm2138_vm2, %v2244_v7, %v2246_v51  ;;  %v2248_v1 = vrot.slane %v14473_v44, 2  ;;  %22196 = vst [vmem:[#allocation33_spill] sm:$0xff] %v14498_v22  ;;  %v14605_v22 = vld [vmem:[%s13359_s15 + $0x58] sm:$0xff] }
 0x136   : > { %2370 = vmatprep.subr.mxu0 %v14195_v48  ;;  %2474 = vmatprep.subr.mxu1 %v14195_v48  ;;  %v14478_v7 = vpop.f32.mrf.mxu1  ;;  %v14609_v33 = vld [vmem:[%s13359_s15 + $0x78] sm:$0xff] }
 0x137   : > { %2371 = vmatpush1.msra.mxu0 %v14204_v50  ;;  %2475 = vmatpush1.msra.mxu1 %v14204_v50  ;;  %22193 = vst [vmem:[#allocation30_spill] sm:$0xff] %v14478_v7 }
 0x138   : > { %2372 = vmatprep.subr.mxu0 %v14213_v57  ;;  %2476 = vmatprep.subr.mxu1 %v14213_v57  ;;  %v14492_v7 = vpop.f32.mrf.mxu1 }
 0x139   : > { %2224 = vmatprep.mubr.f32.mxu0 %v22191_v56  ;;  %2328 = vmatprep.mubr.f32.mxu1 %v22191_v56  ;;  %22195 = vst [vmem:[#allocation32_spill] sm:$0xff] %v14492_v7  ;;  %v14581_v7 = vld [vmem:[%s13359_s15 + $0x70] sm:$0xff] }
 0x13a   : > { %2373 = vmatpush1.msra.mxu0 %v14224_v61  ;;  %2477 = vmatpush1.msra.mxu1 %v14224_v61 }
 0x13b   : > { %12271 = vmatmul.mubr.msk.f32.gmra.mxu0 %vm483_vm1, %v2143_v16  ;;  %12275 = vmatmul.mubr.msk.f32.gmra.mxu1 %vm483_vm1, %v2247_v17  ;;  %v2145_v16 = vsel %vm2138_vm2, %v2142_v62, %v2144_v32  ;;  %v2249_v17 = vsel %vm2138_vm2, %v2246_v51, %v2248_v1  ;;  %v14504_v62 = vpop.f32.mrf.mxu1  ;;  %v14510_v51 = vpop.f32.mrf.mxu0 }
 0x13c   : > { %2374 = vmatprep.subr.mxu0 %v14235_v34  ;;  %2478 = vmatprep.subr.mxu1 %v14235_v34  ;;  %22197 = vst [vmem:[#allocation34_spill] sm:$0xff] %v14504_v62  ;;  %22198 = vst [vmem:[#allocation35_spill] sm:$0xff] %v14510_v51  ;;  %v14541_v51 = vld [vmem:[%s13359_s15 + $0x40] sm:$0xff] }
 0x13d   : > { %2375 = vmatpush1.msra.mxu0 %v14244_v38  ;;  %2479 = vmatpush1.msra.mxu1 %v14244_v38 }
 0x13e   : > { %2376 = vmatprep.subr.mxu0 %v14253_v40  ;;  %2480 = vmatprep.subr.mxu1 %v14253_v40 }
 0x13f   : > { %2230 = vmatprep.mubr.f32.mxu0 %v22191_v56  ;;  %2334 = vmatprep.mubr.f32.mxu1 %v22191_v56 }
 0x140   : > { %2377 = vmatpush1.msra.mxu0 %v14264_v53  ;;  %2481 = vmatpush1.msra.mxu1 %v14264_v53 }
 0x141   : > { %12272 = vmatmul.mubr.msk.f32.gmra.mxu0 %vm483_vm1, %v2145_v16  ;;  %12276 = vmatmul.mubr.msk.f32.gmra.mxu1 %vm483_vm1, %v2249_v17  ;;  %v14518_v17 = vpop.f32.mrf.mxu0 }
 0x142   : > { %2378 = vmatprep.subr.mxu0 %v14275_v5  ;;  %2482 = vmatprep.subr.mxu1 %v14275_v5  ;;  %22200 = vst [vmem:[#allocation37_spill] sm:$0xff] %v14518_v17  ;;  %v14577_v17 = vld [vmem:[%s13359_s15 + $0x50] sm:$0xff] }
 0x143   : > { %2379 = vmatpush1.msra.mxu0 %v14284_v11  ;;  %2483 = vmatpush1.msra.mxu1 %v14284_v11 }
 0x144   : > { %2380 = vmatprep.subr.mxu0 %v14293_v12  ;;  %2484 = vmatprep.subr.mxu1 %v14293_v12  ;;  %v14512_v16 = vpop.f32.mrf.mxu1 }
 0x145   : > { %2236 = vmatprep.mubr.f32.mxu0 %v22191_v56  ;;  %2340 = vmatprep.mubr.f32.mxu1 %v22191_v56  ;;  %22199 = vst [vmem:[#allocation36_spill] sm:$0xff] %v14512_v16  ;;  %v2453_v16 = vsel %vm2138_vm2, %v2451_v10, %v2452_v25 }
 0x146   : > { %2381 = vmatpush1.msra.mxu0 %v14304_v21  ;;  %2485 = vmatpush1.msra.mxu1 %v14304_v21  ;;  %v14524_v62 = vpop.f32.mrf.mxu1 }
 0x147   : > { %12273 = vmatmul.mubr.msk.f32.gmra.mxu0 %vm483_vm1, %v2144_v32  ;;  %12277 = vmatmul.mubr.msk.f32.gmra.mxu1 %vm483_vm1, %v2248_v1  ;;  %22201 = vst [vmem:[#allocation38_spill] sm:$0xff] %v14524_v62  ;;  %v14530_v32 = vpop.f32.mrf.mxu0  ;;  %v2347_v62 = vrot.slane %v14541_v51, 2 }
 0x148   : > { %2382 = vmatprep.subr.mxu0 %v14315_v28  ;;  %2486 = vmatprep.subr.mxu1 %v14315_v28  ;;  %22202 = vst [vmem:[#allocation39_spill] sm:$0xff] %v14530_v32  ;;  %v2348_v32 = vrot.slane %v14545_v39, 2 }
 0x149   : > { %2383 = vmatpush1.msra.mxu0 %v14324_v54  ;;  %2487 = vmatpush1.msra.mxu1 %v14324_v54  ;;  %v14558_v42 = vpop.f32.mrf.mxu0 }
 0x14a   : > { %2384 = vmatprep.subr.mxu0 %v14333_v55  ;;  %2488 = vmatprep.subr.mxu1 %v14333_v55  ;;  %v14536_v1 = vpop.f32.mrf.mxu1  ;;  %22204 = vst [vmem:[#allocation41_spill] sm:$0xff] %v14558_v42 }
 0x14b   : > { %2385 = vmatpush1.msra.mxu0 %v14344_v60  ;;  %2489 = vmatpush1.msra.mxu1 %v14344_v60  ;;  %22203 = vst [vmem:[#allocation40_spill] sm:$0xff] %v14536_v1  ;;  %v2349_v1 = vsel %vm2138_vm2, %v2347_v62, %v2348_v32  ;;  %v14572_v42 = vpop.f32.mrf.mxu0  ;;  %v2454_v62 = vrot.slane %v14581_v7, 2 }
 0x14c   : > { %2386 = vmatprep.subr.mxu0 %v14351_v63  ;;  %2490 = vmatprep.subr.mxu1 %v14351_v63  ;;  %v14564_v23 = vpop.f32.mrf.mxu1  ;;  %22206 = vst [vmem:[#allocation43_spill] sm:$0xff] %v14572_v42 }
 0x14d   : > { %2387 = vmatpush1.msra.mxu0 %v14360_v29  ;;  %2491 = vmatpush1.msra.mxu1 %v14360_v29  ;;  %22205 = vst [vmem:[#allocation42_spill] sm:$0xff] %v14564_v23  ;;  %v2350_v23 = vrot.slane %v14577_v17, 2  ;;  %v14592_v42 = vpop.f32.mrf.mxu0 }
 0x14e   : > { %2388 = vmatprep.subr.mxu0 %v14367_v30  ;;  %2492 = vmatprep.subr.mxu1 %v14367_v30  ;;  %22208 = vst [vmem:[#allocation45_spill] sm:$0xff] %v14592_v42  ;;  %v2352_v42 = vrot.slane %v14605_v22, 2 }
 0x14f   : > { %2389 = vmatpush1.msra.mxu0 %v14376_v41  ;;  %2493 = vmatpush1.msra.mxu1 %v14376_v41 }
 0x150   : > { %2390 = vmatprep.subr.mxu0 %v14383_v43  ;;  %2494 = vmatprep.subr.mxu1 %v14383_v43  ;;  %v14586_v10 = vpop.f32.mrf.mxu1 }
 0x151   : > { %2391 = vmatpush1.msra.mxu0 %v14392_v45  ;;  %2495 = vmatpush1.msra.mxu1 %v14392_v45  ;;  %22207 = vst [vmem:[#allocation44_spill] sm:$0xff] %v14586_v10 }
 0x152   : > { %2392 = vmatprep.subr.mxu0 %v14415_v8  ;;  %2496 = vmatprep.subr.mxu1 %v14415_v8  ;;  %v14600_v10 = vpop.f32.mrf.mxu1 }
 0x153   : > { %2393 = vmatpush1.msra.mxu0 %v14424_v14  ;;  %2426 = vmatprep.mubr.f32.mxu0 %v22191_v56  ;;  %22209 = vst [vmem:[#allocation46_spill] sm:$0xff] %v14600_v10 }
 0x154   : > { %2497 = vmatpush1.msra.mxu1 %v14424_v14  ;;  %2530 = vmatprep.mubr.f32.mxu1 %v22191_v56 }
 0x155   : > { %12278 = vmatmul.mubr.msk.f32.vlgmr.msra.gmra.mxu0 %vm483_vm1, %v2349_v1  ;;  %12282 = vmatmul.mubr.msk.f32.vlgmr.msra.gmra.mxu1 %vm483_vm1, %v2453_v16  ;;  %v2351_v16 = vsel %vm2138_vm2, %v2348_v32, %v2350_v23  ;;  %v2455_v1 = vsel %vm2138_vm2, %v2452_v25, %v2454_v62  ;;  %v2456_v32 = vrot.slane %v14609_v33, 2  ;;  %v14614_v25 = vpop.f32.mrf.mxu0 }
 0x156   : > { %2578 = vmatprep.subr.mxu0 %v14195_v48  ;;  %2682 = vmatprep.subr.mxu1 %v14195_v48  ;;  %22210 = vst [vmem:[#allocation47_spill] sm:$0xff] %v14614_v25  ;;  %v14620_v10 = vpop.f32.mrf.mxu1 }
 0x157   : > { %2579 = vmatpush1.msra.mxu0 %v14204_v50  ;;  %2683 = vmatpush1.msra.mxu1 %v14204_v50  ;;  %22211 = vst [vmem:[#allocation48_spill] sm:$0xff] %v14620_v10  ;;  %v14628_v25 = vpop.f32.mrf.mxu0 }
 0x158   : > { %2580 = vmatprep.subr.mxu0 %v14213_v57  ;;  %2684 = vmatprep.subr.mxu1 %v14213_v57  ;;  %22212 = vst [vmem:[#allocation49_spill] sm:$0xff] %v14628_v25  ;;  %v14634_v10 = vpop.f32.mrf.mxu1 }
 0x159   : > { %2432 = vmatprep.mubr.f32.mxu0 %v22191_v56  ;;  %2536 = vmatprep.mubr.f32.mxu1 %v22191_v56  ;;  %22213 = vst [vmem:[#allocation50_spill] sm:$0xff] %v14634_v10 }
 0x15a   : > { %2581 = vmatpush1.msra.mxu0 %v14224_v61  ;;  %2685 = vmatpush1.msra.mxu1 %v14224_v61 }
 0x15b   : > { %12279 = vmatmul.mubr.msk.f32.gmra.mxu0 %vm483_vm1, %v2351_v16  ;;  %12283 = vmatmul.mubr.msk.f32.gmra.mxu1 %vm483_vm1, %v2455_v1  ;;  %v2353_v16 = vsel %vm2138_vm2, %v2350_v23, %v2352_v42  ;;  %v2457_v1 = vsel %vm2138_vm2, %v2454_v62, %v2456_v32  ;;  %v14640_v23 = vpop.f32.mrf.mxu0 }
 0x15c   : > { %2582 = vmatprep.subr.mxu0 %v14235_v34  ;;  %2686 = vmatprep.subr.mxu1 %v14235_v34  ;;  %22214 = vst [vmem:[#allocation51_spill] sm:$0xff] %v14640_v23  ;;  %v14677_v23 = vld [vmem:[%s13359_s15 + $0x80] sm:$0xff] }
 0x15d   : > { %2583 = vmatpush1.msra.mxu0 %v14244_v38  ;;  %2687 = vmatpush1.msra.mxu1 %v14244_v38 }
 0x15e   : > { %2584 = vmatprep.subr.mxu0 %v14253_v40  ;;  %2688 = vmatprep.subr.mxu1 %v14253_v40 }
 0x15f   : > { %2438 = vmatprep.mubr.f32.mxu0 %v22191_v56  ;;  %2542 = vmatprep.mubr.f32.mxu1 %v22191_v56 }
 0x160   : > { %2585 = vmatpush1.msra.mxu0 %v14264_v53  ;;  %2689 = vmatpush1.msra.mxu1 %v14264_v53 }
 0x161   : > { %12280 = vmatmul.mubr.msk.f32.gmra.mxu0 %vm483_vm1, %v2353_v16  ;;  %12284 = vmatmul.mubr.msk.f32.gmra.mxu1 %vm483_vm1, %v2457_v1  ;;  %v14646_v62 = vpop.f32.mrf.mxu0 }
 0x162   : > { %2586 = vmatprep.subr.mxu0 %v14275_v5  ;;  %2690 = vmatprep.subr.mxu1 %v14275_v5  ;;  %22215 = vst [vmem:[#allocation52_spill] sm:$0xff] %v14646_v62  ;;  %v14685_v62 = vld [vmem:[%s13359_s15 + $0xa0] sm:$0xff] }
 0x163   : > { %2587 = vmatpush1.msra.mxu0 %v14284_v11  ;;  %2691 = vmatpush1.msra.mxu1 %v14284_v11  ;;  %v14658_v1 = vpop.f32.mrf.mxu0  ;;  %v2659_v25 = vrot.slane %v14685_v62, 2 }
 0x164   : > { %2588 = vmatprep.subr.mxu0 %v14293_v12  ;;  %2692 = vmatprep.subr.mxu1 %v14293_v12  ;;  %v14648_v16 = vpop.f32.mrf.mxu1  ;;  %22217 = vst [vmem:[#allocation54_spill] sm:$0xff] %v14658_v1  ;;  %v14681_v1 = vld [vmem:[%s13359_s15 + $0x88] sm:$0xff] }
 0x165   : > { %2444 = vmatprep.mubr.f32.mxu0 %v22191_v56  ;;  %2548 = vmatprep.mubr.f32.mxu1 %v22191_v56  ;;  %22216 = vst [vmem:[#allocation53_spill] sm:$0xff] %v14648_v16  ;;  %v2556_v16 = vrot.slane %v14681_v1, 2 }
 0x166   : > { %2589 = vmatpush1.msra.mxu0 %v14304_v21  ;;  %2693 = vmatpush1.msra.mxu1 %v14304_v21  ;;  %v14660_v10 = vpop.f32.mrf.mxu1 }
 0x167   : > { %12281 = vmatmul.mubr.msk.f32.gmra.mxu0 %vm483_vm1, %v2352_v42  ;;  %12285 = vmatmul.mubr.msk.f32.gmra.mxu1 %vm483_vm1, %v2456_v32  ;;  %22218 = vst [vmem:[#allocation55_spill] sm:$0xff] %v14660_v10  ;;  %v14670_v42 = vpop.f32.mrf.mxu0  ;;  %v2555_v10 = vrot.slane %v14677_v23, 2 }
 0x168   : > { %2590 = vmatprep.subr.mxu0 %v14315_v28  ;;  %2694 = vmatprep.subr.mxu1 %v14315_v28  ;;  %22219 = vst [vmem:[#allocation56_spill] sm:$0xff] %v14670_v42 }
 0x169   : > { %2591 = vmatpush1.msra.mxu0 %v14324_v54  ;;  %2695 = vmatpush1.msra.mxu1 %v14324_v54  ;;  %v14698_v42 = vpop.f32.mrf.mxu0  ;;  %v2557_v15 = vsel %vm2138_vm2, %v2555_v10, %v2556_v16 }
 0x16a   : > { %2592 = vmatprep.subr.mxu0 %v14333_v55  ;;  %2696 = vmatprep.subr.mxu1 %v14333_v55  ;;  %v14672_v32 = vpop.f32.mrf.mxu1  ;;  %22221 = vst [vmem:[#allocation58_spill] sm:$0xff] %v14698_v42  ;;  %v14715_v42 = vld [vmem:[%s13359_s15 + $0xb0] sm:$0xff] }
 0x16b   : > { %2593 = vmatpush1.msra.mxu0 %v14344_v60  ;;  %2697 = vmatpush1.msra.mxu1 %v14344_v60  ;;  %22220 = vst [vmem:[#allocation57_spill] sm:$0xff] %v14672_v32  ;;  %v2660_v32 = vrot.slane %v14689_v20, 2  ;;  %v2662_v13 = vrot.slane %v14715_v42, 2 }
 0x16c   : > { %2594 = vmatprep.subr.mxu0 %v14351_v63  ;;  %2698 = vmatprep.subr.mxu1 %v14351_v63  ;;  %v14700_v9 = vpop.f32.mrf.mxu1 }
 0x16d   : > { %2595 = vmatpush1.msra.mxu0 %v14360_v29  ;;  %2699 = vmatpush1.msra.mxu1 %v14360_v29  ;;  %22222 = vst [vmem:[#allocation59_spill] sm:$0xff] %v14700_v9  ;;  %v2661_v58 = vsel %vm2138_vm2, %v2659_v25, %v2660_v32  ;;  %v2558_v9 = vrot.slane %v14711_v26, 2  ;;  %v14720_v10 = vpop.f32.mrf.mxu0 }
 0x16e   : > { %2596 = vmatprep.subr.mxu0 %v14367_v30  ;;  %2700 = vmatprep.subr.mxu1 %v14367_v30  ;;  %22223 = vst [vmem:[#allocation60_spill] sm:$0xff] %v14720_v10 }
 0x16f   : > { %2597 = vmatpush1.msra.mxu0 %v14376_v41  ;;  %2701 = vmatpush1.msra.mxu1 %v14376_v41 }
 0x170   : > { %2598 = vmatprep.subr.mxu0 %v14383_v43  ;;  %2702 = vmatprep.subr.mxu1 %v14383_v43  ;;  %v14722_v25 = vpop.f32.mrf.mxu1 }
 0x171   : > { %2599 = vmatpush1.msra.mxu0 %v14392_v45  ;;  %2703 = vmatpush1.msra.mxu1 %v14392_v45  ;;  %22224 = vst [vmem:[#allocation61_spill] sm:$0xff] %v14722_v25  ;;  %v14734_v25 = vpop.f32.mrf.mxu0 }
 0x172   : > { %2600 = vmatprep.subr.mxu0 %v14415_v8  ;;  %2704 = vmatprep.subr.mxu1 %v14415_v8  ;;  %22225 = vst [vmem:[#allocation62_spill] sm:$0xff] %v14734_v25  ;;  %v14736_v10 = vpop.f32.mrf.mxu1 }
 0x173   : > { %2601 = vmatpush1.msra.mxu0 %v14424_v14  ;;  %2634 = vmatprep.mubr.f32.mxu0 %v22191_v56  ;;  %22226 = vst [vmem:[#allocation63_spill] sm:$0xff] %v14736_v10 }
 0x174   : > { %2705 = vmatpush1.msra.mxu1 %v14424_v14  ;;  %2738 = vmatprep.mubr.f32.mxu1 %v22191_v56 }
 0x175   : > { %12286 = vmatmul.mubr.msk.f32.vlgmr.msra.gmra.mxu0 %vm483_vm1, %v2557_v15  ;;  %12290 = vmatmul.mubr.msk.f32.vlgmr.msra.gmra.mxu1 %vm483_vm1, %v2661_v58  ;;  %v2559_v58 = vsel %vm2138_vm2, %v2556_v16, %v2558_v9  ;;  %v2663_v15 = vsel %vm2138_vm2, %v2660_v32, %v2662_v13  ;;  %v14756_v32 = vpop.f32.mrf.mxu1 }
 0x176   : > { %2786 = vmatprep.subr.mxu0 %v14195_v48  ;;  %2890 = vmatprep.subr.mxu1 %v14195_v48  ;;  %v14741_v48 = vld [vmem:[%s13359_s15 + $0x98] sm:$0xff] }
 0x177   : > { %2787 = vmatpush1.msra.mxu0 %v14204_v50  ;;  %2891 = vmatpush1.msra.mxu1 %v14204_v50  ;;  %v2560_v50 = vrot.slane %v14741_v48, 2 }
 0x178   : > { %2788 = vmatprep.subr.mxu0 %v14213_v57  ;;  %2892 = vmatprep.subr.mxu1 %v14213_v57  ;;  %v14745_v57 = vld [vmem:[%s13359_s15 + $0xb8] sm:$0xff] }
 0x179   : > { %2640 = vmatprep.mubr.f32.mxu0 %v22191_v56  ;;  %2744 = vmatprep.mubr.f32.mxu1 %v22191_v56  ;;  %v2664_v16 = vrot.slane %v14745_v57, 2 }
 0x17a   : > { %2789 = vmatpush1.msra.mxu0 %v14224_v61  ;;  %2893 = vmatpush1.msra.mxu1 %v14224_v61  ;;  %v14754_v61 = vpop.f32.mrf.mxu0 }
 0x17b   : > { %12287 = vmatmul.mubr.msk.f32.gmra.mxu0 %vm483_vm1, %v2559_v58  ;;  %12291 = vmatmul.mubr.msk.f32.gmra.mxu1 %vm483_vm1, %v2663_v15  ;;  %v2561_v58 = vsel %vm2138_vm2, %v2558_v9, %v2560_v50  ;;  %v2665_v15 = vsel %vm2138_vm2, %v2662_v13, %v2664_v16 }
 0x17c   : > { %2790 = vmatprep.subr.mxu0 %v14235_v34  ;;  %2894 = vmatprep.subr.mxu1 %v14235_v34  ;;  %v14768_v34 = vpop.f32.mrf.mxu0 }
 0x17d   : > { %2791 = vmatpush1.msra.mxu0 %v14244_v38  ;;  %2895 = vmatpush1.msra.mxu1 %v14244_v38  ;;  %22227 = vst [vmem:[#allocation64_spill] sm:$0xff] %v14768_v34  ;;  %v14770_v38 = vpop.f32.mrf.mxu1 }
 0x17e   : > { %2792 = vmatprep.subr.mxu0 %v14253_v40  ;;  %2896 = vmatprep.subr.mxu1 %v14253_v40  ;;  %22228 = vst [vmem:[#allocation65_spill] sm:$0xff] %v14770_v38  ;;  %v14780_v40 = vpop.f32.mrf.mxu0  ;;  %v14891_v38 = vld [vmem:[%s22165_s1 + $0x2d8] sm:$0xff] }
 0x17f   : > { %2646 = vmatprep.mubr.f32.mxu0 %v22191_v56  ;;  %2750 = vmatprep.mubr.f32.mxu1 %v22191_v56 }
 0x180   : > { %2793 = vmatpush1.msra.mxu0 %v14264_v53  ;;  %2897 = vmatpush1.msra.mxu1 %v14264_v53  ;;  %v14782_v53 = vpop.f32.mrf.mxu1 }
 0x181   : > { %12288 = vmatmul.mubr.msk.f32.gmra.mxu0 %vm483_vm1, %v2561_v58  ;;  %12292 = vmatmul.mubr.msk.f32.gmra.mxu1 %vm483_vm1, %v2665_v15  ;;  %v14859_v15 = vld [vmem:[%s13359_s15 + $0xf0] sm:$0xff] }
 0x182   : > { %2794 = vmatprep.subr.mxu0 %v14275_v5  ;;  %2898 = vmatprep.subr.mxu1 %v14275_v5  ;;  %v14792_v5 = vpop.f32.mrf.mxu0  ;;  %22240 = vst [vmem:[#allocation77_spill] sm:$0xff] %v14859_v15 }
 0x183   : > { %2795 = vmatpush1.msra.mxu0 %v14284_v11  ;;  %2899 = vmatpush1.msra.mxu1 %v14284_v11  ;;  %22229 = vst [vmem:[#allocation66_spill] sm:$0xff] %v14792_v5  ;;  %v14794_v11 = vpop.f32.mrf.mxu1  ;;  %v14909_v5 = vld [vmem:[%s13359_s15 + $0xf8] sm:$0xff] }
 0x184   : > { %2796 = vmatprep.subr.mxu0 %v14293_v12  ;;  %2900 = vmatprep.subr.mxu1 %v14293_v12  ;;  %22230 = vst [vmem:[#allocation67_spill] sm:$0xff] %v14794_v11  ;;  %v14804_v12 = vpop.f32.mrf.mxu0  ;;  %22246 = vst [vmem:[#allocation83_spill] sm:$0xff] %v14909_v5  ;;  %v2872_v34 = vrot.slane %v14909_v5, 2 }
 0x185   : > { %2652 = vmatprep.mubr.f32.mxu0 %v22191_v56  ;;  %2756 = vmatprep.mubr.f32.mxu1 %v22191_v56  ;;  %22231 = vst [vmem:[#allocation68_spill] sm:$0xff] %v14804_v12  ;;  %v14806_v13 = vpop.f32.mrf.mxu1  ;;  %v3168_v12 = vrot.slane %v14445_v31, 3 }
 0x186   : > { %2797 = vmatpush1.msra.mxu0 %v14304_v21  ;;  %2901 = vmatpush1.msra.mxu1 %v14304_v21  ;;  %22232 = vst [vmem:[#allocation69_spill] sm:$0xff] %v14806_v13  ;;  %v14811_v21 = vld [vmem:[%s13359_s15 + $0xc0] sm:$0xff] }
 0x187   : > { %12289 = vmatmul.mubr.msk.f32.gmra.mxu0 %vm483_vm1, %v2560_v50  ;;  %12293 = vmatmul.mubr.msk.f32.gmra.mxu1 %vm483_vm1, %v2664_v16  ;;  %22233 = vst [vmem:[#allocation70_spill] sm:$0xff] %v14811_v21  ;;  %v14834_v50 = vpop.f32.mrf.mxu1 }
 0x188   : > { %2798 = vmatprep.subr.mxu0 %v14315_v28  ;;  %2902 = vmatprep.subr.mxu1 %v14315_v28  ;;  %v2763_v28 = vrot.slane %v14811_v21, 2  ;;  %22238 = vst [vmem:[#allocation75_spill] sm:$0xff] %v14834_v50  ;;  %v15045_v21 = vld [vmem:[%s22165_s1 + $0x258] sm:$0xff] }
 0x189   : > { %2799 = vmatpush1.msra.mxu0 %v14324_v54  ;;  %2903 = vmatpush1.msra.mxu1 %v14324_v54  ;;  %v14815_v54 = vld [vmem:[%s13359_s15 + $0xc8] sm:$0xff]  ;;  %v14871_v10 = vpop.f32.mrf.mxu1 }
 0x18a   : > { %2800 = vmatprep.subr.mxu0 %v14333_v55  ;;  %2904 = vmatprep.subr.mxu1 %v14333_v55  ;;  %22234 = vst [vmem:[#allocation71_spill] sm:$0xff] %v14815_v54  ;;  %v2764_v55 = vrot.slane %v14815_v54, 2  ;;  %22242 = vst [vmem:[#allocation79_spill] sm:$0xff] %v14871_v10  ;;  %v15038_v54 = vld [vmem:[%s22165_s1 + $0x260] sm:$0xff]  ;;  %v3062_v10 = vrot.slane %v14399_v0, 3 }
 0x18b   : > { %2801 = vmatpush1.msra.mxu0 %v14344_v60  ;;  %2905 = vmatpush1.msra.mxu1 %v14344_v60  ;;  %v14819_v60 = vld [vmem:[%s13359_s15 + $0xe0] sm:$0xff]  ;;  %v14895_v50 = vpop.f32.mrf.mxu1 }
 0x18c   : > { %2802 = vmatprep.subr.mxu0 %v14351_v63  ;;  %2906 = vmatprep.subr.mxu1 %v14351_v63  ;;  %22235 = vst [vmem:[#allocation72_spill] sm:$0xff] %v14819_v60  ;;  %v2867_v63 = vrot.slane %v14819_v60, 2  ;;  %22244 = vst [vmem:[#allocation81_spill] sm:$0xff] %v14895_v50  ;;  %v14917_v50 = vld [vmem:[%s22165_s1 + $0x2c8] sm:$0xff] }
 0x18d   : > { %2803 = vmatpush1.msra.mxu0 %v14360_v29  ;;  %2907 = vmatpush1.msra.mxu1 %v14360_v29  ;;  %v14823_v29 = vld [vmem:[%s13359_s15 + $0xe8] sm:$0xff] }
 0x18e   : > { %2804 = vmatprep.subr.mxu0 %v14367_v30  ;;  %2908 = vmatprep.subr.mxu1 %v14367_v30  ;;  %22236 = vst [vmem:[#allocation73_spill] sm:$0xff] %v14823_v29  ;;  %v2868_v9 = vrot.slane %v14823_v29, 2  ;;  %v14832_v30 = vpop.f32.mrf.mxu0  ;;  %v15006_v29 = vld [vmem:[%s22165_s1 + $0x280] sm:$0xff] }
 0x18f   : > { %2805 = vmatpush1.msra.mxu0 %v14376_v41  ;;  %2909 = vmatpush1.msra.mxu1 %v14376_v41  ;;  %22237 = vst [vmem:[#allocation74_spill] sm:$0xff] %v14832_v30  ;;  %v2765_v41 = vsel %vm2138_vm2, %v2763_v28, %v2764_v55  ;;  %v2870_v28 = vrot.slane %v14859_v15, 2 }
 0x190   : > { %2806 = vmatprep.subr.mxu0 %v14383_v43  ;;  %2910 = vmatprep.subr.mxu1 %v14383_v43  ;;  %v2869_v16 = vsel %vm2138_vm2, %v2867_v63, %v2868_v9  ;;  %v14845_v43 = vld [vmem:[%s22165_s1 + $0x2f8] sm:$0xff]  ;;  %v14869_v63 = vpop.f32.mrf.mxu0 }
 0x191   : > { %2807 = vmatpush1.msra.mxu0 %v14392_v45  ;;  %2911 = vmatpush1.msra.mxu1 %v14392_v45  ;;  %v14852_v45 = vld [vmem:[%s22165_s1 + $0x2f0] sm:$0xff]  ;;  %22241 = vst [vmem:[#allocation78_spill] sm:$0xff] %v14869_v63  ;;  %v2871_v25 = vsel %vm2138_vm2, %v2868_v9, %v2870_v28  ;;  %v14905_v9 = vld [vmem:[%s13359_s15 + $0xd8] sm:$0xff]  ;;  %v2873_v5 = vsel %vm2138_vm2, %v2870_v28, %v2872_v34  ;;  %v14959_v28 = vld [vmem:[%s22165_s1 + $0x2a8] sm:$0xff]  ;;  %v3166_v63 = vrot.slane %v14407_v6, 3 }
 0x192   : > { %2808 = vmatprep.subr.mxu0 %v14415_v8  ;;  %2912 = vmatprep.subr.mxu1 %v14415_v8  ;;  %v14855_v8 = vld [vmem:[%s13359_s15 + $0xd0] sm:$0xff]  ;;  %v14893_v11 = vpop.f32.mrf.mxu0  ;;  %22245 = vst [vmem:[#allocation82_spill] sm:$0xff] %v14905_v9  ;;  %v2768_v30 = vrot.slane %v14905_v9, 2  ;;  %v14941_v9 = vld [vmem:[%s22165_s1 + $0x2b8] sm:$0xff] }
 0x193   : > { %2809 = vmatpush1.msra.mxu0 %v14424_v14  ;;  %2842 = vmatprep.mubr.f32.mxu0 %v22191_v56  ;;  %22239 = vst [vmem:[#allocation76_spill] sm:$0xff] %v14855_v8  ;;  %v2766_v58 = vrot.slane %v14855_v8, 2  ;;  %22243 = vst [vmem:[#allocation80_spill] sm:$0xff] %v14893_v11  ;;  %v3167_v3 = vsel %vm3060_vm3, %v3165_v36, %v3166_v63 }
 0x194   : > { %2913 = vmatpush1.msra.mxu1 %v14424_v14  ;;  %2946 = vmatprep.mubr.f32.mxu1 %v22191_v56  ;;  %v14867_v14 = vld [vmem:[%s22165_s1 + $0x2e8] sm:$0xff] }
 0x195   : > { %12294 = vmatmul.mubr.msk.f32.vlgmr.msra.gmra.mxu0 %vm483_vm1, %v2765_v41  ;;  %12298 = vmatmul.mubr.msk.f32.vlgmr.msra.gmra.mxu1 %vm483_vm1, %v2869_v16  ;;  %v14880_v41 = vld [vmem:[%s22165_s1 + $0x2e0] sm:$0xff]  ;;  %v2767_v16 = vsel %vm2138_vm2, %v2764_v55, %v2766_v58  ;;  %v14902_v55 = vld [vmem:[%s22165_s1 + $0x2d0] sm:$0xff]  ;;  %v14919_v11 = vpop.f32.mrf.mxu0  ;;  %v14921_v15 = vpop.f32.mrf.mxu1 }
 0x196   : > { %3084 = vmatprep.subr.mxu0 %v14845_v43  ;;  %3188 = vmatprep.subr.mxu1 %v14845_v43  ;;  %22247 = vst [vmem:[#allocation84_spill] sm:$0xff] %v14919_v11  ;;  %22248 = vst [vmem:[#allocation85_spill] sm:$0xff] %v14921_v15 }
 0x197   : > { %3085 = vmatpush1.msra.mxu0 %v14852_v45  ;;  %3189 = vmatpush1.msra.mxu1 %v14852_v45  ;;  %v14943_v8 = vpop.f32.mrf.mxu0  ;;  %v14945_v15 = vpop.f32.mrf.mxu1 }
 0x198   : > { %3086 = vmatprep.subr.mxu0 %v14867_v14  ;;  %3190 = vmatprep.subr.mxu1 %v14867_v14  ;;  %22249 = vst [vmem:[#allocation86_spill] sm:$0xff] %v14943_v8  ;;  %22250 = vst [vmem:[#allocation87_spill] sm:$0xff] %v14945_v15  ;;  %v14968_v15 = vld [vmem:[%s22165_s1 + $0x2a0] sm:$0xff]  ;;  %v14981_v8 = vld [vmem:[%s22165_s1 + $0x298] sm:$0xff] }
 0x199   : > { %2848 = vmatprep.mubr.f32.mxu0 %v22191_v56  ;;  %2952 = vmatprep.mubr.f32.mxu1 %v22191_v56 }
 0x19a   : > { %3087 = vmatpush1.msra.mxu0 %v14880_v41  ;;  %3191 = vmatpush1.msra.mxu1 %v14880_v41 }
 0x19b   : > { %12295 = vmatmul.mubr.msk.f32.gmra.mxu0 %vm483_vm1, %v2767_v16  ;;  %12299 = vmatmul.mubr.msk.f32.gmra.mxu1 %vm483_vm1, %v2871_v25  ;;  %v14930_v25 = vld [vmem:[%s22165_s1 + $0x2c0] sm:$0xff]  ;;  %v2769_v16 = vsel %vm2138_vm2, %v2766_v58, %v2768_v30  ;;  %v14952_v58 = vld [vmem:[%s22165_s1 + $0x2b0] sm:$0xff] }
 0x19c   : > { %3088 = vmatprep.subr.mxu0 %v14891_v38  ;;  %3192 = vmatprep.subr.mxu1 %v14891_v38 }
 0x19d   : > { %3089 = vmatpush1.msra.mxu0 %v14902_v55  ;;  %3193 = vmatpush1.msra.mxu1 %v14902_v55 }
 0x19e   : > { %3090 = vmatprep.subr.mxu0 %v14917_v50  ;;  %3194 = vmatprep.subr.mxu1 %v14917_v50 }
 0x19f   : > { %2854 = vmatprep.mubr.f32.mxu0 %v22191_v56  ;;  %2958 = vmatprep.mubr.f32.mxu1 %v22191_v56 }
 0x1a0   : > { %3091 = vmatpush1.msra.mxu0 %v14930_v25  ;;  %3195 = vmatpush1.msra.mxu1 %v14930_v25 }
 0x1a1   : > { %12296 = vmatmul.mubr.msk.f32.gmra.mxu0 %vm483_vm1, %v2769_v16  ;;  %12300 = vmatmul.mubr.msk.f32.gmra.mxu1 %vm483_vm1, %v2873_v5  ;;  %v14970_v16 = vpop.f32.mrf.mxu0  ;;  %v14972_v5 = vpop.f32.mrf.mxu1 }
 0x1a2   : > { %3092 = vmatprep.subr.mxu0 %v14941_v9  ;;  %3196 = vmatprep.subr.mxu1 %v14941_v9  ;;  %22251 = vst [vmem:[#allocation88_spill] sm:$0xff] %v14970_v16  ;;  %22252 = vst [vmem:[#allocation89_spill] sm:$0xff] %v14972_v5  ;;  %v14988_v5 = vld [vmem:[%s22165_s1 + $0x290] sm:$0xff]  ;;  %v14995_v16 = vld [vmem:[%s22165_s1 + $0x288] sm:$0xff] }
 0x1a3   : > { %3093 = vmatpush1.msra.mxu0 %v14952_v58  ;;  %3197 = vmatpush1.msra.mxu1 %v14952_v58  ;;  %v14997_v11 = vpop.f32.mrf.mxu0  ;;  %v14999_v27 = vpop.f32.mrf.mxu1 }
 0x1a4   : > { %3094 = vmatprep.subr.mxu0 %v14959_v28  ;;  %3198 = vmatprep.subr.mxu1 %v14959_v28  ;;  %22253 = vst [vmem:[#allocation90_spill] sm:$0xff] %v14997_v11  ;;  %22254 = vst [vmem:[#allocation91_spill] sm:$0xff] %v14999_v27  ;;  %v15027_v27 = vld [vmem:[%s22165_s1 + $0x268] sm:$0xff] }
 0x1a5   : > { %2860 = vmatprep.mubr.f32.mxu0 %v22191_v56  ;;  %2964 = vmatprep.mubr.f32.mxu1 %v22191_v56  ;;  %v15029_v11 = vpop.f32.mrf.mxu0  ;;  %v15031_v60 = vpop.f32.mrf.mxu1 }
 0x1a6   : > { %3095 = vmatpush1.msra.mxu0 %v14968_v15  ;;  %3199 = vmatpush1.msra.mxu1 %v14968_v15  ;;  %22255 = vst [vmem:[#allocation92_spill] sm:$0xff] %v15029_v11  ;;  %22256 = vst [vmem:[#allocation93_spill] sm:$0xff] %v15031_v60  ;;  %v15052_v60 = vld [vmem:[%s22165_s1 + $0x250] sm:$0xff]  ;;  %v3061_v11 = vrot.slane %v14395_v46, 3  ;;  %v15074_v46 = vld [vmem:[%s22165_s1 + $0x240] sm:$0xff] }
 0x1a7   : > { %12297 = vmatmul.mubr.msk.f32.gmra.mxu0 %vm483_vm1, %v2768_v30  ;;  %12301 = vmatmul.mubr.msk.f32.gmra.mxu1 %vm483_vm1, %v2872_v34  ;;  %v15013_v34 = vld [vmem:[%s22165_s1 + $0x278] sm:$0xff]  ;;  %v15020_v30 = vld [vmem:[%s22165_s1 + $0x270] sm:$0xff]  ;;  %v15065_v13 = vpop.f32.mrf.mxu0  ;;  %v15067_v47 = vpop.f32.mrf.mxu1 }
 0x1a8   : > { %3096 = vmatprep.subr.mxu0 %v14981_v8  ;;  %3200 = vmatprep.subr.mxu1 %v14981_v8  ;;  %22257 = vst [vmem:[#allocation94_spill] sm:$0xff] %v15065_v13  ;;  %22258 = vst [vmem:[#allocation95_spill] sm:$0xff] %v15067_v47  ;;  %v3063_v0 = vsel %vm3060_vm3, %v3061_v11, %v3062_v10  ;;  %v3064_v13 = vrot.slane %v14441_v24, 3  ;;  %v3169_v24 = vsel %vm3060_vm3, %v3166_v63, %v3168_v12 }
 0x1a9   : > { %3097 = vmatpush1.msra.mxu0 %v14988_v5  ;;  %3201 = vmatpush1.msra.mxu1 %v14988_v5  ;;  %v15084_v6 = vpop.f32.mrf.mxu0  ;;  %v15086_v47 = vpop.f32.mrf.mxu1 }
 0x1aa   : > { %3098 = vmatprep.subr.mxu0 %v14995_v16  ;;  %3202 = vmatprep.subr.mxu1 %v14995_v16  ;;  %v3065_v31 = vsel %vm3060_vm3, %v3062_v10, %v3064_v13 }
 0x1ab   : > { %3099 = vmatpush1.msra.mxu0 %v15006_v29  ;;  %3203 = vmatpush1.msra.mxu1 %v15006_v29  ;;  %v15098_v36 = vpop.f32.mrf.mxu0  ;;  %v15100_v11 = vpop.f32.mrf.mxu1 }
 0x1ac   : > { %3100 = vmatprep.subr.mxu0 %v15013_v34  ;;  %3204 = vmatprep.subr.mxu1 %v15013_v34  ;;  %22259 = vst [vmem:[#allocation96_spill] sm:$0xff] %v15098_v36  ;;  %22260 = vst [vmem:[#allocation97_spill] sm:$0xff] %v15100_v11  ;;  %v3066_v11 = vrot.slane %v14469_v4, 3  ;;  %v3170_v36 = vrot.slane %v14473_v44, 3 }
 0x1ad   : > { %3101 = vmatpush1.msra.mxu0 %v15020_v30  ;;  %3205 = vmatpush1.msra.mxu1 %v15020_v30 }
 0x1ae   : > { %3102 = vmatprep.subr.mxu0 %v15027_v27  ;;  %3206 = vmatprep.subr.mxu1 %v15027_v27  ;;  %v3067_v44 = vsel %vm3060_vm3, %v3064_v13, %v3066_v11  ;;  %v3171_v4 = vsel %vm3060_vm3, %v3168_v12, %v3170_v36 }
 0x1af   : > { %3103 = vmatpush1.msra.mxu0 %v15038_v54  ;;  %3207 = vmatpush1.msra.mxu1 %v15038_v54 }
 0x1b0   : > { %3104 = vmatprep.subr.mxu0 %v15045_v21  ;;  %3208 = vmatprep.subr.mxu1 %v15045_v21 }
 0x1b1   : > { %3105 = vmatpush1.msra.mxu0 %v15052_v60  ;;  %3209 = vmatpush1.msra.mxu1 %v15052_v60 }
 0x1b2   : > { %3106 = vmatprep.subr.mxu0 %v15063_v52  ;;  %3210 = vmatprep.subr.mxu1 %v15063_v52 }
 0x1b3   : > { %3107 = vmatpush1.msra.mxu0 %v15074_v46  ;;  %3140 = vmatprep.mubr.f32.mxu0 %v22191_v56 }
 0x1b4   : > { %3211 = vmatpush1.msra.mxu1 %v15074_v46  ;;  %3244 = vmatprep.mubr.f32.mxu1 %v22191_v56 }
 0x1b5   : > { %12326 = vmatmul.mubr.msk.f32.vlgmr.msra.gmra.mxu0 %vm483_vm1, %v3063_v0  ;;  %12330 = vmatmul.mubr.msk.f32.vlgmr.msra.gmra.mxu1 %vm483_vm1, %v3167_v3  ;;  %v15108_v0 = vpop.f32.mrf.mxu0  ;;  %v15110_v3 = vpop.f32.mrf.mxu1 }
 0x1b6   : > { %3292 = vmatprep.subr.mxu0 %v14845_v43  ;;  %3396 = vmatprep.subr.mxu1 %v14845_v43 }
 0x1b7   : > { %3293 = vmatpush1.msra.mxu0 %v14852_v45  ;;  %3397 = vmatpush1.msra.mxu1 %v14852_v45  ;;  %v15122_v10 = vpop.f32.mrf.mxu0  ;;  %v15124_v63 = vpop.f32.mrf.mxu1 }
 0x1b8   : > { %3294 = vmatprep.subr.mxu0 %v14867_v14  ;;  %3398 = vmatprep.subr.mxu1 %v14867_v14  ;;  %22261 = vst [vmem:[#allocation98_spill] sm:$0xff] %v15122_v10  ;;  %22262 = vst [vmem:[#allocation99_spill] sm:$0xff] %v15124_v63  ;;  %v3269_v63 = vrot.slane %v14541_v51, 3  ;;  %v3270_v10 = vrot.slane %v14545_v39, 3 }
 0x1b9   : > { %3146 = vmatprep.mubr.f32.mxu0 %v22191_v56  ;;  %3250 = vmatprep.mubr.f32.mxu1 %v22191_v56 }
 0x1ba   : > { %3295 = vmatpush1.msra.mxu0 %v14880_v41  ;;  %3399 = vmatpush1.msra.mxu1 %v14880_v41  ;;  %v3271_v39 = vsel %vm3060_vm3, %v3269_v63, %v3270_v10 }
 0x1bb   : > { %12327 = vmatmul.mubr.msk.f32.gmra.mxu0 %vm483_vm1, %v3065_v31  ;;  %12331 = vmatmul.mubr.msk.f32.gmra.mxu1 %vm483_vm1, %v3169_v24  ;;  %v15136_v31 = vpop.f32.mrf.mxu0  ;;  %v15138_v24 = vpop.f32.mrf.mxu1 }
 0x1bc   : > { %3296 = vmatprep.subr.mxu0 %v14891_v38  ;;  %3400 = vmatprep.subr.mxu1 %v14891_v38 }
 0x1bd   : > { %3297 = vmatpush1.msra.mxu0 %v14902_v55  ;;  %3401 = vmatpush1.msra.mxu1 %v14902_v55  ;;  %v15148_v12 = vpop.f32.mrf.mxu0  ;;  %v15150_v13 = vpop.f32.mrf.mxu1 }
 0x1be   : > { %3298 = vmatprep.subr.mxu0 %v14917_v50  ;;  %3402 = vmatprep.subr.mxu1 %v14917_v50  ;;  %22263 = vst [vmem:[#allocation100_spill] sm:$0xff] %v15148_v12  ;;  %22264 = vst [vmem:[#allocation101_spill] sm:$0xff] %v15150_v13  ;;  %v3373_v13 = vrot.slane %v14549_v2, 3  ;;  %v3374_v12 = vrot.slane %v14553_v59, 3  ;;  %v3272_v2 = vrot.slane %v14577_v17, 3 }
 0x1bf   : > { %3152 = vmatprep.mubr.f32.mxu0 %v22191_v56  ;;  %3256 = vmatprep.mubr.f32.mxu1 %v22191_v56 }
 0x1c0   : > { %3299 = vmatpush1.msra.mxu0 %v14930_v25  ;;  %3403 = vmatpush1.msra.mxu1 %v14930_v25  ;;  %v3375_v59 = vsel %vm3060_vm3, %v3373_v13, %v3374_v12 }
 0x1c1   : > { %12328 = vmatmul.mubr.msk.f32.gmra.mxu0 %vm483_vm1, %v3067_v44  ;;  %12332 = vmatmul.mubr.msk.f32.gmra.mxu1 %vm483_vm1, %v3171_v4  ;;  %v15160_v44 = vpop.f32.mrf.mxu0  ;;  %v15162_v4 = vpop.f32.mrf.mxu1 }
 0x1c2   : > { %3300 = vmatprep.subr.mxu0 %v14941_v9  ;;  %3404 = vmatprep.subr.mxu1 %v14941_v9 }
 0x1c3   : > { %3301 = vmatpush1.msra.mxu0 %v14952_v58  ;;  %3405 = vmatpush1.msra.mxu1 %v14952_v58 }
 0x1c4   : > { %3302 = vmatprep.subr.mxu0 %v14959_v28  ;;  %3406 = vmatprep.subr.mxu1 %v14959_v28 }
 0x1c5   : > { %3158 = vmatprep.mubr.f32.mxu0 %v22191_v56  ;;  %3262 = vmatprep.mubr.f32.mxu1 %v22191_v56 }
 0x1c6   : > { %3303 = vmatpush1.msra.mxu0 %v14968_v15  ;;  %3407 = vmatpush1.msra.mxu1 %v14968_v15 }
 0x1c7   : > { %12329 = vmatmul.mubr.msk.f32.gmra.mxu0 %vm483_vm1, %v3066_v11  ;;  %12333 = vmatmul.mubr.msk.f32.gmra.mxu1 %vm483_vm1, %v3170_v36  ;;  %v15172_v36 = vpop.f32.mrf.mxu0  ;;  %v15174_v11 = vpop.f32.mrf.mxu1 }
 0x1c8   : > { %3304 = vmatprep.subr.mxu0 %v14981_v8  ;;  %3408 = vmatprep.subr.mxu1 %v14981_v8  ;;  %22265 = vst [vmem:[#allocation102_spill] sm:$0xff] %v15172_v36  ;;  %22266 = vst [vmem:[#allocation103_spill] sm:$0xff] %v15174_v11  ;;  %v3376_v36 = vrot.slane %v14581_v7, 3  ;;  %v3273_v7 = vsel %vm3060_vm3, %v3270_v10, %v3272_v2 }
 0x1c9   : > { %3305 = vmatpush1.msra.mxu0 %v14988_v5  ;;  %3409 = vmatpush1.msra.mxu1 %v14988_v5  ;;  %v15188_v11 = vpop.f32.mrf.mxu0  ;;  %v15190_v51 = vpop.f32.mrf.mxu1 }
 0x1ca   : > { %3306 = vmatprep.subr.mxu0 %v14995_v16  ;;  %3410 = vmatprep.subr.mxu1 %v14995_v16  ;;  %22267 = vst [vmem:[#allocation104_spill] sm:$0xff] %v15190_v51 }
 0x1cb   : > { %3307 = vmatpush1.msra.mxu0 %v15006_v29  ;;  %3411 = vmatpush1.msra.mxu1 %v15006_v29  ;;  %v15204_v51 = vpop.f32.mrf.mxu0  ;;  %v15206_v63 = vpop.f32.mrf.mxu1 }
 0x1cc   : > { %3308 = vmatprep.subr.mxu0 %v15013_v34  ;;  %3412 = vmatprep.subr.mxu1 %v15013_v34  ;;  %22268 = vst [vmem:[#allocation105_spill] sm:$0xff] %v15204_v51  ;;  %22269 = vst [vmem:[#allocation106_spill] sm:$0xff] %v15206_v63  ;;  %v3378_v63 = vrot.slane %v14609_v33, 3 }
 0x1cd   : > { %3309 = vmatpush1.msra.mxu0 %v15020_v30  ;;  %3413 = vmatpush1.msra.mxu1 %v15020_v30 }
 0x1ce   : > { %3310 = vmatprep.subr.mxu0 %v15027_v27  ;;  %3414 = vmatprep.subr.mxu1 %v15027_v27 }
 0x1cf   : > { %3311 = vmatpush1.msra.mxu0 %v15038_v54  ;;  %3415 = vmatpush1.msra.mxu1 %v15038_v54 }
 0x1d0   : > { %3312 = vmatprep.subr.mxu0 %v15045_v21  ;;  %3416 = vmatprep.subr.mxu1 %v15045_v21 }
 0x1d1   : > { %3313 = vmatpush1.msra.mxu0 %v15052_v60  ;;  %3417 = vmatpush1.msra.mxu1 %v15052_v60 }
 0x1d2   : > { %3314 = vmatprep.subr.mxu0 %v15063_v52  ;;  %3418 = vmatprep.subr.mxu1 %v15063_v52 }
 0x1d3   : > { %3315 = vmatpush1.msra.mxu0 %v15074_v46  ;;  %3348 = vmatprep.mubr.f32.mxu0 %v22191_v56 }
 0x1d4   : > { %3419 = vmatpush1.msra.mxu1 %v15074_v46  ;;  %3452 = vmatprep.mubr.f32.mxu1 %v22191_v56 }
 0x1d5   : > { %12334 = vmatmul.mubr.msk.f32.vlgmr.msra.gmra.mxu0 %vm483_vm1, %v3271_v39  ;;  %12338 = vmatmul.mubr.msk.f32.vlgmr.msra.gmra.mxu1 %vm483_vm1, %v3375_v59  ;;  %v15212_v13 = vpop.f32.mrf.mxu0  ;;  %v15214_v17 = vpop.f32.mrf.mxu1  ;;  %v3377_v39 = vsel %vm3060_vm3, %v3374_v12, %v3376_v36  ;;  %v3274_v59 = vrot.slane %v14605_v22, 3  ;;  %v3379_v22 = vsel %vm3060_vm3, %v3376_v36, %v3378_v63 }
 0x1d6   : > { %3500 = vmatprep.subr.mxu0 %v14845_v43  ;;  %3604 = vmatprep.subr.mxu1 %v14845_v43 }
 0x1d7   : > { %3501 = vmatpush1.msra.mxu0 %v14852_v45  ;;  %3605 = vmatpush1.msra.mxu1 %v14852_v45  ;;  %v15228_v51 = vpop.f32.mrf.mxu0  ;;  %v15230_v10 = vpop.f32.mrf.mxu1  ;;  %v3275_v33 = vsel %vm3060_vm3, %v3272_v2, %v3274_v59 }
 0x1d8   : > { %3502 = vmatprep.subr.mxu0 %v14867_v14  ;;  %3606 = vmatprep.subr.mxu1 %v14867_v14  ;;  %22270 = vst [vmem:[#allocation107_spill] sm:$0xff] %v15228_v51  ;;  %22271 = vst [vmem:[#allocation108_spill] sm:$0xff] %v15230_v10  ;;  %v3478_v10 = vrot.slane %v14681_v1, 3  ;;  %v3581_v51 = vrot.slane %v14685_v62, 3 }
 0x1d9   : > { %3354 = vmatprep.mubr.f32.mxu0 %v22191_v56  ;;  %3458 = vmatprep.mubr.f32.mxu1 %v22191_v56 }
 0x1da   : > { %3503 = vmatpush1.msra.mxu0 %v14880_v41  ;;  %3607 = vmatpush1.msra.mxu1 %v14880_v41 }
 0x1db   : > { %12335 = vmatmul.mubr.msk.f32.gmra.mxu0 %vm483_vm1, %v3273_v7  ;;  %12339 = vmatmul.mubr.msk.f32.gmra.mxu1 %vm483_vm1, %v3377_v39  ;;  %v15242_v12 = vpop.f32.mrf.mxu0  ;;  %v15244_v7 = vpop.f32.mrf.mxu1 }
 0x1dc   : > { %3504 = vmatprep.subr.mxu0 %v14891_v38  ;;  %3608 = vmatprep.subr.mxu1 %v14891_v38 }
 0x1dd   : > { %3505 = vmatpush1.msra.mxu0 %v14902_v55  ;;  %3609 = vmatpush1.msra.mxu1 %v14902_v55  ;;  %v15254_v36 = vpop.f32.mrf.mxu0  ;;  %v15256_v2 = vpop.f32.mrf.mxu1 }
 0x1de   : > { %3506 = vmatprep.subr.mxu0 %v14917_v50  ;;  %3610 = vmatprep.subr.mxu1 %v14917_v50  ;;  %22272 = vst [vmem:[#allocation109_spill] sm:$0xff] %v15254_v36  ;;  %22273 = vst [vmem:[#allocation110_spill] sm:$0xff] %v15256_v2  ;;  %v1412_v36 = vadd.f32 %v14754_v61, %v14146_v19 }
 0x1df   : > { %3360 = vmatprep.mubr.f32.mxu0 %v22191_v56  ;;  %3464 = vmatprep.mubr.f32.mxu1 %v22191_v56 }
 0x1e0   : > { %3507 = vmatpush1.msra.mxu0 %v14930_v25  ;;  %3611 = vmatpush1.msra.mxu1 %v14930_v25 }
 0x1e1   : > { %12336 = vmatmul.mubr.msk.f32.gmra.mxu0 %vm483_vm1, %v3275_v33  ;;  %12340 = vmatmul.mubr.msk.f32.gmra.mxu1 %vm483_vm1, %v3379_v22  ;;  %v15266_v39 = vpop.f32.mrf.mxu0  ;;  %v15268_v33 = vpop.f32.mrf.mxu1  ;;  %v3477_v22 = vrot.slane %v14677_v23, 3 }
 0x1e2   : > { %3508 = vmatprep.subr.mxu0 %v14941_v9  ;;  %3612 = vmatprep.subr.mxu1 %v14941_v9 }
 0x1e3   : > { %3509 = vmatpush1.msra.mxu0 %v14952_v58  ;;  %3613 = vmatpush1.msra.mxu1 %v14952_v58 }
 0x1e4   : > { %3510 = vmatprep.subr.mxu0 %v14959_v28  ;;  %3614 = vmatprep.subr.mxu1 %v14959_v28 }
 0x1e5   : > { %3366 = vmatprep.mubr.f32.mxu0 %v22191_v56  ;;  %3470 = vmatprep.mubr.f32.mxu1 %v22191_v56 }
 0x1e6   : > { %3511 = vmatpush1.msra.mxu0 %v14968_v15  ;;  %3615 = vmatpush1.msra.mxu1 %v14968_v15 }
 0x1e7   : > { %12337 = vmatmul.mubr.msk.f32.gmra.mxu0 %vm483_vm1, %v3274_v59  ;;  %12341 = vmatmul.mubr.msk.f32.gmra.mxu1 %vm483_vm1, %v3378_v63  ;;  %v15278_v63 = vpop.f32.mrf.mxu0  ;;  %v15280_v59 = vpop.f32.mrf.mxu1 }
 0x1e8   : > { %3512 = vmatprep.subr.mxu0 %v14981_v8  ;;  %3616 = vmatprep.subr.mxu1 %v14981_v8  ;;  %22274 = vst [vmem:[#allocation111_spill] sm:$0xff] %v15278_v63  ;;  %22275 = vst [vmem:[#allocation112_spill] sm:$0xff] %v15280_v59  ;;  %v3582_v59 = vrot.slane %v14689_v20, 3  ;;  %v3479_v20 = vsel %vm3060_vm3, %v3477_v22, %v3478_v10  ;;  %v3584_v22 = vrot.slane %v14715_v42, 3 }
 0x1e9   : > { %3513 = vmatpush1.msra.mxu0 %v14988_v5  ;;  %3617 = vmatpush1.msra.mxu1 %v14988_v5  ;;  %v15294_v63 = vpop.f32.mrf.mxu0  ;;  %v15296_v2 = vpop.f32.mrf.mxu1 }
 0x1ea   : > { %3514 = vmatprep.subr.mxu0 %v14995_v16  ;;  %3618 = vmatprep.subr.mxu1 %v14995_v16  ;;  %22276 = vst [vmem:[#allocation113_spill] sm:$0xff] %v15296_v2  ;;  %v3583_v23 = vsel %vm3060_vm3, %v3581_v51, %v3582_v59  ;;  %v1509_v2 = vadd.f32 %v14756_v32, %v14140_v18  ;;  %v3480_v51 = vrot.slane %v14711_v26, 3 }
 0x1eb   : > { %3515 = vmatpush1.msra.mxu0 %v15006_v29  ;;  %3619 = vmatpush1.msra.mxu1 %v15006_v29  ;;  %v15308_v62 = vpop.f32.mrf.mxu0  ;;  %v15310_v1 = vpop.f32.mrf.mxu1  ;;  %v3585_v32 = vsel %vm3060_vm3, %v3582_v59, %v3584_v22  ;;  %v22286_v59 = vld [vmem:[#allocation69_spill] sm:$0xff] }
 0x1ec   : > { %3516 = vmatprep.subr.mxu0 %v15013_v34  ;;  %3620 = vmatprep.subr.mxu1 %v15013_v34  ;;  %22277 = vst [vmem:[#allocation114_spill] sm:$0xff] %v15308_v62  ;;  %22278 = vst [vmem:[#allocation115_spill] sm:$0xff] %v15310_v1  ;;  %v3481_v61 = vsel %vm3060_vm3, %v3478_v10, %v3480_v51  ;;  %v3586_v10 = vrot.slane %v14745_v57, 3 }
 0x1ed   : > { %3517 = vmatpush1.msra.mxu0 %v15020_v30  ;;  %3621 = vmatpush1.msra.mxu1 %v15020_v30 }
 0x1ee   : > { %3518 = vmatprep.subr.mxu0 %v15027_v27  ;;  %3622 = vmatprep.subr.mxu1 %v15027_v27 }
 0x1ef   : > { %3519 = vmatpush1.msra.mxu0 %v15038_v54  ;;  %3623 = vmatpush1.msra.mxu1 %v15038_v54 }
 0x1f0   : > { %3520 = vmatprep.subr.mxu0 %v15045_v21  ;;  %3624 = vmatprep.subr.mxu1 %v15045_v21 }
 0x1f1   : > { %3521 = vmatpush1.msra.mxu0 %v15052_v60  ;;  %3625 = vmatpush1.msra.mxu1 %v15052_v60 }
 0x1f2   : > { %3522 = vmatprep.subr.mxu0 %v15063_v52  ;;  %3626 = vmatprep.subr.mxu1 %v15063_v52 }
 0x1f3   : > { %3523 = vmatpush1.msra.mxu0 %v15074_v46  ;;  %3556 = vmatprep.mubr.f32.mxu0 %v22191_v56 }
 0x1f4   : > { %3627 = vmatpush1.msra.mxu1 %v15074_v46  ;;  %3660 = vmatprep.mubr.f32.mxu1 %v22191_v56 }
 0x1f5   : > { %12342 = vmatmul.mubr.msk.f32.vlgmr.msra.gmra.mxu0 %vm483_vm1, %v3479_v20  ;;  %12346 = vmatmul.mubr.msk.f32.vlgmr.msra.gmra.mxu1 %vm483_vm1, %v3583_v23  ;;  %v2220_v62 = vpop.f32.mrf.mxu0  ;;  %v2324_v1 = vpop.f32.mrf.mxu1 }
 0x1f6   : > { %3708 = vmatprep.subr.mxu0 %v14845_v43  ;;  %3812 = vmatprep.subr.mxu1 %v14845_v43  ;;  %v15324_v19 = vadd.f32 %v2220_v62, %v1412_v36  ;;  %v15326_v18 = vadd.f32 %v2324_v1, %v1509_v2  ;;  %v1418_v43 = vadd.f32 %v14780_v40, %v14168_v37 }
 0x1f7   : > { %3709 = vmatpush1.msra.mxu0 %v14852_v45  ;;  %3813 = vmatpush1.msra.mxu1 %v14852_v45  ;;  %v15330_v26 = vpop.f32.mrf.mxu0  ;;  %v15332_v42 = vpop.f32.mrf.mxu1  ;;  %v1515_v45 = vadd.f32 %v14782_v53, %v14162_v35  ;;  %v22284_v53 = vld [vmem:[#allocation68_spill] sm:$0xff] }
 0x1f8   : > { %22279 = vst [vmem:[#allocation116_spill] sm:$0xff] %v15324_v19  ;;  %22280 = vst [vmem:[#allocation117_spill] sm:$0xff] %v15330_v26  ;;  %3710 = vmatprep.subr.mxu0 %v14867_v14  ;;  %3814 = vmatprep.subr.mxu1 %v14867_v14  ;;  %v3482_v14 = vrot.slane %v14741_v48, 3  ;;  %v22329_v19 = vld [vmem:[#allocation33_spill] sm:$0xff] }
 0x1f9   : > { %22281 = vst [vmem:[#allocation118_spill] sm:$0xff] %v15332_v42  ;;  %3562 = vmatprep.mubr.f32.mxu0 %v22191_v56  ;;  %3666 = vmatprep.mubr.f32.mxu1 %v22191_v56  ;;  %v1800_v26 = vadd.f32 %v15108_v0, %v22329_v19 }
 0x1fa   : > { %3711 = vmatpush1.msra.mxu0 %v14880_v41  ;;  %3815 = vmatpush1.msra.mxu1 %v14880_v41  ;;  %v3483_v40 = vsel %vm3060_vm3, %v3480_v51, %v3482_v14  ;;  %v1424_v41 = vadd.f32 %v22284_v53, %v14197_v49  ;;  %v22290_v51 = vld [vmem:[#allocation78_spill] sm:$0xff]  ;;  %v22302_v53 = vld [vmem:[#allocation85_spill] sm:$0xff] }
 0x1fb   : > { %12343 = vmatmul.mubr.msk.f32.gmra.mxu0 %vm483_vm1, %v3481_v61  ;;  %12347 = vmatmul.mubr.msk.f32.gmra.mxu1 %vm483_vm1, %v3585_v32  ;;  %v2226_v36 = vpop.f32.mrf.mxu0  ;;  %v2330_v2 = vpop.f32.mrf.mxu1  ;;  %v22291_v61 = vld [vmem:[#allocation12_spill] sm:$0xff]  ;;  %v22292_v32 = vld [vmem:[#allocation79_spill] sm:$0xff] }
 0x1fc   : > { %3712 = vmatprep.subr.mxu0 %v14891_v38  ;;  %3816 = vmatprep.subr.mxu1 %v14891_v38  ;;  %v15352_v37 = vadd.f32 %v2226_v36, %v1418_v43  ;;  %v15354_v35 = vadd.f32 %v2330_v2, %v1515_v45  ;;  %v3587_v38 = vsel %vm3060_vm3, %v3584_v22, %v3586_v10  ;;  %v22296_v2 = vld [vmem:[#allocation73_spill] sm:$0xff] }
 0x1fd   : > { %3713 = vmatpush1.msra.mxu0 %v14902_v55  ;;  %3817 = vmatpush1.msra.mxu1 %v14902_v55  ;;  %v15358_v48 = vpop.f32.mrf.mxu0  ;;  %v15360_v57 = vpop.f32.mrf.mxu1  ;;  %v22285_v55 = vld [vmem:[#allocation9_spill] sm:$0xff]  ;;  %v1527_v43 = vadd.f32 %v22292_v32, %v22291_v61  ;;  %v15474_v32 = vld [vmem:[%s22165_s1 + $0x3a0] sm:$0xff] }
 0x1fe   : > { %22282 = vst [vmem:[#allocation119_spill] sm:$0xff] %v15358_v48  ;;  %22283 = vst [vmem:[#allocation120_spill] sm:$0xff] %v15360_v57  ;;  %3714 = vmatprep.subr.mxu0 %v14917_v50  ;;  %3818 = vmatprep.subr.mxu1 %v14917_v50  ;;  %v1521_v20 = vadd.f32 %v22286_v59, %v22285_v55  ;;  %v15452_v55 = vld [vmem:[%s22165_s1 + $0x3b0] sm:$0xff]  ;;  %v22303_v59 = vld [vmem:[#allocation76_spill] sm:$0xff] }
 0x1ff   : > { %3568 = vmatprep.mubr.f32.mxu0 %v22191_v56  ;;  %3672 = vmatprep.mubr.f32.mxu1 %v22191_v56  ;;  %v13051_v57 = vld [vmem:[%s13359_s15 + $0x20] sm:$0xff] }
 0x200   : > { %3715 = vmatpush1.msra.mxu0 %v14930_v25  ;;  %3819 = vmatpush1.msra.mxu1 %v14930_v25 }
 0x201   : > { %12344 = vmatmul.mubr.msk.f32.gmra.mxu0 %vm483_vm1, %v3483_v40  ;;  %12348 = vmatmul.mubr.msk.f32.gmra.mxu1 %vm483_vm1, %v3587_v38  ;;  %v2232_v50 = vpop.f32.mrf.mxu0  ;;  %v2336_v23 = vpop.f32.mrf.mxu1  ;;  %v22300_v40 = vld [vmem:[#allocation84_spill] sm:$0xff] }
 0x202   : > { %3716 = vmatprep.subr.mxu0 %v14941_v9  ;;  %3820 = vmatprep.subr.mxu1 %v14941_v9  ;;  %v15378_v62 = vadd.f32 %v2232_v50, %v1424_v41  ;;  %v15380_v49 = vadd.f32 %v2336_v23, %v1521_v20  ;;  %v22289_v9 = vld [vmem:[#allocation13_spill] sm:$0xff]  ;;  %v22301_v38 = vld [vmem:[#allocation16_spill] sm:$0xff]  ;;  %v3688_v20 = vrot.slane %v22303_v59, 3 }
 0x203   : > { %3717 = vmatpush1.msra.mxu0 %v14952_v58  ;;  %3821 = vmatpush1.msra.mxu1 %v14952_v58  ;;  %v15384_v1 = vpop.f32.mrf.mxu0  ;;  %v15386_v25 = vpop.f32.mrf.mxu1  ;;  %v1430_v22 = vadd.f32 %v22290_v51, %v22289_v9  ;;  %v1703_v41 = vadd.f32 %v22302_v53, %v22301_v38  ;;  %v22304_v50 = vld [vmem:[#allocation77_spill] sm:$0xff]  ;;  %v15461_v9 = vld [vmem:[%s22165_s1 + $0x3a8] sm:$0xff] }
 0x204   : > { %22287 = vst [vmem:[#allocation68_spill] sm:$0xff] %v15384_v1  ;;  %22288 = vst [vmem:[#allocation9_spill] sm:$0xff] %v15386_v25  ;;  %3718 = vmatprep.subr.mxu0 %v14959_v28  ;;  %3822 = vmatprep.subr.mxu1 %v14959_v28  ;;  %v3792_v23 = vrot.slane %v22304_v50, 3  ;;  %v15509_v38 = vld [vmem:[%s22165_s1 + $0x388] sm:$0xff] }
 0x205   : > { %3574 = vmatprep.mubr.f32.mxu0 %v22191_v56  ;;  %3678 = vmatprep.mubr.f32.mxu1 %v22191_v56  ;;  %v15663_v1 = vld [vmem:[%s22165_s1 + $0x308] sm:$0xff] }
 0x206   : > { %3719 = vmatpush1.msra.mxu0 %v14968_v15  ;;  %3823 = vmatpush1.msra.mxu1 %v14968_v15 }
 0x207   : > { %12345 = vmatmul.mubr.msk.f32.gmra.mxu0 %vm483_vm1, %v3482_v14  ;;  %12349 = vmatmul.mubr.msk.f32.gmra.mxu1 %vm483_vm1, %v3586_v10  ;;  %v2238_v58 = vpop.f32.mrf.mxu0  ;;  %v2342_v28 = vpop.f32.mrf.mxu1  ;;  %v22295_v14 = vld [vmem:[#allocation72_spill] sm:$0xff] }
 0x208   : > { %3720 = vmatprep.subr.mxu0 %v14981_v8  ;;  %3824 = vmatprep.subr.mxu1 %v14981_v8  ;;  %v15402_v45 = vadd.f32 %v2238_v58, %v1430_v22  ;;  %v15404_v36 = vadd.f32 %v2342_v28, %v1527_v43  ;;  %v22293_v8 = vld [vmem:[#allocation70_spill] sm:$0xff]  ;;  %v3789_v10 = vrot.slane %v22295_v14, 3  ;;  %v22308_v14 = vld [vmem:[#allocation88_spill] sm:$0xff] }
 0x209   : > { %3721 = vmatpush1.msra.mxu0 %v14988_v5  ;;  %3825 = vmatpush1.msra.mxu1 %v14988_v5  ;;  %v3685_v15 = vrot.slane %v22293_v8, 3  ;;  %v22294_v5 = vld [vmem:[#allocation71_spill] sm:$0xff] }
 0x20a   : > { %3722 = vmatprep.subr.mxu0 %v14995_v16  ;;  %3826 = vmatprep.subr.mxu1 %v14995_v16  ;;  %v3686_v16 = vrot.slane %v22294_v5, 3  ;;  %v22307_v5 = vld [vmem:[#allocation21_spill] sm:$0xff] }
 0x20b   : > { %3723 = vmatpush1.msra.mxu0 %v15006_v29  ;;  %3827 = vmatpush1.msra.mxu1 %v15006_v29  ;;  %v3790_v29 = vrot.slane %v22296_v2, 3  ;;  %v22309_v2 = vld [vmem:[#allocation20_spill] sm:$0xff] }
 0x20c   : > { %3724 = vmatprep.subr.mxu0 %v15013_v34  ;;  %3828 = vmatprep.subr.mxu1 %v15013_v34  ;;  %v3689_v28 = vsel %vm3060_vm3, %v3686_v16, %v3688_v20 }
 0x20d   : > { %3725 = vmatpush1.msra.mxu0 %v15020_v30  ;;  %3829 = vmatpush1.msra.mxu1 %v15020_v30  ;;  %v3791_v34 = vsel %vm3060_vm3, %v3789_v10, %v3790_v29  ;;  %v22299_v30 = vld [vmem:[#allocation17_spill] sm:$0xff]  ;;  %v3793_v8 = vsel %vm3060_vm3, %v3790_v29, %v3792_v23  ;;  %v1612_v10 = vadd.f32 %v22308_v14, %v22307_v5  ;;  %v22311_v29 = vld [vmem:[#allocation82_spill] sm:$0xff] }
 0x20e   : > { %3726 = vmatprep.subr.mxu0 %v15027_v27  ;;  %3830 = vmatprep.subr.mxu1 %v15027_v27  ;;  %v3687_v27 = vsel %vm3060_vm3, %v3685_v15, %v3686_v16  ;;  %v15489_v15 = vld [vmem:[%s22165_s1 + $0x398] sm:$0xff]  ;;  %v15500_v16 = vld [vmem:[%s22165_s1 + $0x390] sm:$0xff] }
 0x20f   : > { %3727 = vmatpush1.msra.mxu0 %v15038_v54  ;;  %3831 = vmatpush1.msra.mxu1 %v15038_v54  ;;  %v15439_v54 = vpop.f32.mrf.mxu0  ;;  %v15537_v14 = vld [vmem:[%s22165_s1 + $0x378] sm:$0xff] }
 0x210   : > { %3728 = vmatprep.subr.mxu0 %v15045_v21  ;;  %3832 = vmatprep.subr.mxu1 %v15045_v21  ;;  %v15437_v21 = vld [vmem:[%s22165_s1 + $0x3b8] sm:$0xff]  ;;  %22297 = vst [vmem:[#allocation69_spill] sm:$0xff] %v15439_v54  ;;  %v13052_v54 = vld [vmem:[%s13359_s15 + $0x28] sm:$0xff] }
 0x211   : > { %3729 = vmatpush1.msra.mxu0 %v15052_v60  ;;  %3833 = vmatpush1.msra.mxu1 %v15052_v60  ;;  %v15441_v60 = vpop.f32.mrf.mxu1  ;;  %v4088_v25 = vrot.slane %v13052_v54, 4 }
 0x212   : > { %3730 = vmatprep.subr.mxu0 %v15063_v52  ;;  %3834 = vmatprep.subr.mxu1 %v15063_v52  ;;  %22298 = vst [vmem:[#allocation13_spill] sm:$0xff] %v15441_v60  ;;  %v1606_v52 = vadd.f32 %v22300_v40, %v22299_v30  ;;  %v3690_v30 = vrot.slane %v22311_v29, 3  ;;  %v22312_v40 = vld [vmem:[#allocation83_spill] sm:$0xff]  ;;  %v22318_v29 = vld [vmem:[#allocation93_spill] sm:$0xff]  ;;  %v4087_v60 = vrot.slane %v13051_v57, 4 }
 0x213   : > { %3731 = vmatpush1.msra.mxu0 %v15074_v46  ;;  %3764 = vmatprep.mubr.f32.mxu0 %v22191_v56  ;;  %v15670_v57 = vld [vmem:[%s22165_s1 + $0x300] sm:$0xff] }
 0x214   : > { %3835 = vmatpush1.msra.mxu1 %v15074_v46  ;;  %3868 = vmatprep.mubr.f32.mxu1 %v22191_v56 }
 0x215   : > { %12350 = vmatmul.mubr.msk.f32.vlgmr.msra.gmra.mxu0 %vm483_vm1, %v3687_v27  ;;  %12354 = vmatmul.mubr.msk.f32.vlgmr.msra.gmra.mxu1 %vm483_vm1, %v3791_v34  ;;  %v2428_v46 = vpop.f32.mrf.mxu0  ;;  %v2532_v51 = vpop.f32.mrf.mxu1  ;;  %v22310_v27 = vld [vmem:[#allocation89_spill] sm:$0xff] }
 0x216   : > { %4006 = vmatprep.subr.mxu0 %v15437_v21  ;;  %4110 = vmatprep.subr.mxu1 %v15437_v21  ;;  %v15465_v22 = vadd.f32 %v2428_v46, %v1606_v52  ;;  %v15467_v61 = vadd.f32 %v2532_v51, %v1703_v41  ;;  %v1709_v34 = vadd.f32 %v22310_v27, %v22309_v2  ;;  %v3794_v52 = vrot.slane %v22312_v40, 3  ;;  %v15522_v46 = vld [vmem:[%s22165_s1 + $0x380] sm:$0xff]  ;;  %v22316_v2 = vld [vmem:[#allocation92_spill] sm:$0xff] }
 0x217   : > { %4007 = vmatpush1.msra.mxu0 %v15452_v55  ;;  %4111 = vmatpush1.msra.mxu1 %v15452_v55  ;;  %v15476_v43 = vpop.f32.mrf.mxu0  ;;  %v15478_v58 = vpop.f32.mrf.mxu1 }
 0x218   : > { %22305 = vst [vmem:[#allocation78_spill] sm:$0xff] %v15476_v43  ;;  %22306 = vst [vmem:[#allocation12_spill] sm:$0xff] %v15478_v58  ;;  %4008 = vmatprep.subr.mxu0 %v15461_v9  ;;  %4112 = vmatprep.subr.mxu1 %v15461_v9  ;;  %v3795_v5 = vsel %vm3060_vm3, %v3792_v23, %v3794_v52  ;;  %v15555_v23 = vld [vmem:[%s22165_s1 + $0x368] sm:$0xff]  ;;  %v15592_v58 = vld [vmem:[%s22165_s1 + $0x350] sm:$0xff] }
 0x219   : > { %3770 = vmatprep.mubr.f32.mxu0 %v22191_v56  ;;  %3874 = vmatprep.mubr.f32.mxu1 %v22191_v56 }
 0x21a   : > { %4009 = vmatpush1.msra.mxu0 %v15474_v32  ;;  %4113 = vmatpush1.msra.mxu1 %v15474_v32 }
 0x21b   : > { %12351 = vmatmul.mubr.msk.f32.gmra.mxu0 %vm483_vm1, %v3689_v28  ;;  %12355 = vmatmul.mubr.msk.f32.gmra.mxu1 %vm483_vm1, %v3793_v8  ;;  %v2434_v53 = vpop.f32.mrf.mxu0  ;;  %v2538_v41 = vpop.f32.mrf.mxu1  ;;  %v3691_v8 = vsel %vm3060_vm3, %v3688_v20, %v3690_v30  ;;  %v15548_v20 = vld [vmem:[%s22165_s1 + $0x370] sm:$0xff] }
 0x21c   : > { %4010 = vmatprep.subr.mxu0 %v15489_v15  ;;  %4114 = vmatprep.subr.mxu1 %v15489_v15  ;;  %v15513_v59 = vadd.f32 %v2434_v53, %v1612_v10  ;;  %v15515_v50 = vadd.f32 %v2538_v41, %v1709_v34  ;;  %v22315_v10 = vld [vmem:[#allocation25_spill] sm:$0xff]  ;;  %v22317_v34 = vld [vmem:[#allocation24_spill] sm:$0xff] }
 0x21d   : > { %4011 = vmatpush1.msra.mxu0 %v15500_v16  ;;  %4115 = vmatpush1.msra.mxu1 %v15500_v16  ;;  %v15524_v51 = vpop.f32.mrf.mxu0  ;;  %v15526_v28 = vpop.f32.mrf.mxu1  ;;  %v1618_v27 = vadd.f32 %v22316_v2, %v22315_v10  ;;  %v1715_v40 = vadd.f32 %v22318_v29, %v22317_v34  ;;  %v22323_v29 = vld [vmem:[#allocation29_spill] sm:$0xff] }
 0x21e   : > { %22313 = vst [vmem:[#allocation79_spill] sm:$0xff] %v15524_v51  ;;  %22314 = vst [vmem:[#allocation70_spill] sm:$0xff] %v15526_v28  ;;  %4012 = vmatprep.subr.mxu0 %v15509_v38  ;;  %4116 = vmatprep.subr.mxu1 %v15509_v38  ;;  %v13050_v51 = vld [vmem:[%s13359_s15 + $0x8] sm:$0xff] }
 0x21f   : > { %3776 = vmatprep.mubr.f32.mxu0 %v22191_v56  ;;  %3880 = vmatprep.mubr.f32.mxu1 %v22191_v56  ;;  %v3984_v42 = vrot.slane %v13050_v51, 4  ;;  %v4089_v51 = vsel %vm3982_vm4, %v4087_v60, %v4088_v25 }
 0x220   : > { %4013 = vmatpush1.msra.mxu0 %v15522_v46  ;;  %4117 = vmatpush1.msra.mxu1 %v15522_v46 }
 0x221   : > { %12352 = vmatmul.mubr.msk.f32.gmra.mxu0 %vm483_vm1, %v3691_v8  ;;  %12356 = vmatmul.mubr.msk.f32.gmra.mxu1 %vm483_vm1, %v3795_v5  ;;  %v2440_v53 = vpop.f32.mrf.mxu0  ;;  %v2544_v41 = vpop.f32.mrf.mxu1  ;;  %v15568_v8 = vld [vmem:[%s22165_s1 + $0x360] sm:$0xff] }
 0x222   : > { %4014 = vmatprep.subr.mxu0 %v15537_v14  ;;  %4118 = vmatprep.subr.mxu1 %v15537_v14  ;;  %v15559_v10 = vadd.f32 %v2440_v53, %v1618_v27  ;;  %v15561_v2 = vadd.f32 %v2544_v41, %v1715_v40  ;;  %v15581_v27 = vld [vmem:[%s22165_s1 + $0x358] sm:$0xff]  ;;  %v1624_v40 = vadd.f32 %v15084_v6, %v22323_v29  ;;  %v22324_v53 = vld [vmem:[#allocation28_spill] sm:$0xff] }
 0x223   : > { %4015 = vmatpush1.msra.mxu0 %v15548_v20  ;;  %4119 = vmatpush1.msra.mxu1 %v15548_v20  ;;  %v15570_v5 = vpop.f32.mrf.mxu0  ;;  %v15572_v34 = vpop.f32.mrf.mxu1  ;;  %v1721_v41 = vadd.f32 %v15086_v47, %v22324_v53  ;;  %v15599_v6 = vld [vmem:[%s22165_s1 + $0x348] sm:$0xff]  ;;  %v15606_v53 = vld [vmem:[%s22165_s1 + $0x340] sm:$0xff] }
 0x224   : > { %22319 = vst [vmem:[#allocation71_spill] sm:$0xff] %v15559_v10  ;;  %22320 = vst [vmem:[#allocation72_spill] sm:$0xff] %v15561_v2  ;;  %4016 = vmatprep.subr.mxu0 %v15555_v23  ;;  %4120 = vmatprep.subr.mxu1 %v15555_v23  ;;  %v13054_v2 = vld [vmem:[%s13359_s15 + $0x30] sm:$0xff] }
 0x225   : > { %22321 = vst [vmem:[#allocation73_spill] sm:$0xff] %v15570_v5  ;;  %22322 = vst [vmem:[#allocation17_spill] sm:$0xff] %v15572_v34  ;;  %3782 = vmatprep.mubr.f32.mxu0 %v22191_v56  ;;  %3886 = vmatprep.mubr.f32.mxu1 %v22191_v56  ;;  %v15652_v34 = vld [vmem:[%s22165_s1 + $0x310] sm:$0xff]  ;;  %v13049_v5 = vld [vmem:[%s13359_s15] sm:$0xff]  ;;  %v4090_v10 = vrot.slane %v13054_v2, 4 }
 0x226   : > { %4017 = vmatpush1.msra.mxu0 %v15568_v8  ;;  %4121 = vmatpush1.msra.mxu1 %v15568_v8  ;;  %v3983_v28 = vrot.slane %v13049_v5, 4 }
 0x227   : > { %12353 = vmatmul.mubr.msk.f32.gmra.mxu0 %vm483_vm1, %v3690_v30  ;;  %12357 = vmatmul.mubr.msk.f32.gmra.mxu1 %vm483_vm1, %v3794_v52  ;;  %v2446_v29 = vpop.f32.mrf.mxu0  ;;  %v2550_v47 = vpop.f32.mrf.mxu1  ;;  %v15617_v52 = vld [vmem:[%s22165_s1 + $0x338] sm:$0xff] }
 0x228   : > { %4018 = vmatprep.subr.mxu0 %v15581_v27  ;;  %4122 = vmatprep.subr.mxu1 %v15581_v27  ;;  %v15608_v43 = vadd.f32 %v2446_v29, %v1624_v40  ;;  %v15610_v30 = vadd.f32 %v2550_v47, %v1721_v41  ;;  %v15624_v40 = vld [vmem:[%s22165_s1 + $0x330] sm:$0xff]  ;;  %v15631_v41 = vld [vmem:[%s22165_s1 + $0x328] sm:$0xff]  ;;  %v15638_v29 = vld [vmem:[%s22165_s1 + $0x320] sm:$0xff]  ;;  %v3985_v54 = vsel %vm3982_vm4, %v3983_v28, %v3984_v42 }
 0x229   : > { %4019 = vmatpush1.msra.mxu0 %v15592_v58  ;;  %4123 = vmatpush1.msra.mxu1 %v15592_v58  ;;  %v15645_v47 = vld [vmem:[%s22165_s1 + $0x318] sm:$0xff]  ;;  %v15680_v5 = vpop.f32.mrf.mxu0  ;;  %v15682_v48 = vpop.f32.mrf.mxu1  ;;  %v13053_v28 = vld [vmem:[%s13359_s15 + $0x10] sm:$0xff] }
 0x22a   : > { %22325 = vst [vmem:[#allocation84_spill] sm:$0xff] %v15608_v43  ;;  %22326 = vst [vmem:[#allocation16_spill] sm:$0xff] %v15610_v30  ;;  %4020 = vmatprep.subr.mxu0 %v15599_v6  ;;  %4124 = vmatprep.subr.mxu1 %v15599_v6  ;;  %v22330_v30 = vld [vmem:[#allocation32_spill] sm:$0xff]  ;;  %v3986_v60 = vrot.slane %v13053_v28, 4 }
 0x22b   : > { %4021 = vmatpush1.msra.mxu0 %v15606_v53  ;;  %4125 = vmatpush1.msra.mxu1 %v15606_v53  ;;  %22327 = vst [vmem:[#allocation85_spill] sm:$0xff] %v15680_v5  ;;  %22328 = vst [vmem:[#allocation76_spill] sm:$0xff] %v15682_v48  ;;  %v1897_v43 = vadd.f32 %v15110_v3, %v22330_v30 }
 0x22c   : > { %4022 = vmatprep.subr.mxu0 %v15617_v52  ;;  %4126 = vmatprep.subr.mxu1 %v15617_v52  ;;  %v3987_v30 = vsel %vm3982_vm4, %v3984_v42, %v3986_v60 }
 0x22d   : > { %4023 = vmatpush1.msra.mxu0 %v15624_v40  ;;  %4127 = vmatpush1.msra.mxu1 %v15624_v40 }
 0x22e   : > { %4024 = vmatprep.subr.mxu0 %v15631_v41  ;;  %4128 = vmatprep.subr.mxu1 %v15631_v41 }
 0x22f   : > { %4025 = vmatpush1.msra.mxu0 %v15638_v29  ;;  %4129 = vmatpush1.msra.mxu1 %v15638_v29 }
 0x230   : > { %4026 = vmatprep.subr.mxu0 %v15645_v47  ;;  %4130 = vmatprep.subr.mxu1 %v15645_v47 }
 0x231   : > { %4027 = vmatpush1.msra.mxu0 %v15652_v34  ;;  %4131 = vmatpush1.msra.mxu1 %v15652_v34 }
 0x232   : > { %4028 = vmatprep.subr.mxu0 %v15663_v1  ;;  %4132 = vmatprep.subr.mxu1 %v15663_v1 }
 0x233   : > { %4029 = vmatpush1.msra.mxu0 %v15670_v57  ;;  %4062 = vmatprep.mubr.f32.mxu0 %v22191_v56 }
 0x234   : > { %4133 = vmatpush1.msra.mxu1 %v15670_v57  ;;  %4166 = vmatprep.mubr.f32.mxu1 %v22191_v56 }
 0x235   : > { %12382 = vmatmul.mubr.msk.f32.vlgmr.msra.gmra.mxu0 %vm483_vm1, %v3985_v54  ;;  %12386 = vmatmul.mubr.msk.f32.vlgmr.msra.gmra.mxu1 %vm483_vm1, %v4089_v51  ;;  %v2636_v5 = vpop.f32.mrf.mxu0  ;;  %v2740_v48 = vpop.f32.mrf.mxu1  ;;  %v22334_v54 = vld [vmem:[#allocation36_spill] sm:$0xff] }
 0x236   : > { %4214 = vmatprep.subr.mxu0 %v15437_v21  ;;  %4318 = vmatprep.subr.mxu1 %v15437_v21  ;;  %v15696_v0 = vadd.f32 %v2636_v5, %v1800_v26  ;;  %v15698_v3 = vadd.f32 %v2740_v48, %v1897_v43  ;;  %v4091_v26 = vsel %vm3982_vm4, %v4088_v25, %v4090_v10  ;;  %v22333_v48 = vld [vmem:[#allocation37_spill] sm:$0xff]  ;;  %v13055_v5 = vld [vmem:[%s13359_s15 + $0x18] sm:$0xff] }
 0x237   : > { %4215 = vmatpush1.msra.mxu0 %v15452_v55  ;;  %4319 = vmatpush1.msra.mxu1 %v15452_v55  ;;  %v15702_v19 = vpop.f32.mrf.mxu0  ;;  %v15704_v2 = vpop.f32.mrf.mxu1  ;;  %v1806_v43 = vadd.f32 %v15136_v31, %v22333_v48  ;;  %v1903_v51 = vadd.f32 %v15138_v24, %v22334_v54  ;;  %v3988_v28 = vrot.slane %v13055_v5, 4  ;;  %v22338_v54 = vld [vmem:[#allocation40_spill] sm:$0xff] }
 0x238   : > { %22331 = vst [vmem:[#allocation77_spill] sm:$0xff] %v15702_v19  ;;  %22332 = vst [vmem:[#allocation21_spill] sm:$0xff] %v15704_v2  ;;  %4216 = vmatprep.subr.mxu0 %v15461_v9  ;;  %4320 = vmatprep.subr.mxu1 %v15461_v9  ;;  %v13056_v2 = vld [vmem:[%s13359_s15 + $0x38] sm:$0xff] }
 0x239   : > { %4068 = vmatprep.mubr.f32.mxu0 %v22191_v56  ;;  %4172 = vmatprep.mubr.f32.mxu1 %v22191_v56  ;;  %v4092_v42 = vrot.slane %v13056_v2, 4 }
 0x23a   : > { %4217 = vmatpush1.msra.mxu0 %v15474_v32  ;;  %4321 = vmatpush1.msra.mxu1 %v15474_v32 }
 0x23b   : > { %12383 = vmatmul.mubr.msk.f32.gmra.mxu0 %vm483_vm1, %v3987_v30  ;;  %12387 = vmatmul.mubr.msk.f32.gmra.mxu1 %vm483_vm1, %v4091_v26  ;;  %v2642_v25 = vpop.f32.mrf.mxu0  ;;  %v2746_v19 = vpop.f32.mrf.mxu1  ;;  %v3989_v30 = vsel %vm3982_vm4, %v3986_v60, %v3988_v28  ;;  %v4093_v26 = vsel %vm3982_vm4, %v4090_v10, %v4092_v42 }
 0x23c   : > { %4218 = vmatprep.subr.mxu0 %v15489_v15  ;;  %4322 = vmatprep.subr.mxu1 %v15489_v15  ;;  %v15724_v31 = vadd.f32 %v2642_v25, %v1806_v43  ;;  %v15726_v24 = vadd.f32 %v2746_v19, %v1903_v51  ;;  %v22337_v19 = vld [vmem:[#allocation41_spill] sm:$0xff]  ;;  %v1909_v51 = vadd.f32 %v15162_v4, %v22338_v54 }
 0x23d   : > { %4219 = vmatpush1.msra.mxu0 %v15500_v16  ;;  %4323 = vmatpush1.msra.mxu1 %v15500_v16  ;;  %v15730_v48 = vpop.f32.mrf.mxu0  ;;  %v15732_v2 = vpop.f32.mrf.mxu1  ;;  %v1812_v43 = vadd.f32 %v15160_v44, %v22337_v19  ;;  %v22342_v19 = vld [vmem:[#allocation44_spill] sm:$0xff] }
 0x23e   : > { %22335 = vst [vmem:[#allocation88_spill] sm:$0xff] %v15730_v48  ;;  %22336 = vst [vmem:[#allocation20_spill] sm:$0xff] %v15732_v2  ;;  %4220 = vmatprep.subr.mxu0 %v15509_v38  ;;  %4324 = vmatprep.subr.mxu1 %v15509_v38  ;;  %v13062_v48 = vld [vmem:[%s13359_s15 + $0x70] sm:$0xff] }
 0x23f   : > { %4074 = vmatprep.mubr.f32.mxu0 %v22191_v56  ;;  %4178 = vmatprep.mubr.f32.mxu1 %v22191_v56 }
 0x240   : > { %4221 = vmatpush1.msra.mxu0 %v15522_v46  ;;  %4325 = vmatpush1.msra.mxu1 %v15522_v46 }
 0x241   : > { %12384 = vmatmul.mubr.msk.f32.gmra.mxu0 %vm483_vm1, %v3989_v30  ;;  %12388 = vmatmul.mubr.msk.f32.gmra.mxu1 %vm483_vm1, %v4093_v26  ;;  %v2648_v60 = vpop.f32.mrf.mxu0  ;;  %v2752_v10 = vpop.f32.mrf.mxu1  ;;  %v22341_v30 = vld [vmem:[#allocation45_spill] sm:$0xff] }
 0x242   : > { %4222 = vmatprep.subr.mxu0 %v15537_v14  ;;  %4326 = vmatprep.subr.mxu1 %v15537_v14  ;;  %v15750_v5 = vadd.f32 %v2648_v60, %v1812_v43  ;;  %v15752_v44 = vadd.f32 %v2752_v10, %v1909_v51  ;;  %v1818_v26 = vadd.f32 %v15188_v11, %v22341_v30  ;;  %v22343_v43 = vld [vmem:[#allocation104_spill] sm:$0xff] }
 0x243   : > { %4223 = vmatpush1.msra.mxu0 %v15548_v20  ;;  %4327 = vmatpush1.msra.mxu1 %v15548_v20  ;;  %v15756_v4 = vpop.f32.mrf.mxu0  ;;  %v15758_v25 = vpop.f32.mrf.mxu1  ;;  %v1915_v54 = vadd.f32 %v22343_v43, %v22342_v19  ;;  %v13058_v30 = vld [vmem:[%s13359_s15 + $0x48] sm:$0xff]  ;;  %v13059_v19 = vld [vmem:[%s13359_s15 + $0x60] sm:$0xff] }
 0x244   : > { %22339 = vst [vmem:[#allocation89_spill] sm:$0xff] %v15756_v4  ;;  %22340 = vst [vmem:[#allocation82_spill] sm:$0xff] %v15758_v25  ;;  %4224 = vmatprep.subr.mxu0 %v15555_v23  ;;  %4328 = vmatprep.subr.mxu1 %v15555_v23  ;;  %v4295_v43 = vrot.slane %v13059_v19, 4  ;;  %v22348_v4 = vld [vmem:[#allocation48_spill] sm:$0xff] }
 0x245   : > { %4080 = vmatprep.mubr.f32.mxu0 %v22191_v56  ;;  %4184 = vmatprep.mubr.f32.mxu1 %v22191_v56  ;;  %v2091_v2 = vadd.f32 %v15214_v17, %v22348_v4 }
 0x246   : > { %4225 = vmatpush1.msra.mxu0 %v15568_v8  ;;  %4329 = vmatpush1.msra.mxu1 %v15568_v8 }
 0x247   : > { %12385 = vmatmul.mubr.msk.f32.gmra.mxu0 %vm483_vm1, %v3988_v28  ;;  %12389 = vmatmul.mubr.msk.f32.gmra.mxu1 %vm483_vm1, %v4092_v42  ;;  %v2654_v51 = vpop.f32.mrf.mxu0  ;;  %v2758_v60 = vpop.f32.mrf.mxu1  ;;  %v13057_v28 = vld [vmem:[%s13359_s15 + $0x40] sm:$0xff] }
 0x248   : > { %4226 = vmatprep.subr.mxu0 %v15581_v27  ;;  %4330 = vmatprep.subr.mxu1 %v15581_v27  ;;  %v15774_v10 = vadd.f32 %v2654_v51, %v1818_v26  ;;  %v15776_v11 = vadd.f32 %v2758_v60, %v1915_v54  ;;  %v4191_v42 = vrot.slane %v13057_v28, 4  ;;  %v4192_v26 = vrot.slane %v13058_v30, 4  ;;  %v13060_v54 = vld [vmem:[%s13359_s15 + $0x68] sm:$0xff] }
 0x249   : > { %4227 = vmatpush1.msra.mxu0 %v15592_v58  ;;  %4331 = vmatpush1.msra.mxu1 %v15592_v58  ;;  %v4296_v51 = vrot.slane %v13060_v54, 4  ;;  %v15806_v30 = vpop.f32.mrf.mxu0  ;;  %v15808_v19 = vpop.f32.mrf.mxu1  ;;  %v22347_v54 = vld [vmem:[#allocation49_spill] sm:$0xff] }
 0x24a   : > { %22344 = vst [vmem:[#allocation83_spill] sm:$0xff] %v15776_v11  ;;  %4228 = vmatprep.subr.mxu0 %v15599_v6  ;;  %4332 = vmatprep.subr.mxu1 %v15599_v6  ;;  %v4193_v60 = vsel %vm3982_vm4, %v4191_v42, %v4192_v26  ;;  %22345 = vst [vmem:[#allocation25_spill] sm:$0xff] %v15806_v30  ;;  %v1994_v25 = vadd.f32 %v15212_v13, %v22347_v54  ;;  %v13061_v42 = vld [vmem:[%s13359_s15 + $0x50] sm:$0xff]  ;;  %v4298_v11 = vrot.slane %v13062_v48, 4  ;;  %v13063_v54 = vld [vmem:[%s13359_s15 + $0x58] sm:$0xff] }
 0x24b   : > { %4229 = vmatpush1.msra.mxu0 %v15606_v53  ;;  %4333 = vmatpush1.msra.mxu1 %v15606_v53  ;;  %v4297_v28 = vsel %vm3982_vm4, %v4295_v43, %v4296_v51  ;;  %22346 = vst [vmem:[#allocation92_spill] sm:$0xff] %v15808_v19  ;;  %v4194_v43 = vrot.slane %v13061_v42, 4  ;;  %v4196_v42 = vrot.slane %v13063_v54, 4 }
 0x24c   : > { %4230 = vmatprep.subr.mxu0 %v15617_v52  ;;  %4334 = vmatprep.subr.mxu1 %v15617_v52 }
 0x24d   : > { %4231 = vmatpush1.msra.mxu0 %v15624_v40  ;;  %4335 = vmatpush1.msra.mxu1 %v15624_v40 }
 0x24e   : > { %4232 = vmatprep.subr.mxu0 %v15631_v41  ;;  %4336 = vmatprep.subr.mxu1 %v15631_v41 }
 0x24f   : > { %4233 = vmatpush1.msra.mxu0 %v15638_v29  ;;  %4337 = vmatpush1.msra.mxu1 %v15638_v29 }
 0x250   : > { %4234 = vmatprep.subr.mxu0 %v15645_v47  ;;  %4338 = vmatprep.subr.mxu1 %v15645_v47 }
 0x251   : > { %4235 = vmatpush1.msra.mxu0 %v15652_v34  ;;  %4339 = vmatpush1.msra.mxu1 %v15652_v34 }
 0x252   : > { %4236 = vmatprep.subr.mxu0 %v15663_v1  ;;  %4340 = vmatprep.subr.mxu1 %v15663_v1 }
 0x253   : > { %4237 = vmatpush1.msra.mxu0 %v15670_v57  ;;  %4270 = vmatprep.mubr.f32.mxu0 %v22191_v56 }
 0x254   : > { %4341 = vmatpush1.msra.mxu1 %v15670_v57  ;;  %4374 = vmatprep.mubr.f32.mxu1 %v22191_v56 }
 0x255   : > { %12390 = vmatmul.mubr.msk.f32.vlgmr.msra.gmra.mxu0 %vm483_vm1, %v4193_v60  ;;  %12394 = vmatmul.mubr.msk.f32.vlgmr.msra.gmra.mxu1 %vm483_vm1, %v4297_v28  ;;  %v2844_v30 = vpop.f32.mrf.mxu0  ;;  %v2948_v19 = vpop.f32.mrf.mxu1  ;;  %v4195_v60 = vsel %vm3982_vm4, %v4192_v26, %v4194_v43 }
 0x256   : > { %4422 = vmatprep.subr.mxu0 %v15437_v21  ;;  %4526 = vmatprep.subr.mxu1 %v15437_v21  ;;  %v15822_v13 = vadd.f32 %v2844_v30, %v1994_v25  ;;  %v15824_v17 = vadd.f32 %v2948_v19, %v2091_v2  ;;  %v4299_v25 = vsel %vm3982_vm4, %v4296_v51, %v4298_v11  ;;  %v22351_v2 = vld [vmem:[#allocation52_spill] sm:$0xff]  ;;  %v22352_v30 = vld [vmem:[#allocation53_spill] sm:$0xff] }
 0x257   : > { %4423 = vmatpush1.msra.mxu0 %v15452_v55  ;;  %4527 = vmatpush1.msra.mxu1 %v15452_v55  ;;  %v15828_v48 = vpop.f32.mrf.mxu0  ;;  %v15830_v4 = vpop.f32.mrf.mxu1  ;;  %v2000_v28 = vadd.f32 %v15242_v12, %v22351_v2  ;;  %v2097_v19 = vadd.f32 %v15244_v7, %v22352_v30  ;;  %v22356_v30 = vld [vmem:[#allocation57_spill] sm:$0xff] }
 0x258   : > { %22349 = vst [vmem:[#allocation24_spill] sm:$0xff] %v15828_v48  ;;  %22350 = vst [vmem:[#allocation93_spill] sm:$0xff] %v15830_v4  ;;  %4424 = vmatprep.subr.mxu0 %v15461_v9  ;;  %4528 = vmatprep.subr.mxu1 %v15461_v9  ;;  %v13064_v4 = vld [vmem:[%s13359_s15 + $0x78] sm:$0xff] }
 0x259   : > { %4276 = vmatprep.mubr.f32.mxu0 %v22191_v56  ;;  %4380 = vmatprep.mubr.f32.mxu1 %v22191_v56  ;;  %v4300_v26 = vrot.slane %v13064_v4, 4 }
 0x25a   : > { %4425 = vmatpush1.msra.mxu0 %v15474_v32  ;;  %4529 = vmatpush1.msra.mxu1 %v15474_v32 }
 0x25b   : > { %12391 = vmatmul.mubr.msk.f32.gmra.mxu0 %vm483_vm1, %v4195_v60  ;;  %12395 = vmatmul.mubr.msk.f32.gmra.mxu1 %vm483_vm1, %v4299_v25  ;;  %v2850_v51 = vpop.f32.mrf.mxu0  ;;  %v2954_v48 = vpop.f32.mrf.mxu1  ;;  %v4197_v60 = vsel %vm3982_vm4, %v4194_v43, %v4196_v42  ;;  %v4301_v25 = vsel %vm3982_vm4, %v4298_v11, %v4300_v26 }
 0x25c   : > { %4426 = vmatprep.subr.mxu0 %v15489_v15  ;;  %4530 = vmatprep.subr.mxu1 %v15489_v15  ;;  %v15850_v12 = vadd.f32 %v2850_v51, %v2000_v28  ;;  %v15852_v7 = vadd.f32 %v2954_v48, %v2097_v19  ;;  %v22355_v48 = vld [vmem:[#allocation56_spill] sm:$0xff]  ;;  %v2103_v19 = vadd.f32 %v15268_v33, %v22356_v30 }
 0x25d   : > { %4427 = vmatpush1.msra.mxu0 %v15500_v16  ;;  %4531 = vmatpush1.msra.mxu1 %v15500_v16  ;;  %v15856_v2 = vpop.f32.mrf.mxu0  ;;  %v15858_v4 = vpop.f32.mrf.mxu1  ;;  %v2006_v28 = vadd.f32 %v15266_v39, %v22355_v48  ;;  %v22360_v48 = vld [vmem:[#allocation61_spill] sm:$0xff] }
 0x25e   : > { %22353 = vst [vmem:[#allocation29_spill] sm:$0xff] %v15856_v2  ;;  %22354 = vst [vmem:[#allocation28_spill] sm:$0xff] %v15858_v4  ;;  %4428 = vmatprep.subr.mxu0 %v15509_v38  ;;  %4532 = vmatprep.subr.mxu1 %v15509_v38 }
 0x25f   : > { %4282 = vmatprep.mubr.f32.mxu0 %v22191_v56  ;;  %4386 = vmatprep.mubr.f32.mxu1 %v22191_v56 }
 0x260   : > { %4429 = vmatpush1.msra.mxu0 %v15522_v46  ;;  %4533 = vmatpush1.msra.mxu1 %v15522_v46 }
 0x261   : > { %12392 = vmatmul.mubr.msk.f32.gmra.mxu0 %vm483_vm1, %v4197_v60  ;;  %12396 = vmatmul.mubr.msk.f32.gmra.mxu1 %vm483_vm1, %v4301_v25  ;;  %v2856_v43 = vpop.f32.mrf.mxu0  ;;  %v2960_v11 = vpop.f32.mrf.mxu1  ;;  %v22359_v60 = vld [vmem:[#allocation60_spill] sm:$0xff] }
 0x262   : > { %4430 = vmatprep.subr.mxu0 %v15537_v14  ;;  %4534 = vmatprep.subr.mxu1 %v15537_v14  ;;  %v15876_v54 = vadd.f32 %v2856_v43, %v2006_v28  ;;  %v15878_v39 = vadd.f32 %v2960_v11, %v2103_v19  ;;  %v2012_v25 = vadd.f32 %v15294_v63, %v22359_v60  ;;  %v22361_v28 = vld [vmem:[#allocation113_spill] sm:$0xff]  ;;  %v13066_v60 = vld [vmem:[%s13359_s15 + $0x88] sm:$0xff] }
 0x263   : > { %4431 = vmatpush1.msra.mxu0 %v15548_v20  ;;  %4535 = vmatpush1.msra.mxu1 %v15548_v20  ;;  %v15882_v33 = vpop.f32.mrf.mxu0  ;;  %v15884_v51 = vpop.f32.mrf.mxu1  ;;  %v2109_v30 = vadd.f32 %v22361_v28, %v22360_v48  ;;  %v13067_v48 = vld [vmem:[%s13359_s15 + $0xa0] sm:$0xff] }
 0x264   : > { %22357 = vst [vmem:[#allocation33_spill] sm:$0xff] %v15882_v33  ;;  %22358 = vst [vmem:[#allocation32_spill] sm:$0xff] %v15884_v51  ;;  %4432 = vmatprep.subr.mxu0 %v15555_v23  ;;  %4536 = vmatprep.subr.mxu1 %v15555_v23  ;;  %v4503_v28 = vrot.slane %v13067_v48, 4  ;;  %v13070_v33 = vld [vmem:[%s13359_s15 + $0xb0] sm:$0xff] }
 0x265   : > { %4288 = vmatprep.mubr.f32.mxu0 %v22191_v56  ;;  %4392 = vmatprep.mubr.f32.mxu1 %v22191_v56  ;;  %v4506_v4 = vrot.slane %v13070_v33, 4 }
 0x266   : > { %4433 = vmatpush1.msra.mxu0 %v15568_v8  ;;  %4537 = vmatpush1.msra.mxu1 %v15568_v8 }
 0x267   : > { %12393 = vmatmul.mubr.msk.f32.gmra.mxu0 %vm483_vm1, %v4196_v42  ;;  %12397 = vmatmul.mubr.msk.f32.gmra.mxu1 %vm483_vm1, %v4300_v26  ;;  %v2862_v19 = vpop.f32.mrf.mxu0  ;;  %v2966_v43 = vpop.f32.mrf.mxu1  ;;  %v13065_v42 = vld [vmem:[%s13359_s15 + $0x80] sm:$0xff] }
 0x268   : > { %4434 = vmatprep.subr.mxu0 %v15581_v27  ;;  %4538 = vmatprep.subr.mxu1 %v15581_v27  ;;  %v15900_v11 = vadd.f32 %v2862_v19, %v2012_v25  ;;  %v15902_v63 = vadd.f32 %v2966_v43, %v2109_v30  ;;  %v4399_v26 = vrot.slane %v13065_v42, 4  ;;  %v4400_v25 = vrot.slane %v13066_v60, 4  ;;  %v13068_v30 = vld [vmem:[%s13359_s15 + $0xa8] sm:$0xff] }
 0x269   : > { %4435 = vmatpush1.msra.mxu0 %v15592_v58  ;;  %4539 = vmatpush1.msra.mxu1 %v15592_v58  ;;  %v4504_v19 = vrot.slane %v13068_v30, 4  ;;  %v15932_v60 = vpop.f32.mrf.mxu0  ;;  %v15934_v48 = vpop.f32.mrf.mxu1  ;;  %v13069_v30 = vld [vmem:[%s13359_s15 + $0x90] sm:$0xff] }
 0x26a   : > { %4436 = vmatprep.subr.mxu0 %v15599_v6  ;;  %4540 = vmatprep.subr.mxu1 %v15599_v6  ;;  %v4401_v43 = vsel %vm3982_vm4, %v4399_v26, %v4400_v25  ;;  %22362 = vst [vmem:[#allocation37_spill] sm:$0xff] %v15932_v60  ;;  %22363 = vst [vmem:[#allocation36_spill] sm:$0xff] %v15934_v48  ;;  %v4402_v51 = vrot.slane %v13069_v30, 4  ;;  %v13072_v30 = vld [vmem:[%s13359_s15 + $0xb8] sm:$0xff] }
 0x26b   : > { %4437 = vmatpush1.msra.mxu0 %v15606_v53  ;;  %4541 = vmatpush1.msra.mxu1 %v15606_v53  ;;  %v4505_v42 = vsel %vm3982_vm4, %v4503_v28, %v4504_v19 }
 0x26c   : > { %4438 = vmatprep.subr.mxu0 %v15617_v52  ;;  %4542 = vmatprep.subr.mxu1 %v15617_v52 }
 0x26d   : > { %4439 = vmatpush1.msra.mxu0 %v15624_v40  ;;  %4543 = vmatpush1.msra.mxu1 %v15624_v40 }
 0x26e   : > { %4440 = vmatprep.subr.mxu0 %v15631_v41  ;;  %4544 = vmatprep.subr.mxu1 %v15631_v41 }
 0x26f   : > { %4441 = vmatpush1.msra.mxu0 %v15638_v29  ;;  %4545 = vmatpush1.msra.mxu1 %v15638_v29 }
 0x270   : > { %4442 = vmatprep.subr.mxu0 %v15645_v47  ;;  %4546 = vmatprep.subr.mxu1 %v15645_v47 }
 0x271   : > { %4443 = vmatpush1.msra.mxu0 %v15652_v34  ;;  %4547 = vmatpush1.msra.mxu1 %v15652_v34 }
 0x272   : > { %4444 = vmatprep.subr.mxu0 %v15663_v1  ;;  %4548 = vmatprep.subr.mxu1 %v15663_v1 }
 0x273   : > { %4445 = vmatpush1.msra.mxu0 %v15670_v57  ;;  %4478 = vmatprep.mubr.f32.mxu0 %v22191_v56 }
 0x274   : > { %4549 = vmatpush1.msra.mxu1 %v15670_v57  ;;  %4582 = vmatprep.mubr.f32.mxu1 %v22191_v56 }
 0x275   : > { %12398 = vmatmul.mubr.msk.f32.vlgmr.msra.gmra.mxu0 %vm483_vm1, %v4401_v43  ;;  %12402 = vmatmul.mubr.msk.f32.vlgmr.msra.gmra.mxu1 %vm483_vm1, %v4505_v42  ;;  %v15942_v26 = vpop.f32.mrf.mxu0  ;;  %v3246_v28 = vpop.f32.mrf.mxu1  ;;  %v4403_v42 = vsel %vm3982_vm4, %v4400_v25, %v4402_v51 }
 0x276   : > { %4630 = vmatprep.subr.mxu0 %v15437_v21  ;;  %4734 = vmatprep.subr.mxu1 %v15437_v21  ;;  %v15947_v48 = vadd.f32 %v3246_v28, %v15326_v18  ;;  %v4507_v21 = vsel %vm3982_vm4, %v4504_v19, %v4506_v4  ;;  %v13071_v18 = vld [vmem:[%s13359_s15 + $0x98] sm:$0xff]  ;;  %v4508_v28 = vrot.slane %v13072_v30, 4 }
 0x277   : > { %4631 = vmatpush1.msra.mxu0 %v15452_v55  ;;  %4735 = vmatpush1.msra.mxu1 %v15452_v55  ;;  %v15951_v33 = vpop.f32.mrf.mxu0  ;;  %v15953_v43 = vpop.f32.mrf.mxu1  ;;  %v4404_v55 = vrot.slane %v13071_v18, 4 }
 0x278   : > { %4632 = vmatprep.subr.mxu0 %v15461_v9  ;;  %4736 = vmatprep.subr.mxu1 %v15461_v9 }
 0x279   : > { %4484 = vmatprep.mubr.f32.mxu0 %v22191_v56  ;;  %4588 = vmatprep.mubr.f32.mxu1 %v22191_v56 }
 0x27a   : > { %4633 = vmatpush1.msra.mxu0 %v15474_v32  ;;  %4737 = vmatpush1.msra.mxu1 %v15474_v32 }
 0x27b   : > { %12399 = vmatmul.mubr.msk.f32.gmra.mxu0 %vm483_vm1, %v4403_v42  ;;  %12403 = vmatmul.mubr.msk.f32.gmra.mxu1 %vm483_vm1, %v4507_v21  ;;  %v3148_v9 = vpop.f32.mrf.mxu0  ;;  %v3252_v25 = vpop.f32.mrf.mxu1 }
 0x27c   : > { %4634 = vmatprep.subr.mxu0 %v15489_v15  ;;  %4738 = vmatprep.subr.mxu1 %v15489_v15  ;;  %v15970_v19 = vadd.f32 %v3148_v9, %v15352_v37  ;;  %v15973_v60 = vadd.f32 %v3252_v25, %v15354_v35  ;;  %v4405_v15 = vsel %vm3982_vm4, %v4402_v51, %v4404_v55  ;;  %v13079_v9 = vld [vmem:[%s13359_s15 + $0xd8] sm:$0xff] }
 0x27d   : > { %4635 = vmatpush1.msra.mxu0 %v15500_v16  ;;  %4739 = vmatpush1.msra.mxu1 %v15500_v16  ;;  %v15977_v32 = vpop.f32.mrf.mxu0  ;;  %v15979_v42 = vpop.f32.mrf.mxu1  ;;  %v4509_v37 = vsel %vm3982_vm4, %v4506_v4, %v4508_v28  ;;  %v4612_v25 = vrot.slane %v13079_v9, 4 }
 0x27e   : > { %4636 = vmatprep.subr.mxu0 %v15509_v38  ;;  %4740 = vmatprep.subr.mxu1 %v15509_v38 }
 0x27f   : > { %4490 = vmatprep.mubr.f32.mxu0 %v22191_v56  ;;  %4594 = vmatprep.mubr.f32.mxu1 %v22191_v56 }
 0x280   : > { %4637 = vmatpush1.msra.mxu0 %v15522_v46  ;;  %4741 = vmatpush1.msra.mxu1 %v15522_v46 }
 0x281   : > { %12400 = vmatmul.mubr.msk.f32.gmra.mxu0 %vm483_vm1, %v4405_v15  ;;  %12404 = vmatmul.mubr.msk.f32.gmra.mxu1 %vm483_vm1, %v4509_v37  ;;  %v3154_v35 = vpop.f32.mrf.mxu0  ;;  %v3258_v16 = vpop.f32.mrf.mxu1  ;;  %v13080_v15 = vld [vmem:[%s13359_s15 + $0xf8] sm:$0xff] }
 0x282   : > { %4638 = vmatprep.subr.mxu0 %v15537_v14  ;;  %4742 = vmatprep.subr.mxu1 %v15537_v14  ;;  %v15994_v38 = vadd.f32 %v3154_v35, %v15378_v62  ;;  %v15997_v4 = vadd.f32 %v3258_v16, %v15380_v49 }
 0x283   : > { %4639 = vmatpush1.msra.mxu0 %v15548_v20  ;;  %4743 = vmatpush1.msra.mxu1 %v15548_v20  ;;  %v16001_v46 = vpop.f32.mrf.mxu0  ;;  %v16003_v51 = vpop.f32.mrf.mxu1 }
 0x284   : > { %4640 = vmatprep.subr.mxu0 %v15555_v23  ;;  %4744 = vmatprep.subr.mxu1 %v15555_v23 }
 0x285   : > { %4496 = vmatprep.mubr.f32.mxu0 %v22191_v56  ;;  %4600 = vmatprep.mubr.f32.mxu1 %v22191_v56 }
 0x286   : > { %4641 = vmatpush1.msra.mxu0 %v15568_v8  ;;  %4745 = vmatpush1.msra.mxu1 %v15568_v8  ;;  %v13075_v8 = vld [vmem:[%s13359_s15 + $0xe0] sm:$0xff] }
 0x287   : > { %12401 = vmatmul.mubr.msk.f32.gmra.mxu0 %vm483_vm1, %v4404_v55  ;;  %12405 = vmatmul.mubr.msk.f32.gmra.mxu1 %vm483_vm1, %v4508_v28  ;;  %v3160_v62 = vpop.f32.mrf.mxu0  ;;  %v3264_v49 = vpop.f32.mrf.mxu1 }
 0x288   : > { %4642 = vmatprep.subr.mxu0 %v15581_v27  ;;  %4746 = vmatprep.subr.mxu1 %v15581_v27  ;;  %v16016_v14 = vadd.f32 %v3160_v62, %v15402_v45  ;;  %v16019_v20 = vadd.f32 %v3264_v49, %v15404_v36  ;;  %v13073_v45 = vld [vmem:[%s13359_s15 + $0xc0] sm:$0xff]  ;;  %v4711_v27 = vrot.slane %v13075_v8, 4 }
 0x289   : > { %4643 = vmatpush1.msra.mxu0 %v15592_v58  ;;  %4747 = vmatpush1.msra.mxu1 %v15592_v58  ;;  %v4607_v36 = vrot.slane %v13073_v45, 4  ;;  %v13074_v58 = vld [vmem:[%s13359_s15 + $0xc8] sm:$0xff] }
 0x28a   : > { %4644 = vmatprep.subr.mxu0 %v15599_v6  ;;  %4748 = vmatprep.subr.mxu1 %v15599_v6  ;;  %v4608_v23 = vrot.slane %v13074_v58, 4  ;;  %v13076_v6 = vld [vmem:[%s13359_s15 + $0xe8] sm:$0xff] }
 0x28b   : > { %4645 = vmatpush1.msra.mxu0 %v15606_v53  ;;  %4749 = vmatpush1.msra.mxu1 %v15606_v53  ;;  %v4712_v53 = vrot.slane %v13076_v6, 4 }
 0x28c   : > { %4646 = vmatprep.subr.mxu0 %v15617_v52  ;;  %4750 = vmatprep.subr.mxu1 %v15617_v52  ;;  %v13077_v52 = vld [vmem:[%s13359_s15 + $0xd0] sm:$0xff]  ;;  %v4609_v18 = vsel %vm3982_vm4, %v4607_v36, %v4608_v23 }
 0x28d   : > { %4647 = vmatpush1.msra.mxu0 %v15624_v40  ;;  %4751 = vmatpush1.msra.mxu1 %v15624_v40  ;;  %v4610_v40 = vrot.slane %v13077_v52, 4 }
 0x28e   : > { %4648 = vmatprep.subr.mxu0 %v15631_v41  ;;  %4752 = vmatprep.subr.mxu1 %v15631_v41  ;;  %v13078_v41 = vld [vmem:[%s13359_s15 + $0xf0] sm:$0xff] }
 0x28f   : > { %4649 = vmatpush1.msra.mxu0 %v15638_v29  ;;  %4753 = vmatpush1.msra.mxu1 %v15638_v29  ;;  %v4714_v21 = vrot.slane %v13078_v41, 4  ;;  %v4713_v29 = vsel %vm3982_vm4, %v4711_v27, %v4712_v53  ;;  %v4613_v49 = vsel %vm3982_vm4, %v4610_v40, %v4612_v25 }
 0x290   : > { %4650 = vmatprep.subr.mxu0 %v15645_v47  ;;  %4754 = vmatprep.subr.mxu1 %v15645_v47  ;;  %v16051_v47 = vpop.f32.mrf.mxu0 }
 0x291   : > { %4651 = vmatpush1.msra.mxu0 %v15652_v34  ;;  %4755 = vmatpush1.msra.mxu1 %v15652_v34  ;;  %v16053_v34 = vpop.f32.mrf.mxu1  ;;  %v4715_v55 = vsel %vm3982_vm4, %v4712_v53, %v4714_v21  ;;  %v22365_v53 = vld [vmem:[#allocation72_spill] sm:$0xff] }
 0x292   : > { %4652 = vmatprep.subr.mxu0 %v15663_v1  ;;  %4756 = vmatprep.subr.mxu1 %v15663_v1  ;;  %v4611_v1 = vsel %vm3982_vm4, %v4608_v23, %v4610_v40 }
 0x293   : > { %4653 = vmatpush1.msra.mxu0 %v15670_v57  ;;  %4686 = vmatprep.mubr.f32.mxu0 %v22191_v56 }
 0x294   : > { %4757 = vmatpush1.msra.mxu1 %v15670_v57  ;;  %4790 = vmatprep.mubr.f32.mxu1 %v22191_v56  ;;  %v4716_v57 = vrot.slane %v13080_v15, 4 }
 0x295   : > { %12406 = vmatmul.mubr.msk.f32.vlgmr.msra.gmra.mxu0 %vm483_vm1, %v4609_v18  ;;  %12410 = vmatmul.mubr.msk.f32.vlgmr.msra.gmra.mxu1 %vm483_vm1, %v4713_v29  ;;  %v3350_v30 = vpop.f32.mrf.mxu0  ;;  %v3454_v28 = vpop.f32.mrf.mxu1  ;;  %v22366_v29 = vld [vmem:[#allocation84_spill] sm:$0xff] }
 0x296   : > { %4692 = vmatprep.mubr.f32.mxu0 %v22191_v56  ;;  %4796 = vmatprep.mubr.f32.mxu1 %v22191_v56  ;;  %v16066_v37 = vadd.f32 %v3350_v30, %v15465_v22  ;;  %v16069_v35 = vadd.f32 %v3454_v28, %v15467_v61  ;;  %v4717_v22 = vsel %vm3982_vm4, %v4714_v21, %v4716_v57 }
 0x297   : > { %v16071_v16 = vpop.f32.mrf.mxu0  ;;  %v16073_v62 = vpop.f32.mrf.mxu1 }
 0x299   : > { %12407 = vmatmul.mubr.msk.f32.gmra.mxu0 %vm483_vm1, %v4611_v1  ;;  %12411 = vmatmul.mubr.msk.f32.gmra.mxu1 %vm483_vm1, %v4715_v55  ;;  %v22367_v55 = vld [vmem:[#allocation16_spill] sm:$0xff] }
 0x29a   : > { %4698 = vmatprep.mubr.f32.mxu0 %v22191_v56  ;;  %4802 = vmatprep.mubr.f32.mxu1 %v22191_v56 }
 0x29b   : > { %v3356_v45 = vpop.f32.mrf.mxu0  ;;  %v3460_v36 = vpop.f32.mrf.mxu1 }
 0x29c   : > { %v16082_v61 = vadd.f32 %v3356_v45, %v15513_v59  ;;  %v16085_v58 = vadd.f32 %v3460_v36, %v15515_v50  ;;  %v22364_v50 = vld [vmem:[#allocation71_spill] sm:$0xff] }
 0x29d   : > { %12408 = vmatmul.mubr.msk.f32.gmra.mxu0 %vm483_vm1, %v4613_v49  ;;  %12412 = vmatmul.mubr.msk.f32.gmra.mxu1 %vm483_vm1, %v4717_v22  ;;  %v16089_v23 = vpop.f32.mrf.mxu0  ;;  %v16091_v8 = vpop.f32.mrf.mxu1 }
 0x29e   : > { %4704 = vmatprep.mubr.f32.mxu0 %v22191_v56  ;;  %4808 = vmatprep.mubr.f32.mxu1 %v22191_v56 }
 0x2a1   : > { %12409 = vmatmul.mubr.msk.f32.gmra.mxu0 %vm483_vm1, %v4612_v25  ;;  %12413 = vmatmul.mubr.msk.f32.gmra.mxu1 %vm483_vm1, %v4716_v57  ;;  %v3362_v59 = vpop.f32.mrf.mxu0  ;;  %v3466_v27 = vpop.f32.mrf.mxu1  ;;  %vm11308_vm1 = vcmask 1043459  }
 0x2a2   : > { %v16098_v6 = vadd.f32 %v3362_v59, %v22364_v50  ;;  %v16101_v52 = vadd.f32 %v3466_v27, %v22365_v53  ;;  %5767 = vmatprep.mubr.f32.mxu0 %v22191_v56  ;;  %6016 = vmatprep.mubr.f32.mxu1 %v22191_v56 }
 0x2a3   : > { %v16105_v40 = vpop.f32.mrf.mxu0  ;;  %v16107_v41 = vpop.f32.mrf.mxu1 }
 0x2a7   : > { %v3368_v21 = vpop.f32.mrf.mxu0  ;;  %v3472_v18 = vpop.f32.mrf.mxu1 }
 0x2a8   : > { %v16110_v1 = vadd.f32 %v3368_v21, %v22366_v29  ;;  %v16113_v30 = vadd.f32 %v3472_v18, %v22367_v55 }
 0x2a9   : > { %v16115_v28 = vpop.f32.mrf.mxu0  ;;  %v16117_v9 = vpop.f32.mrf.mxu1 }
 0x2b5   : > { %v3558_v25 = vpop.f32.mrf.mxu0  ;;  %v3662_v15 = vpop.f32.mrf.mxu1 }
 0x2b6   : > { %v16120_v57 = vadd.f32 %v3558_v25, %v15696_v0  ;;  %v16123_v49 = vadd.f32 %v3662_v15, %v15698_v3 }
 0x2b7   : > { %v16125_v22 = vpop.f32.mrf.mxu0  ;;  %v16127_v45 = vpop.f32.mrf.mxu1 }
 0x2b8   : > { %22368 = vst [vmem:[#allocation41_spill] sm:$0xff] %v16120_v57  ;;  %22369 = vst [vmem:[#allocation40_spill] sm:$0xff] %v16123_v49 }
 0x2b9   : > { %22370 = vst [vmem:[#allocation45_spill] sm:$0xff] %v16125_v22  ;;  %22371 = vst [vmem:[#allocation44_spill] sm:$0xff] %v16127_v45 }
 0x2bb   : > { %v3564_v36 = vpop.f32.mrf.mxu0  ;;  %v3668_v59 = vpop.f32.mrf.mxu1 }
 0x2bc   : > { %v16130_v27 = vadd.f32 %v3564_v36, %v15724_v31  ;;  %v16133_v50 = vadd.f32 %v3668_v59, %v15726_v24  ;;  %v22373_v36 = vld [vmem:[#allocation83_spill] sm:$0xff] }
 0x2bd   : > { %v16135_v53 = vpop.f32.mrf.mxu0  ;;  %v16137_v21 = vpop.f32.mrf.mxu1 }
 0x2c1   : > { %v3570_v0 = vpop.f32.mrf.mxu0  ;;  %v3674_v18 = vpop.f32.mrf.mxu1 }
 0x2c2   : > { %v16140_v3 = vadd.f32 %v3570_v0, %v15750_v5  ;;  %v16143_v29 = vadd.f32 %v3674_v18, %v15752_v44 }
 0x2c3   : > { %v16145_v55 = vpop.f32.mrf.mxu0  ;;  %v16147_v25 = vpop.f32.mrf.mxu1 }
 0x2c7   : > { %v3576_v31 = vpop.f32.mrf.mxu0  ;;  %v3680_v15 = vpop.f32.mrf.mxu1 }
 0x2c8   : > { %v16150_v24 = vadd.f32 %v3576_v31, %v15774_v10  ;;  %v16153_v59 = vadd.f32 %v3680_v15, %v22373_v36 }
 0x2c9   : > { %v16155_v56 = vpop.f32.mrf.mxu0  ;;  %v16157_v49 = vpop.f32.mrf.mxu1 }
 0x2ca   : > { %22372 = vst [vmem:[#allocation104_spill] sm:$0xff] %v16150_v24  ;;  %22374 = vst [vmem:[#allocation49_spill] sm:$0xff] %v16153_v59 }
 0x2d5   : > { %v3766_v5 = vpop.f32.mrf.mxu0  ;;  %v3870_v0 = vpop.f32.mrf.mxu1 }
 0x2d6   : > { %v16160_v44 = vadd.f32 %v3766_v5, %v15822_v13  ;;  %v16163_v18 = vadd.f32 %v3870_v0, %v15824_v17 }
 0x2d7   : > { %v16165_v2 = vpop.f32.mrf.mxu0  ;;  %v16167_v57 = vpop.f32.mrf.mxu1 }
 0x2d8   : > { %22375 = vst [vmem:[#allocation48_spill] sm:$0xff] %v16160_v44  ;;  %22376 = vst [vmem:[#allocation52_spill] sm:$0xff] %v16163_v18 }
 0x2d9   : > { %22377 = vst [vmem:[#allocation53_spill] sm:$0xff] %v16165_v2  ;;  %22378 = vst [vmem:[#allocation56_spill] sm:$0xff] %v16167_v57  ;;  %v21962_v57 = vlaneseq }
 0x2db   : > { %v3772_v10 = vpop.f32.mrf.mxu0  ;;  %v3876_v31 = vpop.f32.mrf.mxu1  ;;  %v16196_v2 = vshrl.u32 %v21962_v57, 7 }
 0x2dc   : > { %v16170_v15 = vadd.f32 %v3772_v10, %v15850_v12  ;;  %v16173_v36 = vadd.f32 %v3876_v31, %v15852_v7 }
 0x2dd   : > { %v16175_v45 = vpop.f32.mrf.mxu0  ;;  %v16177_v59 = vpop.f32.mrf.mxu1  ;;  %22389 = vst [vmem:[#allocation122_spill] sm:$0xff] %v16196_v2 }
 0x2de   : > { %22379 = vst [vmem:[#allocation57_spill] sm:$0xff] %v16170_v15  ;;  %22380 = vst [vmem:[#allocation60_spill] sm:$0xff] %v16173_v36  ;;  %v22399_v15 = vld [vmem:[#allocation119_spill] sm:$0xff] }
 0x2df   : > { %22381 = vst [vmem:[#allocation61_spill] sm:$0xff] %v16175_v45  ;;  %22382 = vst [vmem:[#allocation113_spill] sm:$0xff] %v16177_v59 }
 0x2e1   : > { %v3778_v13 = vpop.f32.mrf.mxu0  ;;  %v3882_v5 = vpop.f32.mrf.mxu1 }
 0x2e2   : > { %v16180_v17 = vadd.f32 %v3778_v13, %v15876_v54  ;;  %v16183_v0 = vadd.f32 %v3882_v5, %v15878_v39  ;;  %v21963_v54 = vsub.s32 0, %v16196_v2  ;;  %v4879_v39 = vld [vmem:[%s21941_s2] sm:$0x3]  ;;  %v22390_v13 = vld [vmem:[#allocation6_spill] sm:$0xff]  ;;  %v22391_v5 = vld [vmem:[#allocation64_spill] sm:$0xff] }
 0x2e3   : > { %v16185_v18 = vpop.f32.mrf.mxu0  ;;  %v16187_v44 = vpop.f32.mrf.mxu1 }
 0x2e4   : > { %22383 = vst [vmem:[#allocation71_spill] sm:$0xff] %v16180_v17  ;;  %22384 = vst [vmem:[#allocation72_spill] sm:$0xff] %v16183_v0  ;;  %v1414_v0 = vadd.f32 %v22391_v5, %v22390_v13  ;;  %v21964_v17 = vsub.s32 1, %v16196_v2 }
 0x2e5   : > { %22385 = vst [vmem:[#allocation84_spill] sm:$0xff] %v16185_v18  ;;  %22386 = vst [vmem:[#allocation16_spill] sm:$0xff] %v16187_v44 }
 0x2e7   : > { %v3784_v12 = vpop.f32.mrf.mxu0  ;;  %v3888_v10 = vpop.f32.mrf.mxu1 }
 0x2e8   : > { %v16190_v7 = vadd.f32 %v3784_v12, %v15900_v11  ;;  %v16193_v31 = vadd.f32 %v3888_v10, %v15902_v63  ;;  %v22394_v63 = vld [vmem:[#allocation117_spill] sm:$0xff] }
 0x2e9   : > { %v16205_v11 = vpop.f32.mrf.mxu0  ;;  %v16207_v12 = vpop.f32.mrf.mxu1  ;;  %v2972_v10 = vadd.f32 %v22394_v63, %v1414_v0  ;;  %v22396_v0 = vld [vmem:[#allocation8_spill] sm:$0xff]  ;;  %v22397_v63 = vld [vmem:[#allocation66_spill] sm:$0xff] }
 0x2ea   : > { %22387 = vst [vmem:[#allocation83_spill] sm:$0xff] %v16190_v7  ;;  %22388 = vst [vmem:[#allocation121_spill] sm:$0xff] %v16193_v31  ;;  %v22395_v31 = vld [vmem:[#allocation116_spill] sm:$0xff]  ;;  %v16214_v7 = vrot.slane %v4879_v39, %v21963_v54 }
 0x2eb   : > { %22392 = vst [vmem:[#allocation6_spill] sm:$0xff] %v16205_v11  ;;  %22393 = vst [vmem:[#allocation64_spill] sm:$0xff] %v16207_v12  ;;  %v3893_v57 = vadd.f32 %v15942_v26, %v22395_v31  ;;  %v3894_v13 = vadd.f32 %v15951_v33, %v2972_v10  ;;  %v16221_v11 = vrot.slane %v4879_v39, %v21964_v17 }
 0x2ec   : > { %v1420_v26 = vadd.f32 %v22397_v63, %v22396_v0  ;;  %v22402_v0 = vld [vmem:[#allocation74_spill] sm:$0xff] }
 0x2ee   : > { %v2974_v59 = vadd.f32 %v22399_v15, %v1420_v26 }
 0x2f0   : > { %v3896_v39 = vadd.f32 %v15977_v32, %v2974_v59  ;;  %v22405_v32 = vld [vmem:[#allocation75_spill] sm:$0xff] }
 0x2f5   : > { %v4064_v44 = vpop.f32.mrf.mxu0  ;;  %v16216_v36 = vpop.f32.mrf.mxu1 }
 0x2f6   : > { %v4815_v5 = vadd.f32 %v4064_v44, %v3893_v57 }
 0x2f7   : > { %v4066_v12 = vpop.f32.mrf.mxu0  ;;  %v16223_v18 = vpop.f32.mrf.mxu1 }
 0x2f8   : > { %v4816_v31 = vadd.f32 %v4066_v12, %v3894_v13  ;;  %v16228_v54 = vadd.f32 %v16214_v7, %v4815_v5  ;;  %v22401_v5 = vld [vmem:[#allocation11_spill] sm:$0xff] }
 0x2f9   : > { %v1426_v63 = vadd.f32 %v22402_v0, %v22401_v5 }
 0x2fa   : > { %22398 = vst [vmem:[#allocation117_spill] sm:$0xff] %v16228_v54  ;;  %v21965_v45 = vmax.f32 %v16228_v54, 0.0  ;;  %v16233_v33 = vadd.f32 %v16221_v11, %v4816_v31  ;;  %v22407_v54 = vld [vmem:[#allocation9_spill] sm:$0xff] }
 0x2fb   : > { %v4070_v57 = vpop.f32.mrf.mxu0  ;;  %v16235_v44 = vpop.f32.mrf.mxu1 }
 0x2fc   : > { %22400 = vst [vmem:[#allocation116_spill] sm:$0xff] %v16233_v33  ;;  %v4817_v10 = vadd.f32 %v4070_v57, %v15970_v19  ;;  %5083 = vrot.lane.b32.xlu0 %v21965_v45, %s13144_s30  ;;  %v21969_v12 = vmax.f32 %v16233_v33, 0.0  ;;  %v22404_v19 = vld [vmem:[#allocation10_spill] sm:$0xff]  ;;  %v22406_v57 = vld [vmem:[#allocation68_spill] sm:$0xff] }
 0x2fd   : > { %v4072_v15 = vpop.f32.mrf.mxu0  ;;  %v4176_v13 = vpop.f32.mrf.mxu1  ;;  %v1523_v59 = vadd.f32 %v22405_v32, %v22404_v19  ;;  %v2976_v17 = vadd.f32 %v22406_v57, %v1426_v63 }
 0x2fe   : > { %v16246_v26 = vadd.f32 %v16214_v7, %v4817_v10  ;;  %v4818_v31 = vadd.f32 %v4072_v15, %v3896_v39  ;;  %5085 = vrot.lane.b32.xlu1 %v21969_v12, %s13144_s30  ;;  %v22409_v12 = vld [vmem:[#allocation80_spill] sm:$0xff] }
 0x2ff   : > { %v2984_v5 = vadd.f32 %v22407_v54, %v1523_v59  ;;  %v3898_v39 = vadd.f32 %v16001_v46, %v2976_v17  ;;  %v22410_v54 = vld [vmem:[#allocation14_spill] sm:$0xff]  ;;  %v22411_v59 = vld [vmem:[#allocation81_spill] sm:$0xff] }
 0x300   : > { %22403 = vst [vmem:[#allocation8_spill] sm:$0xff] %v16246_v26  ;;  %v21971_v45 = vmax.f32 %v16246_v26, 0.0  ;;  %v16256_v2 = vadd.f32 %v16221_v11, %v4818_v31  ;;  %v22408_v31 = vld [vmem:[#allocation15_spill] sm:$0xff]  ;;  %v1529_v22 = vadd.f32 %v22411_v59, %v22410_v54 }
 0x301   : > { %v4076_v0 = vpop.f32.mrf.mxu0  ;;  %v4180_v10 = vpop.f32.mrf.mxu1  ;;  %v3906_v63 = vadd.f32 %v16003_v51, %v2984_v5  ;;  %v1432_v33 = vadd.f32 %v22409_v12, %v22408_v31  ;;  %v22413_v51 = vld [vmem:[#allocation13_spill] sm:$0xff]  ;;  %v22414_v31 = vld [vmem:[#allocation7_spill] sm:$0xff] }
 0x302   : > { %v4819_v15 = vadd.f32 %v4076_v0, %v15994_v38  ;;  %5087 = vrot.lane.b32.xlu0 %v21971_v45, %s13144_s30  ;;  %v22009_v19 = vmax.f32 %v16256_v2, 0.0  ;;  %v22412_v0 = vld [vmem:[#allocation69_spill] sm:$0xff]  ;;  %v2986_v5 = vadd.f32 %v22413_v51, %v1529_v22  ;;  %v22415_v54 = vld [vmem:[#allocation67_spill] sm:$0xff]  ;;  %v22416_v22 = vld [vmem:[#allocation120_spill] sm:$0xff] }
 0x303   : > { %v4078_v32 = vpop.f32.mrf.mxu0  ;;  %v4182_v57 = vpop.f32.mrf.mxu1  ;;  %v2978_v45 = vadd.f32 %v22412_v0, %v1432_v33  ;;  %v1517_v59 = vadd.f32 %v22415_v54, %v22414_v31 }
 0x304   : > { %v16271_v46 = vadd.f32 %v16214_v7, %v4819_v15  ;;  %v4820_v38 = vadd.f32 %v4078_v32, %v3898_v39  ;;  %5089 = vrot.lane.b32.xlu1 %v22009_v19, %s13144_s30  ;;  %v4828_v17 = vadd.f32 %v4182_v57, %v3906_v63  ;;  %v3908_v32 = vadd.f32 %v16053_v34, %v2986_v5  ;;  %v22485_v19 = vld [vmem:[#allocation29_spill] sm:$0xff] }
 0x305   : > { %v3900_v39 = vadd.f32 %v16051_v47, %v2978_v45  ;;  %v2982_v33 = vadd.f32 %v22416_v22, %v1517_v59  ;;  %v22417_v45 = vld [vmem:[#allocation5_spill] sm:$0xff] }
 0x306   : > { %v21996_v26 = vmax.f32 %v16271_v46, 0.0  ;;  %v16280_v12 = vadd.f32 %v16221_v11, %v4820_v38  ;;  %v16292_v57 = vadd.f32 %v16221_v11, %v4828_v17 }
 0x307   : > { %v4082_v15 = vpop.f32.mrf.mxu0  ;;  %v4186_v24 = vpop.f32.mrf.mxu1  ;;  %v3904_v54 = vadd.f32 %v15979_v42, %v2982_v33 }
 0x308   : > { %v4821_v63 = vadd.f32 %v4082_v15, %v16016_v14  ;;  %5091 = vrot.lane.b32.xlu1 %v21996_v26, %s13144_s30  ;;  %v22011_v34 = vmax.f32 %v16280_v12, 0.0  ;;  %v22418_v14 = vld [vmem:[#allocation65_spill] sm:$0xff]  ;;  %v4829_v59 = vadd.f32 %v4186_v24, %v16019_v20  ;;  %v21974_v42 = vmax.f32 %v16292_v57, 0.0 }
 0x309   : > { %v4084_v38 = vpop.f32.mrf.mxu0  ;;  %v4188_v0 = vpop.f32.mrf.mxu1  ;;  %v1511_v5 = vadd.f32 %v22418_v14, %v22417_v45  ;;  %v4827_v24 = vadd.f32 %v4180_v10, %v15997_v4  ;;  %v4825_v4 = vadd.f32 %v16235_v44, %v15973_v60  ;;  %v22420_v44 = vld [vmem:[#allocation23_spill] sm:$0xff]  ;;  %v22421_v14 = vld [vmem:[#allocation90_spill] sm:$0xff] }
 0x30a   : > { %v16295_v51 = vadd.f32 %v16214_v7, %v4821_v63  ;;  %v4822_v31 = vadd.f32 %v4084_v38, %v3900_v39  ;;  %v4830_v47 = vadd.f32 %v4188_v0, %v3908_v32  ;;  %v22419_v39 = vld [vmem:[#allocation118_spill] sm:$0xff]  ;;  %v4826_v63 = vadd.f32 %v4176_v13, %v3904_v54 }
 0x30b   : > { %v2980_v32 = vadd.f32 %v22419_v39, %v1511_v5  ;;  %v16320_v33 = vadd.f32 %v16214_v7, %v4829_v59  ;;  %v16337_v10 = vadd.f32 %v16214_v7, %v4827_v24  ;;  %v1614_v5 = vadd.f32 %v22421_v14, %v22420_v44  ;;  %v22422_v39 = vld [vmem:[#allocation22_spill] sm:$0xff]  ;;  %v22424_v44 = vld [vmem:[#allocation79_spill] sm:$0xff] }
 0x30c   : > { %v21978_v15 = vmax.f32 %v16295_v51, 0.0  ;;  %v16304_v17 = vadd.f32 %v16221_v11, %v4822_v31  ;;  %5093 = vrot.lane.b32.xlu1 %v22011_v34, %s13144_s30  ;;  %v16311_v22 = vadd.f32 %v16221_v11, %v4830_v47  ;;  %v16328_v0 = vadd.f32 %v16221_v11, %v4826_v63 }
 0x30d   : > { %v3902_v20 = vadd.f32 %v15953_v43, %v2980_v32  ;;  %v21973_v31 = vmax.f32 %v16320_v33, 0.0  ;;  %v22423_v32 = vld [vmem:[#allocation91_spill] sm:$0xff]  ;;  %v16365_v24 = vadd.f32 %v16214_v7, %v4825_v4  ;;  %v2990_v14 = vadd.f32 %v22424_v44, %v1614_v5 }
 0x30e   : > { %5095 = vrot.lane.b32.xlu0 %v21978_v15, %s13144_s30  ;;  %v21979_v38 = vmax.f32 %v16304_v17, 0.0  ;;  %v21975_v43 = vmax.f32 %v16311_v22, 0.0  ;;  %v21976_v60 = vmax.f32 %v16328_v0, 0.0  ;;  %v1711_v63 = vadd.f32 %v22423_v32, %v22422_v39 }
 0x30f   : > { %v4824_v13 = vadd.f32 %v16223_v18, %v3902_v20  ;;  %v4823_v20 = vadd.f32 %v16216_v36, %v15947_v48  ;;  %v3912_v48 = vadd.f32 %v16089_v23, %v2990_v14 }
 0x310   : > { %5109 = vrot.lane.b32.xlu1 %v21974_v42, %s13144_s30 }
 0x311   : > { %v16348_v45 = vadd.f32 %v16221_v11, %v4824_v13  ;;  %v21977_v13 = vmax.f32 %v16337_v10, 0.0 }
 0x312   : > { %5097 = vrot.lane.b32.xlu0 %v21979_v38, %s13144_s30  ;;  %v22430_v38 = vld [vmem:[#allocation73_spill] sm:$0xff] }
 0x313   : > { %v21980_v39 = vmax.f32 %v16348_v45, 0.0 }
 0x314   : > { %5113 = vrot.lane.b32.xlu1 %v21975_v43, %s13144_s30  ;;  %v16380_v43 = vadd.f32 %v16214_v7, %v4823_v20 }
 0x315   : > { %v16343_v18 = vpop.f32.mrf.mxu0  ;;  %v16345_v47 = vpop.f32.mrf.mxu1 }
 0x316   : > { %5111 = vrot.lane.b32.xlu0 %v21973_v31, %s13144_s30  ;;  %v22425_v31 = vld [vmem:[#allocation70_spill] sm:$0xff] }
 0x317   : > { %v16356_v54 = vpop.f32.mrf.mxu0  ;;  %v16358_v59 = vpop.f32.mrf.mxu1  ;;  %v2998_v42 = vadd.f32 %v22425_v31, %v1711_v63  ;;  %v22426_v31 = vld [vmem:[#allocation27_spill] sm:$0xff]  ;;  %v22427_v63 = vld [vmem:[#allocation94_spill] sm:$0xff] }
 0x318   : > { %5105 = vrot.lane.b32.xlu1 %v21976_v60, %s13144_s30  ;;  %v21981_v60 = vmax.f32 %v16365_v24, 0.0  ;;  %v1620_v44 = vadd.f32 %v22427_v63, %v22426_v31 }
 0x319   : > { %v3920_v32 = vadd.f32 %v16091_v8, %v2998_v42  ;;  %v22428_v8 = vld [vmem:[#allocation26_spill] sm:$0xff]  ;;  %v22429_v42 = vld [vmem:[#allocation95_spill] sm:$0xff] }
 0x31a   : > { %5107 = vrot.lane.b32.xlu0 %v21977_v13, %s13144_s30  ;;  %v1717_v20 = vadd.f32 %v22429_v42, %v22428_v8 }
 0x31b   : > { %v4278_v36 = vpop.f32.mrf.mxu0  ;;  %v4382_v4 = vpop.f32.mrf.mxu1 }
 0x31c   : > { %v4833_v5 = vadd.f32 %v4278_v36, %v16082_v61  ;;  %5101 = vrot.lane.b32.xlu1 %v21980_v39, %s13144_s30  ;;  %v2992_v61 = vadd.f32 %v22430_v38, %v1620_v44  ;;  %v21982_v36 = vmax.f32 %v16380_v43, 0.0  ;;  %v4841_v31 = vadd.f32 %v4382_v4, %v16085_v58  ;;  %v22433_v58 = vld [vmem:[#allocation96_spill] sm:$0xff] }
 0x31d   : > { %v4280_v13 = vpop.f32.mrf.mxu0  ;;  %v4384_v23 = vpop.f32.mrf.mxu1 }
 0x31e   : > { %v4834_v14 = vadd.f32 %v4280_v13, %v3912_v48  ;;  %v4842_v15 = vadd.f32 %v4384_v23, %v3920_v32  ;;  %5103 = vrot.lane.b32.xlu0 %v21981_v60, %s13144_s30  ;;  %v16397_v39 = vadd.f32 %v16214_v7, %v4833_v5  ;;  %v22431_v13 = vld [vmem:[#allocation17_spill] sm:$0xff]  ;;  %v3914_v60 = vadd.f32 %v16105_v40, %v2992_v61  ;;  %v22432_v5 = vld [vmem:[#allocation31_spill] sm:$0xff] }
 0x31f   : > { %v3000_v48 = vadd.f32 %v22431_v13, %v1717_v20  ;;  %v1626_v4 = vadd.f32 %v22433_v58, %v22432_v5  ;;  %v16417_v40 = vadd.f32 %v16214_v7, %v4841_v31  ;;  %v22434_v13 = vld [vmem:[#allocation85_spill] sm:$0xff] }
 0x320   : > { %v16401_v63 = vadd.f32 %v16221_v11, %v4834_v14  ;;  %v16406_v8 = vadd.f32 %v16221_v11, %v4842_v15  ;;  %v21984_v20 = vmax.f32 %v16397_v39, 0.0  ;;  %v22436_v58 = vld [vmem:[#allocation97_spill] sm:$0xff] }
 0x321   : > { %v4284_v32 = vpop.f32.mrf.mxu0  ;;  %v4388_v23 = vpop.f32.mrf.mxu1  ;;  %v3922_v44 = vadd.f32 %v16107_v41, %v3000_v48  ;;  %v22435_v48 = vld [vmem:[#allocation30_spill] sm:$0xff] }
 0x322   : > { %5099 = vrot.lane.b32.xlu0 %v21982_v36, %s13144_s30  ;;  %v21983_v38 = vmax.f32 %v16401_v63, 0.0  ;;  %v4835_v15 = vadd.f32 %v4284_v32, %v16098_v6  ;;  %v2994_v36 = vadd.f32 %v22434_v13, %v1626_v4  ;;  %v21985_v31 = vmax.f32 %v16406_v8, 0.0 }
 0x323   : > { %v4286_v14 = vpop.f32.mrf.mxu0  ;;  %v4390_v42 = vpop.f32.mrf.mxu1  ;;  %v1723_v6 = vadd.f32 %v22436_v58, %v22435_v48 }
 0x324   : > { %v4836_v61 = vadd.f32 %v4286_v14, %v3914_v60  ;;  %5121 = vrot.lane.b32.xlu1 %v21983_v38, %s13144_s30  ;;  %v4844_v41 = vadd.f32 %v4390_v42, %v3922_v44  ;;  %v3916_v14 = vadd.f32 %v16115_v28, %v2994_v36  ;;  %v21986_v38 = vmax.f32 %v16417_v40, 0.0  ;;  %v22438_v36 = vld [vmem:[#allocation19_spill] sm:$0xff] }
 0x325   : > { %v16436_v4 = vadd.f32 %v16214_v7, %v4835_v15  ;;  %v4843_v44 = vadd.f32 %v4388_v23, %v16101_v52  ;;  %v22439_v15 = vld [vmem:[#allocation86_spill] sm:$0xff] }
 0x326   : > { %v16425_v5 = vadd.f32 %v16221_v11, %v4836_v61  ;;  %5119 = vrot.lane.b32.xlu0 %v21984_v20, %s13144_s30  ;;  %v22437_v61 = vld [vmem:[#allocation76_spill] sm:$0xff]  ;;  %v16444_v48 = vadd.f32 %v16221_v11, %v4844_v41  ;;  %v1608_v52 = vadd.f32 %v22439_v15, %v22438_v36 }
 0x327   : > { %v4290_v60 = vpop.f32.mrf.mxu0  ;;  %v4394_v32 = vpop.f32.mrf.mxu1  ;;  %v3002_v13 = vadd.f32 %v22437_v61, %v1723_v6  ;;  %v16455_v6 = vadd.f32 %v16214_v7, %v4843_v44  ;;  %v22441_v44 = vld [vmem:[#allocation18_spill] sm:$0xff] }
 0x328   : > { %5137 = vrot.lane.b32.xlu1 %v21985_v31, %s13144_s30  ;;  %v21994_v28 = vmax.f32 %v16425_v5, 0.0  ;;  %v21993_v31 = vmax.f32 %v16436_v4, 0.0  ;;  %v4837_v41 = vadd.f32 %v4290_v60, %v16110_v1 }
 0x329   : > { %v4292_v42 = vpop.f32.mrf.mxu0  ;;  %v4396_v23 = vpop.f32.mrf.mxu1  ;;  %v3924_v20 = vadd.f32 %v16117_v9, %v3002_v13  ;;  %v21989_v9 = vmax.f32 %v16444_v48, 0.0  ;;  %v22442_v13 = vld [vmem:[#allocation87_spill] sm:$0xff]  ;;  %v21987_v60 = vmax.f32 %v16455_v6, 0.0 }
 0x32a   : > { %v4838_v58 = vadd.f32 %v4292_v42, %v3916_v14  ;;  %5135 = vrot.lane.b32.xlu0 %v21986_v38, %s13144_s30  ;;  %v22440_v14 = vld [vmem:[#allocation78_spill] sm:$0xff]  ;;  %v1705_v15 = vadd.f32 %v22442_v13, %v22441_v44  ;;  %v16474_v38 = vadd.f32 %v16214_v7, %v4837_v41  ;;  %v22445_v13 = vld [vmem:[#allocation100_spill] sm:$0xff] }
 0x32b   : > { %v2988_v42 = vadd.f32 %v22440_v14, %v1608_v52  ;;  %v4846_v36 = vadd.f32 %v4396_v23, %v3924_v20  ;;  %v22443_v20 = vld [vmem:[#allocation12_spill] sm:$0xff] }
 0x32c   : > { %5125 = vrot.lane.b32.xlu1 %v21994_v28, %s13144_s30  ;;  %v16463_v61 = vadd.f32 %v16221_v11, %v4838_v58  ;;  %v4845_v58 = vadd.f32 %v4394_v32, %v16113_v30  ;;  %v2996_v52 = vadd.f32 %v22443_v20, %v1705_v15  ;;  %v4831_v30 = vadd.f32 %v16343_v18, %v16066_v37  ;;  %v22444_v18 = vld [vmem:[#allocation39_spill] sm:$0xff]  ;;  %v22446_v20 = vld [vmem:[#allocation38_spill] sm:$0xff] }
 0x32d   : > { %v3910_v1 = vadd.f32 %v16071_v16, %v2988_v42  ;;  %v16483_v14 = vadd.f32 %v16221_v11, %v4846_v36  ;;  %v21988_v32 = vmax.f32 %v16474_v38, 0.0  ;;  %v1808_v15 = vadd.f32 %v22445_v13, %v22444_v18  ;;  %v22448_v18 = vld [vmem:[#allocation88_spill] sm:$0xff] }
 0x32e   : > { %5123 = vrot.lane.b32.xlu0 %v21993_v31, %s13144_s30  ;;  %v21990_v16 = vmax.f32 %v16463_v61, 0.0  ;;  %v3918_v41 = vadd.f32 %v16073_v62, %v2996_v52  ;;  %v16494_v42 = vadd.f32 %v16214_v7, %v4845_v58  ;;  %v22447_v52 = vld [vmem:[#allocation101_spill] sm:$0xff] }
 0x32f   : > { %v4832_v23 = vadd.f32 %v16356_v54, %v3910_v1  ;;  %v21991_v37 = vmax.f32 %v16483_v14, 0.0  ;;  %v3006_v13 = vadd.f32 %v22448_v18, %v1808_v15 }
 0x330   : > { %5141 = vrot.lane.b32.xlu1 %v21989_v9, %s13144_s30  ;;  %v4840_v62 = vadd.f32 %v16358_v59, %v3918_v41  ;;  %v4839_v59 = vadd.f32 %v16345_v47, %v16069_v35  ;;  %v21992_v41 = vmax.f32 %v16494_v42, 0.0 }
 0x331   : > { %v16504_v44 = vadd.f32 %v16221_v11, %v4832_v23  ;;  %v16520_v23 = vadd.f32 %v16214_v7, %v4831_v30  ;;  %v3928_v35 = vadd.f32 %v16135_v53, %v3006_v13 }
 0x332   : > { %5139 = vrot.lane.b32.xlu0 %v21987_v60, %s13144_s30  ;;  %v1905_v60 = vadd.f32 %v22447_v52, %v22446_v20  ;;  %v16541_v15 = vadd.f32 %v16214_v7, %v4839_v59  ;;  %v22453_v59 = vld [vmem:[#allocation103_spill] sm:$0xff] }
 0x333   : > { %v21995_v30 = vmax.f32 %v16504_v44, 0.0 }
 0x334   : > { %5129 = vrot.lane.b32.xlu1 %v21990_v16, %s13144_s30  ;;  %v16531_v16 = vadd.f32 %v16221_v11, %v4840_v62  ;;  %v22451_v62 = vld [vmem:[#allocation102_spill] sm:$0xff] }
 0x335   : > { %v16499_v54 = vpop.f32.mrf.mxu0  ;;  %v16501_v36 = vpop.f32.mrf.mxu1 }
 0x336   : > { %5127 = vrot.lane.b32.xlu0 %v21988_v32, %s13144_s30  ;;  %v22449_v32 = vld [vmem:[#allocation20_spill] sm:$0xff] }
 0x337   : > { %v16513_v1 = vpop.f32.mrf.mxu0  ;;  %v16515_v58 = vpop.f32.mrf.mxu1  ;;  %v3014_v9 = vadd.f32 %v22449_v32, %v1905_v60  ;;  %v22450_v32 = vld [vmem:[#allocation43_spill] sm:$0xff] }
 0x338   : > { %5145 = vrot.lane.b32.xlu1 %v21991_v37, %s13144_s30  ;;  %v22003_v37 = vmax.f32 %v16520_v23, 0.0  ;;  %v1814_v18 = vadd.f32 %v22451_v62, %v22450_v32 }
 0x339   : > { %v3936_v52 = vadd.f32 %v16137_v21, %v3014_v9  ;;  %v21998_v21 = vmax.f32 %v16531_v16, 0.0  ;;  %v22452_v9 = vld [vmem:[#allocation42_spill] sm:$0xff] }
 0x33a   : > { %5143 = vrot.lane.b32.xlu0 %v21992_v41, %s13144_s30 }
 0x33b   : > { %v4486_v47 = vpop.f32.mrf.mxu0  ;;  %v4590_v20 = vpop.f32.mrf.mxu1 }
 0x33c   : > { %v4849_v60 = vadd.f32 %v4486_v47, %v16130_v27  ;;  %5117 = vrot.lane.b32.xlu1 %v21995_v30, %s13144_s30  ;;  %v1911_v27 = vadd.f32 %v22453_v59, %v22452_v9  ;;  %v22454_v47 = vld [vmem:[#allocation89_spill] sm:$0xff]  ;;  %v21997_v30 = vmax.f32 %v16541_v15, 0.0  ;;  %v4857_v32 = vadd.f32 %v4590_v20, %v16133_v50  ;;  %v22456_v20 = vld [vmem:[#allocation47_spill] sm:$0xff] }
 0x33d   : > { %v4488_v41 = vpop.f32.mrf.mxu0  ;;  %v4592_v53 = vpop.f32.mrf.mxu1  ;;  %v3008_v28 = vadd.f32 %v22454_v47, %v1814_v18 }
 0x33e   : > { %v4850_v13 = vadd.f32 %v4488_v41, %v3928_v35  ;;  %v4858_v31 = vadd.f32 %v4592_v53, %v3936_v52  ;;  %5115 = vrot.lane.b32.xlu0 %v22003_v37, %s13144_s30  ;;  %v16558_v26 = vadd.f32 %v16214_v7, %v4849_v60  ;;  %v22455_v35 = vld [vmem:[#allocation82_spill] sm:$0xff]  ;;  %v22457_v60 = vld [vmem:[#allocation105_spill] sm:$0xff] }
 0x33f   : > { %v3016_v52 = vadd.f32 %v22455_v35, %v1911_v27  ;;  %v3930_v18 = vadd.f32 %v16145_v55, %v3008_v28  ;;  %v16581_v55 = vadd.f32 %v16214_v7, %v4857_v32 }
 0x340   : > { %v16562_v41 = vadd.f32 %v16221_v11, %v4850_v13  ;;  %5133 = vrot.lane.b32.xlu1 %v21998_v21, %s13144_s30  ;;  %v16570_v9 = vadd.f32 %v16221_v11, %v4858_v31  ;;  %v1820_v13 = vadd.f32 %v22457_v60, %v22456_v20  ;;  %v22000_v35 = vmax.f32 %v16558_v26, 0.0  ;;  %v22461_v60 = vld [vmem:[#allocation106_spill] sm:$0xff] }
 0x341   : > { %v4492_v62 = vpop.f32.mrf.mxu0  ;;  %v4596_v53 = vpop.f32.mrf.mxu1  ;;  %v3938_v59 = vadd.f32 %v16147_v25, %v3016_v52  ;;  %22458 = vst [vmem:[#allocation66_spill] sm:$0xff] %v16581_v55  ;;  %v22460_v52 = vld [vmem:[#allocation46_spill] sm:$0xff] }
 0x342   : > { %5131 = vrot.lane.b32.xlu0 %v21997_v30, %s13144_s30  ;;  %v21999_v50 = vmax.f32 %v16562_v41, 0.0  ;;  %v4851_v31 = vadd.f32 %v4492_v62, %v16140_v3  ;;  %v22459_v30 = vld [vmem:[#allocation25_spill] sm:$0xff]  ;;  %v22001_v32 = vmax.f32 %v16570_v9, 0.0  ;;  %v1917_v3 = vadd.f32 %v22461_v60, %v22460_v52 }
 0x343   : > { %v4494_v47 = vpop.f32.mrf.mxu0  ;;  %v4598_v27 = vpop.f32.mrf.mxu1  ;;  %v3010_v21 = vadd.f32 %v22459_v30, %v1820_v13  ;;  %v4859_v13 = vadd.f32 %v4596_v53, %v16143_v29 }
 0x344   : > { %v4852_v28 = vadd.f32 %v4494_v47, %v3930_v18  ;;  %5153 = vrot.lane.b32.xlu1 %v21999_v50, %s13144_s30  ;;  %v4860_v25 = vadd.f32 %v4598_v27, %v3938_v59  ;;  %v22002_v50 = vmax.f32 %v16581_v55, 0.0  ;;  %v16600_v30 = vadd.f32 %v16214_v7, %v4851_v31  ;;  %v22462_v27 = vld [vmem:[#allocation92_spill] sm:$0xff]  ;;  %v22465_v31 = vld [vmem:[#allocation98_spill] sm:$0xff]  ;;  %v22489_v55 = vld [vmem:[#allocation61_spill] sm:$0xff] }
 0x345   : > { %v3932_v47 = vadd.f32 %v16155_v56, %v3010_v21  ;;  %v22464_v21 = vld [vmem:[#allocation35_spill] sm:$0xff] }
 0x346   : > { %v16589_v20 = vadd.f32 %v16221_v11, %v4852_v28  ;;  %5151 = vrot.lane.b32.xlu0 %v22000_v35, %s13144_s30  ;;  %v3018_v28 = vadd.f32 %v22462_v27, %v1917_v3  ;;  %v16608_v52 = vadd.f32 %v16221_v11, %v4860_v25  ;;  %v1802_v29 = vadd.f32 %v22465_v31, %v22464_v21  ;;  %v22467_v25 = vld [vmem:[#allocation104_spill] sm:$0xff] }
 0x347   : > { %v4498_v62 = vpop.f32.mrf.mxu0  ;;  %v4602_v18 = vpop.f32.mrf.mxu1  ;;  %v16619_v3 = vadd.f32 %v16214_v7, %v4859_v13  ;;  %v22470_v13 = vld [vmem:[#allocation34_spill] sm:$0xff] }
 0x348   : > { %5169 = vrot.lane.b32.xlu1 %v22001_v32, %s13144_s30  ;;  %22463 = vst [vmem:[#allocation119_spill] sm:$0xff] %v16608_v52  ;;  %v22004_v56 = vmax.f32 %v16589_v20, 0.0  ;;  %v3940_v35 = vadd.f32 %v16157_v49, %v3018_v28  ;;  %v22005_v32 = vmax.f32 %v16600_v30, 0.0  ;;  %v4853_v27 = vadd.f32 %v4498_v62, %v22467_v25  ;;  %v22471_v28 = vld [vmem:[#allocation99_spill] sm:$0xff]  ;;  %v22472_v62 = vld [vmem:[#allocation45_spill] sm:$0xff] }
 0x349   : > { %v4500_v59 = vpop.f32.mrf.mxu0  ;;  %v4604_v53 = vpop.f32.mrf.mxu1  ;;  %22466 = vst [vmem:[#allocation11_spill] sm:$0xff] %v16619_v3  ;;  %v22007_v49 = vmax.f32 %v16608_v52, 0.0  ;;  %v1899_v31 = vadd.f32 %v22471_v28, %v22470_v13  ;;  %v22006_v37 = vmax.f32 %v16619_v3, 0.0 }
 0x34a   : > { %v4854_v60 = vadd.f32 %v4500_v59, %v3932_v47  ;;  %5167 = vrot.lane.b32.xlu0 %v22002_v50, %s13144_s30  ;;  %v22468_v47 = vld [vmem:[#allocation77_spill] sm:$0xff]  ;;  %v4862_v21 = vadd.f32 %v4604_v53, %v3940_v35 }
 0x34b   : > { %v3004_v59 = vadd.f32 %v22468_v47, %v1802_v29  ;;  %v22474_v29 = vld [vmem:[#allocation49_spill] sm:$0xff] }
 0x34c   : > { %5157 = vrot.lane.b32.xlu1 %v22004_v56, %s13144_s30  ;;  %v16627_v50 = vadd.f32 %v16221_v11, %v4854_v60  ;;  %v16638_v56 = vadd.f32 %v16214_v7, %v4853_v27  ;;  %v4861_v60 = vadd.f32 %v4602_v18, %v22474_v29  ;;  %v22475_v35 = vld [vmem:[#allocation21_spill] sm:$0xff] }
 0x34d   : > { %v3926_v25 = vadd.f32 %v22472_v62, %v3004_v59  ;;  %v3012_v53 = vadd.f32 %v22475_v35, %v1899_v31  ;;  %v22477_v59 = vld [vmem:[#allocation44_spill] sm:$0xff]  ;;  %v22478_v18 = vld [vmem:[#allocation41_spill] sm:$0xff] }
 0x34e   : > { %22469 = vst [vmem:[#allocation74_spill] sm:$0xff] %v16627_v50  ;;  %5155 = vrot.lane.b32.xlu0 %v22005_v32, %s13144_s30  ;;  %22473 = vst [vmem:[#allocation10_spill] sm:$0xff] %v16638_v56  ;;  %v16647_v32 = vadd.f32 %v16221_v11, %v4862_v21  ;;  %v22008_v27 = vmax.f32 %v16627_v50, 0.0  ;;  %v4847_v28 = vadd.f32 %v16499_v54, %v22478_v18  ;;  %v22010_v62 = vmax.f32 %v16638_v56, 0.0  ;;  %v22481_v29 = vld [vmem:[#allocation109_spill] sm:$0xff]  ;;  %v22484_v18 = vld [vmem:[#allocation110_spill] sm:$0xff] }
 0x34f   : > { %v4848_v47 = vadd.f32 %v16513_v1, %v3926_v25  ;;  %v3934_v13 = vadd.f32 %v22477_v59, %v3012_v53  ;;  %v16658_v31 = vadd.f32 %v16214_v7, %v4861_v60  ;;  %v22480_v25 = vld [vmem:[#allocation54_spill] sm:$0xff]  ;;  %v22483_v59 = vld [vmem:[#allocation55_spill] sm:$0xff] }
 0x350   : > { %5173 = vrot.lane.b32.xlu1 %v22007_v49, %s13144_s30  ;;  %22476 = vst [vmem:[#allocation75_spill] sm:$0xff] %v16647_v32  ;;  %v2002_v35 = vadd.f32 %v22481_v29, %v22480_v25  ;;  %v22015_v60 = vmax.f32 %v16647_v32, 0.0  ;;  %v22487_v29 = vld [vmem:[#allocation40_spill] sm:$0xff]  ;;  %v22493_v32 = vld [vmem:[#allocation113_spill] sm:$0xff] }
 0x351   : > { %22479 = vst [vmem:[#allocation68_spill] sm:$0xff] %v16658_v31  ;;  %v16670_v53 = vadd.f32 %v16221_v11, %v4848_v47  ;;  %v4856_v54 = vadd.f32 %v16515_v58, %v3934_v13  ;;  %v16685_v47 = vadd.f32 %v16214_v7, %v4847_v28  ;;  %v4855_v58 = vadd.f32 %v16501_v36, %v22487_v29  ;;  %v22491_v28 = vld [vmem:[#allocation58_spill] sm:$0xff] }
 0x352   : > { %5171 = vrot.lane.b32.xlu0 %v22006_v37, %s13144_s30  ;;  %v2099_v37 = vadd.f32 %v22484_v18, %v22483_v59  ;;  %v3022_v25 = vadd.f32 %v22485_v19, %v2002_v35  ;;  %v22018_v13 = vmax.f32 %v16658_v31, 0.0  ;;  %v22492_v35 = vld [vmem:[#allocation111_spill] sm:$0xff]  ;;  %v22496_v31 = vld [vmem:[#allocation33_spill] sm:$0xff] }
 0x353   : > { %22482 = vst [vmem:[#allocation9_spill] sm:$0xff] %v16670_v53  ;;  %22486 = vst [vmem:[#allocation15_spill] sm:$0xff] %v16685_v47  ;;  %v16696_v19 = vadd.f32 %v16221_v11, %v4856_v54  ;;  %v22021_v36 = vmax.f32 %v16670_v53, 0.0  ;;  %v2008_v29 = vadd.f32 %v22492_v35, %v22491_v28  ;;  %v22495_v54 = vld [vmem:[#allocation57_spill] sm:$0xff] }
 0x354   : > { %5161 = vrot.lane.b32.xlu1 %v22008_v27, %s13144_s30  ;;  %v3944_v56 = vadd.f32 %v22489_v55, %v3022_v25  ;;  %v16707_v55 = vadd.f32 %v16214_v7, %v4855_v58 }
 0x355   : > { %v16663_v1 = vpop.f32.mrf.mxu0  ;;  %v16665_v21 = vpop.f32.mrf.mxu1  ;;  %22490 = vst [vmem:[#allocation80_spill] sm:$0xff] %v16696_v19  ;;  %v3024_v50 = vadd.f32 %v22496_v31, %v2008_v29  ;;  %v22026_v58 = vmax.f32 %v16696_v19, 0.0  ;;  %v22503_v29 = vld [vmem:[#allocation32_spill] sm:$0xff] }
 0x356   : > { %5159 = vrot.lane.b32.xlu0 %v22010_v62, %s13144_s30  ;;  %v22488_v62 = vld [vmem:[#allocation28_spill] sm:$0xff]  ;;  %22494 = vst [vmem:[#allocation14_spill] sm:$0xff] %v16707_v55  ;;  %v22027_v53 = vmax.f32 %v16707_v55, 0.0  ;;  %v22514_v55 = vld [vmem:[#allocation6_spill] sm:$0xff] }
 0x357   : > { %v16679_v49 = vpop.f32.mrf.mxu0  ;;  %v16681_v27 = vpop.f32.mrf.mxu1  ;;  %v3030_v59 = vadd.f32 %v22488_v62, %v2099_v37  ;;  %v22023_v62 = vmax.f32 %v16685_v47, 0.0  ;;  %v22507_v47 = vld [vmem:[#allocation16_spill] sm:$0xff] }
 0x358   : > { %5177 = vrot.lane.b32.xlu1 %v22015_v60, %s13144_s30 }
 0x359   : > { %v4694_v18 = vpop.f32.mrf.mxu0  ;;  %v4798_v34 = vpop.f32.mrf.mxu1  ;;  %v3952_v60 = vadd.f32 %v22493_v32, %v3030_v59  ;;  %v22498_v59 = vld [vmem:[#allocation59_spill] sm:$0xff] }
 0x35a   : > { %5175 = vrot.lane.b32.xlu0 %v22018_v13, %s13144_s30  ;;  %v4865_v25 = vadd.f32 %v4694_v18, %v22495_v54  ;;  %v22499_v18 = vld [vmem:[#allocation112_spill] sm:$0xff] }
 0x35b   : > { %v4696_v3 = vpop.f32.mrf.mxu0  ;;  %v4800_v37 = vpop.f32.mrf.mxu1  ;;  %v22500_v54 = vld [vmem:[#allocation84_spill] sm:$0xff] }
 0x35c   : > { %v4866_v52 = vadd.f32 %v4696_v3, %v3944_v56  ;;  %5149 = vrot.lane.b32.xlu1 %v22021_v36, %s13144_s30  ;;  %v4874_v32 = vadd.f32 %v4800_v37, %v3952_v60  ;;  %v2105_v56 = vadd.f32 %v22499_v18, %v22498_v59  ;;  %v3946_v36 = vadd.f32 %v22500_v54, %v3024_v50  ;;  %v22506_v18 = vld [vmem:[#allocation114_spill] sm:$0xff] }
 0x35d   : > { %v4700_v13 = vpop.f32.mrf.mxu0  ;;  %v4804_v3 = vpop.f32.mrf.mxu1  ;;  %v16726_v31 = vadd.f32 %v16214_v7, %v4865_v25  ;;  %v22505_v25 = vld [vmem:[#allocation62_spill] sm:$0xff] }
 0x35e   : > { %v16715_v28 = vadd.f32 %v16221_v11, %v4866_v52  ;;  %5147 = vrot.lane.b32.xlu0 %v22023_v62, %s13144_s30  ;;  %v22502_v52 = vld [vmem:[#allocation60_spill] sm:$0xff]  ;;  %v3032_v37 = vadd.f32 %v22503_v29, %v2105_v56  ;;  %v16734_v62 = vadd.f32 %v16221_v11, %v4874_v32  ;;  %v2014_v54 = vadd.f32 %v22506_v18, %v22505_v25  ;;  %v22509_v32 = vld [vmem:[#allocation71_spill] sm:$0xff] }
 0x35f   : > { %v4702_v35 = vpop.f32.mrf.mxu0  ;;  %22501 = vst [vmem:[#allocation69_spill] sm:$0xff] %v16726_v31  ;;  %v4873_v60 = vadd.f32 %v4798_v34, %v22502_v52  ;;  %v4806_v34 = vpop.f32.mrf.mxu1 }
 0x360   : > { %22497 = vst [vmem:[#allocation81_spill] sm:$0xff] %v16715_v28  ;;  %5165 = vrot.lane.b32.xlu1 %v22026_v58, %s13144_s30  ;;  %22504 = vst [vmem:[#allocation13_spill] sm:$0xff] %v16734_v62  ;;  %v4868_v59 = vadd.f32 %v4702_v35, %v3946_v36  ;;  %v22030_v50 = vmax.f32 %v16715_v28, 0.0  ;;  %v3954_v19 = vadd.f32 %v22507_v47, %v3032_v37  ;;  %v22031_v58 = vmax.f32 %v16726_v31, 0.0  ;;  %v22510_v35 = vld [vmem:[#allocation37_spill] sm:$0xff]  ;;  %v22513_v37 = vld [vmem:[#allocation115_spill] sm:$0xff] }
 0x361   : > { %v4706_v52 = vpop.f32.mrf.mxu0  ;;  %v16745_v56 = vadd.f32 %v16214_v7, %v4873_v60  ;;  %v4867_v36 = vadd.f32 %v4700_v13, %v22509_v32  ;;  %v3026_v29 = vadd.f32 %v22510_v35, %v2014_v54  ;;  %v22033_v47 = vmax.f32 %v16734_v62, 0.0  ;;  %v22512_v60 = vld [vmem:[#allocation63_spill] sm:$0xff]  ;;  %v4810_v13 = vpop.f32.mrf.mxu1 }
 0x362   : > { %5163 = vrot.lane.b32.xlu0 %v22027_v53, %s13144_s30  ;;  %v16753_v53 = vadd.f32 %v16221_v11, %v4868_v59  ;;  %v4876_v25 = vadd.f32 %v4806_v34, %v3954_v19  ;;  %v2111_v18 = vadd.f32 %v22513_v37, %v22512_v60  ;;  %v22516_v59 = vld [vmem:[#allocation72_spill] sm:$0xff] }
 0x363   : > { %22508 = vst [vmem:[#allocation7_spill] sm:$0xff] %v16745_v56  ;;  %v4708_v32 = vpop.f32.mrf.mxu0  ;;  %v3948_v28 = vadd.f32 %v22514_v55, %v3026_v29  ;;  %v16764_v54 = vadd.f32 %v16214_v7, %v4867_v36  ;;  %v4875_v19 = vadd.f32 %v4804_v3, %v22516_v59  ;;  %v22517_v34 = vld [vmem:[#allocation36_spill] sm:$0xff]  ;;  %v22519_v36 = vld [vmem:[#allocation51_spill] sm:$0xff]  ;;  %v4812_v3 = vpop.f32.mrf.mxu1 }
 0x364   : > { %5185 = vrot.lane.b32.xlu1 %v22030_v50, %s13144_s30  ;;  %22511 = vst [vmem:[#allocation67_spill] sm:$0xff] %v16753_v53  ;;  %v22034_v50 = vmax.f32 %v16745_v56, 0.0  ;;  %v3034_v35 = vadd.f32 %v22517_v34, %v2111_v18  ;;  %v22036_v55 = vmax.f32 %v16753_v53, 0.0  ;;  %v22520_v29 = vld [vmem:[#allocation107_spill] sm:$0xff]  ;;  %v22521_v59 = vld [vmem:[#allocation64_spill] sm:$0xff] }
 0x365   : > { %22515 = vst [vmem:[#allocation120_spill] sm:$0xff] %v16764_v54  ;;  %v4870_v60 = vadd.f32 %v4708_v32, %v3948_v28  ;;  %v1996_v37 = vadd.f32 %v22520_v29, %v22519_v36  ;;  %v16783_v18 = vadd.f32 %v16214_v7, %v4875_v19  ;;  %v22524_v28 = vld [vmem:[#allocation24_spill] sm:$0xff]  ;;  %v22526_v19 = vld [vmem:[#allocation50_spill] sm:$0xff] }
 0x366   : > { %5183 = vrot.lane.b32.xlu0 %v22031_v58, %s13144_s30  ;;  %v16772_v58 = vadd.f32 %v16221_v11, %v4876_v25  ;;  %v3956_v31 = vadd.f32 %v22521_v59, %v3034_v35  ;;  %v22523_v25 = vld [vmem:[#allocation83_spill] sm:$0xff]  ;;  %v22527_v35 = vld [vmem:[#allocation108_spill] sm:$0xff] }
 0x367   : > { %22522 = vst [vmem:[#allocation65_spill] sm:$0xff] %v16783_v18  ;;  %v4869_v34 = vadd.f32 %v4706_v52, %v22523_v25  ;;  %v3020_v32 = vadd.f32 %v22524_v28, %v1996_v37  ;;  %v16792_v36 = vadd.f32 %v16221_v11, %v4870_v60  ;;  %v2093_v59 = vadd.f32 %v22527_v35, %v22526_v19  ;;  %v22528_v52 = vld [vmem:[#allocation53_spill] sm:$0xff]  ;;  %v22534_v35 = vld [vmem:[#allocation48_spill] sm:$0xff] }
 0x368   : > { %5201 = vrot.lane.b32.xlu1 %v22033_v47, %s13144_s30  ;;  %22518 = vst [vmem:[#allocation5_spill] sm:$0xff] %v16772_v58  ;;  %v22037_v47 = vmax.f32 %v16764_v54, 0.0  ;;  %v4878_v29 = vadd.f32 %v4812_v3, %v3956_v31  ;;  %v22042_v56 = vmax.f32 %v16783_v18, 0.0  ;;  %v22530_v37 = vld [vmem:[#allocation121_spill] sm:$0xff] }
 0x369   : > { %22525 = vst [vmem:[#allocation118_spill] sm:$0xff] %v16792_v36  ;;  %v3942_v25 = vadd.f32 %v22528_v52, %v3020_v32  ;;  %v4877_v28 = vadd.f32 %v4810_v13, %v22530_v37  ;;  %v22531_v60 = vld [vmem:[#allocation93_spill] sm:$0xff]  ;;  %v22533_v32 = vld [vmem:[#allocation56_spill] sm:$0xff]  ;;  %v4863_v52 = vadd.f32 %v16663_v1, %v22534_v35 }
 0x36a   : > { %5199 = vrot.lane.b32.xlu0 %v22034_v50, %s13144_s30  ;;  %v22044_v50 = vmax.f32 %v16772_v58, 0.0  ;;  %v3028_v3 = vadd.f32 %v22531_v60, %v2093_v59  ;;  %v16811_v19 = vadd.f32 %v16221_v11, %v4878_v29 }
 0x36b   : > { %v16822_v59 = vadd.f32 %v16214_v7, %v4877_v28  ;;  %v16836_v28 = vadd.f32 %v16214_v7, %v4863_v52 }
 0x36c   : > { %5189 = vrot.lane.b32.xlu1 %v22036_v55, %s13144_s30  ;;  %v16802_v55 = vadd.f32 %v16214_v7, %v4869_v34  ;;  %22532 = vst [vmem:[#allocation90_spill] sm:$0xff] %v16811_v19  ;;  %v22045_v34 = vmax.f32 %v16792_v36, 0.0  ;;  %v3950_v13 = vadd.f32 %v22533_v32, %v3028_v3  ;;  %v22538_v3 = vld [vmem:[#allocation52_spill] sm:$0xff] }
 0x36d   : > { %22535 = vst [vmem:[#allocation22_spill] sm:$0xff] %v16822_v59  ;;  %22537 = vst [vmem:[#allocation79_spill] sm:$0xff] %v16836_v28  ;;  %v4871_v32 = vadd.f32 %v16665_v21, %v22538_v3  ;;  %v22038_v35 = vmax.f32 %v16822_v59, 0.0  ;;  %v22043_v52 = vmax.f32 %v16836_v28, 0.0 }
 0x36e   : > { %5187 = vrot.lane.b32.xlu0 %v22037_v47, %s13144_s30  ;;  %22529 = vst [vmem:[#allocation23_spill] sm:$0xff] %v16802_v55  ;;  %v4864_v47 = vadd.f32 %v16679_v49, %v3942_v25  ;;  %v22041_v37 = vmax.f32 %v16802_v55, 0.0  ;;  %v4872_v29 = vadd.f32 %v16681_v27, %v3950_v13  ;;  %v22039_v25 = vmax.f32 %v16811_v19, 0.0  ;;  %v5084_v60 = vpop.permute.xlu0 %5083 }
 0x36f   : > { %v16853_v21 = vadd.f32 %v16214_v7, %v4871_v32 }
 0x370   : > { %5205 = vrot.lane.b32.xlu1 %v22044_v50, %s13144_s30  ;;  %v5086_v31 = vpop.permute.xlu1 %5085  ;;  %v16828_v49 = vadd.f32 %v16221_v11, %v4864_v47  ;;  %v16845_v27 = vadd.f32 %v16221_v11, %v4872_v29 }
 0x371   : > { %22540 = vst [vmem:[#allocation27_spill] sm:$0xff] %v16853_v21 }
 0x372   : > { %5203 = vrot.lane.b32.xlu0 %v22042_v56, %s13144_s30  ;;  %22536 = vst [vmem:[#allocation91_spill] sm:$0xff] %v16828_v49  ;;  %22539 = vst [vmem:[#allocation70_spill] sm:$0xff] %v16845_v27  ;;  %v22040_v47 = vmax.f32 %v16828_v49, 0.0  ;;  %v22047_v11 = vmax.f32 %v16845_v27, 0.0  ;;  %v22546_v49 = vld [vmem:[#allocation117_spill] sm:$0xff] }
 0x374   : > { %5193 = vrot.lane.b32.xlu1 %v22045_v34, %s13144_s30  ;;  %v5088_v3 = vpop.permute.xlu0 %5087 }
 0x376   : > { %5191 = vrot.lane.b32.xlu0 %v22041_v37, %s13144_s30  ;;  %v5090_v1 = vpop.permute.xlu1 %5089  ;;  %v22541_v37 = vmax.f32 %v16280_v12, 0.0  ;;  %v22548_v12 = vld [vmem:[#allocation8_spill] sm:$0xff] }
 0x378   : > { %5209 = vrot.lane.b32.xlu1 %v22039_v25, %s13144_s30  ;;  %v5212_v25 = vsel %vm5211_vm5, %v5084_v60, %v5086_v31 }
 0x37a   : > { %5207 = vrot.lane.b32.xlu0 %v22038_v35, %s13144_s30  ;;  %v5092_v13 = vpop.permute.xlu1 %5091  ;;  %v22051_v35 = vmax.f32 %v16853_v21, 0.0 }
 0x37c   : > { %5181 = vrot.lane.b32.xlu1 %v22040_v47, %s13144_s30  ;;  %v5213_v47 = vsel %vm5211_vm5, %v5088_v3, %v5090_v1  ;;  %v22547_v3 = vmax.f32 %v22546_v49, 0.0 }
 0x37e   : > { %5179 = vrot.lane.b32.xlu0 %v22043_v52, %s13144_s30  ;;  %v5094_v29 = vpop.permute.xlu1 %5093  ;;  %v22542_v52 = vld [vmem:[#allocation116_spill] sm:$0xff]  ;;  %v16884_v59 = vmax.f32 %v22547_v3, %v5212_v25 }
 0x37f   : > { %v5214_v32 = vsel %vm5211_vm5, %v5092_v13, %v5094_v29  ;;  %v5313_v56 = vmax.f32 %v22541_v37, %v5094_v29  ;;  %v22543_v50 = vmax.f32 %v22542_v52, 0.0  ;;  %v22545_v13 = vmax.f32 %v16271_v46, 0.0 }
 0x380   : > { %5197 = vrot.lane.b32.xlu1 %v22047_v11, %s13144_s30  ;;  %v5096_v7 = vpop.permute.xlu0 %5095  ;;  %v22544_v11 = vmax.f32 %v16256_v2, 0.0  ;;  %v22549_v37 = vmax.f32 %v22548_v12, 0.0  ;;  %v22551_v2 = vlaneseq }
 0x381   : > { %v16873_v34 = vmax.f32 %v22543_v50, %v5086_v31  ;;  %v5312_v60 = vmax.f32 %v22545_v13, %v5214_v32  ;;  %v5444_v31 = vrot.slane %v5313_v56, 1  ;;  %v22553_v32 = vld [vmem:[#allocation122_spill] sm:$0xff] }
 0x382   : > { %5195 = vrot.lane.b32.xlu0 %v22051_v35, %s13144_s30  ;;  %v5110_v27 = vpop.permute.xlu1 %5109  ;;  %v5311_v28 = vmax.f32 %v22544_v11, %v5090_v1  ;;  %v5310_v52 = vmax.f32 %v22549_v37, %v5213_v47  ;;  %v22550_v35 = vmax.f32 %v16304_v17, 0.0  ;;  %v5680_v1 = vand.u32 127, %v22551_v2  ;;  %s380_s30 = sand.u32 1, %s13133_s18  }
 0x383   : > { %v5439_v46 = vrot.slane %v16873_v34, 1  ;;  %v22552_v11 = vmax.f32 %v16295_v51, 0.0  ;;  %v5681_v13 = vmul.u32 2, %v22553_v32  ;;  %v5678_v47 = vadd.s32 8, %v22553_v32  ;;  %s12154_s16 = sshll.u32 %s380_s30, 3  ;;  %s12078_s0 = scalar_lea.sflag [#allocation3], %s380_s30 }
 0x384   : > { %v5098_v50 = vpop.permute.xlu0 %5097  ;;  %v5440_v3 = vrot.slane %v5311_v28, 1  ;;  %v5442_v12 = vrot.slane %v5312_v60, 1  ;;  %v5436_v17 = vrot.slane %v16884_v59, 1  ;;  %v22555_v2 = vmax.f32 %v16292_v57, 0.0  ;;  %s382_s24 = scalar_lea.vmem [#allocation2], %s12154_s16  ;;  %s13085_s16 = sshll.u32 %s13147_s21, 4  ;;  %s13086_s16 = int_to_ptr.vmem [resolvable:$false] %s13085_s16 }
 0x385   : > { %v5215_v29 = vsel %vm5211_vm5, %v5096_v7, %v5098_v50  ;;  %v5315_v21 = vmax.f32 %v22550_v35, %v5098_v50  ;;  %v22554_v7 = vmax.f32 %v16311_v22, 0.0  ;;  %v5437_v35 = vrot.slane %v5310_v52, 1  ;;  %s12091_s25 = sshll.u32 %s382_s24, 4  ;;  %s13087_s12 = scalar_lea.vmem %s13086_s16, 256  ;;  %s12092_s25 = int_to_ptr.vmem [resolvable:$true] %s12091_s25 }
 0x386   : > { %v5314_v49 = vmax.f32 %v22552_v11, %v5215_v29  ;;  %v5114_v25 = vpop.permute.xlu1 %5113  ;;  %v16902_v55 = vmax.f32 %v22555_v2, %v5110_v27  ;;  %v5445_v18 = vsel %vm475_vm0, %v5440_v3, %v5444_v31  ;;  %v22556_v22 = vmax.f32 %v16320_v33, 0.0  ;;  %s13081_s1 = scalar_lea.vmem %s12092_s25, 128  ;;  %p13088_p0 = scmp.lt.s32.totalorder %s12092_s25, %s13086_s16 }
 0x387   : > { %v5448_v37 = vrot.slane %v5315_v21, 1  ;;  %v5323_v19 = vmax.f32 %v22554_v7, %v5114_v25  ;;  %v22557_v57 = vmax.f32 %v16328_v0, 0.0  ;;  %v5438_v33 = vsel %vm475_vm0, %v5436_v17, %v5437_v35  ;;  %p13082_p11 = scmp.ne.s32.totalorder %s12092_s25, %s13081_s1  ;;  %p13089_p1 = scmp.lt.s32.totalorder %s13087_s12, %s13081_s1 }
 0x388   : > { %v5446_v50 = vrot.slane %v5314_v49, 1  ;;  %v5112_v51 = vpop.permute.xlu0 %5111  ;;  %vm16917_vm7 = vcmp.eq.s32.totalorder %v5680_v1, %v5681_v13  ;;  %v22561_v17 = vmax.f32 %v16348_v45, 0.0 }
 0x389   : > { %v5619_v29 = vmax.f32 %v5315_v21, %v5448_v37  ;;  %v5219_v11 = vsel %vm5211_vm5, %v5112_v51, %v5114_v25  ;;  %v5449_v32 = vsel %vm475_vm0, %v5444_v31, %v5448_v37  ;;  %v5462_v53 = vrot.slane %v5323_v19, 1  ;;  %p13083_p12 = pnand %p13082_p11, %p13246_p5  ;;  %p13090_p2 = por %p13089_p1, %p13088_p0 }
 0x38a   : > { %v5618_v58 = vmax.f32 %v5314_v49, %v5446_v50  ;;  %v5322_v7 = vmax.f32 %v22556_v22, %v5219_v11  ;;  %v5617_v36 = vmax.f32 %v5313_v56, %v5449_v32  ;;  %v5106_v62 = vpop.permute.xlu1 %5105  ;;  %v5447_v54 = vsel %vm475_vm0, %v5442_v12, %v5446_v50 }
 0x38b   : > { %12416 = vmatprep.subr.msk.mxu0 %vm5696_vm6, %v5619_v29  ;;  %v5319_v21 = vmax.f32 %v22557_v57, %v5106_v62  ;;  %v5616_v2 = vmax.f32 %v5312_v60, %v5447_v54  ;;  %v5443_v25 = vsel %vm475_vm0, %v5437_v35, %v5442_v12  ;;  %v5441_v49 = vsel %vm475_vm0, %v5439_v46, %v5440_v3  ;;  %p13084_p13 = pneg %p13083_p12 }
 0x38c   : > { %12417 = vmatpush1.msk.msra.mxu0 %vm5696_vm6, %v5618_v58  ;;  %v5108_v31 = vpop.permute.xlu0 %5107  ;;  %v5682_v32 = vmul.u32 2, %v5678_v47  ;;  %v5458_v37 = vrot.slane %v16902_v55, 1  ;;  %v5615_v60 = vmax.f32 %v5311_v28, %v5445_v18  ;;  %v5460_v12 = vrot.slane %v5322_v7, 1 }
 0x38d   : > { %v5218_v0 = vsel %vm5211_vm5, %v5108_v31, %v5110_v27  ;;  %5729 = vmatprep.subr.mxu0 %v5617_v36  ;;  %v5454_v54 = vrot.slane %v5319_v21, 1  ;;  %v22560_v58 = vmax.f32 %v16337_v10, 0.0  ;;  %v5614_v46 = vmax.f32 %v5310_v52, %v5443_v25  ;;  %p13091_p3 = pnand %p13090_p2, %p13084_p13 }
 0x38e   : > { %5730 = vmatpush1.msra.mxu0 %v5616_v2  ;;  %v5102_v3 = vpop.permute.xlu1 %5101  ;;  %v5613_v13 = vmax.f32 %v16873_v34, %v5441_v49  ;;  %v5463_v35 = vsel %vm475_vm0, %v5458_v37, %v5462_v53  ;;  %v5612_v10 = vmax.f32 %v16884_v59, %v5438_v33  ;;  %v22562_v28 = vmov 0.0  }
 0x38f   : > { %v5320_v50 = vmax.f32 %v22560_v58, %v5218_v0  ;;  %5731 = vmatprep.subr.mxu0 %v5615_v60  ;;  %v5317_v47 = vmax.f32 %v22561_v17, %v5102_v3  ;;  %v5459_v36 = vsel %vm475_vm0, %v5454_v54, %v5458_v37  ;;  %v16934_v52 = vsel %vm16917_vm7, 1.0, %v22562_v28 }
 0x390   : > { %5732 = vmatpush1.msra.mxu0 %v5614_v46  ;;  %v5104_v18 = vpop.permute.xlu0 %5103  ;;  %22563 = vst [vmem:[#allocation94_spill] sm:$0xff] %v16934_v52  ;;  %v5627_v51 = vmax.f32 %v5323_v19, %v5462_v53  ;;  %vm5684_vm9 = vcmp.eq.s32.totalorder %v5680_v1, %v5682_v32  ;;  %v5626_v29 = vmax.f32 %v5322_v7, %v5460_v12  ;;  %v22564_v22 = vmax.f32 %v16365_v24, 0.0 }
 0x391   : > { %v5456_v27 = vrot.slane %v5320_v50, 1  ;;  %v5217_v34 = vsel %vm5211_vm5, %v5104_v18, %v5106_v62  ;;  %5733 = vmatprep.subr.mxu0 %v5613_v13  ;;  %v5453_v45 = vrot.slane %v5317_v47, 1  ;;  %v5625_v59 = vmax.f32 %v16902_v55, %v5463_v35 }
 0x392   : > { %v5318_v57 = vmax.f32 %v22564_v22, %v5217_v34  ;;  %5734 = vmatpush1.msra.mxu0 %v5612_v10  ;;  %v5623_v25 = vmax.f32 %v5319_v21, %v5459_v36  ;;  %v16948_v24 = vsel %vm5684_vm9, 1.0, %v22562_v28  ;;  %v22565_v7 = vmax.f32 %v16380_v43, 0.0 }
 0x393   : > { %v5461_v11 = vsel %vm475_vm0, %v5456_v27, %v5460_v12  ;;  %v5455_v31 = vsel %vm475_vm0, %v5453_v45, %v5454_v54  ;;  %12418 = vmatmul.mubr.msk.f32.vlgmr.msra.gmra.mxu0 %vm5689_vm8, %v16934_v52  ;;  %12420 = vmatprep.subr.msk.mxu0 %vm5696_vm6, %v5627_v51  ;;  %v22569_v10 = vmax.f32 %v16397_v39, 0.0  ;;  %v22570_v34 = vmax.f32 %v16406_v8, 0.0 }
 0x394   : > { %v5624_v2 = vmax.f32 %v5320_v50, %v5461_v11  ;;  %v5451_v53 = vrot.slane %v5318_v57, 1  ;;  %12421 = vmatpush1.msk.msra.mxu0 %vm5696_vm6, %v5626_v29  ;;  %v5100_v62 = vpop.permute.xlu0 %5099  ;;  %5773 = vmatprep.mubr.f32.mxu0 %v22562_v28  ;;  %v5621_v1 = vmax.f32 %v5317_v47, %v5455_v31  ;;  %v22567_v47 = vmax.f32 %v16436_v4, 0.0 }
 0x395   : > { %v5216_v55 = vsel %vm5211_vm5, %v5100_v62, %v5102_v3  ;;  %5812 = vmatprep.subr.mxu0 %v5625_v59  ;;  %v22566_v3 = vmax.f32 %v16425_v5, 0.0  ;;  %v22571_v5 = vmax.f32 %v16463_v61, 0.0  ;;  %v22572_v59 = vmax.f32 %v16444_v48, 0.0 }
 0x396   : > { %v5457_v19 = vsel %vm475_vm0, %v5451_v53, %v5456_v27  ;;  %v5316_v21 = vmax.f32 %v22565_v7, %v5216_v55  ;;  %v5122_v49 = vpop.permute.xlu1 %5121  ;;  %5813 = vmatpush1.msra.mxu0 %v5624_v2  ;;  %v22568_v27 = vmax.f32 %v16401_v63, 0.0  ;;  %v22573_v8 = vmax.f32 %v16455_v6, 0.0 }
 0x397   : > { %v5622_v33 = vmax.f32 %v5318_v57, %v5457_v19  ;;  %12419 = vmatmul.mubr.msk.f32.gmra.mxu0 %vm5689_vm8, %v16948_v24  ;;  %5814 = vmatprep.subr.mxu0 %v5623_v25  ;;  %v22574_v62 = vmax.f32 %v16474_v38, 0.0  ;;  %vm11337_vm7 = vcmask 130048   ;;  %vm11905_vm9 = vcmask 982016  }
 0x398   : > { %v5450_v56 = vrot.slane %v5316_v21, 1  ;;  %v5120_v32 = vpop.permute.xlu0 %5119  ;;  %5850 = vmatprep.mubr.f32.mxu0 %v22562_v28  ;;  %v5327_v36 = vmax.f32 %v22568_v27, %v5122_v49 }
 0x399   : > { %5815 = vmatpush1.msra.mxu0 %v5622_v33  ;;  %v5221_v46 = vsel %vm5211_vm5, %v5120_v32, %v5122_v49  ;;  %v22576_v49 = vmax.f32 %v16417_v40, 0.0  ;;  %v22577_v40 = vmax.f32 %v16494_v42, 0.0 }
 0x39a   : > { %v5452_v37 = vsel %vm475_vm0, %v5450_v56, %v5451_v53  ;;  %v5138_v0 = vpop.permute.xlu1 %5137  ;;  %5816 = vmatprep.subr.mxu0 %v5621_v1  ;;  %v16974_v51 = vmax.f32 %v22569_v10, %v5221_v46  ;;  %v5468_v31 = vrot.slane %v5327_v36, 1 }
 0x39b   : > { %v5620_v54 = vmax.f32 %v5316_v21, %v5452_v37  ;;  %v16978_v45 = vmax.f32 %v22570_v34, %v5138_v0  ;;  %v22575_v21 = vmax.f32 %v16483_v14, 0.0 }
 0x39c   : > { %v5136_v60 = vpop.permute.xlu0 %5135  ;;  %v5465_v19 = vrot.slane %v16974_v51, 1 }
 0x39d   : > { %5817 = vmatpush1.msra.mxu0 %v5620_v54  ;;  %v5225_v4 = vsel %vm5211_vm5, %v5136_v60, %v5138_v0  ;;  %v5482_v1 = vrot.slane %v16978_v45, 1 }
 0x39e   : > { %v5126_v43 = vpop.permute.xlu1 %5125  ;;  %12422 = vmatmul.mubr.msk.f32.vlgmr.msra.gmra.mxu0 %vm5689_vm8, %v16934_v52  ;;  %v16997_v33 = vmax.f32 %v22576_v49, %v5225_v4  ;;  %v22579_v4 = vmax.f32 %v16520_v23, 0.0 }
 0x39f   : > { %5856 = vmatprep.mubr.f32.mxu0 %v22562_v28  ;;  %v5329_v13 = vmax.f32 %v22566_v3, %v5126_v43  ;;  %v22578_v3 = vmax.f32 %v16504_v44, 0.0 }
 0x3a0   : > { %v5124_v12 = vpop.permute.xlu0 %5123 }
 0x3a1   : > { %v5222_v58 = vsel %vm5211_vm5, %v5124_v12, %v5126_v43  ;;  %v5472_v22 = vrot.slane %v5329_v13, 1 }
 0x3a2   : > { %v5142_v50 = vpop.permute.xlu1 %5141  ;;  %12423 = vmatmul.mubr.msk.f32.gmra.mxu0 %vm5689_vm8, %v16948_v24  ;;  %v5328_v35 = vmax.f32 %v22567_v47, %v5222_v58 }
 0x3a3   : > { %5933 = vmatprep.mubr.f32.mxu0 %v22562_v28  ;;  %v5337_v2 = vmax.f32 %v22572_v59, %v5142_v50  ;;  %v5473_v38 = vsel %vm475_vm0, %v5468_v31, %v5472_v22 }
 0x3a4   : > { %v5140_v17 = vpop.permute.xlu0 %5139  ;;  %v5470_v63 = vrot.slane %v5328_v35, 1 }
 0x3a5   : > { %v5226_v29 = vsel %vm5211_vm5, %v5140_v17, %v5142_v50  ;;  %v5486_v37 = vrot.slane %v5337_v2, 1 }
 0x3a6   : > { %v5130_v18 = vpop.permute.xlu1 %5129  ;;  %v5336_v53 = vmax.f32 %v22573_v8, %v5226_v29  ;;  %v5471_v60 = vsel %vm475_vm0, %v5465_v19, %v5470_v63  ;;  %v5631_v29 = vmax.f32 %v5327_v36, %v5473_v38 }
 0x3a7   : > { %v5331_v11 = vmax.f32 %v22571_v5, %v5130_v18  ;;  %v5630_v44 = vmax.f32 %v16974_v51, %v5471_v60 }
 0x3a8   : > { %v5128_v57 = vpop.permute.xlu0 %5127  ;;  %v5484_v14 = vrot.slane %v5336_v53, 1 }
 0x3a9   : > { %v5476_v39 = vrot.slane %v5331_v11, 1  ;;  %v5223_v25 = vsel %vm5211_vm5, %v5128_v57, %v5130_v18  ;;  %v5479_v18 = vrot.slane %v16997_v33, 1 }
 0x3aa   : > { %v5330_v55 = vmax.f32 %v22574_v62, %v5223_v25  ;;  %v5146_v61 = vpop.permute.xlu1 %5145 }
 0x3ab   : > { %v5635_v7 = vmax.f32 %v5331_v11, %v5476_v39  ;;  %v5339_v48 = vmax.f32 %v22575_v21, %v5146_v61  ;;  %v5477_v6 = vsel %vm475_vm0, %v5472_v22, %v5476_v39  ;;  %v22580_v39 = vmax.f32 %v16531_v16, 0.0 }
 0x3ac   : > { %v5474_v56 = vrot.slane %v5330_v55, 1  ;;  %v5144_v32 = vpop.permute.xlu0 %5143  ;;  %v5633_v47 = vmax.f32 %v5329_v13, %v5477_v6  ;;  %v5487_v13 = vsel %vm475_vm0, %v5482_v1, %v5486_v37  ;;  %v22581_v16 = vmax.f32 %v16541_v15, 0.0 }
 0x3ad   : > { %v5490_v0 = vrot.slane %v5339_v48, 1  ;;  %v5227_v54 = vsel %vm5211_vm5, %v5144_v32, %v5146_v61  ;;  %12424 = vmatprep.subr.msk.mxu0 %vm5696_vm6, %v5635_v7  ;;  %v5639_v21 = vmax.f32 %v16978_v45, %v5487_v13 }
 0x3ae   : > { %v5634_v43 = vmax.f32 %v5330_v55, %v5474_v56  ;;  %v5338_v12 = vmax.f32 %v22577_v40, %v5227_v54  ;;  %v5118_v58 = vpop.permute.xlu1 %5117  ;;  %v5475_v50 = vsel %vm475_vm0, %v5470_v63, %v5474_v56  ;;  %v5485_v63 = vsel %vm475_vm0, %v5479_v18, %v5484_v14 }
 0x3af   : > { %v5643_v46 = vmax.f32 %v5339_v48, %v5490_v0  ;;  %v5325_v17 = vmax.f32 %v22578_v3, %v5118_v58  ;;  %v5632_v27 = vmax.f32 %v5328_v35, %v5475_v50  ;;  %v5491_v5 = vsel %vm475_vm0, %v5486_v37, %v5490_v0 }
 0x3b0   : > { %v5488_v10 = vrot.slane %v5338_v12, 1  ;;  %12425 = vmatpush1.msk.msra.mxu0 %vm5696_vm6, %v5634_v43  ;;  %v5116_v34 = vpop.permute.xlu0 %5115  ;;  %v5641_v8 = vmax.f32 %v5337_v2, %v5491_v5  ;;  %v5638_v2 = vmax.f32 %v16997_v33, %v5485_v63  ;;  %v22584_v50 = vmax.f32 %v16562_v41, 0.0 }
 0x3b1   : > { %v5467_v42 = vrot.slane %v5325_v17, 1  ;;  %v5220_v11 = vsel %vm5211_vm5, %v5116_v34, %v5118_v58  ;;  %5895 = vmatprep.subr.mxu0 %v5633_v47  ;;  %12428 = vmatprep.subr.msk.mxu1 %vm5696_vm6, %v5643_v46 }
 0x3b2   : > { %v5642_v35 = vmax.f32 %v5338_v12, %v5488_v10  ;;  %v5324_v22 = vmax.f32 %v22579_v4, %v5220_v11  ;;  %v5134_v57 = vpop.permute.xlu1 %5133  ;;  %5896 = vmatpush1.msra.mxu0 %v5632_v27  ;;  %v5489_v36 = vsel %vm475_vm0, %v5484_v14, %v5488_v10  ;;  %v22582_v14 = vmax.f32 %v16589_v20, 0.0  ;;  %v22587_v20 = vld [vmem:[#allocation74_spill] sm:$0xff]  ;;  %v22589_v11 = vld [vmem:[#allocation119_spill] sm:$0xff] }
 0x3b3   : > { %v5469_v59 = vsel %vm475_vm0, %v5467_v42, %v5468_v31  ;;  %v5333_v25 = vmax.f32 %v22580_v39, %v5134_v57  ;;  %5897 = vmatprep.subr.mxu0 %v5631_v29  ;;  %v5640_v51 = vmax.f32 %v5336_v53, %v5489_v36  ;;  %v22583_v12 = vmax.f32 %v16600_v30, 0.0  ;;  %v22593_v36 = vld [vmem:[#allocation10_spill] sm:$0xff] }
 0x3b4   : > { %v5629_v62 = vmax.f32 %v5325_v17, %v5469_v59  ;;  %v5464_v55 = vrot.slane %v5324_v22, 1  ;;  %5898 = vmatpush1.msra.mxu0 %v5630_v44  ;;  %12429 = vmatpush1.msk.msra.mxu1 %vm5696_vm6, %v5642_v35  ;;  %v5132_v23 = vpop.permute.xlu0 %5131  ;;  %v22585_v17 = vmax.f32 %v16558_v26, 0.0  ;;  %v22586_v27 = vmax.f32 %v16570_v9, 0.0  ;;  %v22591_v9 = vld [vmem:[#allocation11_spill] sm:$0xff] }
 0x3b5   : > { %v5481_v61 = vrot.slane %v5333_v25, 1  ;;  %v5224_v7 = vsel %vm5211_vm5, %v5132_v23, %v5134_v57  ;;  %5978 = vmatprep.subr.mxu1 %v5641_v8  ;;  %v22588_v34 = vmax.f32 %v22587_v20, 0.0  ;;  %v22590_v44 = vmax.f32 %v22589_v11, 0.0 }
 0x3b6   : > { %v5466_v31 = vsel %vm475_vm0, %v5464_v55, %v5465_v19  ;;  %v5332_v48 = vmax.f32 %v22581_v16, %v5224_v7  ;;  %v5154_v49 = vpop.permute.xlu1 %5153  ;;  %5899 = vmatprep.subr.mxu0 %v5629_v62  ;;  %5979 = vmatpush1.msra.mxu1 %v5640_v51  ;;  %v22594_v63 = vmax.f32 %v22593_v36, 0.0  ;;  %v22595_v62 = vld [vmem:[#allocation75_spill] sm:$0xff] }
 0x3b7   : > { %v5628_v53 = vmax.f32 %v5324_v22, %v5466_v31  ;;  %v5483_v56 = vsel %vm475_vm0, %v5481_v61, %v5482_v1  ;;  %5980 = vmatprep.subr.mxu1 %v5639_v21  ;;  %v5343_v46 = vmax.f32 %v22584_v50, %v5154_v49  ;;  %v22592_v22 = vmax.f32 %v22591_v9, 0.0  ;;  %v22597_v61 = vld [vmem:[#allocation66_spill] sm:$0xff] }
 0x3b8   : > { %v5637_v32 = vmax.f32 %v5333_v25, %v5483_v56  ;;  %v5478_v6 = vrot.slane %v5332_v48, 1  ;;  %5981 = vmatpush1.msra.mxu1 %v5638_v2  ;;  %v5152_v38 = vpop.permute.xlu0 %5151  ;;  %v22596_v55 = vmax.f32 %v22595_v62, 0.0  ;;  %v22598_v7 = vmax.f32 %v22597_v61, 0.0  ;;  %v22607_v62 = vld [vmem:[#allocation14_spill] sm:$0xff] }
 0x3b9   : > { %5900 = vmatpush1.msra.mxu0 %v5628_v53  ;;  %v5229_v60 = vsel %vm5211_vm5, %v5152_v38, %v5154_v49  ;;  %v5496_v4 = vrot.slane %v5343_v46, 1 }
 0x3ba   : > { %v5480_v45 = vsel %vm475_vm0, %v5478_v6, %v5479_v18  ;;  %v5170_v19 = vpop.permute.xlu1 %5169  ;;  %5982 = vmatprep.subr.mxu1 %v5637_v32  ;;  %12426 = vmatmul.mubr.msk.f32.vlgmr.msra.gmra.mxu0 %vm5689_vm8, %v16934_v52  ;;  %v17054_v47 = vmax.f32 %v22585_v17, %v5229_v60 }
 0x3bb   : > { %v5636_v15 = vmax.f32 %v5332_v48, %v5480_v45  ;;  %5939 = vmatprep.mubr.f32.mxu0 %v22562_v28  ;;  %v17058_v18 = vmax.f32 %v22586_v27, %v5170_v19  ;;  %v22599_v45 = vld [vmem:[#allocation68_spill] sm:$0xff] }
 0x3bc   : > { %v5168_v33 = vpop.permute.xlu0 %5167  ;;  %v5493_v25 = vrot.slane %v17054_v47, 1 }
 0x3bd   : > { %5983 = vmatpush1.msra.mxu1 %v5636_v15  ;;  %v5233_v30 = vsel %vm5211_vm5, %v5168_v33, %v5170_v19  ;;  %v5510_v8 = vrot.slane %v17058_v18, 1  ;;  %v22600_v19 = vmax.f32 %v22599_v45, 0.0 }
 0x3be   : > { %v5158_v37 = vpop.permute.xlu1 %5157  ;;  %12427 = vmatmul.mubr.msk.f32.gmra.mxu0 %vm5689_vm8, %v16948_v24  ;;  %12430 = vmatmul.mubr.msk.f32.vlgmr.msra.gmra.mxu1 %vm5689_vm8, %v16934_v52  ;;  %v17077_v21 = vmax.f32 %v22598_v7, %v5233_v30 }
 0x3bf   : > { %6022 = vmatprep.mubr.f32.mxu1 %v22562_v28  ;;  %6099 = vmatprep.mubr.f32.mxu0 %v22562_v28  ;;  %v5345_v43 = vmax.f32 %v22582_v14, %v5158_v37 }
 0x3c0   : > { %v5156_v1 = vpop.permute.xlu0 %5155 }
 0x3c1   : > { %v5230_v0 = vsel %vm5211_vm5, %v5156_v1, %v5158_v37  ;;  %v5500_v5 = vrot.slane %v5345_v43, 1 }
 0x3c2   : > { %v5174_v54 = vpop.permute.xlu1 %5173  ;;  %12431 = vmatmul.mubr.msk.f32.gmra.mxu1 %vm5689_vm8, %v16948_v24  ;;  %v5344_v58 = vmax.f32 %v22583_v12, %v5230_v0  ;;  %v22601_v0 = vld [vmem:[#allocation9_spill] sm:$0xff]  ;;  %v5507_v12 = vrot.slane %v17077_v21, 1 }
 0x3c3   : > { %6182 = vmatprep.mubr.f32.mxu1 %v22562_v28  ;;  %v5353_v13 = vmax.f32 %v22590_v44, %v5174_v54  ;;  %v5501_v49 = vsel %vm475_vm0, %v5496_v4, %v5500_v5  ;;  %v22605_v44 = vld [vmem:[#allocation80_spill] sm:$0xff] }
 0x3c4   : > { %v5172_v40 = vpop.permute.xlu0 %5171  ;;  %v5498_v41 = vrot.slane %v5344_v58, 1  ;;  %v5647_v17 = vmax.f32 %v5343_v46, %v5501_v49 }
 0x3c5   : > { %v5234_v10 = vsel %vm5211_vm5, %v5172_v40, %v5174_v54  ;;  %v5514_v2 = vrot.slane %v5353_v13, 1  ;;  %v22602_v54 = vmax.f32 %v22601_v0, 0.0 }
 0x3c6   : > { %v5162_v3 = vpop.permute.xlu1 %5161  ;;  %v5352_v57 = vmax.f32 %v22592_v22, %v5234_v10  ;;  %v5499_v32 = vsel %vm475_vm0, %v5493_v25, %v5498_v41 }
 0x3c7   : > { %v5347_v29 = vmax.f32 %v22588_v34, %v5162_v3  ;;  %v5646_v34 = vmax.f32 %v17054_v47, %v5499_v32 }
 0x3c8   : > { %v5160_v42 = vpop.permute.xlu0 %5159  ;;  %v5512_v6 = vrot.slane %v5352_v57, 1 }
 0x3c9   : > { %v5504_v26 = vrot.slane %v5347_v29, 1  ;;  %v5231_v35 = vsel %vm5211_vm5, %v5160_v42, %v5162_v3 }
 0x3ca   : > { %v5346_v59 = vmax.f32 %v22594_v63, %v5231_v35  ;;  %v5178_v39 = vpop.permute.xlu1 %5177 }
 0x3cb   : > { %v5651_v51 = vmax.f32 %v5347_v29, %v5504_v26  ;;  %v5355_v23 = vmax.f32 %v22596_v55, %v5178_v39  ;;  %v5505_v48 = vsel %vm475_vm0, %v5500_v5, %v5504_v26  ;;  %v22603_v29 = vld [vmem:[#allocation15_spill] sm:$0xff]  ;;  %v22606_v26 = vmax.f32 %v22605_v44, 0.0 }
 0x3cc   : > { %v5502_v31 = vrot.slane %v5346_v59, 1  ;;  %v5176_v16 = vpop.permute.xlu0 %5175  ;;  %v5649_v14 = vmax.f32 %v5345_v43, %v5505_v48  ;;  %v5515_v43 = vsel %vm475_vm0, %v5510_v8, %v5514_v2  ;;  %v22604_v30 = vmax.f32 %v22603_v29, 0.0 }
 0x3cd   : > { %v5518_v53 = vrot.slane %v5355_v23, 1  ;;  %v5235_v56 = vsel %vm5211_vm5, %v5176_v16, %v5178_v39  ;;  %12432 = vmatprep.subr.msk.mxu0 %vm5696_vm6, %v5651_v51  ;;  %v5655_v51 = vmax.f32 %v17058_v18, %v5515_v43  ;;  %v22608_v55 = vmax.f32 %v22607_v62, 0.0 }
 0x3ce   : > { %v5650_v38 = vmax.f32 %v5346_v59, %v5502_v31  ;;  %v5354_v15 = vmax.f32 %v22600_v19, %v5235_v56  ;;  %v5150_v33 = vpop.permute.xlu1 %5149  ;;  %v5503_v37 = vsel %vm475_vm0, %v5498_v41, %v5502_v31  ;;  %v5513_v41 = vsel %vm475_vm0, %v5507_v12, %v5512_v6 }
 0x3cf   : > { %v5659_v1 = vmax.f32 %v5355_v23, %v5518_v53  ;;  %v5341_v60 = vmax.f32 %v22602_v54, %v5150_v33  ;;  %v5648_v40 = vmax.f32 %v5344_v58, %v5503_v37  ;;  %v5519_v27 = vsel %vm475_vm0, %v5514_v2, %v5518_v53 }
 0x3d0   : > { %v5516_v50 = vrot.slane %v5354_v15, 1  ;;  %12433 = vmatpush1.msk.msra.mxu0 %vm5696_vm6, %v5650_v38  ;;  %v5148_v3 = vpop.permute.xlu0 %5147  ;;  %v5657_v9 = vmax.f32 %v5353_v13, %v5519_v27  ;;  %v5654_v13 = vmax.f32 %v17077_v21, %v5513_v41 }
 0x3d1   : > { %v5495_v10 = vrot.slane %v5341_v60, 1  ;;  %v5228_v20 = vsel %vm5211_vm5, %v5148_v3, %v5150_v33  ;;  %6061 = vmatprep.subr.mxu0 %v5649_v14  ;;  %12436 = vmatprep.subr.msk.mxu1 %vm5696_vm6, %v5659_v1  ;;  %v22613_v1 = vld [vmem:[#allocation81_spill] sm:$0xff] }
 0x3d2   : > { %v5658_v58 = vmax.f32 %v5354_v15, %v5516_v50  ;;  %v5340_v5 = vmax.f32 %v22604_v30, %v5228_v20  ;;  %v5166_v42 = vpop.permute.xlu1 %5165  ;;  %6062 = vmatpush1.msra.mxu0 %v5648_v40  ;;  %v5517_v46 = vsel %vm475_vm0, %v5512_v6, %v5516_v50  ;;  %v22609_v6 = vld [vmem:[#allocation67_spill] sm:$0xff]  ;;  %v22611_v15 = vld [vmem:[#allocation120_spill] sm:$0xff]  ;;  %v22614_v0 = vmax.f32 %v22613_v1, 0.0  ;;  %v22615_v14 = vld [vmem:[#allocation69_spill] sm:$0xff] }
 0x3d3   : > { %v5497_v11 = vsel %vm475_vm0, %v5495_v10, %v5496_v4  ;;  %v5349_v35 = vmax.f32 %v22606_v26, %v5166_v42  ;;  %6063 = vmatprep.subr.mxu0 %v5647_v17  ;;  %v5656_v47 = vmax.f32 %v5352_v57, %v5517_v46  ;;  %v22610_v38 = vmax.f32 %v22609_v6, 0.0  ;;  %v22617_v50 = vld [vmem:[#allocation13_spill] sm:$0xff]  ;;  %v22619_v10 = vld [vmem:[#allocation118_spill] sm:$0xff] }
 0x3d4   : > { %v5645_v22 = vmax.f32 %v5341_v60, %v5497_v11  ;;  %v5492_v36 = vrot.slane %v5340_v5, 1  ;;  %6064 = vmatpush1.msra.mxu0 %v5646_v34  ;;  %12437 = vmatpush1.msk.msra.mxu1 %vm5696_vm6, %v5658_v58  ;;  %v5164_v63 = vpop.permute.xlu0 %5163  ;;  %v22612_v33 = vmax.f32 %v22611_v15, 0.0  ;;  %v22616_v40 = vmax.f32 %v22615_v14, 0.0  ;;  %v22623_v26 = vld [vmem:[#allocation65_spill] sm:$0xff] }
 0x3d5   : > { %v5509_v59 = vrot.slane %v5349_v35, 1  ;;  %v5232_v39 = vsel %vm5211_vm5, %v5164_v63, %v5166_v42  ;;  %6144 = vmatprep.subr.mxu1 %v5657_v9  ;;  %v22618_v3 = vmax.f32 %v22617_v50, 0.0  ;;  %v22620_v20 = vmax.f32 %v22619_v10, 0.0 }
 0x3d6   : > { %v5494_v4 = vsel %vm475_vm0, %v5492_v36, %v5493_v25  ;;  %v5348_v23 = vmax.f32 %v22608_v55, %v5232_v39  ;;  %v5186_v61 = vpop.permute.xlu1 %5185  ;;  %6065 = vmatprep.subr.mxu0 %v5645_v22  ;;  %6145 = vmatpush1.msra.mxu1 %v5656_v47  ;;  %v22625_v47 = vld [vmem:[#allocation23_spill] sm:$0xff] }
 0x3d7   : > { %v5644_v57 = vmax.f32 %v5340_v5, %v5494_v4  ;;  %v5511_v7 = vsel %vm475_vm0, %v5509_v59, %v5510_v8  ;;  %6146 = vmatprep.subr.mxu1 %v5655_v51  ;;  %v5359_v54 = vmax.f32 %v22614_v0, %v5186_v61  ;;  %v22621_v5 = vld [vmem:[#allocation5_spill] sm:$0xff]  ;;  %v22626_v22 = vmax.f32 %v22625_v47, 0.0  ;;  %v22627_v4 = vld [vmem:[#allocation90_spill] sm:$0xff] }
 0x3d8   : > { %v5653_v31 = vmax.f32 %v5349_v35, %v5511_v7  ;;  %v5506_v16 = vrot.slane %v5348_v23, 1  ;;  %6147 = vmatpush1.msra.mxu1 %v5654_v13  ;;  %v5184_v48 = vpop.permute.xlu0 %5183  ;;  %v22622_v42 = vmax.f32 %v22621_v5, 0.0  ;;  %v22624_v35 = vmax.f32 %v22623_v26, 0.0 }
 0x3d9   : > { %6066 = vmatpush1.msra.mxu0 %v5644_v57  ;;  %v5237_v32 = vsel %vm5211_vm5, %v5184_v48, %v5186_v61  ;;  %v5524_v44 = vrot.slane %v5359_v54, 1  ;;  %v22628_v62 = vmax.f32 %v22627_v4, 0.0  ;;  %v22639_v4 = vld [vmem:[#allocation27_spill] sm:$0xff] }
 0x3da   : > { %v5508_v18 = vsel %vm475_vm0, %v5506_v16, %v5507_v12  ;;  %v5202_v25 = vpop.permute.xlu1 %5201  ;;  %6148 = vmatprep.subr.mxu1 %v5653_v31  ;;  %12434 = vmatmul.mubr.msk.f32.vlgmr.msra.gmra.mxu0 %vm5689_vm8, %v16934_v52  ;;  %v17134_v12 = vmax.f32 %v22616_v40, %v5237_v32 }
 0x3db   : > { %v5652_v49 = vmax.f32 %v5348_v23, %v5508_v18  ;;  %6105 = vmatprep.mubr.f32.mxu0 %v22562_v28  ;;  %v17138_v17 = vmax.f32 %v22618_v3, %v5202_v25  ;;  %v22629_v23 = vld [vmem:[#allocation7_spill] sm:$0xff] }
 0x3dc   : > { %v5200_v21 = vpop.permute.xlu0 %5199  ;;  %v5521_v59 = vrot.slane %v17134_v12, 1  ;;  %v22630_v61 = vmax.f32 %v22629_v23, 0.0 }
 0x3dd   : > { %6149 = vmatpush1.msra.mxu1 %v5652_v49  ;;  %v5241_v43 = vsel %vm5211_vm5, %v5200_v21, %v5202_v25  ;;  %v5538_v39 = vrot.slane %v17138_v17, 1 }
 0x3de   : > { %v5190_v2 = vpop.permute.xlu1 %5189  ;;  %12435 = vmatmul.mubr.msk.f32.gmra.mxu0 %vm5689_vm8, %v16948_v24  ;;  %12438 = vmatmul.mubr.msk.f32.vlgmr.msra.gmra.mxu1 %vm5689_vm8, %v16934_v52  ;;  %v17157_v13 = vmax.f32 %v22630_v61, %v5241_v43 }
 0x3df   : > { %6188 = vmatprep.mubr.f32.mxu1 %v22562_v28  ;;  %6265 = vmatprep.mubr.f32.mxu0 %v22562_v28  ;;  %v5361_v45 = vmax.f32 %v22610_v38, %v5190_v2 }
 0x3e0   : > { %v5188_v8 = vpop.permute.xlu0 %5187 }
 0x3e1   : > { %v5238_v53 = vsel %vm5211_vm5, %v5188_v8, %v5190_v2  ;;  %v5528_v58 = vrot.slane %v5361_v45, 1  ;;  %v22631_v8 = vld [vmem:[#allocation22_spill] sm:$0xff] }
 0x3e2   : > { %v5206_v56 = vpop.permute.xlu1 %5205  ;;  %12439 = vmatmul.mubr.msk.f32.gmra.mxu1 %vm5689_vm8, %v16948_v24  ;;  %v5360_v37 = vmax.f32 %v22612_v33, %v5238_v53  ;;  %v22632_v53 = vmax.f32 %v22631_v8, 0.0  ;;  %v17279_v8 = vld [vmem:[%s21942_s3 + $0x1e8] sm:$0xff] }
 0x3e3   : > { %6348 = vmatprep.mubr.f32.mxu1 %v22562_v28  ;;  %v5369_v46 = vmax.f32 %v22622_v42, %v5206_v56  ;;  %v5529_v16 = vsel %vm475_vm0, %v5524_v44, %v5528_v58  ;;  %v22637_v42 = vld [vmem:[#allocation70_spill] sm:$0xff] }
 0x3e4   : > { %v5204_v19 = vpop.permute.xlu0 %5203  ;;  %v5526_v30 = vrot.slane %v5360_v37, 1  ;;  %v5663_v50 = vmax.f32 %v5359_v54, %v5529_v16  ;;  %v17221_v16 = vld [vmem:[%s21942_s3 + $0x228] sm:$0xff] }
 0x3e5   : > { %v5242_v27 = vsel %vm5211_vm5, %v5204_v19, %v5206_v56  ;;  %v5542_v48 = vrot.slane %v5369_v46, 1  ;;  %v22633_v19 = vld [vmem:[#allocation91_spill] sm:$0xff] }
 0x3e6   : > { %v5194_v60 = vpop.permute.xlu1 %5193  ;;  %v5368_v9 = vmax.f32 %v22624_v35, %v5242_v27  ;;  %v5527_v49 = vsel %vm475_vm0, %v5521_v59, %v5526_v30  ;;  %v22634_v15 = vmax.f32 %v22633_v19, 0.0  ;;  %v17321_v19 = vld [vmem:[%s21942_s3 + $0x1b8] sm:$0xff] }
 0x3e7   : > { %v5363_v34 = vmax.f32 %v22620_v20, %v5194_v60  ;;  %v5662_v20 = vmax.f32 %v17134_v12, %v5527_v49  ;;  %v17250_v49 = vld [vmem:[%s21942_s3 + $0x208] sm:$0xff] }
 0x3e8   : > { %v5192_v29 = vpop.permute.xlu0 %5191  ;;  %v5540_v21 = vrot.slane %v5368_v9, 1 }
 0x3e9   : > { %v5532_v41 = vrot.slane %v5363_v34, 1  ;;  %v5239_v11 = vsel %vm5211_vm5, %v5192_v29, %v5194_v60  ;;  %v5535_v60 = vrot.slane %v17157_v13, 1 }
 0x3ea   : > { %v5362_v36 = vmax.f32 %v22626_v22, %v5239_v11  ;;  %v5210_v63 = vpop.permute.xlu1 %5209 }
 0x3eb   : > { %v5667_v51 = vmax.f32 %v5363_v34, %v5532_v41  ;;  %v5371_v55 = vmax.f32 %v22628_v62, %v5210_v63  ;;  %v5533_v31 = vsel %vm475_vm0, %v5528_v58, %v5532_v41  ;;  %v22635_v34 = vld [vmem:[#allocation79_spill] sm:$0xff]  ;;  %v22638_v41 = vmax.f32 %v22637_v42, 0.0  ;;  %v17477_v42 = vld [vmem:[%s21942_s3 + $0x258] sm:$0xff] }
 0x3ec   : > { %v5530_v57 = vrot.slane %v5362_v36, 1  ;;  %v5208_v7 = vpop.permute.xlu0 %5207  ;;  %v5665_v1 = vmax.f32 %v5361_v45, %v5533_v31  ;;  %v5543_v45 = vsel %vm475_vm0, %v5538_v39, %v5542_v48  ;;  %v22636_v43 = vmax.f32 %v22635_v34, 0.0  ;;  %v17215_v31 = vld [vmem:[%s21942_s3 + $0x230] sm:$0xff] }
 0x3ed   : > { %v5546_v18 = vrot.slane %v5371_v55, 1  ;;  %v5243_v25 = vsel %vm5211_vm5, %v5208_v7, %v5210_v63  ;;  %12440 = vmatprep.subr.msk.mxu0 %vm5696_vm6, %v5667_v51  ;;  %v5671_v51 = vmax.f32 %v17138_v17, %v5543_v45  ;;  %v22640_v62 = vmax.f32 %v22639_v4, 0.0  ;;  %v17194_v17 = vld [vmem:[%s21942_s3 + $0x248] sm:$0xff]  ;;  %v17412_v45 = vld [vmem:[%s21942_s3 + $0x150] sm:$0xff] }
 0x3ee   : > { %v5666_v2 = vmax.f32 %v5362_v36, %v5530_v57  ;;  %v5370_v56 = vmax.f32 %v22632_v53, %v5243_v25  ;;  %v5182_v32 = vpop.permute.xlu1 %5181  ;;  %v5531_v6 = vsel %vm475_vm0, %v5526_v30, %v5530_v57  ;;  %v5541_v30 = vsel %vm475_vm0, %v5535_v60, %v5540_v21  ;;  %v17243_v25 = vld [vmem:[%s21942_s3 + $0x210] sm:$0xff]  ;;  %v17286_v53 = vld [vmem:[%s21942_s3 + $0x1e0] sm:$0xff] }
 0x3ef   : > { %v5675_v38 = vmax.f32 %v5371_v55, %v5546_v18  ;;  %v5357_v33 = vmax.f32 %v22634_v15, %v5182_v32  ;;  %v5664_v0 = vmax.f32 %v5360_v37, %v5531_v6  ;;  %v5547_v3 = vsel %vm475_vm0, %v5542_v48, %v5546_v18  ;;  %v17230_v48 = vld [vmem:[%s21942_s3 + $0x220] sm:$0xff]  ;;  %v17237_v18 = vld [vmem:[%s21942_s3 + $0x218] sm:$0xff]  ;;  %v17307_v6 = vld [vmem:[%s21942_s3 + $0x1c8] sm:$0xff] }
 0x3f0   : > { %v5544_v14 = vrot.slane %v5370_v56, 1  ;;  %12441 = vmatpush1.msk.msra.mxu0 %vm5696_vm6, %v5666_v2  ;;  %v5180_v40 = vpop.permute.xlu0 %5179  ;;  %v5673_v26 = vmax.f32 %v5369_v46, %v5547_v3  ;;  %v5670_v46 = vmax.f32 %v17157_v13, %v5541_v30  ;;  %v17265_v2 = vld [vmem:[%s21942_s3 + $0x1f8] sm:$0xff]  ;;  %v17328_v15 = vld [vmem:[%s21942_s3 + $0x1b0] sm:$0xff]  ;;  %v17463_v30 = vld [vmem:[%s21942_s3 + $0x268] sm:$0xff] }
 0x3f1   : > { %v5523_v27 = vrot.slane %v5357_v33, 1  ;;  %v5236_v10 = vsel %vm5211_vm5, %v5180_v40, %v5182_v32  ;;  %6227 = vmatprep.subr.mxu0 %v5665_v1  ;;  %12444 = vmatprep.subr.msk.mxu1 %vm5696_vm6, %v5675_v38  ;;  %v17300_v32 = vld [vmem:[%s21942_s3 + $0x1d0] sm:$0xff]  ;;  %v17314_v38 = vld [vmem:[%s21942_s3 + $0x1c0] sm:$0xff] }
 0x3f2   : > { %v5674_v37 = vmax.f32 %v5370_v56, %v5544_v14  ;;  %v5356_v58 = vmax.f32 %v22636_v43, %v5236_v10  ;;  %v5198_v29 = vpop.permute.xlu1 %5197  ;;  %6228 = vmatpush1.msra.mxu0 %v5664_v0  ;;  %v5545_v54 = vsel %vm475_vm0, %v5540_v21, %v5544_v14  ;;  %v17259_v21 = vld [vmem:[%s21942_s3 + $0x200] sm:$0xff]  ;;  %v17293_v56 = vld [vmem:[%s21942_s3 + $0x1d8] sm:$0xff]  ;;  %v17363_v14 = vld [vmem:[%s21942_s3 + $0x188] sm:$0xff] }
 0x3f3   : > { %v5525_v5 = vsel %vm475_vm0, %v5523_v27, %v5524_v44  ;;  %v5365_v11 = vmax.f32 %v22638_v41, %v5198_v29  ;;  %6229 = vmatprep.subr.mxu0 %v5663_v50  ;;  %v5672_v12 = vmax.f32 %v5368_v9, %v5545_v54  ;;  %v17342_v1 = vld [vmem:[%s21942_s3 + $0x1a0] sm:$0xff]  ;;  %v17349_v0 = vld [vmem:[%s21942_s3 + $0x198] sm:$0xff]  ;;  %v17384_v3 = vld [vmem:[%s21942_s3 + $0x170] sm:$0xff] }
 0x3f4   : > { %v5661_v35 = vmax.f32 %v5357_v33, %v5525_v5  ;;  %v5520_v47 = vrot.slane %v5356_v58, 1  ;;  %6230 = vmatpush1.msra.mxu0 %v5662_v20  ;;  %12445 = vmatpush1.msk.msra.mxu1 %vm5696_vm6, %v5674_v37  ;;  %v5196_v22 = vpop.permute.xlu0 %5195  ;;  %v17335_v33 = vld [vmem:[%s21942_s3 + $0x1a8] sm:$0xff]  ;;  %v17370_v40 = vld [vmem:[%s21942_s3 + $0x180] sm:$0xff]  ;;  %v17377_v50 = vld [vmem:[%s21942_s3 + $0x178] sm:$0xff]  ;;  %vm11320_vm6 = vcmask 1047559  }
 0x3f5   : > { %v5537_v36 = vrot.slane %v5365_v11, 1  ;;  %v5240_v63 = vsel %vm5211_vm5, %v5196_v22, %v5198_v29  ;;  %6310 = vmatprep.subr.mxu1 %v5673_v26  ;;  %v17391_v27 = vld [vmem:[%s21942_s3 + $0x168] sm:$0xff]  ;;  %v17398_v10 = vld [vmem:[%s21942_s3 + $0x160] sm:$0xff]  ;;  %v17405_v20 = vld [vmem:[%s21942_s3 + $0x158] sm:$0xff]  ;;  %vm11317_vm5 = vcmask 1046534  }
 0x3f6   : > { %v5522_v44 = vsel %vm475_vm0, %v5520_v47, %v5521_v59  ;;  %v5364_v55 = vmax.f32 %v22640_v62, %v5240_v63  ;;  %6231 = vmatprep.subr.mxu0 %v5661_v35  ;;  %6311 = vmatpush1.msra.mxu1 %v5672_v12  ;;  %v17199_v59 = vld [vmem:[%s21942_s3 + $0x240] sm:$0xff]  ;;  %v17419_v37 = vld [vmem:[%s21942_s3 + $0x298] sm:$0x3]  ;;  %v17426_v34 = vld [vmem:[%s21942_s3 + $0x290] sm:$0x3] }
 0x3f7   : > { %v5660_v9 = vmax.f32 %v5356_v58, %v5522_v44  ;;  %v5539_v23 = vsel %vm475_vm0, %v5537_v36, %v5538_v39  ;;  %6312 = vmatprep.subr.mxu1 %v5671_v51  ;;  %v17207_v39 = vld [vmem:[%s21942_s3 + $0x238] sm:$0xff]  ;;  %v17433_v43 = vld [vmem:[%s21942_s3 + $0x288] sm:$0xff]  ;;  %v17441_v58 = vld [vmem:[%s21942_s3 + $0x280] sm:$0xff] }
 0x3f8   : > { %v5669_v61 = vmax.f32 %v5365_v11, %v5539_v23  ;;  %v5534_v57 = vrot.slane %v5364_v55, 1  ;;  %6313 = vmatpush1.msra.mxu1 %v5670_v46  ;;  %v17449_v29 = vld [vmem:[%s21942_s3 + $0x278] sm:$0xff]  ;;  %v17456_v54 = vld [vmem:[%s21942_s3 + $0x270] sm:$0xff]  ;;  %v17470_v5 = vld [vmem:[%s21942_s3 + $0x260] sm:$0xff] }
 0x3f9   : > { %6232 = vmatpush1.msra.mxu0 %v5660_v9  ;;  %v17485_v41 = vld [vmem:[%s21942_s3 + $0x250] sm:$0xff] }
 0x3fa   : > { %v5536_v13 = vsel %vm475_vm0, %v5534_v57, %v5535_v60  ;;  %6314 = vmatprep.subr.mxu1 %v5669_v61  ;;  %12442 = vmatmul.mubr.msk.f32.vlgmr.msra.gmra.mxu0 %vm5689_vm8, %v16934_v52  ;;  %v17356_v60 = vld [vmem:[%s21942_s3 + $0x190] sm:$0xff] }
 0x3fb   : > { %v5668_v7 = vmax.f32 %v5364_v55, %v5536_v13  ;;  %6271 = vmatprep.mubr.f32.mxu0 %v22562_v28  ;;  %6470 = vmatprep.subr.mxu0 %v17194_v17 }
 0x3fc   : > { %6471 = vmatpush1.msra.mxu0 %v17199_v59 }
 0x3fd   : > { %6315 = vmatpush1.msra.mxu1 %v5668_v7  ;;  %6472 = vmatprep.subr.mxu0 %v17207_v39 }
 0x3fe   : > { %12443 = vmatmul.mubr.msk.f32.gmra.mxu0 %vm5689_vm8, %v16948_v24  ;;  %12446 = vmatmul.mubr.msk.f32.vlgmr.msra.gmra.mxu1 %vm5689_vm8, %v16934_v52 }
 0x3ff   : > { %6354 = vmatprep.mubr.f32.mxu1 %v22562_v28  ;;  %6473 = vmatpush1.msra.mxu0 %v17215_v31 }
 0x400   : > { %6474 = vmatprep.subr.mxu0 %v17221_v16  ;;  %6563 = vmatprep.subr.mxu1 %v17194_v17 }
 0x401   : > { %6475 = vmatpush1.msra.mxu0 %v17230_v48  ;;  %6564 = vmatpush1.msra.mxu1 %v17199_v59 }
 0x402   : > { %12447 = vmatmul.mubr.msk.f32.gmra.mxu1 %vm5689_vm8, %v16948_v24  ;;  %6476 = vmatprep.subr.mxu0 %v17237_v18  ;;  %v17272_v24 = vld [vmem:[%s21942_s3 + $0x1f0] sm:$0xff]  ;;  %vm13146_vm8 = vmmov 0  }
 0x403   : > { %6477 = vmatpush1.msra.mxu0 %v17243_v25  ;;  %6565 = vmatprep.subr.mxu1 %v17207_v39 }
 0x404   : > { %6478 = vmatprep.subr.mxu0 %v17250_v49  ;;  %6566 = vmatpush1.msra.mxu1 %v17215_v31 }
 0x405   : > { %6479 = vmatpush1.msra.mxu0 %v17259_v21  ;;  %6567 = vmatprep.subr.mxu1 %v17221_v16 }
 0x406   : > { %6480 = vmatprep.subr.mxu0 %v17265_v2  ;;  %6568 = vmatpush1.msra.mxu1 %v17230_v48 }
 0x407   : > { %6481 = vmatpush1.msra.mxu0 %v17272_v24  ;;  %6569 = vmatprep.subr.mxu1 %v17237_v18 }
 0x408   : > { %6482 = vmatprep.subr.mxu0 %v17279_v8  ;;  %6570 = vmatpush1.msra.mxu1 %v17243_v25 }
 0x409   : > { %6483 = vmatpush1.msra.mxu0 %v17286_v53  ;;  %6571 = vmatprep.subr.mxu1 %v17250_v49 }
 0x40a   : > { %6484 = vmatprep.subr.mxu0 %v17293_v56  ;;  %6572 = vmatpush1.msra.mxu1 %v17259_v21 }
 0x40b   : > { %6485 = vmatpush1.msra.mxu0 %v17300_v32  ;;  %6573 = vmatprep.subr.mxu1 %v17265_v2 }
 0x40c   : > { %6486 = vmatprep.subr.mxu0 %v17307_v6  ;;  %6574 = vmatpush1.msra.mxu1 %v17272_v24 }
 0x40d   : > { %6487 = vmatpush1.msra.mxu0 %v17314_v38  ;;  %6575 = vmatprep.subr.mxu1 %v17279_v8 }
 0x40e   : > { %6488 = vmatprep.subr.mxu0 %v17321_v19  ;;  %6576 = vmatpush1.msra.mxu1 %v17286_v53 }
 0x40f   : > { %6489 = vmatpush1.msra.mxu0 %v17328_v15  ;;  %6577 = vmatprep.subr.mxu1 %v17293_v56 }
 0x410   : > { %6490 = vmatprep.subr.mxu0 %v17335_v33  ;;  %6578 = vmatpush1.msra.mxu1 %v17300_v32 }
 0x411   : > { %6491 = vmatpush1.msra.mxu0 %v17342_v1  ;;  %6579 = vmatprep.subr.mxu1 %v17307_v6 }
 0x412   : > { %6492 = vmatprep.subr.mxu0 %v17349_v0  ;;  %6580 = vmatpush1.msra.mxu1 %v17314_v38 }
 0x413   : > { %6493 = vmatpush1.msra.mxu0 %v17356_v60  ;;  %6581 = vmatprep.subr.mxu1 %v17321_v19 }
 0x414   : > { %6494 = vmatprep.subr.mxu0 %v17363_v14  ;;  %6582 = vmatpush1.msra.mxu1 %v17328_v15 }
 0x415   : > { %6495 = vmatpush1.msra.mxu0 %v17370_v40  ;;  %6583 = vmatprep.subr.mxu1 %v17335_v33 }
 0x416   : > { %6496 = vmatprep.subr.mxu0 %v17377_v50  ;;  %6584 = vmatpush1.msra.mxu1 %v17342_v1 }
 0x417   : > { %6497 = vmatpush1.msra.mxu0 %v17384_v3  ;;  %6585 = vmatprep.subr.mxu1 %v17349_v0 }
 0x418   : > { %6498 = vmatprep.subr.mxu0 %v17391_v27  ;;  %6586 = vmatpush1.msra.mxu1 %v17356_v60 }
 0x419   : > { %6499 = vmatpush1.msra.mxu0 %v17398_v10  ;;  %6587 = vmatprep.subr.mxu1 %v17363_v14 }
 0x41a   : > { %6500 = vmatprep.subr.mxu0 %v17405_v20  ;;  %6588 = vmatpush1.msra.mxu1 %v17370_v40 }
 0x41b   : > { %6501 = vmatpush1.msra.mxu0 %v17412_v45  ;;  %6589 = vmatprep.subr.mxu1 %v17377_v50 }
 0x41c   : > { %12490 = vmatprep.subr.msk.mxu0 %vm6463_vm10, %v17419_v37  ;;  %6590 = vmatpush1.msra.mxu1 %v17384_v3 }
 0x41d   : > { %12491 = vmatpush2.msk.msra.mxu0 %vm6463_vm10, %v17426_v34  ;;  %6591 = vmatprep.subr.mxu1 %v17391_v27 }
 0x41e   : > { %6526 = vmatprep.subr.mxu0 %v17433_v43  ;;  %6592 = vmatpush1.msra.mxu1 %v17398_v10 }
 0x41f   : > { %6527 = vmatpush2.msra.mxu0 %v17441_v58  ;;  %6593 = vmatprep.subr.mxu1 %v17405_v20 }
 0x420   : > { %6528 = vmatprep.subr.mxu0 %v17449_v29  ;;  %6594 = vmatpush1.msra.mxu1 %v17412_v45 }
 0x421   : > { %6529 = vmatpush2.msra.mxu0 %v17456_v54  ;;  %12494 = vmatprep.subr.msk.mxu1 %vm6463_vm10, %v17419_v37 }
 0x422   : > { %6530 = vmatprep.subr.mxu0 %v17463_v30  ;;  %12495 = vmatpush2.msk.msra.mxu1 %vm6463_vm10, %v17426_v34 }
 0x423   : > { %6531 = vmatpush2.msra.mxu0 %v17470_v5  ;;  %6619 = vmatprep.subr.mxu1 %v17433_v43 }
 0x424   : > { %6532 = vmatprep.subr.mxu0 %v17477_v42  ;;  %6620 = vmatpush2.msra.mxu1 %v17441_v58 }
 0x425   : > { %6533 = vmatpush2.msra.mxu0 %v17485_v41  ;;  %6621 = vmatprep.subr.mxu1 %v17449_v29 }
 0x426   : > { %6656 = vmatprep.subr.mxu0 %v17194_v17  ;;  %6622 = vmatpush2.msra.mxu1 %v17456_v54 }
 0x427   : > { %6623 = vmatprep.subr.mxu1 %v17463_v30 }
 0x428   : > { %6624 = vmatpush2.msra.mxu1 %v17470_v5 }
 0x429   : > { %6625 = vmatprep.subr.mxu1 %v17477_v42 }
 0x42a   : > { %6626 = vmatpush2.msra.mxu1 %v17485_v41 }
 0x42b   : > { %6749 = vmatprep.subr.mxu1 %v17194_v17 }
 0x453   : > { %v17502_v11 = vpop.f32.mrf.mxu0 }
 0x454   : > { %22641 = vst [vmem:[#allocation26_spill] sm:$0xff] %v17502_v11  ;;  %v6450_v35 = vrot.slane %v17502_v11, 1 }
 0x455   : > { %v17504_v26 = vpop.f32.mrf.mxu0 }
 0x456   : > { %22642 = vst [vmem:[#allocation95_spill] sm:$0xff] %v17504_v26  ;;  %v6453_v36 = vrot.slane %v17504_v26, 1 }
 0x457   : > { %v17506_v12 = vpop.f32.mrf.mxu0 }
 0x458   : > { %22643 = vst [vmem:[#allocation73_spill] sm:$0xff] %v17506_v12  ;;  %v6451_v47 = vrot.slane %v17506_v12, 1 }
 0x459   : > { %v17510_v22 = vpop.f32.mrf.mxu0 }
 0x45a   : > { %22644 = vst [vmem:[#allocation17_spill] sm:$0xff] %v17510_v22  ;;  %v6454_v63 = vrot.slane %v17510_v22, 1  ;;  %v6452_v44 = vsel %vm475_vm0, %v6450_v35, %v6451_v47 }
 0x45c   : > { %v6455_v51 = vsel %vm475_vm0, %v6453_v36, %v6454_v63 }
 0x45d   : > { %12492 = vmatprep.mubr.msk.f32.mxu0 %vm6458_vm11, %v6455_v51 }
 0x45e   : > { %v17517_v4 = vpop.f32.mrf.mxu0  ;;  %6535 = vmatmul.mubr.f32.vlgmr.msra.gmra.mxu0 %v6452_v44 }
 0x45f   : > { %22645 = vst [vmem:[#allocation31_spill] sm:$0xff] %v17517_v4  ;;  %6657 = vmatpush1.msra.mxu0 %v17199_v59  ;;  %12493 = vmatprep.mubr.msk.f32.mxu0 %vm6458_vm11, %v6454_v63  ;;  %v6551_v57 = vrot.slane %v17517_v4, 1 }
 0x460   : > { %6658 = vmatprep.subr.mxu0 %v17207_v39  ;;  %v17522_v62 = vpop.f32.mrf.mxu0 }
 0x461   : > { %22646 = vst [vmem:[#allocation96_spill] sm:$0xff] %v17522_v62  ;;  %6659 = vmatpush1.msra.mxu0 %v17215_v31  ;;  %v6554_v23 = vrot.slane %v17522_v62, 1 }
 0x462   : > { %6660 = vmatprep.subr.mxu0 %v17221_v16  ;;  %v17526_v55 = vpop.f32.mrf.mxu0  ;;  %6541 = vmatmul.mubr.f32.gmra.mxu0 %v6451_v47 }
 0x463   : > { %22647 = vst [vmem:[#allocation85_spill] sm:$0xff] %v17526_v55  ;;  %6661 = vmatpush1.msra.mxu0 %v17230_v48  ;;  %v6552_v46 = vrot.slane %v17526_v55, 1 }
 0x464   : > { %6662 = vmatprep.subr.mxu0 %v17237_v18  ;;  %v17531_v9 = vpop.f32.mrf.mxu0 }
 0x465   : > { %22648 = vst [vmem:[#allocation30_spill] sm:$0xff] %v17531_v9  ;;  %6663 = vmatpush1.msra.mxu0 %v17243_v25  ;;  %v6555_v61 = vrot.slane %v17531_v9, 1  ;;  %v6553_v7 = vsel %vm475_vm0, %v6551_v57, %v6552_v46 }
 0x466   : > { %6664 = vmatprep.subr.mxu0 %v17250_v49 }
 0x467   : > { %6665 = vmatpush1.msra.mxu0 %v17259_v21  ;;  %v6556_v13 = vsel %vm475_vm0, %v6554_v23, %v6555_v61 }
 0x468   : > { %6666 = vmatprep.subr.mxu0 %v17265_v2  ;;  %12496 = vmatprep.mubr.msk.f32.mxu1 %vm6458_vm11, %v6556_v13 }
 0x469   : > { %6667 = vmatpush1.msra.mxu0 %v17272_v24  ;;  %6628 = vmatmul.mubr.f32.vlgmr.msra.gmra.mxu1 %v6553_v7 }
 0x46a   : > { %6668 = vmatprep.subr.mxu0 %v17279_v8  ;;  %6750 = vmatpush1.msra.mxu1 %v17199_v59 }
 0x46b   : > { %12497 = vmatprep.mubr.msk.f32.mxu1 %vm6458_vm11, %v6555_v61  ;;  %6669 = vmatpush1.msra.mxu0 %v17286_v53 }
 0x46c   : > { %6751 = vmatprep.subr.mxu1 %v17207_v39  ;;  %6670 = vmatprep.subr.mxu0 %v17293_v56 }
 0x46d   : > { %6752 = vmatpush1.msra.mxu1 %v17215_v31  ;;  %6671 = vmatpush1.msra.mxu0 %v17300_v32 }
 0x46e   : > { %6753 = vmatprep.subr.mxu1 %v17221_v16  ;;  %6634 = vmatmul.mubr.f32.gmra.mxu1 %v6552_v46 }
 0x46f   : > { %6672 = vmatprep.subr.mxu0 %v17307_v6  ;;  %6754 = vmatpush1.msra.mxu1 %v17230_v48 }
 0x470   : > { %6673 = vmatpush1.msra.mxu0 %v17314_v38  ;;  %6755 = vmatprep.subr.mxu1 %v17237_v18 }
 0x471   : > { %6674 = vmatprep.subr.mxu0 %v17321_v19  ;;  %6756 = vmatpush1.msra.mxu1 %v17243_v25 }
 0x472   : > { %6675 = vmatpush1.msra.mxu0 %v17328_v15  ;;  %6757 = vmatprep.subr.mxu1 %v17250_v49 }
 0x473   : > { %6676 = vmatprep.subr.mxu0 %v17335_v33  ;;  %6758 = vmatpush1.msra.mxu1 %v17259_v21 }
 0x474   : > { %6677 = vmatpush1.msra.mxu0 %v17342_v1  ;;  %6759 = vmatprep.subr.mxu1 %v17265_v2 }
 0x475   : > { %6678 = vmatprep.subr.mxu0 %v17349_v0  ;;  %6760 = vmatpush1.msra.mxu1 %v17272_v24 }
 0x476   : > { %6679 = vmatpush1.msra.mxu0 %v17356_v60  ;;  %6761 = vmatprep.subr.mxu1 %v17279_v8 }
 0x477   : > { %6680 = vmatprep.subr.mxu0 %v17363_v14  ;;  %6762 = vmatpush1.msra.mxu1 %v17286_v53 }
 0x478   : > { %6681 = vmatpush1.msra.mxu0 %v17370_v40  ;;  %6763 = vmatprep.subr.mxu1 %v17293_v56 }
 0x479   : > { %6682 = vmatprep.subr.mxu0 %v17377_v50  ;;  %6764 = vmatpush1.msra.mxu1 %v17300_v32 }
 0x47a   : > { %6683 = vmatpush1.msra.mxu0 %v17384_v3  ;;  %6765 = vmatprep.subr.mxu1 %v17307_v6  ;;  %v17577_v35 = vpop.f32.mrf.mxu0 }
 0x47b   : > { %22649 = vst [vmem:[#allocation97_spill] sm:$0xff] %v17577_v35  ;;  %6684 = vmatprep.subr.mxu0 %v17391_v27  ;;  %6766 = vmatpush1.msra.mxu1 %v17314_v38  ;;  %v6644_v23 = vrot.slane %v17577_v35, 1 }
 0x47c   : > { %6685 = vmatpush1.msra.mxu0 %v17398_v10  ;;  %6767 = vmatprep.subr.mxu1 %v17321_v19  ;;  %v17583_v47 = vpop.f32.mrf.mxu0 }
 0x47d   : > { %22650 = vst [vmem:[#allocation76_spill] sm:$0xff] %v17583_v47  ;;  %6686 = vmatprep.subr.mxu0 %v17405_v20  ;;  %6768 = vmatpush1.msra.mxu1 %v17328_v15  ;;  %v6647_v44 = vrot.slane %v17583_v47, 1 }
 0x47e   : > { %6687 = vmatpush1.msra.mxu0 %v17412_v45  ;;  %6769 = vmatprep.subr.mxu1 %v17335_v33  ;;  %v17589_v36 = vpop.f32.mrf.mxu0  ;;  %v17594_v63 = vpop.f32.mrf.mxu1 }
 0x47f   : > { %22651 = vst [vmem:[#allocation19_spill] sm:$0xff] %v17589_v36  ;;  %12498 = vmatprep.subr.msk.mxu0 %vm6463_vm10, %v17419_v37  ;;  %6770 = vmatpush1.msra.mxu1 %v17342_v1  ;;  %22652 = vst [vmem:[#allocation86_spill] sm:$0xff] %v17594_v63  ;;  %v6645_v61 = vrot.slane %v17589_v36, 1 }
 0x480   : > { %12499 = vmatpush2.msk.msra.mxu0 %vm6463_vm10, %v17426_v34  ;;  %6771 = vmatprep.subr.mxu1 %v17349_v0  ;;  %v17599_v51 = vpop.f32.mrf.mxu0  ;;  %v17611_v57 = vpop.f32.mrf.mxu1 }
 0x481   : > { %22653 = vst [vmem:[#allocation78_spill] sm:$0xff] %v17599_v51  ;;  %6712 = vmatprep.subr.mxu0 %v17433_v43  ;;  %6772 = vmatpush1.msra.mxu1 %v17356_v60  ;;  %v6648_v46 = vrot.slane %v17599_v51, 1  ;;  %22654 = vst [vmem:[#allocation18_spill] sm:$0xff] %v17611_v57  ;;  %v6646_v7 = vsel %vm475_vm0, %v6644_v23, %v6645_v61  ;;  %v6740_v23 = vrot.slane %v17611_v57, 1 }
 0x482   : > { %6713 = vmatpush2.msra.mxu0 %v17441_v58  ;;  %6773 = vmatprep.subr.mxu1 %v17363_v14  ;;  %v17623_v52 = vpop.f32.mrf.mxu1 }
 0x483   : > { %6714 = vmatprep.subr.mxu0 %v17449_v29  ;;  %6774 = vmatpush1.msra.mxu1 %v17370_v40  ;;  %v6649_v13 = vsel %vm475_vm0, %v6647_v44, %v6648_v46  ;;  %22655 = vst [vmem:[#allocation87_spill] sm:$0xff] %v17623_v52  ;;  %v6738_v28 = vrot.slane %v17623_v52, 1 }
 0x484   : > { %6715 = vmatpush2.msra.mxu0 %v17456_v54  ;;  %6775 = vmatprep.subr.mxu1 %v17377_v50  ;;  %v17633_v44 = vpop.f32.mrf.mxu1 }
 0x485   : > { %6716 = vmatprep.subr.mxu0 %v17463_v30  ;;  %6776 = vmatpush1.msra.mxu1 %v17384_v3  ;;  %22656 = vst [vmem:[#allocation12_spill] sm:$0xff] %v17633_v44 }
 0x486   : > { %6717 = vmatpush2.msra.mxu0 %v17470_v5  ;;  %6777 = vmatprep.subr.mxu1 %v17391_v27 }
 0x487   : > { %6718 = vmatprep.subr.mxu0 %v17477_v42  ;;  %6778 = vmatpush1.msra.mxu1 %v17398_v10 }
 0x488   : > { %6719 = vmatpush2.msra.mxu0 %v17485_v41  ;;  %6779 = vmatprep.subr.mxu1 %v17405_v20 }
 0x489   : > { %12500 = vmatprep.mubr.msk.f32.mxu0 %vm6458_vm11, %v6649_v13  ;;  %6780 = vmatpush1.msra.mxu1 %v17412_v45  ;;  %v6741_v13 = vrot.slane %v17633_v44, 1 }
 0x48a   : > { %6842 = vmatprep.subr.mxu0 %v17194_v17  ;;  %6721 = vmatmul.mubr.f32.vlgmr.msra.gmra.mxu0 %v6646_v7  ;;  %v6737_v7 = vrot.slane %v17594_v63, 1 }
 0x48b   : > { %12502 = vmatprep.subr.msk.mxu1 %vm6463_vm10, %v17419_v37  ;;  %6843 = vmatpush1.msra.mxu0 %v17199_v59  ;;  %v6742_v44 = vsel %vm475_vm0, %v6740_v23, %v6741_v13 }
 0x48c   : > { %12503 = vmatpush2.msk.msra.mxu1 %vm6463_vm10, %v17426_v34  ;;  %6844 = vmatprep.subr.mxu0 %v17207_v39 }
 0x48d   : > { %6805 = vmatprep.subr.mxu1 %v17433_v43  ;;  %6845 = vmatpush1.msra.mxu0 %v17215_v31 }
 0x48e   : > { %6806 = vmatpush2.msra.mxu1 %v17441_v58  ;;  %6846 = vmatprep.subr.mxu0 %v17221_v16 }
 0x48f   : > { %6807 = vmatprep.subr.mxu1 %v17449_v29  ;;  %6847 = vmatpush1.msra.mxu0 %v17230_v48 }
 0x490   : > { %12501 = vmatprep.mubr.msk.f32.mxu0 %vm6458_vm11, %v6648_v46  ;;  %6808 = vmatpush2.msra.mxu1 %v17456_v54  ;;  %v6739_v46 = vsel %vm475_vm0, %v6737_v7, %v6738_v28 }
 0x491   : > { %6848 = vmatprep.subr.mxu0 %v17237_v18  ;;  %6727 = vmatmul.mubr.f32.gmra.mxu0 %v6645_v61 }
 0x492   : > { %6809 = vmatprep.subr.mxu1 %v17463_v30  ;;  %6849 = vmatpush1.msra.mxu0 %v17243_v25 }
 0x493   : > { %6810 = vmatpush2.msra.mxu1 %v17470_v5  ;;  %6850 = vmatprep.subr.mxu0 %v17250_v49 }
 0x494   : > { %6811 = vmatprep.subr.mxu1 %v17477_v42  ;;  %6851 = vmatpush1.msra.mxu0 %v17259_v21 }
 0x495   : > { %6812 = vmatpush2.msra.mxu1 %v17485_v41  ;;  %12504 = vmatprep.mubr.msk.f32.mxu1 %vm6458_vm11, %v6742_v44 }
 0x496   : > { %6852 = vmatprep.subr.mxu0 %v17265_v2  ;;  %6814 = vmatmul.mubr.f32.vlgmr.msra.gmra.mxu1 %v6739_v46 }
 0x497   : > { %6853 = vmatpush1.msra.mxu0 %v17272_v24  ;;  %6935 = vmatprep.subr.mxu1 %v17194_v17 }
 0x498   : > { %6854 = vmatprep.subr.mxu0 %v17279_v8  ;;  %6936 = vmatpush1.msra.mxu1 %v17199_v59 }
 0x499   : > { %12505 = vmatprep.mubr.msk.f32.mxu1 %vm6458_vm11, %v6741_v13  ;;  %6855 = vmatpush1.msra.mxu0 %v17286_v53 }
 0x49a   : > { %6937 = vmatprep.subr.mxu1 %v17207_v39  ;;  %6856 = vmatprep.subr.mxu0 %v17293_v56 }
 0x49b   : > { %6938 = vmatpush1.msra.mxu1 %v17215_v31  ;;  %6857 = vmatpush1.msra.mxu0 %v17300_v32 }
 0x49c   : > { %6820 = vmatmul.mubr.f32.gmra.mxu1 %v6738_v28  ;;  %6939 = vmatprep.subr.mxu1 %v17221_v16  ;;  %v17683_v28 = vpop.f32.mrf.mxu0 }
 0x49d   : > { %6858 = vmatprep.subr.mxu0 %v17307_v6  ;;  %6940 = vmatpush1.msra.mxu1 %v17230_v48  ;;  %22657 = vst [vmem:[#allocation39_spill] sm:$0xff] %v17683_v28  ;;  %v6830_v52 = vrot.slane %v17683_v28, 1 }
 0x49e   : > { %6859 = vmatpush1.msra.mxu0 %v17314_v38  ;;  %6941 = vmatprep.subr.mxu1 %v17237_v18  ;;  %v17693_v61 = vpop.f32.mrf.mxu0  ;;  %v17716_v13 = vpop.f32.mrf.mxu1 }
 0x49f   : > { %6860 = vmatprep.subr.mxu0 %v17321_v19  ;;  %6942 = vmatpush1.msra.mxu1 %v17243_v25  ;;  %22658 = vst [vmem:[#allocation100_spill] sm:$0xff] %v17693_v61  ;;  %22661 = vst [vmem:[#allocation88_spill] sm:$0xff] %v17716_v13  ;;  %v6833_v7 = vrot.slane %v17693_v61, 1 }
 0x4a0   : > { %6861 = vmatpush1.msra.mxu0 %v17328_v15  ;;  %6943 = vmatprep.subr.mxu1 %v17250_v49  ;;  %v17703_v44 = vpop.f32.mrf.mxu0  ;;  %v17731_v36 = vpop.f32.mrf.mxu1 }
 0x4a1   : > { %6862 = vmatprep.subr.mxu0 %v17335_v33  ;;  %6944 = vmatpush1.msra.mxu1 %v17259_v21  ;;  %22659 = vst [vmem:[#allocation38_spill] sm:$0xff] %v17703_v44  ;;  %v6831_v63 = vrot.slane %v17703_v44, 1  ;;  %22662 = vst [vmem:[#allocation20_spill] sm:$0xff] %v17731_v36 }
 0x4a2   : > { %6863 = vmatpush1.msra.mxu0 %v17342_v1  ;;  %6945 = vmatprep.subr.mxu1 %v17265_v2  ;;  %v17714_v23 = vpop.f32.mrf.mxu0  ;;  %v17743_v28 = vpop.f32.mrf.mxu1 }
 0x4a3   : > { %6864 = vmatprep.subr.mxu0 %v17349_v0  ;;  %6946 = vmatpush1.msra.mxu1 %v17272_v24  ;;  %22660 = vst [vmem:[#allocation101_spill] sm:$0xff] %v17714_v23  ;;  %v6834_v46 = vrot.slane %v17714_v23, 1  ;;  %v6832_v23 = vsel %vm475_vm0, %v6830_v52, %v6831_v63  ;;  %22663 = vst [vmem:[#allocation43_spill] sm:$0xff] %v17743_v28  ;;  %v6926_v52 = vrot.slane %v17731_v36, 1  ;;  %v6924_v61 = vrot.slane %v17743_v28, 1 }
 0x4a4   : > { %6865 = vmatpush1.msra.mxu0 %v17356_v60  ;;  %6947 = vmatprep.subr.mxu1 %v17279_v8 }
 0x4a5   : > { %6866 = vmatprep.subr.mxu0 %v17363_v14  ;;  %6948 = vmatpush1.msra.mxu1 %v17286_v53  ;;  %v6835_v44 = vsel %vm475_vm0, %v6833_v7, %v6834_v46  ;;  %v17753_v7 = vpop.f32.mrf.mxu1 }
 0x4a6   : > { %6867 = vmatpush1.msra.mxu0 %v17370_v40  ;;  %6949 = vmatprep.subr.mxu1 %v17293_v56  ;;  %22664 = vst [vmem:[#allocation102_spill] sm:$0xff] %v17753_v7 }
 0x4a7   : > { %6868 = vmatprep.subr.mxu0 %v17377_v50  ;;  %6950 = vmatpush1.msra.mxu1 %v17300_v32 }
 0x4a8   : > { %6869 = vmatpush1.msra.mxu0 %v17384_v3  ;;  %6951 = vmatprep.subr.mxu1 %v17307_v6 }
 0x4a9   : > { %6870 = vmatprep.subr.mxu0 %v17391_v27  ;;  %6952 = vmatpush1.msra.mxu1 %v17314_v38 }
 0x4aa   : > { %6871 = vmatpush1.msra.mxu0 %v17398_v10  ;;  %6953 = vmatprep.subr.mxu1 %v17321_v19 }
 0x4ab   : > { %6872 = vmatprep.subr.mxu0 %v17405_v20  ;;  %6954 = vmatpush1.msra.mxu1 %v17328_v15 }
 0x4ac   : > { %6873 = vmatpush1.msra.mxu0 %v17412_v45  ;;  %6955 = vmatprep.subr.mxu1 %v17335_v33 }
 0x4ad   : > { %12506 = vmatprep.subr.msk.mxu0 %vm6463_vm10, %v17419_v37  ;;  %6956 = vmatpush1.msra.mxu1 %v17342_v1 }
 0x4ae   : > { %12507 = vmatpush2.msk.msra.mxu0 %vm6463_vm10, %v17426_v34  ;;  %6957 = vmatprep.subr.mxu1 %v17349_v0 }
 0x4af   : > { %6898 = vmatprep.subr.mxu0 %v17433_v43  ;;  %6958 = vmatpush1.msra.mxu1 %v17356_v60 }
 0x4b0   : > { %6899 = vmatpush2.msra.mxu0 %v17441_v58  ;;  %6959 = vmatprep.subr.mxu1 %v17363_v14 }
 0x4b1   : > { %6900 = vmatprep.subr.mxu0 %v17449_v29  ;;  %6960 = vmatpush1.msra.mxu1 %v17370_v40 }
 0x4b2   : > { %6901 = vmatpush2.msra.mxu0 %v17456_v54  ;;  %6961 = vmatprep.subr.mxu1 %v17377_v50 }
 0x4b3   : > { %6902 = vmatprep.subr.mxu0 %v17463_v30  ;;  %6962 = vmatpush1.msra.mxu1 %v17384_v3 }
 0x4b4   : > { %6903 = vmatpush2.msra.mxu0 %v17470_v5  ;;  %6963 = vmatprep.subr.mxu1 %v17391_v27 }
 0x4b5   : > { %6904 = vmatprep.subr.mxu0 %v17477_v42  ;;  %6964 = vmatpush1.msra.mxu1 %v17398_v10 }
 0x4b6   : > { %6905 = vmatpush2.msra.mxu0 %v17485_v41  ;;  %6965 = vmatprep.subr.mxu1 %v17405_v20 }
 0x4b7   : > { %12508 = vmatprep.mubr.msk.f32.mxu0 %vm6458_vm11, %v6835_v44  ;;  %6966 = vmatpush1.msra.mxu1 %v17412_v45  ;;  %v6927_v44 = vrot.slane %v17753_v7, 1 }
 0x4b8   : > { %7028 = vmatprep.subr.mxu0 %v17194_v17  ;;  %6907 = vmatmul.mubr.f32.vlgmr.msra.gmra.mxu0 %v6832_v23  ;;  %v6923_v23 = vrot.slane %v17716_v13, 1 }
 0x4b9   : > { %12510 = vmatprep.subr.msk.mxu1 %vm6463_vm10, %v17419_v37  ;;  %7029 = vmatpush1.msra.mxu0 %v17199_v59  ;;  %v6928_v7 = vsel %vm475_vm0, %v6926_v52, %v6927_v44  ;;  %v18059_v52 = vld [vmem:[%s21942_s3 + $0x30] sm:$0xff] }
 0x4ba   : > { %12511 = vmatpush2.msk.msra.mxu1 %vm6463_vm10, %v17426_v34  ;;  %7030 = vmatprep.subr.mxu0 %v17207_v39 }
 0x4bb   : > { %6991 = vmatprep.subr.mxu1 %v17433_v43  ;;  %7031 = vmatpush1.msra.mxu0 %v17215_v31 }
 0x4bc   : > { %6992 = vmatpush2.msra.mxu1 %v17441_v58  ;;  %7032 = vmatprep.subr.mxu0 %v17221_v16 }
 0x4bd   : > { %6993 = vmatprep.subr.mxu1 %v17449_v29  ;;  %7033 = vmatpush1.msra.mxu0 %v17230_v48 }
 0x4be   : > { %12509 = vmatprep.mubr.msk.f32.mxu0 %vm6458_vm11, %v6834_v46  ;;  %6994 = vmatpush2.msra.mxu1 %v17456_v54  ;;  %v18045_v46 = vld [vmem:[%s21942_s3 + $0x40] sm:$0xff] }
 0x4bf   : > { %7034 = vmatprep.subr.mxu0 %v17237_v18  ;;  %6913 = vmatmul.mubr.f32.gmra.mxu0 %v6831_v63  ;;  %v6925_v63 = vsel %vm475_vm0, %v6923_v23, %v6924_v61  ;;  %v18073_v23 = vld [vmem:[%s21942_s3 + $0x20] sm:$0xff] }
 0x4c0   : > { %6995 = vmatprep.subr.mxu1 %v17463_v30  ;;  %7035 = vmatpush1.msra.mxu0 %v17243_v25 }
 0x4c1   : > { %6996 = vmatpush2.msra.mxu1 %v17470_v5  ;;  %7036 = vmatprep.subr.mxu0 %v17250_v49 }
 0x4c2   : > { %6997 = vmatprep.subr.mxu1 %v17477_v42  ;;  %7037 = vmatpush1.msra.mxu0 %v17259_v21 }
 0x4c3   : > { %6998 = vmatpush2.msra.mxu1 %v17485_v41  ;;  %12512 = vmatprep.mubr.msk.f32.mxu1 %vm6458_vm11, %v6928_v7  ;;  %v18052_v7 = vld [vmem:[%s21942_s3 + $0x38] sm:$0xff] }
 0x4c4   : > { %7038 = vmatprep.subr.mxu0 %v17265_v2  ;;  %7000 = vmatmul.mubr.f32.vlgmr.msra.gmra.mxu1 %v6925_v63  ;;  %v18080_v63 = vld [vmem:[%s21942_s3 + $0x18] sm:$0xff] }
 0x4c5   : > { %7039 = vmatpush1.msra.mxu0 %v17272_v24  ;;  %7121 = vmatprep.subr.mxu1 %v17194_v17  ;;  %v17801_v17 = vpop.f32.mrf.mxu0 }
 0x4c6   : > { %7040 = vmatprep.subr.mxu0 %v17279_v8  ;;  %7122 = vmatpush1.msra.mxu1 %v17199_v59  ;;  %22665 = vst [vmem:[#allocation42_spill] sm:$0xff] %v17801_v17 }
 0x4c7   : > { %12513 = vmatprep.mubr.msk.f32.mxu1 %vm6458_vm11, %v6927_v44  ;;  %7041 = vmatpush1.msra.mxu0 %v17286_v53  ;;  %v17811_v59 = vpop.f32.mrf.mxu0  ;;  %v18066_v44 = vld [vmem:[%s21942_s3 + $0x28] sm:$0xff] }
 0x4c8   : > { %7123 = vmatprep.subr.mxu1 %v17207_v39  ;;  %7042 = vmatprep.subr.mxu0 %v17293_v56  ;;  %22666 = vst [vmem:[#allocation103_spill] sm:$0xff] %v17811_v59 }
 0x4c9   : > { %7124 = vmatpush1.msra.mxu1 %v17215_v31  ;;  %7043 = vmatpush1.msra.mxu0 %v17300_v32  ;;  %v17821_v39 = vpop.f32.mrf.mxu0 }
 0x4ca   : > { %7006 = vmatmul.mubr.f32.gmra.mxu1 %v6924_v61  ;;  %7125 = vmatprep.subr.mxu1 %v17221_v16  ;;  %22667 = vst [vmem:[#allocation89_spill] sm:$0xff] %v17821_v39  ;;  %v17839_v16 = vpop.f32.mrf.mxu1  ;;  %v18038_v61 = vld [vmem:[%s21942_s3 + $0x48] sm:$0xff] }
 0x4cb   : > { %7044 = vmatprep.subr.mxu0 %v17307_v6  ;;  %7126 = vmatpush1.msra.mxu1 %v17230_v48  ;;  %v17831_v31 = vpop.f32.mrf.mxu0  ;;  %22669 = vst [vmem:[#allocation47_spill] sm:$0xff] %v17839_v16  ;;  %v7019_v48 = vrot.slane %v17811_v59, 1 }
 0x4cc   : > { %7045 = vmatpush1.msra.mxu0 %v17314_v38  ;;  %7127 = vmatprep.subr.mxu1 %v17237_v18  ;;  %22668 = vst [vmem:[#allocation82_spill] sm:$0xff] %v17831_v31  ;;  %v7020_v18 = vrot.slane %v17831_v31, 1 }
 0x4cd   : > { %7046 = vmatprep.subr.mxu0 %v17321_v19  ;;  %7128 = vmatpush1.msra.mxu1 %v17243_v25  ;;  %v7016_v25 = vrot.slane %v17801_v17, 1 }
 0x4ce   : > { %7047 = vmatpush1.msra.mxu0 %v17328_v15  ;;  %7129 = vmatprep.subr.mxu1 %v17250_v49  ;;  %v7017_v49 = vrot.slane %v17821_v39, 1 }
 0x4cf   : > { %7048 = vmatprep.subr.mxu0 %v17335_v33  ;;  %7130 = vmatpush1.msra.mxu1 %v17259_v21  ;;  %v17853_v21 = vpop.f32.mrf.mxu1 }
 0x4d0   : > { %7049 = vmatpush1.msra.mxu0 %v17342_v1  ;;  %7131 = vmatprep.subr.mxu1 %v17265_v2  ;;  %22670 = vst [vmem:[#allocation105_spill] sm:$0xff] %v17853_v21  ;;  %v7021_v2 = vsel %vm475_vm0, %v7019_v48, %v7020_v18  ;;  %v18087_v48 = vld [vmem:[%s21942_s3 + $0x10] sm:$0xff] }
 0x4d1   : > { %7050 = vmatprep.subr.mxu0 %v17349_v0  ;;  %7132 = vmatpush1.msra.mxu1 %v17272_v24  ;;  %v7018_v24 = vsel %vm475_vm0, %v7016_v25, %v7017_v49  ;;  %v18101_v25 = vld [vmem:[%s21942_s3] sm:$0xff] }
 0x4d2   : > { %7051 = vmatpush1.msra.mxu0 %v17356_v60  ;;  %7133 = vmatprep.subr.mxu1 %v17279_v8  ;;  %v17866_v8 = vld [vmem:[%s21942_s3 + $0xf8] sm:$0xff] }
 0x4d3   : > { %7052 = vmatprep.subr.mxu0 %v17363_v14  ;;  %7134 = vmatpush1.msra.mxu1 %v17286_v53  ;;  %v17873_v53 = vld [vmem:[%s21942_s3 + $0xf0] sm:$0xff] }
 0x4d4   : > { %7053 = vmatpush1.msra.mxu0 %v17370_v40  ;;  %7135 = vmatprep.subr.mxu1 %v17293_v56  ;;  %v17875_v56 = vpop.f32.mrf.mxu1 }
 0x4d5   : > { %7054 = vmatprep.subr.mxu0 %v17377_v50  ;;  %7136 = vmatpush1.msra.mxu1 %v17300_v32  ;;  %22671 = vst [vmem:[#allocation25_spill] sm:$0xff] %v17875_v56  ;;  %v17881_v32 = vld [vmem:[%s21942_s3 + $0xe8] sm:$0xff] }
 0x4d6   : > { %7055 = vmatpush1.msra.mxu0 %v17384_v3  ;;  %7137 = vmatprep.subr.mxu1 %v17307_v6  ;;  %v17891_v6 = vld [vmem:[%s21942_s3 + $0xe0] sm:$0xff] }
 0x4d7   : > { %7056 = vmatprep.subr.mxu0 %v17391_v27  ;;  %7138 = vmatpush1.msra.mxu1 %v17314_v38  ;;  %v17899_v38 = vld [vmem:[%s21942_s3 + $0xd8] sm:$0xff] }
 0x4d8   : > { %7057 = vmatpush1.msra.mxu0 %v17398_v10  ;;  %7139 = vmatprep.subr.mxu1 %v17321_v19  ;;  %v17901_v19 = vpop.f32.mrf.mxu1 }
 0x4d9   : > { %7058 = vmatprep.subr.mxu0 %v17405_v20  ;;  %7140 = vmatpush1.msra.mxu1 %v17328_v15  ;;  %22672 = vst [vmem:[#allocation46_spill] sm:$0xff] %v17901_v19  ;;  %v17908_v15 = vld [vmem:[%s21942_s3 + $0xd0] sm:$0xff] }
 0x4da   : > { %7059 = vmatpush1.msra.mxu0 %v17412_v45  ;;  %7141 = vmatprep.subr.mxu1 %v17335_v33  ;;  %v17916_v33 = vld [vmem:[%s21942_s3 + $0xc8] sm:$0xff] }
 0x4db   : > { %12514 = vmatprep.subr.msk.mxu0 %vm6463_vm10, %v17419_v37  ;;  %7142 = vmatpush1.msra.mxu1 %v17342_v1  ;;  %v7112_v1 = vrot.slane %v17853_v21, 1 }
 0x4dc   : > { %12515 = vmatpush2.msk.msra.mxu0 %vm6463_vm10, %v17426_v34  ;;  %7143 = vmatprep.subr.mxu1 %v17349_v0  ;;  %v7113_v0 = vrot.slane %v17901_v19, 1 }
 0x4dd   : > { %7084 = vmatprep.subr.mxu0 %v17433_v43  ;;  %7144 = vmatpush1.msra.mxu1 %v17356_v60  ;;  %v17925_v60 = vld [vmem:[%s21942_s3 + $0xc0] sm:$0xff] }
 0x4de   : > { %7085 = vmatpush2.msra.mxu0 %v17441_v58  ;;  %7145 = vmatprep.subr.mxu1 %v17363_v14  ;;  %v17933_v14 = vld [vmem:[%s21942_s3 + $0xb8] sm:$0xff] }
 0x4df   : > { %7086 = vmatprep.subr.mxu0 %v17449_v29  ;;  %7146 = vmatpush1.msra.mxu1 %v17370_v40  ;;  %v7109_v40 = vrot.slane %v17839_v16, 1 }
 0x4e0   : > { %7087 = vmatpush2.msra.mxu0 %v17456_v54  ;;  %7147 = vmatprep.subr.mxu1 %v17377_v50  ;;  %v7110_v50 = vrot.slane %v17875_v56, 1  ;;  %v18173_v56 = vld [vmem:[%s21942_s3 + $0x100] sm:$0xff] }
 0x4e1   : > { %7088 = vmatprep.subr.mxu0 %v17463_v30  ;;  %7148 = vmatpush1.msra.mxu1 %v17384_v3  ;;  %v17942_v3 = vld [vmem:[%s21942_s3 + $0xb0] sm:$0xff] }
 0x4e2   : > { %7089 = vmatpush2.msra.mxu0 %v17470_v5  ;;  %7149 = vmatprep.subr.mxu1 %v17391_v27  ;;  %v7114_v27 = vsel %vm475_vm0, %v7112_v1, %v7113_v0  ;;  %v18130_v1 = vld [vmem:[%s21942_s3 + $0x130] sm:$0xff] }
 0x4e3   : > { %7090 = vmatprep.subr.mxu0 %v17477_v42  ;;  %7150 = vmatpush1.msra.mxu1 %v17398_v10  ;;  %v17950_v10 = vld [vmem:[%s21942_s3 + $0xa8] sm:$0xff] }
 0x4e4   : > { %7091 = vmatpush2.msra.mxu0 %v17485_v41  ;;  %12516 = vmatprep.mubr.msk.f32.mxu0 %vm6458_vm11, %v7021_v2  ;;  %v18115_v2 = vld [vmem:[%s21942_s3 + $0x140] sm:$0x3] }
 0x4e5   : > { %7151 = vmatprep.subr.mxu1 %v17405_v20  ;;  %7093 = vmatmul.mubr.f32.vlgmr.msra.gmra.mxu0 %v7018_v24  ;;  %v17957_v20 = vld [vmem:[%s21942_s3 + $0xa0] sm:$0xff]  ;;  %v18122_v24 = vld [vmem:[%s21942_s3 + $0x138] sm:$0xff] }
 0x4e6   : > { %7152 = vmatpush1.msra.mxu1 %v17412_v45  ;;  %7208 = vmatprep.subr.mxu0 %v17866_v8  ;;  %v17964_v45 = vld [vmem:[%s21942_s3 + $0x98] sm:$0xff] }
 0x4e7   : > { %12518 = vmatprep.subr.msk.mxu1 %vm6463_vm10, %v17419_v37  ;;  %7209 = vmatpush1.msra.mxu0 %v17873_v53  ;;  %v7111_v37 = vsel %vm475_vm0, %v7109_v40, %v7110_v50  ;;  %v18145_v40 = vld [vmem:[%s21942_s3 + $0x120] sm:$0xff] }
 0x4e8   : > { %12519 = vmatpush2.msk.msra.mxu1 %vm6463_vm10, %v17426_v34  ;;  %7210 = vmatprep.subr.mxu0 %v17881_v32  ;;  %v17973_v34 = vld [vmem:[%s21942_s3 + $0x90] sm:$0xff] }
 0x4e9   : > { %12517 = vmatprep.mubr.msk.f32.mxu0 %vm6458_vm11, %v7020_v18  ;;  %7177 = vmatprep.subr.mxu1 %v17433_v43  ;;  %v17980_v43 = vld [vmem:[%s21942_s3 + $0x88] sm:$0xff] }
 0x4ea   : > { %7211 = vmatpush1.msra.mxu0 %v17891_v6  ;;  %7178 = vmatpush2.msra.mxu1 %v17441_v58  ;;  %v17987_v58 = vld [vmem:[%s21942_s3 + $0x80] sm:$0xff]  ;;  %v18094_v18 = vld [vmem:[%s21942_s3 + $0x8] sm:$0xff] }
 0x4eb   : > { %7099 = vmatmul.mubr.f32.gmra.mxu0 %v7017_v49  ;;  %7212 = vmatprep.subr.mxu0 %v17899_v38  ;;  %v18108_v49 = vld [vmem:[%s21942_s3 + $0x148] sm:$0x3] }
 0x4ec   : > { %7179 = vmatprep.subr.mxu1 %v17449_v29  ;;  %7213 = vmatpush1.msra.mxu0 %v17908_v15  ;;  %v17994_v29 = vld [vmem:[%s21942_s3 + $0x78] sm:$0xff] }
 0x4ed   : > { %12524 = vmatprep.mubr.msk.f32.mxu0 %vm6458_vm11, %v17504_v26  ;;  %7180 = vmatpush2.msra.mxu1 %v17456_v54  ;;  %v18002_v54 = vld [vmem:[%s21942_s3 + $0x70] sm:$0xff] }
 0x4ee   : > { %7214 = vmatprep.subr.mxu0 %v17916_v33  ;;  %7181 = vmatprep.subr.mxu1 %v17463_v30  ;;  %v18009_v30 = vld [vmem:[%s21942_s3 + $0x68] sm:$0xff] }
 0x4ef   : > { %7215 = vmatpush1.msra.mxu0 %v17925_v60  ;;  %7182 = vmatpush2.msra.mxu1 %v17470_v5  ;;  %v18017_v5 = vld [vmem:[%s21942_s3 + $0x60] sm:$0xff] }
 0x4f0   : > { %7216 = vmatprep.subr.mxu0 %v17933_v14  ;;  %7183 = vmatprep.subr.mxu1 %v17477_v42  ;;  %v18024_v42 = vld [vmem:[%s21942_s3 + $0x58] sm:$0xff] }
 0x4f1   : > { %7217 = vmatpush1.msra.mxu0 %v17942_v3  ;;  %7184 = vmatpush2.msra.mxu1 %v17485_v41  ;;  %v18031_v41 = vld [vmem:[%s21942_s3 + $0x50] sm:$0xff] }
 0x4f2   : > { %12520 = vmatprep.mubr.msk.f32.mxu1 %vm6458_vm11, %v7114_v27  ;;  %7218 = vmatprep.subr.mxu0 %v17950_v10  ;;  %v18159_v27 = vld [vmem:[%s21942_s3 + $0x110] sm:$0xff] }
 0x4f3   : > { %7186 = vmatmul.mubr.f32.vlgmr.msra.gmra.mxu1 %v7111_v37  ;;  %7219 = vmatpush1.msra.mxu0 %v17957_v20  ;;  %v18166_v37 = vld [vmem:[%s21942_s3 + $0x108] sm:$0xff] }
 0x4f4   : > { %7289 = vmatprep.subr.mxu1 %v17866_v8  ;;  %7220 = vmatprep.subr.mxu0 %v17964_v45 }
 0x4f5   : > { %7290 = vmatpush1.msra.mxu1 %v17873_v53  ;;  %12521 = vmatprep.mubr.msk.f32.mxu1 %vm6458_vm11, %v7113_v0  ;;  %v18138_v0 = vld [vmem:[%s21942_s3 + $0x128] sm:$0xff] }
 0x4f6   : > { %7221 = vmatpush1.msra.mxu0 %v17973_v34  ;;  %7291 = vmatprep.subr.mxu1 %v17881_v32 }
 0x4f7   : > { %7222 = vmatprep.subr.mxu0 %v17980_v43  ;;  %7292 = vmatpush1.msra.mxu1 %v17891_v6 }
 0x4f8   : > { %7192 = vmatmul.mubr.f32.gmra.mxu1 %v7110_v50  ;;  %7223 = vmatpush1.msra.mxu0 %v17987_v58  ;;  %v18152_v50 = vld [vmem:[%s21942_s3 + $0x118] sm:$0xff] }
 0x4f9   : > { %7293 = vmatprep.subr.mxu1 %v17899_v38  ;;  %7224 = vmatprep.subr.mxu0 %v17994_v29 }
 0x4fa   : > { %7294 = vmatpush1.msra.mxu1 %v17908_v15  ;;  %12528 = vmatprep.mubr.msk.f32.mxu1 %vm6458_vm11, %v17522_v62 }
 0x4fb   : > { %7225 = vmatpush1.msra.mxu0 %v18002_v54  ;;  %7295 = vmatprep.subr.mxu1 %v17916_v33 }
 0x4fc   : > { %7226 = vmatprep.subr.mxu0 %v18009_v30  ;;  %7296 = vmatpush1.msra.mxu1 %v17925_v60 }
 0x4fd   : > { %7227 = vmatpush1.msra.mxu0 %v18017_v5  ;;  %7297 = vmatprep.subr.mxu1 %v17933_v14 }
 0x4fe   : > { %7228 = vmatprep.subr.mxu0 %v18024_v42  ;;  %7298 = vmatpush1.msra.mxu1 %v17942_v3 }
 0x4ff   : > { %7229 = vmatpush1.msra.mxu0 %v18031_v41  ;;  %7299 = vmatprep.subr.mxu1 %v17950_v10 }
 0x500   : > { %7230 = vmatprep.subr.mxu0 %v18038_v61  ;;  %7300 = vmatpush1.msra.mxu1 %v17957_v20 }
 0x501   : > { %7231 = vmatpush1.msra.mxu0 %v18045_v46  ;;  %7301 = vmatprep.subr.mxu1 %v17964_v45 }
 0x502   : > { %7232 = vmatprep.subr.mxu0 %v18052_v7  ;;  %7302 = vmatpush1.msra.mxu1 %v17973_v34 }
 0x503   : > { %7233 = vmatpush1.msra.mxu0 %v18059_v52  ;;  %7303 = vmatprep.subr.mxu1 %v17980_v43 }
 0x504   : > { %7234 = vmatprep.subr.mxu0 %v18066_v44  ;;  %7304 = vmatpush1.msra.mxu1 %v17987_v58 }
 0x505   : > { %7235 = vmatpush1.msra.mxu0 %v18073_v23  ;;  %7305 = vmatprep.subr.mxu1 %v17994_v29 }
 0x506   : > { %7236 = vmatprep.subr.mxu0 %v18080_v63  ;;  %7306 = vmatpush1.msra.mxu1 %v18002_v54 }
 0x507   : > { %7237 = vmatpush1.msra.mxu0 %v18087_v48  ;;  %7307 = vmatprep.subr.mxu1 %v18009_v30 }
 0x508   : > { %7238 = vmatprep.subr.mxu0 %v18094_v18  ;;  %7308 = vmatpush1.msra.mxu1 %v18017_v5 }
 0x509   : > { %7239 = vmatpush1.msra.mxu0 %v18101_v25  ;;  %7309 = vmatprep.subr.mxu1 %v18024_v42 }
 0x50a   : > { %12522 = vmatprep.subr.msk.mxu0 %vm6463_vm10, %v18108_v49  ;;  %7310 = vmatpush1.msra.mxu1 %v18031_v41 }
 0x50b   : > { %12523 = vmatpush2.msk.msra.mxu0 %vm6463_vm10, %v18115_v2  ;;  %7311 = vmatprep.subr.mxu1 %v18038_v61 }
 0x50c   : > { %7264 = vmatprep.subr.mxu0 %v18122_v24  ;;  %7312 = vmatpush1.msra.mxu1 %v18045_v46 }
 0x50d   : > { %7265 = vmatpush2.msra.mxu0 %v18130_v1  ;;  %7313 = vmatprep.subr.mxu1 %v18052_v7 }
 0x50e   : > { %7266 = vmatprep.subr.mxu0 %v18138_v0  ;;  %7314 = vmatpush1.msra.mxu1 %v18059_v52 }
 0x50f   : > { %7267 = vmatpush2.msra.mxu0 %v18145_v40  ;;  %7315 = vmatprep.subr.mxu1 %v18066_v44 }
 0x510   : > { %7268 = vmatprep.subr.mxu0 %v18152_v50  ;;  %7316 = vmatpush1.msra.mxu1 %v18073_v23 }
 0x511   : > { %7269 = vmatpush2.msra.mxu0 %v18159_v27  ;;  %7317 = vmatprep.subr.mxu1 %v18080_v63 }
 0x512   : > { %7270 = vmatprep.subr.mxu0 %v18166_v37  ;;  %7318 = vmatpush1.msra.mxu1 %v18087_v48 }
 0x513   : > { %7271 = vmatpush2.msra.mxu0 %v18173_v56  ;;  %7319 = vmatprep.subr.mxu1 %v18094_v18 }
 0x514   : > { %7273 = vmatmul.mubr.f32.vlgmr.msra.gmra.mxu0 %v17502_v11  ;;  %7320 = vmatpush1.msra.mxu1 %v18101_v25 }
 0x515   : > { %7370 = vmatprep.subr.mxu0 %v17866_v8  ;;  %12525 = vmatprep.mubr.msk.f32.mxu0 %vm6458_vm11, %v17510_v22 }
 0x516   : > { %12526 = vmatprep.subr.msk.mxu1 %vm6463_vm10, %v18108_v49  ;;  %7371 = vmatpush1.msra.mxu0 %v17873_v53 }
 0x517   : > { %12527 = vmatpush2.msk.msra.mxu1 %vm6463_vm10, %v18115_v2  ;;  %7372 = vmatprep.subr.mxu0 %v17881_v32 }
 0x518   : > { %7345 = vmatprep.subr.mxu1 %v18122_v24  ;;  %7373 = vmatpush1.msra.mxu0 %v17891_v6 }
 0x519   : > { %7279 = vmatmul.mubr.f32.gmra.mxu0 %v17506_v12  ;;  %7346 = vmatpush2.msra.mxu1 %v18130_v1 }
 0x51a   : > { %7374 = vmatprep.subr.mxu0 %v17899_v38  ;;  %7347 = vmatprep.subr.mxu1 %v18138_v0 }
 0x51b   : > { %7375 = vmatpush1.msra.mxu0 %v17908_v15  ;;  %12532 = vmatprep.mubr.msk.f32.mxu0 %vm6458_vm11, %v17583_v47 }
 0x51c   : > { %7348 = vmatpush2.msra.mxu1 %v18145_v40  ;;  %7376 = vmatprep.subr.mxu0 %v17916_v33 }
 0x51d   : > { %7349 = vmatprep.subr.mxu1 %v18152_v50  ;;  %7377 = vmatpush1.msra.mxu0 %v17925_v60 }
 0x51e   : > { %7350 = vmatpush2.msra.mxu1 %v18159_v27  ;;  %7378 = vmatprep.subr.mxu0 %v17933_v14 }
 0x51f   : > { %7351 = vmatprep.subr.mxu1 %v18166_v37  ;;  %7379 = vmatpush1.msra.mxu0 %v17942_v3 }
 0x520   : > { %7352 = vmatpush2.msra.mxu1 %v18173_v56  ;;  %7380 = vmatprep.subr.mxu0 %v17950_v10 }
 0x521   : > { %7354 = vmatmul.mubr.f32.vlgmr.msra.gmra.mxu1 %v17517_v4  ;;  %7381 = vmatpush1.msra.mxu0 %v17957_v20 }
 0x522   : > { %7451 = vmatprep.subr.mxu1 %v17866_v8  ;;  %12529 = vmatprep.mubr.msk.f32.mxu1 %vm6458_vm11, %v17531_v9 }
 0x523   : > { %7382 = vmatprep.subr.mxu0 %v17964_v45  ;;  %7452 = vmatpush1.msra.mxu1 %v17873_v53 }
 0x524   : > { %7383 = vmatpush1.msra.mxu0 %v17973_v34  ;;  %7453 = vmatprep.subr.mxu1 %v17881_v32 }
 0x525   : > { %7384 = vmatprep.subr.mxu0 %v17980_v43  ;;  %7454 = vmatpush1.msra.mxu1 %v17891_v6 }
 0x526   : > { %7360 = vmatmul.mubr.f32.gmra.mxu1 %v17526_v55  ;;  %7385 = vmatpush1.msra.mxu0 %v17987_v58 }
 0x527   : > { %7455 = vmatprep.subr.mxu1 %v17899_v38  ;;  %7386 = vmatprep.subr.mxu0 %v17994_v29 }
 0x528   : > { %7456 = vmatpush1.msra.mxu1 %v17908_v15  ;;  %12536 = vmatprep.mubr.msk.f32.mxu1 %vm6458_vm11, %v17611_v57  ;;  %v22674_v57 = vld [vmem:[#allocation100_spill] sm:$0xff] }
 0x529   : > { %7387 = vmatpush1.msra.mxu0 %v18002_v54  ;;  %7457 = vmatprep.subr.mxu1 %v17916_v33 }
 0x52a   : > { %7388 = vmatprep.subr.mxu0 %v18009_v30  ;;  %7458 = vmatpush1.msra.mxu1 %v17925_v60 }
 0x52b   : > { %7389 = vmatpush1.msra.mxu0 %v18017_v5  ;;  %7459 = vmatprep.subr.mxu1 %v17933_v14 }
 0x52c   : > { %7390 = vmatprep.subr.mxu0 %v18024_v42  ;;  %7460 = vmatpush1.msra.mxu1 %v17942_v3 }
 0x52d   : > { %7391 = vmatpush1.msra.mxu0 %v18031_v41  ;;  %7461 = vmatprep.subr.mxu1 %v17950_v10 }
 0x52e   : > { %7392 = vmatprep.subr.mxu0 %v18038_v61  ;;  %7462 = vmatpush1.msra.mxu1 %v17957_v20 }
 0x52f   : > { %7393 = vmatpush1.msra.mxu0 %v18045_v46  ;;  %7463 = vmatprep.subr.mxu1 %v17964_v45 }
 0x530   : > { %7394 = vmatprep.subr.mxu0 %v18052_v7  ;;  %7464 = vmatpush1.msra.mxu1 %v17973_v34 }
 0x531   : > { %7395 = vmatpush1.msra.mxu0 %v18059_v52  ;;  %7465 = vmatprep.subr.mxu1 %v17980_v43 }
 0x532   : > { %7396 = vmatprep.subr.mxu0 %v18066_v44  ;;  %7466 = vmatpush1.msra.mxu1 %v17987_v58 }
 0x533   : > { %7397 = vmatpush1.msra.mxu0 %v18073_v23  ;;  %7467 = vmatprep.subr.mxu1 %v17994_v29 }
 0x534   : > { %7398 = vmatprep.subr.mxu0 %v18080_v63  ;;  %7468 = vmatpush1.msra.mxu1 %v18002_v54 }
 0x535   : > { %7399 = vmatpush1.msra.mxu0 %v18087_v48  ;;  %7469 = vmatprep.subr.mxu1 %v18009_v30 }
 0x536   : > { %7400 = vmatprep.subr.mxu0 %v18094_v18  ;;  %7470 = vmatpush1.msra.mxu1 %v18017_v5 }
 0x537   : > { %7401 = vmatpush1.msra.mxu0 %v18101_v25  ;;  %7471 = vmatprep.subr.mxu1 %v18024_v42 }
 0x538   : > { %12530 = vmatprep.subr.msk.mxu0 %vm6463_vm10, %v18108_v49  ;;  %7472 = vmatpush1.msra.mxu1 %v18031_v41 }
 0x539   : > { %12531 = vmatpush2.msk.msra.mxu0 %vm6463_vm10, %v18115_v2  ;;  %7473 = vmatprep.subr.mxu1 %v18038_v61 }
 0x53a   : > { %7426 = vmatprep.subr.mxu0 %v18122_v24  ;;  %7474 = vmatpush1.msra.mxu1 %v18045_v46 }
 0x53b   : > { %7427 = vmatpush2.msra.mxu0 %v18130_v1  ;;  %7475 = vmatprep.subr.mxu1 %v18052_v7 }
 0x53c   : > { %7428 = vmatprep.subr.mxu0 %v18138_v0  ;;  %7476 = vmatpush1.msra.mxu1 %v18059_v52 }
 0x53d   : > { %7429 = vmatpush2.msra.mxu0 %v18145_v40  ;;  %7477 = vmatprep.subr.mxu1 %v18066_v44 }
 0x53e   : > { %7430 = vmatprep.subr.mxu0 %v18152_v50  ;;  %7478 = vmatpush1.msra.mxu1 %v18073_v23 }
 0x53f   : > { %7431 = vmatpush2.msra.mxu0 %v18159_v27  ;;  %7479 = vmatprep.subr.mxu1 %v18080_v63 }
 0x540   : > { %7432 = vmatprep.subr.mxu0 %v18166_v37  ;;  %7480 = vmatpush1.msra.mxu1 %v18087_v48 }
 0x541   : > { %7433 = vmatpush2.msra.mxu0 %v18173_v56  ;;  %7481 = vmatprep.subr.mxu1 %v18094_v18 }
 0x542   : > { %7435 = vmatmul.mubr.f32.vlgmr.msra.gmra.mxu0 %v17577_v35  ;;  %7482 = vmatpush1.msra.mxu1 %v18101_v25  ;;  %v22673_v35 = vld [vmem:[#allocation19_spill] sm:$0xff] }
 0x543   : > { %7532 = vmatprep.subr.mxu0 %v17866_v8  ;;  %12533 = vmatprep.mubr.msk.f32.mxu0 %vm6458_vm11, %v17599_v51 }
 0x544   : > { %12534 = vmatprep.subr.msk.mxu1 %vm6463_vm10, %v18108_v49  ;;  %7533 = vmatpush1.msra.mxu0 %v17873_v53 }
 0x545   : > { %12535 = vmatpush2.msk.msra.mxu1 %vm6463_vm10, %v18115_v2  ;;  %7534 = vmatprep.subr.mxu0 %v17881_v32 }
 0x546   : > { %7507 = vmatprep.subr.mxu1 %v18122_v24  ;;  %7535 = vmatpush1.msra.mxu0 %v17891_v6 }
 0x547   : > { %7441 = vmatmul.mubr.f32.gmra.mxu0 %v22673_v35  ;;  %7508 = vmatpush2.msra.mxu1 %v18130_v1  ;;  %v22676_v35 = vld [vmem:[#allocation12_spill] sm:$0xff] }
 0x548   : > { %7536 = vmatprep.subr.mxu0 %v17899_v38  ;;  %7509 = vmatprep.subr.mxu1 %v18138_v0 }
 0x549   : > { %7537 = vmatpush1.msra.mxu0 %v17908_v15  ;;  %12540 = vmatprep.mubr.msk.f32.mxu0 %vm6458_vm11, %v22674_v57  ;;  %v22675_v57 = vld [vmem:[#allocation86_spill] sm:$0xff] }
 0x54a   : > { %7510 = vmatpush2.msra.mxu1 %v18145_v40  ;;  %7538 = vmatprep.subr.mxu0 %v17916_v33 }
 0x54b   : > { %7511 = vmatprep.subr.mxu1 %v18152_v50  ;;  %7539 = vmatpush1.msra.mxu0 %v17925_v60 }
 0x54c   : > { %7512 = vmatpush2.msra.mxu1 %v18159_v27  ;;  %7540 = vmatprep.subr.mxu0 %v17933_v14 }
 0x54d   : > { %7513 = vmatprep.subr.mxu1 %v18166_v37  ;;  %7541 = vmatpush1.msra.mxu0 %v17942_v3 }
 0x54e   : > { %7514 = vmatpush2.msra.mxu1 %v18173_v56  ;;  %7542 = vmatprep.subr.mxu0 %v17950_v10 }
 0x54f   : > { %7516 = vmatmul.mubr.f32.vlgmr.msra.gmra.mxu1 %v22675_v57  ;;  %7543 = vmatpush1.msra.mxu0 %v17957_v20  ;;  %v22677_v57 = vld [vmem:[#allocation87_spill] sm:$0xff] }
 0x550   : > { %7613 = vmatprep.subr.mxu1 %v17866_v8  ;;  %12537 = vmatprep.mubr.msk.f32.mxu1 %vm6458_vm11, %v22676_v35 }
 0x551   : > { %7544 = vmatprep.subr.mxu0 %v17964_v45  ;;  %7614 = vmatpush1.msra.mxu1 %v17873_v53 }
 0x552   : > { %7545 = vmatpush1.msra.mxu0 %v17973_v34  ;;  %7615 = vmatprep.subr.mxu1 %v17881_v32 }
 0x553   : > { %7546 = vmatprep.subr.mxu0 %v17980_v43  ;;  %7616 = vmatpush1.msra.mxu1 %v17891_v6 }
 0x554   : > { %7522 = vmatmul.mubr.f32.gmra.mxu1 %v22677_v57  ;;  %7547 = vmatpush1.msra.mxu0 %v17987_v58  ;;  %v22679_v57 = vld [vmem:[#allocation101_spill] sm:$0xff] }
 0x555   : > { %7617 = vmatprep.subr.mxu1 %v17899_v38  ;;  %7548 = vmatprep.subr.mxu0 %v17994_v29 }
 0x556   : > { %7618 = vmatpush1.msra.mxu1 %v17908_v15  ;;  %12544 = vmatprep.mubr.msk.f32.mxu1 %vm6458_vm11, %v17731_v36  ;;  %v22678_v36 = vld [vmem:[#allocation39_spill] sm:$0xff] }
 0x557   : > { %7549 = vmatpush1.msra.mxu0 %v18002_v54  ;;  %7619 = vmatprep.subr.mxu1 %v17916_v33 }
 0x558   : > { %7550 = vmatprep.subr.mxu0 %v18009_v30  ;;  %7620 = vmatpush1.msra.mxu1 %v17925_v60 }
 0x559   : > { %7551 = vmatpush1.msra.mxu0 %v18017_v5  ;;  %7621 = vmatprep.subr.mxu1 %v17933_v14 }
 0x55a   : > { %7552 = vmatprep.subr.mxu0 %v18024_v42  ;;  %7622 = vmatpush1.msra.mxu1 %v17942_v3 }
 0x55b   : > { %7553 = vmatpush1.msra.mxu0 %v18031_v41  ;;  %7623 = vmatprep.subr.mxu1 %v17950_v10 }
 0x55c   : > { %7554 = vmatprep.subr.mxu0 %v18038_v61  ;;  %7624 = vmatpush1.msra.mxu1 %v17957_v20 }
 0x55d   : > { %7555 = vmatpush1.msra.mxu0 %v18045_v46  ;;  %7625 = vmatprep.subr.mxu1 %v17964_v45 }
 0x55e   : > { %7556 = vmatprep.subr.mxu0 %v18052_v7  ;;  %7626 = vmatpush1.msra.mxu1 %v17973_v34 }
 0x55f   : > { %7557 = vmatpush1.msra.mxu0 %v18059_v52  ;;  %7627 = vmatprep.subr.mxu1 %v17980_v43 }
 0x560   : > { %7558 = vmatprep.subr.mxu0 %v18066_v44  ;;  %7628 = vmatpush1.msra.mxu1 %v17987_v58 }
 0x561   : > { %7559 = vmatpush1.msra.mxu0 %v18073_v23  ;;  %7629 = vmatprep.subr.mxu1 %v17994_v29 }
 0x562   : > { %7560 = vmatprep.subr.mxu0 %v18080_v63  ;;  %7630 = vmatpush1.msra.mxu1 %v18002_v54 }
 0x563   : > { %7561 = vmatpush1.msra.mxu0 %v18087_v48  ;;  %7631 = vmatprep.subr.mxu1 %v18009_v30 }
 0x564   : > { %7562 = vmatprep.subr.mxu0 %v18094_v18  ;;  %7632 = vmatpush1.msra.mxu1 %v18017_v5 }
 0x565   : > { %7563 = vmatpush1.msra.mxu0 %v18101_v25  ;;  %7633 = vmatprep.subr.mxu1 %v18024_v42 }
 0x566   : > { %12538 = vmatprep.subr.msk.mxu0 %vm6463_vm10, %v18108_v49  ;;  %7634 = vmatpush1.msra.mxu1 %v18031_v41 }
 0x567   : > { %12539 = vmatpush2.msk.msra.mxu0 %vm6463_vm10, %v18115_v2  ;;  %7635 = vmatprep.subr.mxu1 %v18038_v61 }
 0x568   : > { %7588 = vmatprep.subr.mxu0 %v18122_v24  ;;  %7636 = vmatpush1.msra.mxu1 %v18045_v46 }
 0x569   : > { %7589 = vmatpush2.msra.mxu0 %v18130_v1  ;;  %7637 = vmatprep.subr.mxu1 %v18052_v7 }
 0x56a   : > { %7590 = vmatprep.subr.mxu0 %v18138_v0  ;;  %7638 = vmatpush1.msra.mxu1 %v18059_v52 }
 0x56b   : > { %7591 = vmatpush2.msra.mxu0 %v18145_v40  ;;  %7639 = vmatprep.subr.mxu1 %v18066_v44 }
 0x56c   : > { %7592 = vmatprep.subr.mxu0 %v18152_v50  ;;  %7640 = vmatpush1.msra.mxu1 %v18073_v23 }
 0x56d   : > { %7593 = vmatpush2.msra.mxu0 %v18159_v27  ;;  %7641 = vmatprep.subr.mxu1 %v18080_v63 }
 0x56e   : > { %7594 = vmatprep.subr.mxu0 %v18166_v37  ;;  %7642 = vmatpush1.msra.mxu1 %v18087_v48 }
 0x56f   : > { %7595 = vmatpush2.msra.mxu0 %v18173_v56  ;;  %7643 = vmatprep.subr.mxu1 %v18094_v18 }
 0x570   : > { %7597 = vmatmul.mubr.f32.vlgmr.msra.gmra.mxu0 %v22678_v36  ;;  %7644 = vmatpush1.msra.mxu1 %v18101_v25  ;;  %v22680_v36 = vld [vmem:[#allocation38_spill] sm:$0xff] }
 0x571   : > { %7694 = vmatprep.subr.mxu0 %v17866_v8  ;;  %12541 = vmatprep.mubr.msk.f32.mxu0 %vm6458_vm11, %v22679_v57 }
 0x572   : > { %12542 = vmatprep.subr.msk.mxu1 %vm6463_vm10, %v18108_v49  ;;  %7695 = vmatpush1.msra.mxu0 %v17873_v53 }
 0x573   : > { %12543 = vmatpush2.msk.msra.mxu1 %vm6463_vm10, %v18115_v2  ;;  %7696 = vmatprep.subr.mxu0 %v17881_v32 }
 0x574   : > { %7669 = vmatprep.subr.mxu1 %v18122_v24  ;;  %7697 = vmatpush1.msra.mxu0 %v17891_v6 }
 0x575   : > { %7603 = vmatmul.mubr.f32.gmra.mxu0 %v22680_v36  ;;  %7670 = vmatpush2.msra.mxu1 %v18130_v1 }
 0x576   : > { %7698 = vmatprep.subr.mxu0 %v17899_v38  ;;  %7671 = vmatprep.subr.mxu1 %v18138_v0 }
 0x577   : > { %7699 = vmatpush1.msra.mxu0 %v17908_v15  ;;  %12548 = vmatprep.mubr.msk.f32.mxu0 %vm6458_vm11, %v17811_v59  ;;  %v22681_v59 = vld [vmem:[#allocation102_spill] sm:$0xff] }
 0x578   : > { %7672 = vmatpush2.msra.mxu1 %v18145_v40  ;;  %7700 = vmatprep.subr.mxu0 %v17916_v33 }
 0x579   : > { %7673 = vmatprep.subr.mxu1 %v18152_v50  ;;  %7701 = vmatpush1.msra.mxu0 %v17925_v60 }
 0x57a   : > { %7674 = vmatpush2.msra.mxu1 %v18159_v27  ;;  %7702 = vmatprep.subr.mxu0 %v17933_v14 }
 0x57b   : > { %7675 = vmatprep.subr.mxu1 %v18166_v37  ;;  %7703 = vmatpush1.msra.mxu0 %v17942_v3 }
 0x57c   : > { %7676 = vmatpush2.msra.mxu1 %v18173_v56  ;;  %7704 = vmatprep.subr.mxu0 %v17950_v10 }
 0x57d   : > { %7678 = vmatmul.mubr.f32.vlgmr.msra.gmra.mxu1 %v17716_v13  ;;  %7705 = vmatpush1.msra.mxu0 %v17957_v20 }
 0x57e   : > { %7775 = vmatprep.subr.mxu1 %v17866_v8  ;;  %12545 = vmatprep.mubr.msk.f32.mxu1 %vm6458_vm11, %v22681_v59  ;;  %v18482_v8 = vld [vmem:[%s21942_s3 + $0x398] sm:$0xff] }
 0x57f   : > { %7706 = vmatprep.subr.mxu0 %v17964_v45  ;;  %7776 = vmatpush1.msra.mxu1 %v17873_v53  ;;  %v18489_v53 = vld [vmem:[%s21942_s3 + $0x390] sm:$0xff] }
 0x580   : > { %7707 = vmatpush1.msra.mxu0 %v17973_v34  ;;  %7777 = vmatprep.subr.mxu1 %v17881_v32  ;;  %v18496_v32 = vld [vmem:[%s21942_s3 + $0x388] sm:$0xff] }
 0x581   : > { %7708 = vmatprep.subr.mxu0 %v17980_v43  ;;  %7778 = vmatpush1.msra.mxu1 %v17891_v6  ;;  %v18504_v6 = vld [vmem:[%s21942_s3 + $0x380] sm:$0xff] }
 0x582   : > { %7684 = vmatmul.mubr.f32.gmra.mxu1 %v17743_v28  ;;  %7709 = vmatpush1.msra.mxu0 %v17987_v58 }
 0x583   : > { %7779 = vmatprep.subr.mxu1 %v17899_v38  ;;  %7710 = vmatprep.subr.mxu0 %v17994_v29  ;;  %v22094_v38 = vrot.slane %v17510_v22, 2 }
 0x584   : > { %7780 = vmatpush1.msra.mxu1 %v17908_v15  ;;  %12552 = vmatprep.mubr.msk.f32.mxu1 %vm6458_vm11, %v17853_v21  ;;  %v18516_v15 = vld [vmem:[%s21942_s3 + $0x378] sm:$0xff] }
 0x585   : > { %7711 = vmatpush1.msra.mxu0 %v18002_v54  ;;  %7781 = vmatprep.subr.mxu1 %v17916_v33  ;;  %v18523_v33 = vld [vmem:[%s21942_s3 + $0x370] sm:$0xff] }
 0x586   : > { %7712 = vmatprep.subr.mxu0 %v18009_v30  ;;  %7782 = vmatpush1.msra.mxu1 %v17925_v60  ;;  %v7898_v60 = vrot.slane %v17504_v26, 2  ;;  %v8082_v26 = vrot.slane %v17583_v47, 2 }
 0x587   : > { %7713 = vmatpush1.msra.mxu0 %v18017_v5  ;;  %7783 = vmatprep.subr.mxu1 %v17933_v14  ;;  %v18531_v14 = vld [vmem:[%s21942_s3 + $0x368] sm:$0xff] }
 0x588   : > { %7714 = vmatprep.subr.mxu0 %v18024_v42  ;;  %7784 = vmatpush1.msra.mxu1 %v17942_v3  ;;  %v7900_v3 = vsel %vm2138_vm2, %v7898_v60, %v22094_v38  ;;  %v18748_v60 = vld [vmem:[%s21942_s3 + $0x3d0] sm:$0xff]  ;;  %v7895_v38 = vrot.slane %v17502_v11, 2  ;;  %v22683_v11 = vrot.slane %v17510_v22, 2 }
 0x589   : > { %7715 = vmatpush1.msra.mxu0 %v18031_v41  ;;  %7785 = vmatprep.subr.mxu1 %v17950_v10  ;;  %v18541_v10 = vld [vmem:[%s21942_s3 + $0x360] sm:$0xff] }
 0x58a   : > { %7716 = vmatprep.subr.mxu0 %v18038_v61  ;;  %7786 = vmatpush1.msra.mxu1 %v17957_v20  ;;  %v18548_v20 = vld [vmem:[%s21942_s3 + $0x358] sm:$0xff] }
 0x58b   : > { %7717 = vmatpush1.msra.mxu0 %v18045_v46  ;;  %7787 = vmatprep.subr.mxu1 %v17964_v45  ;;  %v18555_v45 = vld [vmem:[%s21942_s3 + $0x350] sm:$0xff] }
 0x58c   : > { %7718 = vmatprep.subr.mxu0 %v18052_v7  ;;  %7788 = vmatpush1.msra.mxu1 %v17973_v34  ;;  %v18562_v34 = vld [vmem:[%s21942_s3 + $0x348] sm:$0xff] }
 0x58d   : > { %7719 = vmatpush1.msra.mxu0 %v18059_v52  ;;  %7789 = vmatprep.subr.mxu1 %v17980_v43  ;;  %v18569_v43 = vld [vmem:[%s21942_s3 + $0x340] sm:$0xff] }
 0x58e   : > { %7720 = vmatprep.subr.mxu0 %v18066_v44  ;;  %7790 = vmatpush1.msra.mxu1 %v17987_v58  ;;  %v18578_v58 = vld [vmem:[%s21942_s3 + $0x338] sm:$0xff] }
 0x58f   : > { %7721 = vmatpush1.msra.mxu0 %v18073_v23  ;;  %7791 = vmatprep.subr.mxu1 %v17994_v29  ;;  %v18585_v29 = vld [vmem:[%s21942_s3 + $0x330] sm:$0xff] }
 0x590   : > { %7722 = vmatprep.subr.mxu0 %v18080_v63  ;;  %7792 = vmatpush1.msra.mxu1 %v18002_v54  ;;  %v18600_v54 = vld [vmem:[%s21942_s3 + $0x320] sm:$0xff] }
 0x591   : > { %7723 = vmatpush1.msra.mxu0 %v18087_v48  ;;  %7793 = vmatprep.subr.mxu1 %v18009_v30  ;;  %v22093_v30 = vrot.slane %v17531_v9, 2 }
 0x592   : > { %7724 = vmatprep.subr.mxu0 %v18094_v18  ;;  %7794 = vmatpush1.msra.mxu1 %v18017_v5  ;;  %v18608_v5 = vld [vmem:[%s21942_s3 + $0x318] sm:$0xff] }
 0x593   : > { %7725 = vmatpush1.msra.mxu0 %v18101_v25  ;;  %7795 = vmatprep.subr.mxu1 %v18024_v42  ;;  %v7993_v42 = vrot.slane %v17522_v62, 2  ;;  %v7896_v62 = vrot.slane %v17506_v12, 2 }
 0x594   : > { %12546 = vmatprep.subr.msk.mxu0 %vm6463_vm10, %v18108_v49  ;;  %7796 = vmatpush1.msra.mxu1 %v18031_v41  ;;  %v22682_v41 = vld [vmem:[#allocation25_spill] sm:$0xff] }
 0x595   : > { %12547 = vmatpush2.msk.msra.mxu0 %vm6463_vm10, %v18115_v2  ;;  %7797 = vmatprep.subr.mxu1 %v18038_v61  ;;  %v18618_v61 = vld [vmem:[%s21942_s3 + $0x310] sm:$0xff]  ;;  %v7897_v12 = vsel %vm2138_vm2, %v7895_v38, %v7896_v62  ;;  %v22684_v38 = vrot.slane %v17531_v9, 2 }
 0x596   : > { %7750 = vmatprep.subr.mxu0 %v18122_v24  ;;  %7798 = vmatpush1.msra.mxu1 %v18045_v46  ;;  %v7995_v46 = vsel %vm2138_vm2, %v7993_v42, %v22093_v30  ;;  %v18763_v42 = vld [vmem:[%s21942_s3 + $0x3c0] sm:$0xff]  ;;  %v18777_v30 = vld [vmem:[%s21942_s3 + $0x3b0] sm:$0xff] }
 0x597   : > { %7751 = vmatpush2.msra.mxu0 %v18130_v1  ;;  %7799 = vmatprep.subr.mxu1 %v18052_v7  ;;  %v18628_v7 = vld [vmem:[%s21942_s3 + $0x308] sm:$0xff] }
 0x598   : > { %7752 = vmatprep.subr.mxu0 %v18138_v0  ;;  %7800 = vmatpush1.msra.mxu1 %v18059_v52  ;;  %v18635_v52 = vld [vmem:[%s21942_s3 + $0x300] sm:$0xff] }
 0x599   : > { %7753 = vmatpush2.msra.mxu0 %v18145_v40  ;;  %7801 = vmatprep.subr.mxu1 %v18066_v44  ;;  %v18642_v44 = vld [vmem:[%s21942_s3 + $0x2f8] sm:$0xff] }
 0x59a   : > { %7754 = vmatprep.subr.mxu0 %v18152_v50  ;;  %7802 = vmatpush1.msra.mxu1 %v18073_v23  ;;  %v18649_v23 = vld [vmem:[%s21942_s3 + $0x2f0] sm:$0xff] }
 0x59b   : > { %7755 = vmatpush2.msra.mxu0 %v18159_v27  ;;  %7803 = vmatprep.subr.mxu1 %v18080_v63  ;;  %v18656_v63 = vld [vmem:[%s21942_s3 + $0x2e8] sm:$0xff] }
 0x59c   : > { %7756 = vmatprep.subr.mxu0 %v18166_v37  ;;  %7804 = vmatpush1.msra.mxu1 %v18087_v48  ;;  %v18663_v48 = vld [vmem:[%s21942_s3 + $0x2e0] sm:$0xff] }
 0x59d   : > { %7757 = vmatpush2.msra.mxu0 %v18173_v56  ;;  %7805 = vmatprep.subr.mxu1 %v18094_v18  ;;  %v18670_v18 = vld [vmem:[%s21942_s3 + $0x2d8] sm:$0xff] }
 0x59e   : > { %7759 = vmatmul.mubr.f32.vlgmr.msra.gmra.mxu0 %v17801_v17  ;;  %7806 = vmatpush1.msra.mxu1 %v18101_v25  ;;  %v18677_v25 = vld [vmem:[%s21942_s3 + $0x2d0] sm:$0xff] }
 0x59f   : > { %7913 = vmatprep.subr.mxu0 %v18482_v8  ;;  %12549 = vmatprep.mubr.msk.f32.mxu0 %vm6458_vm11, %v17831_v31 }
 0x5a0   : > { %12550 = vmatprep.subr.msk.mxu1 %vm6463_vm10, %v18108_v49  ;;  %7914 = vmatpush1.msra.mxu0 %v18489_v53  ;;  %v18684_v49 = vld [vmem:[%s21942_s3 + $0x2c8] sm:$0xff] }
 0x5a1   : > { %12551 = vmatpush2.msk.msra.mxu1 %vm6463_vm10, %v18115_v2  ;;  %7915 = vmatprep.subr.mxu0 %v18496_v32  ;;  %v18691_v2 = vld [vmem:[%s21942_s3 + $0x2c0] sm:$0xff] }
 0x5a2   : > { %7831 = vmatprep.subr.mxu1 %v18122_v24  ;;  %7916 = vmatpush1.msra.mxu0 %v18504_v6  ;;  %v18698_v24 = vld [vmem:[%s21942_s3 + $0x2b8] sm:$0xff] }
 0x5a3   : > { %7765 = vmatmul.mubr.f32.gmra.mxu0 %v17821_v39  ;;  %7832 = vmatpush2.msra.mxu1 %v18130_v1  ;;  %v18705_v1 = vld [vmem:[%s21942_s3 + $0x2b0] sm:$0xff]  ;;  %v22107_v39 = vrot.slane %v17599_v51, 2 }
 0x5a4   : > { %7917 = vmatprep.subr.mxu0 %v18516_v15  ;;  %7833 = vmatprep.subr.mxu1 %v18138_v0  ;;  %v18712_v0 = vld [vmem:[%s21942_s3 + $0x2a8] sm:$0xff] }
 0x5a5   : > { %7918 = vmatpush1.msra.mxu0 %v18523_v33  ;;  %12598 = vmatprep.mubr.msk.f32.mxu0 %vm6458_vm11, %v7900_v3  ;;  %v18756_v3 = vld [vmem:[%s21942_s3 + $0x3c8] sm:$0xff] }
 0x5a6   : > { %7834 = vmatpush2.msra.mxu1 %v18145_v40  ;;  %7919 = vmatprep.subr.mxu0 %v18531_v14  ;;  %v18719_v40 = vld [vmem:[%s21942_s3 + $0x2a0] sm:$0xff] }
 0x5a7   : > { %7835 = vmatprep.subr.mxu1 %v18152_v50  ;;  %7920 = vmatpush1.msra.mxu0 %v18541_v10  ;;  %v18726_v50 = vld [vmem:[%s21942_s3 + $0x3e8] sm:$0x3] }
 0x5a8   : > { %7836 = vmatpush2.msra.mxu1 %v18159_v27  ;;  %7921 = vmatprep.subr.mxu0 %v18548_v20  ;;  %v18733_v27 = vld [vmem:[%s21942_s3 + $0x3e0] sm:$0x3] }
 0x5a9   : > { %7837 = vmatprep.subr.mxu1 %v18166_v37  ;;  %7922 = vmatpush1.msra.mxu0 %v18555_v45  ;;  %v18740_v37 = vld [vmem:[%s21942_s3 + $0x3d8] sm:$0xff] }
 0x5aa   : > { %7838 = vmatpush2.msra.mxu1 %v18173_v56  ;;  %7923 = vmatprep.subr.mxu0 %v18562_v34  ;;  %v18593_v56 = vld [vmem:[%s21942_s3 + $0x328] sm:$0xff] }
 0x5ab   : > { %7840 = vmatmul.mubr.f32.vlgmr.msra.gmra.mxu1 %v17839_v16  ;;  %7924 = vmatpush1.msra.mxu0 %v18569_v43  ;;  %v18793_v16 = vld [vmem:[%s21942_s3 + $0x3a0] sm:$0xff] }
 0x5ac   : > { %8002 = vmatprep.subr.mxu1 %v18482_v8  ;;  %12553 = vmatprep.mubr.msk.f32.mxu1 %vm6458_vm11, %v17901_v19 }
 0x5ad   : > { %7925 = vmatprep.subr.mxu0 %v18578_v58  ;;  %8003 = vmatpush1.msra.mxu1 %v18489_v53 }
 0x5ae   : > { %7926 = vmatpush1.msra.mxu0 %v18585_v29  ;;  %8004 = vmatprep.subr.mxu1 %v18496_v32 }
 0x5af   : > { %7927 = vmatprep.subr.mxu0 %v18593_v56  ;;  %8005 = vmatpush1.msra.mxu1 %v18504_v6 }
 0x5b0   : > { %7846 = vmatmul.mubr.f32.gmra.mxu1 %v22682_v41  ;;  %7928 = vmatpush1.msra.mxu0 %v18600_v54  ;;  %v18786_v41 = vld [vmem:[%s21942_s3 + $0x3a8] sm:$0xff] }
 0x5b1   : > { %8006 = vmatprep.subr.mxu1 %v18516_v15  ;;  %7929 = vmatprep.subr.mxu0 %v18608_v5 }
 0x5b2   : > { %8007 = vmatpush1.msra.mxu1 %v18523_v33  ;;  %12602 = vmatprep.mubr.msk.f32.mxu1 %vm6458_vm11, %v7995_v46  ;;  %v18770_v46 = vld [vmem:[%s21942_s3 + $0x3b8] sm:$0xff] }
 0x5b3   : > { %7930 = vmatpush1.msra.mxu0 %v18618_v61  ;;  %8008 = vmatprep.subr.mxu1 %v18531_v14 }
 0x5b4   : > { %7931 = vmatprep.subr.mxu0 %v18628_v7  ;;  %8009 = vmatpush1.msra.mxu1 %v18541_v10 }
 0x5b5   : > { %7932 = vmatpush1.msra.mxu0 %v18635_v52  ;;  %8010 = vmatprep.subr.mxu1 %v18548_v20 }
 0x5b6   : > { %7933 = vmatprep.subr.mxu0 %v18642_v44  ;;  %8011 = vmatpush1.msra.mxu1 %v18555_v45 }
 0x5b7   : > { %7934 = vmatpush1.msra.mxu0 %v18649_v23  ;;  %8012 = vmatprep.subr.mxu1 %v18562_v34 }
 0x5b8   : > { %7935 = vmatprep.subr.mxu0 %v18656_v63  ;;  %8013 = vmatpush1.msra.mxu1 %v18569_v43 }
 0x5b9   : > { %7936 = vmatpush1.msra.mxu0 %v18663_v48  ;;  %8014 = vmatprep.subr.mxu1 %v18578_v58 }
 0x5ba   : > { %7937 = vmatprep.subr.mxu0 %v18670_v18  ;;  %8015 = vmatpush1.msra.mxu1 %v18585_v29 }
 0x5bb   : > { %7938 = vmatpush1.msra.mxu0 %v18677_v25  ;;  %8016 = vmatprep.subr.mxu1 %v18593_v56 }
 0x5bc   : > { %7939 = vmatprep.subr.mxu0 %v18684_v49  ;;  %8017 = vmatpush1.msra.mxu1 %v18600_v54 }
 0x5bd   : > { %7940 = vmatpush1.msra.mxu0 %v18691_v2  ;;  %8018 = vmatprep.subr.mxu1 %v18608_v5 }
 0x5be   : > { %7941 = vmatprep.subr.mxu0 %v18698_v24  ;;  %8019 = vmatpush1.msra.mxu1 %v18618_v61 }
 0x5bf   : > { %7942 = vmatpush1.msra.mxu0 %v18705_v1  ;;  %8020 = vmatprep.subr.mxu1 %v18628_v7 }
 0x5c0   : > { %7943 = vmatprep.subr.mxu0 %v18712_v0  ;;  %8021 = vmatpush1.msra.mxu1 %v18635_v52 }
 0x5c1   : > { %7944 = vmatpush1.msra.mxu0 %v18719_v40  ;;  %8022 = vmatprep.subr.mxu1 %v18642_v44 }
 0x5c2   : > { %12596 = vmatprep.subr.msk.mxu0 %vm6463_vm10, %v18726_v50  ;;  %8023 = vmatpush1.msra.mxu1 %v18649_v23 }
 0x5c3   : > { %12597 = vmatpush2.msk.msra.mxu0 %vm6463_vm10, %v18733_v27  ;;  %8024 = vmatprep.subr.mxu1 %v18656_v63 }
 0x5c4   : > { %7969 = vmatprep.subr.mxu0 %v18740_v37  ;;  %8025 = vmatpush1.msra.mxu1 %v18663_v48 }
 0x5c5   : > { %7970 = vmatpush2.msra.mxu0 %v18748_v60  ;;  %8026 = vmatprep.subr.mxu1 %v18670_v18 }
 0x5c6   : > { %7971 = vmatprep.subr.mxu0 %v18756_v3  ;;  %8027 = vmatpush1.msra.mxu1 %v18677_v25 }
 0x5c7   : > { %7972 = vmatpush2.msra.mxu0 %v18763_v42  ;;  %8028 = vmatprep.subr.mxu1 %v18684_v49 }
 0x5c8   : > { %7973 = vmatprep.subr.mxu0 %v18770_v46  ;;  %8029 = vmatpush1.msra.mxu1 %v18691_v2 }
 0x5c9   : > { %7974 = vmatpush2.msra.mxu0 %v18777_v30  ;;  %8030 = vmatprep.subr.mxu1 %v18698_v24 }
 0x5ca   : > { %7975 = vmatprep.subr.mxu0 %v18786_v41  ;;  %8031 = vmatpush1.msra.mxu1 %v18705_v1 }
 0x5cb   : > { %7976 = vmatpush2.msra.mxu0 %v18793_v16  ;;  %8032 = vmatprep.subr.mxu1 %v18712_v0 }
 0x5cc   : > { %7978 = vmatmul.mubr.f32.vlgmr.msra.gmra.mxu0 %v7897_v12  ;;  %8033 = vmatpush1.msra.mxu1 %v18719_v40  ;;  %v7991_v12 = vrot.slane %v17526_v55, 2 }
 0x5cd   : > { %8091 = vmatprep.subr.mxu0 %v18482_v8  ;;  %12599 = vmatprep.mubr.msk.f32.mxu0 %vm6458_vm11, %v22683_v11  ;;  %v8084_v11 = vsel %vm2138_vm2, %v8082_v26, %v22107_v39 }
 0x5ce   : > { %12600 = vmatprep.subr.msk.mxu1 %vm6463_vm10, %v18726_v50  ;;  %8092 = vmatpush1.msra.mxu0 %v18489_v53 }
 0x5cf   : > { %12601 = vmatpush2.msk.msra.mxu1 %vm6463_vm10, %v18733_v27  ;;  %8093 = vmatprep.subr.mxu0 %v18496_v32 }
 0x5d0   : > { %8058 = vmatprep.subr.mxu1 %v18740_v37  ;;  %8094 = vmatpush1.msra.mxu0 %v18504_v6 }
 0x5d1   : > { %7984 = vmatmul.mubr.f32.gmra.mxu0 %v7896_v62  ;;  %8059 = vmatpush2.msra.mxu1 %v18748_v60  ;;  %v7990_v62 = vrot.slane %v17517_v4, 2  ;;  %v22110_v4 = vrot.slane %v22676_v35, 2 }
 0x5d2   : > { %8095 = vmatprep.subr.mxu0 %v18516_v15  ;;  %8060 = vmatprep.subr.mxu1 %v18756_v3 }
 0x5d3   : > { %8096 = vmatpush1.msra.mxu0 %v18523_v33  ;;  %12606 = vmatprep.mubr.msk.f32.mxu0 %vm6458_vm11, %v8084_v11  ;;  %v7992_v26 = vsel %vm2138_vm2, %v7990_v62, %v7991_v12  ;;  %v22685_v11 = vld [vmem:[#allocation18_spill] sm:$0xff] }
 0x5d4   : > { %8061 = vmatpush2.msra.mxu1 %v18763_v42  ;;  %8097 = vmatprep.subr.mxu0 %v18531_v14  ;;  %v8171_v39 = vrot.slane %v22685_v11, 2  ;;  %v22113_v11 = vrot.slane %v22679_v57, 2 }
 0x5d5   : > { %8062 = vmatprep.subr.mxu1 %v18770_v46  ;;  %8098 = vmatpush1.msra.mxu0 %v18541_v10 }
 0x5d6   : > { %8063 = vmatpush2.msra.mxu1 %v18777_v30  ;;  %8099 = vmatprep.subr.mxu0 %v18548_v20  ;;  %v8173_v62 = vsel %vm2138_vm2, %v8171_v39, %v22110_v4  ;;  %v22686_v39 = vld [vmem:[#allocation97_spill] sm:$0xff]  ;;  %v22688_v4 = vrot.slane %v17599_v51, 2 }
 0x5d7   : > { %8064 = vmatprep.subr.mxu1 %v18786_v41  ;;  %8100 = vmatpush1.msra.mxu0 %v18555_v45 }
 0x5d8   : > { %8065 = vmatpush2.msra.mxu1 %v18793_v16  ;;  %8101 = vmatprep.subr.mxu0 %v18562_v34 }
 0x5d9   : > { %8067 = vmatmul.mubr.f32.vlgmr.msra.gmra.mxu1 %v7992_v26  ;;  %8102 = vmatpush1.msra.mxu0 %v18569_v43  ;;  %v22687_v26 = vld [vmem:[#allocation19_spill] sm:$0xff] }
 0x5da   : > { %8180 = vmatprep.subr.mxu1 %v18482_v8  ;;  %12603 = vmatprep.mubr.msk.f32.mxu1 %vm6458_vm11, %v22684_v38  ;;  %v8080_v38 = vrot.slane %v22687_v26, 2  ;;  %v22689_v26 = vld [vmem:[#allocation100_spill] sm:$0xff] }
 0x5db   : > { %8103 = vmatprep.subr.mxu0 %v18578_v58  ;;  %8181 = vmatpush1.msra.mxu1 %v18489_v53 }
 0x5dc   : > { %8104 = vmatpush1.msra.mxu0 %v18585_v29  ;;  %8182 = vmatprep.subr.mxu1 %v18496_v32 }
 0x5dd   : > { %8105 = vmatprep.subr.mxu0 %v18593_v56  ;;  %8183 = vmatpush1.msra.mxu1 %v18504_v6 }
 0x5de   : > { %8073 = vmatmul.mubr.f32.gmra.mxu1 %v7991_v12  ;;  %8106 = vmatpush1.msra.mxu0 %v18600_v54  ;;  %v8079_v12 = vrot.slane %v22686_v39, 2  ;;  %v8260_v39 = vrot.slane %v22689_v26, 2  ;;  %v22691_v26 = vld [vmem:[#allocation87_spill] sm:$0xff] }
 0x5df   : > { %8184 = vmatprep.subr.mxu1 %v18516_v15  ;;  %8107 = vmatprep.subr.mxu0 %v18608_v5  ;;  %v8169_v55 = vrot.slane %v22691_v26, 2  ;;  %v22114_v26 = vrot.slane %v22681_v59, 2 }
 0x5e0   : > { %8185 = vmatpush1.msra.mxu1 %v18523_v33  ;;  %12610 = vmatprep.mubr.msk.f32.mxu1 %vm6458_vm11, %v8173_v62  ;;  %v8081_v62 = vsel %vm2138_vm2, %v8079_v12, %v8080_v38  ;;  %v22690_v12 = vld [vmem:[#allocation86_spill] sm:$0xff] }
 0x5e1   : > { %8108 = vmatpush1.msra.mxu0 %v18618_v61  ;;  %8186 = vmatprep.subr.mxu1 %v18531_v14 }
 0x5e2   : > { %8109 = vmatprep.subr.mxu0 %v18628_v7  ;;  %8187 = vmatpush1.msra.mxu1 %v18541_v10 }
 0x5e3   : > { %8110 = vmatpush1.msra.mxu0 %v18635_v52  ;;  %8188 = vmatprep.subr.mxu1 %v18548_v20 }
 0x5e4   : > { %8111 = vmatprep.subr.mxu0 %v18642_v44  ;;  %8189 = vmatpush1.msra.mxu1 %v18555_v45 }
 0x5e5   : > { %8112 = vmatpush1.msra.mxu0 %v18649_v23  ;;  %8190 = vmatprep.subr.mxu1 %v18562_v34 }
 0x5e6   : > { %8113 = vmatprep.subr.mxu0 %v18656_v63  ;;  %8191 = vmatpush1.msra.mxu1 %v18569_v43 }
 0x5e7   : > { %8114 = vmatpush1.msra.mxu0 %v18663_v48  ;;  %8192 = vmatprep.subr.mxu1 %v18578_v58 }
 0x5e8   : > { %8115 = vmatprep.subr.mxu0 %v18670_v18  ;;  %8193 = vmatpush1.msra.mxu1 %v18585_v29 }
 0x5e9   : > { %8116 = vmatpush1.msra.mxu0 %v18677_v25  ;;  %8194 = vmatprep.subr.mxu1 %v18593_v56 }
 0x5ea   : > { %8117 = vmatprep.subr.mxu0 %v18684_v49  ;;  %8195 = vmatpush1.msra.mxu1 %v18600_v54 }
 0x5eb   : > { %8118 = vmatpush1.msra.mxu0 %v18691_v2  ;;  %8196 = vmatprep.subr.mxu1 %v18608_v5 }
 0x5ec   : > { %8119 = vmatprep.subr.mxu0 %v18698_v24  ;;  %8197 = vmatpush1.msra.mxu1 %v18618_v61 }
 0x5ed   : > { %8120 = vmatpush1.msra.mxu0 %v18705_v1  ;;  %8198 = vmatprep.subr.mxu1 %v18628_v7 }
 0x5ee   : > { %8121 = vmatprep.subr.mxu0 %v18712_v0  ;;  %8199 = vmatpush1.msra.mxu1 %v18635_v52 }
 0x5ef   : > { %8122 = vmatpush1.msra.mxu0 %v18719_v40  ;;  %8200 = vmatprep.subr.mxu1 %v18642_v44 }
 0x5f0   : > { %12604 = vmatprep.subr.msk.mxu0 %vm6463_vm10, %v18726_v50  ;;  %8201 = vmatpush1.msra.mxu1 %v18649_v23 }
 0x5f1   : > { %12605 = vmatpush2.msk.msra.mxu0 %vm6463_vm10, %v18733_v27  ;;  %8202 = vmatprep.subr.mxu1 %v18656_v63 }
 0x5f2   : > { %8147 = vmatprep.subr.mxu0 %v18740_v37  ;;  %8203 = vmatpush1.msra.mxu1 %v18663_v48 }
 0x5f3   : > { %8148 = vmatpush2.msra.mxu0 %v18748_v60  ;;  %8204 = vmatprep.subr.mxu1 %v18670_v18 }
 0x5f4   : > { %8149 = vmatprep.subr.mxu0 %v18756_v3  ;;  %8205 = vmatpush1.msra.mxu1 %v18677_v25 }
 0x5f5   : > { %8150 = vmatpush2.msra.mxu0 %v18763_v42  ;;  %8206 = vmatprep.subr.mxu1 %v18684_v49 }
 0x5f6   : > { %8151 = vmatprep.subr.mxu0 %v18770_v46  ;;  %8207 = vmatpush1.msra.mxu1 %v18691_v2 }
 0x5f7   : > { %8152 = vmatpush2.msra.mxu0 %v18777_v30  ;;  %8208 = vmatprep.subr.mxu1 %v18698_v24 }
 0x5f8   : > { %8153 = vmatprep.subr.mxu0 %v18786_v41  ;;  %8209 = vmatpush1.msra.mxu1 %v18705_v1 }
 0x5f9   : > { %8154 = vmatpush2.msra.mxu0 %v18793_v16  ;;  %8210 = vmatprep.subr.mxu1 %v18712_v0 }
 0x5fa   : > { %8156 = vmatmul.mubr.f32.vlgmr.msra.gmra.mxu0 %v8081_v62  ;;  %8211 = vmatpush1.msra.mxu1 %v18719_v40  ;;  %v8168_v62 = vrot.slane %v22690_v12, 2 }
 0x5fb   : > { %8269 = vmatprep.subr.mxu0 %v18482_v8  ;;  %12607 = vmatprep.mubr.msk.f32.mxu0 %vm6458_vm11, %v22688_v4  ;;  %v8262_v4 = vsel %vm2138_vm2, %v8260_v39, %v22113_v11 }
 0x5fc   : > { %12608 = vmatprep.subr.msk.mxu1 %vm6463_vm10, %v18726_v50  ;;  %8270 = vmatpush1.msra.mxu0 %v18489_v53  ;;  %v8170_v39 = vsel %vm2138_vm2, %v8168_v62, %v8169_v55 }
 0x5fd   : > { %12609 = vmatpush2.msk.msra.mxu1 %vm6463_vm10, %v18733_v27  ;;  %8271 = vmatprep.subr.mxu0 %v18496_v32 }
 0x5fe   : > { %8236 = vmatprep.subr.mxu1 %v18740_v37  ;;  %8272 = vmatpush1.msra.mxu0 %v18504_v6 }
 0x5ff   : > { %8162 = vmatmul.mubr.f32.gmra.mxu0 %v8080_v38  ;;  %8237 = vmatpush2.msra.mxu1 %v18748_v60  ;;  %v22692_v38 = vrot.slane %v22676_v35, 2 }
 0x600   : > { %8273 = vmatprep.subr.mxu0 %v18516_v15  ;;  %8238 = vmatprep.subr.mxu1 %v18756_v3 }
 0x601   : > { %8274 = vmatpush1.msra.mxu0 %v18523_v33  ;;  %12614 = vmatprep.mubr.msk.f32.mxu0 %vm6458_vm11, %v8262_v4  ;;  %v22693_v4 = vld [vmem:[#allocation20_spill] sm:$0xff] }
 0x602   : > { %8239 = vmatpush2.msra.mxu1 %v18763_v42  ;;  %8275 = vmatprep.subr.mxu0 %v18531_v14  ;;  %v8349_v11 = vrot.slane %v22693_v4, 2 }
 0x603   : > { %8240 = vmatprep.subr.mxu1 %v18770_v46  ;;  %8276 = vmatpush1.msra.mxu0 %v18541_v10 }
 0x604   : > { %8241 = vmatpush2.msra.mxu1 %v18777_v30  ;;  %8277 = vmatprep.subr.mxu0 %v18548_v20  ;;  %v8351_v62 = vsel %vm2138_vm2, %v8349_v11, %v22114_v26  ;;  %v22696_v26 = vld [vmem:[#allocation103_spill] sm:$0xff] }
 0x605   : > { %8242 = vmatprep.subr.mxu1 %v18786_v41  ;;  %8278 = vmatpush1.msra.mxu0 %v18555_v45 }
 0x606   : > { %8243 = vmatpush2.msra.mxu1 %v18793_v16  ;;  %8279 = vmatprep.subr.mxu0 %v18562_v34 }
 0x607   : > { %8245 = vmatmul.mubr.f32.vlgmr.msra.gmra.mxu1 %v8170_v39  ;;  %8280 = vmatpush1.msra.mxu0 %v18569_v43  ;;  %v8258_v39 = vrot.slane %v22680_v36, 2  ;;  %v8438_v36 = vrot.slane %v22696_v26, 2 }
 0x608   : > { %8358 = vmatprep.subr.mxu1 %v18482_v8  ;;  %12611 = vmatprep.mubr.msk.f32.mxu1 %vm6458_vm11, %v22692_v38 }
 0x609   : > { %8281 = vmatprep.subr.mxu0 %v18578_v58  ;;  %8359 = vmatpush1.msra.mxu1 %v18489_v53 }
 0x60a   : > { %8282 = vmatpush1.msra.mxu0 %v18585_v29  ;;  %8360 = vmatprep.subr.mxu1 %v18496_v32 }
 0x60b   : > { %8283 = vmatprep.subr.mxu0 %v18593_v56  ;;  %8361 = vmatpush1.msra.mxu1 %v18504_v6 }
 0x60c   : > { %8251 = vmatmul.mubr.f32.gmra.mxu1 %v8169_v55  ;;  %8284 = vmatpush1.msra.mxu0 %v18600_v54  ;;  %v22694_v55 = vld [vmem:[#allocation39_spill] sm:$0xff] }
 0x60d   : > { %8362 = vmatprep.subr.mxu1 %v18516_v15  ;;  %8285 = vmatprep.subr.mxu0 %v18608_v5  ;;  %v8257_v11 = vrot.slane %v22694_v55, 2  ;;  %v22116_v55 = vrot.slane %v17831_v31, 2 }
 0x60e   : > { %8363 = vmatpush1.msra.mxu1 %v18523_v33  ;;  %12618 = vmatprep.mubr.msk.f32.mxu1 %vm6458_vm11, %v8351_v62  ;;  %v22695_v62 = vrot.slane %v22679_v57, 2 }
 0x60f   : > { %8286 = vmatpush1.msra.mxu0 %v18618_v61  ;;  %8364 = vmatprep.subr.mxu1 %v18531_v14  ;;  %v8259_v38 = vsel %vm2138_vm2, %v8257_v11, %v8258_v39  ;;  %v8440_v11 = vsel %vm2138_vm2, %v8438_v36, %v22116_v55  ;;  %v8528_v55 = vrot.slane %v17901_v19, 2  ;;  %v19480_v19 = vld [vmem:[%s21942_s3 + $0x518] sm:$0xff] }
 0x610   : > { %8287 = vmatprep.subr.mxu0 %v18628_v7  ;;  %8365 = vmatpush1.msra.mxu1 %v18541_v10 }
 0x611   : > { %8288 = vmatpush1.msra.mxu0 %v18635_v52  ;;  %8366 = vmatprep.subr.mxu1 %v18548_v20 }
 0x612   : > { %8289 = vmatprep.subr.mxu0 %v18642_v44  ;;  %8367 = vmatpush1.msra.mxu1 %v18555_v45 }
 0x613   : > { %8290 = vmatpush1.msra.mxu0 %v18649_v23  ;;  %8368 = vmatprep.subr.mxu1 %v18562_v34 }
 0x614   : > { %8291 = vmatprep.subr.mxu0 %v18656_v63  ;;  %8369 = vmatpush1.msra.mxu1 %v18569_v43 }
 0x615   : > { %8292 = vmatpush1.msra.mxu0 %v18663_v48  ;;  %8370 = vmatprep.subr.mxu1 %v18578_v58 }
 0x616   : > { %8293 = vmatprep.subr.mxu0 %v18670_v18  ;;  %8371 = vmatpush1.msra.mxu1 %v18585_v29 }
 0x617   : > { %8294 = vmatpush1.msra.mxu0 %v18677_v25  ;;  %8372 = vmatprep.subr.mxu1 %v18593_v56 }
 0x618   : > { %8295 = vmatprep.subr.mxu0 %v18684_v49  ;;  %8373 = vmatpush1.msra.mxu1 %v18600_v54 }
 0x619   : > { %8296 = vmatpush1.msra.mxu0 %v18691_v2  ;;  %8374 = vmatprep.subr.mxu1 %v18608_v5 }
 0x61a   : > { %8297 = vmatprep.subr.mxu0 %v18698_v24  ;;  %8375 = vmatpush1.msra.mxu1 %v18618_v61 }
 0x61b   : > { %8298 = vmatpush1.msra.mxu0 %v18705_v1  ;;  %8376 = vmatprep.subr.mxu1 %v18628_v7 }
 0x61c   : > { %8299 = vmatprep.subr.mxu0 %v18712_v0  ;;  %8377 = vmatpush1.msra.mxu1 %v18635_v52 }
 0x61d   : > { %8300 = vmatpush1.msra.mxu0 %v18719_v40  ;;  %8378 = vmatprep.subr.mxu1 %v18642_v44 }
 0x61e   : > { %12612 = vmatprep.subr.msk.mxu0 %vm6463_vm10, %v18726_v50  ;;  %8379 = vmatpush1.msra.mxu1 %v18649_v23 }
 0x61f   : > { %12613 = vmatpush2.msk.msra.mxu0 %vm6463_vm10, %v18733_v27  ;;  %8380 = vmatprep.subr.mxu1 %v18656_v63 }
 0x620   : > { %8325 = vmatprep.subr.mxu0 %v18740_v37  ;;  %8381 = vmatpush1.msra.mxu1 %v18663_v48 }
 0x621   : > { %8326 = vmatpush2.msra.mxu0 %v18748_v60  ;;  %8382 = vmatprep.subr.mxu1 %v18670_v18 }
 0x622   : > { %8327 = vmatprep.subr.mxu0 %v18756_v3  ;;  %8383 = vmatpush1.msra.mxu1 %v18677_v25 }
 0x623   : > { %8328 = vmatpush2.msra.mxu0 %v18763_v42  ;;  %8384 = vmatprep.subr.mxu1 %v18684_v49 }
 0x624   : > { %8329 = vmatprep.subr.mxu0 %v18770_v46  ;;  %8385 = vmatpush1.msra.mxu1 %v18691_v2 }
 0x625   : > { %8330 = vmatpush2.msra.mxu0 %v18777_v30  ;;  %8386 = vmatprep.subr.mxu1 %v18698_v24 }
 0x626   : > { %8331 = vmatprep.subr.mxu0 %v18786_v41  ;;  %8387 = vmatpush1.msra.mxu1 %v18705_v1 }
 0x627   : > { %8332 = vmatpush2.msra.mxu0 %v18793_v16  ;;  %8388 = vmatprep.subr.mxu1 %v18712_v0 }
 0x628   : > { %8334 = vmatmul.mubr.f32.vlgmr.msra.gmra.mxu0 %v8259_v38  ;;  %8389 = vmatpush1.msra.mxu1 %v18719_v40  ;;  %v8346_v38 = vrot.slane %v17716_v13, 2 }
 0x629   : > { %8447 = vmatprep.subr.mxu0 %v18482_v8  ;;  %12615 = vmatprep.mubr.msk.f32.mxu0 %vm6458_vm11, %v22695_v62  ;;  %v8347_v62 = vrot.slane %v17743_v28, 2  ;;  %v22737_v28 = vld [vmem:[#allocation73_spill] sm:$0xff] }
 0x62a   : > { %12616 = vmatprep.subr.msk.mxu1 %vm6463_vm10, %v18726_v50  ;;  %8448 = vmatpush1.msra.mxu0 %v18489_v53  ;;  %v8689_v13 = vrot.slane %v22737_v28, 3  ;;  %v19523_v28 = vld [vmem:[%s21942_s3 + $0x4f0] sm:$0xff] }
 0x62b   : > { %12617 = vmatpush2.msk.msra.mxu1 %vm6463_vm10, %v18733_v27  ;;  %8449 = vmatprep.subr.mxu0 %v18496_v32  ;;  %v8348_v36 = vsel %vm2138_vm2, %v8346_v38, %v8347_v62  ;;  %v22714_v38 = vld [vmem:[#allocation25_spill] sm:$0xff] }
 0x62c   : > { %8414 = vmatprep.subr.mxu1 %v18740_v37  ;;  %8450 = vmatpush1.msra.mxu0 %v18504_v6 }
 0x62d   : > { %8340 = vmatmul.mubr.f32.gmra.mxu0 %v8258_v39  ;;  %8415 = vmatpush2.msra.mxu1 %v18748_v60  ;;  %v22697_v39 = vrot.slane %v22681_v59, 2 }
 0x62e   : > { %8451 = vmatprep.subr.mxu0 %v18516_v15  ;;  %8416 = vmatprep.subr.mxu1 %v18756_v3 }
 0x62f   : > { %8452 = vmatpush1.msra.mxu0 %v18523_v33  ;;  %12622 = vmatprep.mubr.msk.f32.mxu0 %vm6458_vm11, %v8440_v11  ;;  %v8527_v11 = vrot.slane %v17853_v21, 2 }
 0x630   : > { %8417 = vmatpush2.msra.mxu1 %v18763_v42  ;;  %8453 = vmatprep.subr.mxu0 %v18531_v14 }
 0x631   : > { %8418 = vmatprep.subr.mxu1 %v18770_v46  ;;  %8454 = vmatpush1.msra.mxu0 %v18541_v10 }
 0x632   : > { %8419 = vmatpush2.msra.mxu1 %v18777_v30  ;;  %8455 = vmatprep.subr.mxu0 %v18548_v20 }
 0x633   : > { %8420 = vmatprep.subr.mxu1 %v18786_v41  ;;  %8456 = vmatpush1.msra.mxu0 %v18555_v45 }
 0x634   : > { %8421 = vmatpush2.msra.mxu1 %v18793_v16  ;;  %8457 = vmatprep.subr.mxu0 %v18562_v34 }
 0x635   : > { %8423 = vmatmul.mubr.f32.vlgmr.msra.gmra.mxu1 %v8348_v36  ;;  %8458 = vmatpush1.msra.mxu0 %v18569_v43  ;;  %v19245_v36 = vld [vmem:[%s21942_s3 + $0x4a0] sm:$0xff] }
 0x636   : > { %8536 = vmatprep.subr.mxu1 %v18482_v8  ;;  %12619 = vmatprep.mubr.msk.f32.mxu1 %vm6458_vm11, %v22697_v39  ;;  %v8529_v8 = vsel %vm2138_vm2, %v8527_v11, %v8528_v55  ;;  %v19254_v11 = vld [vmem:[%s21942_s3 + $0x498] sm:$0xff] }
 0x637   : > { %8459 = vmatprep.subr.mxu0 %v18578_v58  ;;  %8537 = vmatpush1.msra.mxu1 %v18489_v53  ;;  %v19081_v53 = vpop.f32.mrf.mxu0 }
 0x638   : > { %8460 = vmatpush1.msra.mxu0 %v18585_v29  ;;  %8538 = vmatprep.subr.mxu1 %v18496_v32  ;;  %22698 = vst [vmem:[#allocation106_spill] sm:$0xff] %v19081_v53  ;;  %v19380_v53 = vld [vmem:[%s21942_s3 + $0x428] sm:$0xff] }
 0x639   : > { %8461 = vmatprep.subr.mxu0 %v18593_v56  ;;  %8539 = vmatpush1.msra.mxu1 %v18504_v6  ;;  %v19091_v32 = vpop.f32.mrf.mxu0 }
 0x63a   : > { %8429 = vmatmul.mubr.f32.gmra.mxu1 %v8347_v62  ;;  %8462 = vmatpush1.msra.mxu0 %v18600_v54  ;;  %22699 = vst [vmem:[#allocation92_spill] sm:$0xff] %v19091_v32  ;;  %v8525_v62 = vrot.slane %v22714_v38, 2  ;;  %v19373_v32 = vld [vmem:[%s21942_s3 + $0x430] sm:$0xff] }
 0x63b   : > { %8540 = vmatprep.subr.mxu1 %v18516_v15  ;;  %8463 = vmatprep.subr.mxu0 %v18608_v5  ;;  %v19101_v6 = vpop.f32.mrf.mxu0 }
 0x63c   : > { %8541 = vmatpush1.msra.mxu1 %v18523_v33  ;;  %12626 = vmatprep.mubr.msk.f32.mxu1 %vm6458_vm11, %v8529_v8  ;;  %22700 = vst [vmem:[#allocation35_spill] sm:$0xff] %v19101_v6  ;;  %v19115_v33 = vpop.f32.mrf.mxu1 }
 0x63d   : > { %8464 = vmatpush1.msra.mxu0 %v18618_v61  ;;  %8542 = vmatprep.subr.mxu1 %v18531_v14  ;;  %v19111_v15 = vpop.f32.mrf.mxu0  ;;  %22702 = vst [vmem:[#allocation104_spill] sm:$0xff] %v19115_v33  ;;  %v19341_v33 = vld [vmem:[%s21942_s3 + $0x450] sm:$0xff] }
 0x63e   : > { %8465 = vmatprep.subr.mxu0 %v18628_v7  ;;  %8543 = vmatpush1.msra.mxu1 %v18541_v10  ;;  %22701 = vst [vmem:[#allocation98_spill] sm:$0xff] %v19111_v15  ;;  %v19128_v10 = vpop.f32.mrf.mxu1  ;;  %v19364_v15 = vld [vmem:[%s21942_s3 + $0x438] sm:$0xff] }
 0x63f   : > { %8466 = vmatpush1.msra.mxu0 %v18635_v52  ;;  %8544 = vmatprep.subr.mxu1 %v18548_v20  ;;  %v19119_v14 = vpop.f32.mrf.mxu0  ;;  %22703 = vst [vmem:[#allocation77_spill] sm:$0xff] %v19128_v10 }
 0x640   : > { %8467 = vmatprep.subr.mxu0 %v18642_v44  ;;  %8545 = vmatpush1.msra.mxu1 %v18555_v45  ;;  %v8435_v45 = vrot.slane %v17801_v17, 2 }
 0x641   : > { %8468 = vmatpush1.msra.mxu0 %v18649_v23  ;;  %8546 = vmatprep.subr.mxu1 %v18562_v34  ;;  %v19133_v20 = vpop.f32.mrf.mxu0  ;;  %v22704_v34 = vld [vmem:[#allocation89_spill] sm:$0xff] }
 0x642   : > { %8469 = vmatprep.subr.mxu0 %v18656_v63  ;;  %8547 = vmatpush1.msra.mxu1 %v18569_v43  ;;  %v8436_v43 = vrot.slane %v22704_v34, 2  ;;  %v19423_v34 = vld [vmem:[%s21942_s3 + $0x400] sm:$0xff] }
 0x643   : > { %8470 = vmatpush1.msra.mxu0 %v18663_v48  ;;  %8548 = vmatprep.subr.mxu1 %v18578_v58  ;;  %v19143_v58 = vpop.f32.mrf.mxu1 }
 0x644   : > { %8471 = vmatprep.subr.mxu0 %v18670_v18  ;;  %8549 = vmatpush1.msra.mxu1 %v18585_v29  ;;  %22705 = vst [vmem:[#allocation34_spill] sm:$0xff] %v19143_v58  ;;  %v19147_v29 = vpop.f32.mrf.mxu0 }
 0x645   : > { %8472 = vmatpush1.msra.mxu0 %v18677_v25  ;;  %8550 = vmatprep.subr.mxu1 %v18593_v56  ;;  %v19158_v56 = vld [vmem:[%s21942_s3 + $0x4e8] sm:$0xff] }
 0x646   : > { %8473 = vmatprep.subr.mxu0 %v18684_v49  ;;  %8551 = vmatpush1.msra.mxu1 %v18600_v54  ;;  %v19160_v54 = vpop.f32.mrf.mxu1 }
 0x647   : > { %8474 = vmatpush1.msra.mxu0 %v18691_v2  ;;  %8552 = vmatprep.subr.mxu1 %v18608_v5  ;;  %22706 = vst [vmem:[#allocation99_spill] sm:$0xff] %v19160_v54  ;;  %v8437_v5 = vsel %vm2138_vm2, %v8435_v45, %v8436_v43  ;;  %v22723_v54 = vrot.slane %v17531_v9, 3 }
 0x648   : > { %8475 = vmatprep.subr.mxu0 %v18698_v24  ;;  %8553 = vmatpush1.msra.mxu1 %v18618_v61  ;;  %v19168_v61 = vld [vmem:[%s21942_s3 + $0x4e0] sm:$0xff] }
 0x649   : > { %8476 = vmatpush1.msra.mxu0 %v18705_v1  ;;  %8554 = vmatprep.subr.mxu1 %v18628_v7  ;;  %v19170_v7 = vpop.f32.mrf.mxu0 }
 0x64a   : > { %8477 = vmatprep.subr.mxu0 %v18712_v0  ;;  %8555 = vmatpush1.msra.mxu1 %v18635_v52  ;;  %v19176_v52 = vld [vmem:[%s21942_s3 + $0x4d8] sm:$0xff] }
 0x64b   : > { %8478 = vmatpush1.msra.mxu0 %v18719_v40  ;;  %8556 = vmatprep.subr.mxu1 %v18642_v44  ;;  %v19178_v44 = vpop.f32.mrf.mxu1 }
 0x64c   : > { %12620 = vmatprep.subr.msk.mxu0 %vm6463_vm10, %v18726_v50  ;;  %8557 = vmatpush1.msra.mxu1 %v18649_v23  ;;  %22707 = vst [vmem:[#allocation45_spill] sm:$0xff] %v19178_v44  ;;  %v22708_v23 = vrot.slane %v17831_v31, 2  ;;  %v19514_v31 = vld [vmem:[%s21942_s3 + $0x4f8] sm:$0xff] }
 0x64d   : > { %12621 = vmatpush2.msk.msra.mxu0 %vm6463_vm10, %v18733_v27  ;;  %8558 = vmatprep.subr.mxu1 %v18656_v63  ;;  %v19187_v63 = vld [vmem:[%s21942_s3 + $0x4d0] sm:$0xff] }
 0x64e   : > { %8503 = vmatprep.subr.mxu0 %v18740_v37  ;;  %8559 = vmatpush1.msra.mxu1 %v18663_v48  ;;  %v19189_v48 = vpop.f32.mrf.mxu0 }
 0x64f   : > { %8504 = vmatpush2.msra.mxu0 %v18748_v60  ;;  %8560 = vmatprep.subr.mxu1 %v18670_v18  ;;  %22709 = vst [vmem:[#allocation49_spill] sm:$0xff] %v19189_v48  ;;  %v22117_v18 = vrot.slane %v17510_v22, 3 }
 0x650   : > { %8505 = vmatprep.subr.mxu0 %v18756_v3  ;;  %8561 = vmatpush1.msra.mxu1 %v18677_v25  ;;  %v19201_v25 = vld [vmem:[%s21942_s3 + $0x4c8] sm:$0xff] }
 0x651   : > { %8506 = vmatpush2.msra.mxu0 %v18763_v42  ;;  %8562 = vmatprep.subr.mxu1 %v18684_v49  ;;  %v19208_v49 = vld [vmem:[%s21942_s3 + $0x4c0] sm:$0xff] }
 0x652   : > { %8507 = vmatprep.subr.mxu0 %v18770_v46  ;;  %8563 = vmatpush1.msra.mxu1 %v18691_v2  ;;  %v22710_v2 = vld [vmem:[#allocation95_spill] sm:$0xff] }
 0x653   : > { %8508 = vmatpush2.msra.mxu0 %v18777_v30  ;;  %8564 = vmatprep.subr.mxu1 %v18698_v24  ;;  %v8691_v24 = vrot.slane %v22710_v2, 3  ;;  %v19414_v2 = vld [vmem:[%s21942_s3 + $0x408] sm:$0xff] }
 0x654   : > { %8509 = vmatprep.subr.mxu0 %v18786_v41  ;;  %8565 = vmatpush1.msra.mxu1 %v18705_v1  ;;  %v19211_v1 = vpop.f32.mrf.mxu1 }
 0x655   : > { %8510 = vmatpush2.msra.mxu0 %v18793_v16  ;;  %8566 = vmatprep.subr.mxu1 %v18712_v0  ;;  %22711 = vst [vmem:[#allocation21_spill] sm:$0xff] %v19211_v1  ;;  %v19217_v0 = vld [vmem:[%s21942_s3 + $0x4b8] sm:$0xff] }
 0x656   : > { %8512 = vmatmul.mubr.f32.vlgmr.msra.gmra.mxu0 %v8437_v5  ;;  %8567 = vmatpush1.msra.mxu1 %v18719_v40  ;;  %v19219_v40 = vpop.f32.mrf.mxu0  ;;  %v19247_v39 = vpop.f32.mrf.mxu1 }
 0x657   : > { %8706 = vmatprep.subr.mxu0 %v19158_v56  ;;  %12623 = vmatprep.mubr.msk.f32.mxu0 %vm6458_vm11, %v22708_v23  ;;  %22712 = vst [vmem:[#allocation44_spill] sm:$0xff] %v19219_v40  ;;  %22715 = vst [vmem:[#allocation41_spill] sm:$0xff] %v19247_v39  ;;  %v19301_v23 = vld [vmem:[%s21942_s3 + $0x470] sm:$0xff] }
 0x658   : > { %12624 = vmatprep.subr.msk.mxu1 %vm6463_vm10, %v18726_v50  ;;  %8707 = vmatpush1.msra.mxu0 %v19168_v61  ;;  %v8693_v50 = vsel %vm3060_vm3, %v8691_v24, %v22117_v18  ;;  %v19256_v8 = vpop.f32.mrf.mxu0  ;;  %v19275_v45 = vpop.f32.mrf.mxu1  ;;  %v19320_v18 = vld [vmem:[%s21942_s3 + $0x460] sm:$0xff] }
 0x659   : > { %12625 = vmatpush2.msk.msra.mxu1 %vm6463_vm10, %v18733_v27  ;;  %8708 = vmatprep.subr.mxu0 %v19176_v52  ;;  %v19229_v27 = vld [vmem:[%s21942_s3 + $0x4b0] sm:$0xff]  ;;  %22716 = vst [vmem:[#allocation54_spill] sm:$0xff] %v19256_v8  ;;  %22717 = vst [vmem:[#allocation109_spill] sm:$0xff] %v19275_v45  ;;  %v22736_v8 = vld [vmem:[#allocation26_spill] sm:$0xff]  ;;  %v22742_v45 = vrot.slane %v17510_v22, 3 }
 0x65a   : > { %8592 = vmatprep.subr.mxu1 %v18740_v37  ;;  %8709 = vmatpush1.msra.mxu0 %v19187_v63  ;;  %v19236_v37 = vld [vmem:[%s21942_s3 + $0x4a8] sm:$0xff]  ;;  %v19294_v5 = vpop.f32.mrf.mxu1  ;;  %v8688_v40 = vrot.slane %v22736_v8, 3  ;;  %v22744_v22 = vld [vmem:[#allocation85_spill] sm:$0xff] }
 0x65b   : > { %8518 = vmatmul.mubr.f32.gmra.mxu0 %v8436_v43  ;;  %8593 = vmatpush2.msra.mxu1 %v18748_v60  ;;  %v22713_v60 = vld [vmem:[#allocation47_spill] sm:$0xff]  ;;  %v19292_v43 = vld [vmem:[%s21942_s3 + $0x478] sm:$0xff]  ;;  %22719 = vst [vmem:[#allocation110_spill] sm:$0xff] %v19294_v5  ;;  %v8784_v1 = vrot.slane %v22744_v22, 3 }
 0x65c   : > { %8710 = vmatprep.subr.mxu0 %v19201_v25  ;;  %8594 = vmatprep.subr.mxu1 %v18756_v3  ;;  %v8524_v3 = vrot.slane %v22713_v60, 2  ;;  %v19322_v24 = vpop.f32.mrf.mxu1  ;;  %v19405_v60 = vld [vmem:[%s21942_s3 + $0x410] sm:$0xff]  ;;  %v22750_v22 = vld [vmem:[#allocation18_spill] sm:$0xff] }
 0x65d   : > { %8711 = vmatpush1.msra.mxu0 %v19208_v49  ;;  %12672 = vmatprep.mubr.msk.f32.mxu0 %vm6458_vm11, %v8693_v50  ;;  %22722 = vst [vmem:[#allocation40_spill] sm:$0xff] %v19322_v24  ;;  %v19455_v24 = vld [vmem:[%s21942_s3 + $0x530] sm:$0x3] }
 0x65e   : > { %8595 = vmatpush2.msra.mxu1 %v18763_v42  ;;  %8712 = vmatprep.subr.mxu0 %v19217_v0  ;;  %v19263_v42 = vld [vmem:[%s21942_s3 + $0x490] sm:$0xff] }
 0x65f   : > { %8596 = vmatprep.subr.mxu1 %v18770_v46  ;;  %8713 = vmatpush1.msra.mxu0 %v19229_v27  ;;  %v8526_v46 = vsel %vm2138_vm2, %v8524_v3, %v8525_v62  ;;  %v22721_v3 = vld [vmem:[#allocation96_spill] sm:$0xff]  ;;  %vm11311_vm2 = vcmask 1044484  }
 0x660   : > { %8597 = vmatpush2.msra.mxu1 %v18777_v30  ;;  %8714 = vmatprep.subr.mxu0 %v19236_v37  ;;  %v19273_v30 = vld [vmem:[%s21942_s3 + $0x488] sm:$0xff] }
 0x661   : > { %8598 = vmatprep.subr.mxu1 %v18786_v41  ;;  %8715 = vmatpush1.msra.mxu0 %v19245_v36  ;;  %v19281_v41 = vld [vmem:[%s21942_s3 + $0x480] sm:$0xff] }
 0x662   : > { %8599 = vmatpush2.msra.mxu1 %v18793_v16  ;;  %8716 = vmatprep.subr.mxu0 %v19254_v11  ;;  %v19283_v16 = vpop.f32.mrf.mxu0 }
 0x663   : > { %8601 = vmatmul.mubr.f32.vlgmr.msra.gmra.mxu1 %v8526_v46  ;;  %8717 = vmatpush1.msra.mxu0 %v19263_v42  ;;  %22718 = vst [vmem:[#allocation55_spill] sm:$0xff] %v19283_v16  ;;  %v8786_v46 = vrot.slane %v22721_v3, 3  ;;  %v19387_v3 = vld [vmem:[%s21942_s3 + $0x420] sm:$0xff]  ;;  %v19496_v16 = vld [vmem:[%s21942_s3 + $0x508] sm:$0xff] }
 0x664   : > { %8795 = vmatprep.subr.mxu1 %v19158_v56  ;;  %12627 = vmatprep.mubr.msk.f32.mxu1 %vm6458_vm11, %v8528_v55  ;;  %v19304_v50 = vpop.f32.mrf.mxu0  ;;  %v19311_v55 = vld [vmem:[%s21942_s3 + $0x468] sm:$0xff] }
 0x665   : > { %8718 = vmatprep.subr.mxu0 %v19273_v30  ;;  %8796 = vmatpush1.msra.mxu1 %v19168_v61  ;;  %22720 = vst [vmem:[#allocation29_spill] sm:$0xff] %v19304_v50  ;;  %v8788_v58 = vsel %vm3060_vm3, %v8786_v46, %v22723_v54  ;;  %v19348_v54 = vld [vmem:[%s21942_s3 + $0x448] sm:$0xff]  ;;  %v19357_v46 = vpop.f32.mrf.mxu1 }
 0x666   : > { %8719 = vmatpush1.msra.mxu0 %v19281_v41  ;;  %8797 = vmatprep.subr.mxu1 %v19176_v52  ;;  %v19334_v10 = vpop.f32.mrf.mxu0  ;;  %22725 = vst [vmem:[#allocation61_spill] sm:$0xff] %v19357_v46 }
 0x667   : > { %8720 = vmatprep.subr.mxu0 %v19292_v43  ;;  %8798 = vmatpush1.msra.mxu1 %v19187_v63  ;;  %22724 = vst [vmem:[#allocation28_spill] sm:$0xff] %v19334_v10  ;;  %v19396_v10 = vld [vmem:[%s21942_s3 + $0x418] sm:$0xff] }
 0x668   : > { %8607 = vmatmul.mubr.f32.gmra.mxu1 %v8525_v62  ;;  %8721 = vmatpush1.msra.mxu0 %v19301_v23  ;;  %v19332_v62 = vld [vmem:[%s21942_s3 + $0x458] sm:$0xff]  ;;  %v19366_v6 = vpop.f32.mrf.mxu0 }
 0x669   : > { %8799 = vmatprep.subr.mxu1 %v19201_v25  ;;  %8722 = vmatprep.subr.mxu0 %v19311_v55  ;;  %22726 = vst [vmem:[#allocation58_spill] sm:$0xff] %v19366_v6  ;;  %v19389_v6 = vpop.f32.mrf.mxu1 }
 0x66a   : > { %8800 = vmatpush1.msra.mxu1 %v19208_v49  ;;  %12676 = vmatprep.mubr.msk.f32.mxu1 %vm6458_vm11, %v8788_v58  ;;  %v19355_v58 = vld [vmem:[%s21942_s3 + $0x440] sm:$0xff]  ;;  %22727 = vst [vmem:[#allocation111_spill] sm:$0xff] %v19389_v6  ;;  %v19398_v38 = vpop.f32.mrf.mxu0  ;;  %v19446_v6 = vld [vmem:[%s21942_s3 + $0x538] sm:$0x3] }
 0x66b   : > { %8723 = vmatpush1.msra.mxu0 %v19320_v18  ;;  %8801 = vmatprep.subr.mxu1 %v19217_v0  ;;  %22728 = vst [vmem:[#allocation113_spill] sm:$0xff] %v19398_v38  ;;  %v19407_v50 = vpop.f32.mrf.mxu1 }
 0x66c   : > { %8724 = vmatprep.subr.mxu0 %v19332_v62  ;;  %8802 = vmatpush1.msra.mxu1 %v19229_v27  ;;  %22729 = vst [vmem:[#allocation57_spill] sm:$0xff] %v19407_v50  ;;  %v19416_v38 = vpop.f32.mrf.mxu0  ;;  %v19430_v50 = vld [vmem:[%s21942_s3 + $0x3f8] sm:$0xff] }
 0x66d   : > { %8725 = vmatpush1.msra.mxu0 %v19341_v33  ;;  %8803 = vmatprep.subr.mxu1 %v19236_v37  ;;  %22730 = vst [vmem:[#allocation33_spill] sm:$0xff] %v19416_v38  ;;  %22731 = vst [vmem:[#allocation59_spill] sm:$0xff] %v19430_v50  ;;  %v19437_v38 = vld [vmem:[%s21942_s3 + $0x3f0] sm:$0xff]  ;;  %v19439_v17 = vpop.f32.mrf.mxu1 }
 0x66e   : > { %8726 = vmatprep.subr.mxu0 %v19348_v54  ;;  %8804 = vmatpush1.msra.mxu1 %v19245_v36  ;;  %22732 = vst [vmem:[#allocation112_spill] sm:$0xff] %v19439_v17  ;;  %v19448_v46 = vpop.f32.mrf.mxu0  ;;  %v19462_v17 = vld [vmem:[%s21942_s3 + $0x528] sm:$0xff] }
 0x66f   : > { %8727 = vmatpush1.msra.mxu0 %v19355_v58  ;;  %8805 = vmatprep.subr.mxu1 %v19254_v11  ;;  %22733 = vst [vmem:[#allocation84_spill] sm:$0xff] %v19448_v46  ;;  %v19470_v46 = vld [vmem:[%s21942_s3 + $0x520] sm:$0xff]  ;;  %v19472_v5 = vpop.f32.mrf.mxu1 }
 0x670   : > { %8728 = vmatprep.subr.mxu0 %v19364_v15  ;;  %8806 = vmatpush1.msra.mxu1 %v19263_v42  ;;  %22734 = vst [vmem:[#allocation60_spill] sm:$0xff] %v19472_v5  ;;  %v19482_v21 = vpop.f32.mrf.mxu0  ;;  %v19489_v5 = vld [vmem:[%s21942_s3 + $0x510] sm:$0xff] }
 0x671   : > { %8729 = vmatpush1.msra.mxu0 %v19373_v32  ;;  %8807 = vmatprep.subr.mxu1 %v19273_v30  ;;  %22735 = vst [vmem:[#allocation32_spill] sm:$0xff] %v19482_v21  ;;  %v19503_v21 = vld [vmem:[%s21942_s3 + $0x500] sm:$0xff]  ;;  %v19507_v48 = vpop.f32.mrf.mxu1 }
 0x672   : > { %8730 = vmatprep.subr.mxu0 %v19380_v53  ;;  %8808 = vmatpush1.msra.mxu1 %v19281_v41  ;;  %22738 = vst [vmem:[#allocation62_spill] sm:$0xff] %v19507_v48  ;;  %v19516_v26 = vpop.f32.mrf.mxu0 }
 0x673   : > { %8731 = vmatpush1.msra.mxu0 %v19387_v3  ;;  %8809 = vmatprep.subr.mxu1 %v19292_v43  ;;  %22739 = vst [vmem:[#allocation114_spill] sm:$0xff] %v19516_v26  ;;  %v19525_v8 = vpop.f32.mrf.mxu1  ;;  %v8690_v26 = vsel %vm3060_vm3, %v8688_v40, %v8689_v13  ;;  %v8875_v40 = vrot.slane %v17583_v47, 3 }
 0x674   : > { %8732 = vmatprep.subr.mxu0 %v19396_v10  ;;  %8810 = vmatpush1.msra.mxu1 %v19301_v23  ;;  %22740 = vst [vmem:[#allocation16_spill] sm:$0xff] %v19525_v8  ;;  %v19529_v48 = vpop.f32.mrf.mxu0 }
 0x675   : > { %8733 = vmatpush1.msra.mxu0 %v19405_v60  ;;  %8811 = vmatprep.subr.mxu1 %v19311_v55  ;;  %v19537_v8 = vpop.f32.mrf.mxu1 }
 0x676   : > { %8734 = vmatprep.subr.mxu0 %v19414_v2  ;;  %8812 = vmatpush1.msra.mxu1 %v19320_v18  ;;  %22741 = vst [vmem:[#allocation71_spill] sm:$0xff] %v19537_v8  ;;  %v19543_v39 = vpop.f32.mrf.mxu0 }
 0x677   : > { %8735 = vmatpush1.msra.mxu0 %v19423_v34  ;;  %8813 = vmatprep.subr.mxu1 %v19332_v62 }
 0x678   : > { %8736 = vmatprep.subr.mxu0 %v19430_v50  ;;  %8814 = vmatpush1.msra.mxu1 %v19341_v33  ;;  %v19558_v8 = vpop.f32.mrf.mxu0 }
 0x679   : > { %8737 = vmatpush1.msra.mxu0 %v19437_v38  ;;  %8815 = vmatprep.subr.mxu1 %v19348_v54 }
 0x67a   : > { %12670 = vmatprep.subr.msk.mxu0 %vm6463_vm10, %v19446_v6  ;;  %8816 = vmatpush1.msra.mxu1 %v19355_v58  ;;  %v19575_v59 = vpop.f32.mrf.mxu0 }
 0x67b   : > { %12671 = vmatpush2.msk.msra.mxu0 %vm6463_vm10, %v19455_v24  ;;  %8817 = vmatprep.subr.mxu1 %v19364_v15 }
 0x67c   : > { %8762 = vmatprep.subr.mxu0 %v19462_v17  ;;  %8818 = vmatpush1.msra.mxu1 %v19373_v32 }
 0x67d   : > { %8763 = vmatpush2.msra.mxu0 %v19470_v46  ;;  %8819 = vmatprep.subr.mxu1 %v19380_v53 }
 0x67e   : > { %8764 = vmatprep.subr.mxu0 %v19480_v19  ;;  %8820 = vmatpush1.msra.mxu1 %v19387_v3 }
 0x67f   : > { %8765 = vmatpush2.msra.mxu0 %v19489_v5  ;;  %8821 = vmatprep.subr.mxu1 %v19396_v10 }
 0x680   : > { %8766 = vmatprep.subr.mxu0 %v19496_v16  ;;  %8822 = vmatpush1.msra.mxu1 %v19405_v60 }
 0x681   : > { %8767 = vmatpush2.msra.mxu0 %v19503_v21  ;;  %8823 = vmatprep.subr.mxu1 %v19414_v2 }
 0x682   : > { %8768 = vmatprep.subr.mxu0 %v19514_v31  ;;  %8824 = vmatpush1.msra.mxu1 %v19423_v34 }
 0x683   : > { %8769 = vmatpush2.msra.mxu0 %v19523_v28  ;;  %8825 = vmatprep.subr.mxu1 %v19430_v50 }
 0x684   : > { %8771 = vmatmul.mubr.f32.vlgmr.msra.gmra.mxu0 %v8690_v26  ;;  %8826 = vmatpush1.msra.mxu1 %v19437_v38  ;;  %v22134_v26 = vrot.slane %v17599_v51, 3 }
 0x685   : > { %8884 = vmatprep.subr.mxu0 %v19158_v56  ;;  %12673 = vmatprep.mubr.msk.f32.mxu0 %vm6458_vm11, %v22742_v45  ;;  %v19555_v45 = vpop.f32.mrf.mxu1 }
 0x686   : > { %12674 = vmatprep.subr.msk.mxu1 %vm6463_vm10, %v19446_v6  ;;  %8885 = vmatpush1.msra.mxu0 %v19168_v61  ;;  %22743 = vst [vmem:[#allocation37_spill] sm:$0xff] %v19555_v45  ;;  %v8877_v47 = vsel %vm3060_vm3, %v8875_v40, %v22134_v26  ;;  %v22746_v45 = vld [vmem:[#allocation31_spill] sm:$0xff]  ;;  %v19583_v40 = vpop.f32.mrf.mxu0 }
 0x687   : > { %12675 = vmatpush2.msk.msra.mxu1 %vm6463_vm10, %v19455_v24  ;;  %8886 = vmatprep.subr.mxu0 %v19176_v52  ;;  %v8783_v44 = vrot.slane %v22746_v45, 3  ;;  %22748 = vst [vmem:[#allocation6_spill] sm:$0xff] %v19583_v40  ;;  %v8964_v40 = vrot.slane %v22750_v22, 3 }
 0x688   : > { %8851 = vmatprep.subr.mxu1 %v19462_v17  ;;  %8887 = vmatpush1.msra.mxu0 %v19187_v63 }
 0x689   : > { %8777 = vmatmul.mubr.f32.gmra.mxu0 %v8689_v13  ;;  %8852 = vmatpush2.msra.mxu1 %v19470_v46  ;;  %v19570_v13 = vpop.f32.mrf.mxu1  ;;  %v8785_v26 = vsel %vm3060_vm3, %v8783_v44, %v8784_v1  ;;  %v19599_v44 = vpop.f32.mrf.mxu0 }
 0x68a   : > { %8888 = vmatprep.subr.mxu0 %v19201_v25  ;;  %8853 = vmatprep.subr.mxu1 %v19480_v19  ;;  %22745 = vst [vmem:[#allocation63_spill] sm:$0xff] %v19570_v13  ;;  %v22749_v13 = vrot.slane %v17531_v9, 3  ;;  %22751 = vst [vmem:[#allocation72_spill] sm:$0xff] %v19599_v44  ;;  %v22765_v44 = vld [vmem:[#allocation19_spill] sm:$0xff] }
 0x68b   : > { %8889 = vmatpush1.msra.mxu0 %v19208_v49  ;;  %12680 = vmatprep.mubr.msk.f32.mxu0 %vm6458_vm11, %v8877_v47  ;;  %v19579_v47 = vpop.f32.mrf.mxu1  ;;  %v19613_v22 = vpop.f32.mrf.mxu0 }
 0x68c   : > { %8854 = vmatpush2.msra.mxu1 %v19489_v5  ;;  %8890 = vmatprep.subr.mxu0 %v19217_v0  ;;  %22747 = vst [vmem:[#allocation115_spill] sm:$0xff] %v19579_v47  ;;  %v22135_v47 = vrot.slane %v22676_v35, 3  ;;  %22752 = vst [vmem:[#allocation36_spill] sm:$0xff] %v19613_v22 }
 0x68d   : > { %8855 = vmatprep.subr.mxu1 %v19496_v16  ;;  %8891 = vmatpush1.msra.mxu0 %v19229_v27  ;;  %v19593_v45 = vpop.f32.mrf.mxu1 }
 0x68e   : > { %8856 = vmatpush2.msra.mxu1 %v19503_v21  ;;  %8892 = vmatprep.subr.mxu0 %v19236_v37 }
 0x68f   : > { %8857 = vmatprep.subr.mxu1 %v19514_v31  ;;  %8893 = vmatpush1.msra.mxu0 %v19245_v36 }
 0x690   : > { %8858 = vmatpush2.msra.mxu1 %v19523_v28  ;;  %8894 = vmatprep.subr.mxu0 %v19254_v11 }
 0x691   : > { %8860 = vmatmul.mubr.f32.vlgmr.msra.gmra.mxu1 %v8785_v26  ;;  %8895 = vmatpush1.msra.mxu0 %v19263_v42  ;;  %v19606_v26 = vpop.f32.mrf.mxu1 }
 0x692   : > { %8973 = vmatprep.subr.mxu1 %v19158_v56  ;;  %12677 = vmatprep.mubr.msk.f32.mxu1 %vm6458_vm11, %v22749_v13  ;;  %v8966_v13 = vsel %vm3060_vm3, %v8964_v40, %v22135_v47  ;;  %v19625_v40 = vpop.f32.mrf.mxu0 }
 0x693   : > { %8896 = vmatprep.subr.mxu0 %v19273_v30  ;;  %8974 = vmatpush1.msra.mxu1 %v19168_v61  ;;  %22753 = vst [vmem:[#allocation51_spill] sm:$0xff] %v19625_v40 }
 0x694   : > { %8897 = vmatpush1.msra.mxu0 %v19281_v41  ;;  %8975 = vmatprep.subr.mxu1 %v19176_v52  ;;  %v19633_v47 = vpop.f32.mrf.mxu0 }
 0x695   : > { %8898 = vmatprep.subr.mxu0 %v19292_v43  ;;  %8976 = vmatpush1.msra.mxu1 %v19187_v63  ;;  %22755 = vst [vmem:[#allocation64_spill] sm:$0xff] %v19633_v47 }
 0x696   : > { %8866 = vmatmul.mubr.f32.gmra.mxu1 %v8784_v1  ;;  %8899 = vmatpush1.msra.mxu0 %v19301_v23  ;;  %v19621_v1 = vpop.f32.mrf.mxu1 }
 0x697   : > { %8977 = vmatprep.subr.mxu1 %v19201_v25  ;;  %8900 = vmatprep.subr.mxu0 %v19311_v55 }
 0x698   : > { %8978 = vmatpush1.msra.mxu1 %v19208_v49  ;;  %12684 = vmatprep.mubr.msk.f32.mxu1 %vm6458_vm11, %v8966_v13  ;;  %v19629_v13 = vpop.f32.mrf.mxu1 }
 0x699   : > { %8901 = vmatpush1.msra.mxu0 %v19320_v18  ;;  %8979 = vmatprep.subr.mxu1 %v19217_v0  ;;  %22754 = vst [vmem:[#allocation107_spill] sm:$0xff] %v19629_v13  ;;  %v19645_v13 = vpop.f32.mrf.mxu0 }
 0x69a   : > { %8902 = vmatprep.subr.mxu0 %v19332_v62  ;;  %8980 = vmatpush1.msra.mxu1 %v19229_v27  ;;  %v19641_v9 = vpop.f32.mrf.mxu1  ;;  %22757 = vst [vmem:[#allocation24_spill] sm:$0xff] %v19645_v13 }
 0x69b   : > { %8903 = vmatpush1.msra.mxu0 %v19341_v33  ;;  %8981 = vmatprep.subr.mxu1 %v19236_v37  ;;  %22756 = vst [vmem:[#allocation83_spill] sm:$0xff] %v19641_v9  ;;  %v19657_v9 = vpop.f32.mrf.mxu0 }
 0x69c   : > { %8904 = vmatprep.subr.mxu0 %v19348_v54  ;;  %8982 = vmatpush1.msra.mxu1 %v19245_v36  ;;  %v19653_v47 = vpop.f32.mrf.mxu1  ;;  %22759 = vst [vmem:[#allocation108_spill] sm:$0xff] %v19657_v9 }
 0x69d   : > { %8905 = vmatpush1.msra.mxu0 %v19355_v58  ;;  %8983 = vmatprep.subr.mxu1 %v19254_v11  ;;  %22758 = vst [vmem:[#allocation50_spill] sm:$0xff] %v19653_v47  ;;  %v19671_v9 = vpop.f32.mrf.mxu0 }
 0x69e   : > { %8906 = vmatprep.subr.mxu0 %v19364_v15  ;;  %8984 = vmatpush1.msra.mxu1 %v19263_v42  ;;  %v19666_v13 = vpop.f32.mrf.mxu1  ;;  %22761 = vst [vmem:[#allocation121_spill] sm:$0xff] %v19671_v9  ;;  %v8873_v9 = vrot.slane %v22765_v44, 3 }
 0x69f   : > { %8907 = vmatpush1.msra.mxu0 %v19373_v32  ;;  %8985 = vmatprep.subr.mxu1 %v19273_v30  ;;  %22760 = vst [vmem:[#allocation53_spill] sm:$0xff] %v19666_v13  ;;  %v19679_v40 = vpop.f32.mrf.mxu0  ;;  %v22764_v13 = vld [vmem:[#allocation97_spill] sm:$0xff] }
 0x6a0   : > { %8908 = vmatprep.subr.mxu0 %v19380_v53  ;;  %8986 = vmatpush1.msra.mxu1 %v19281_v41  ;;  %v19675_v47 = vpop.f32.mrf.mxu1  ;;  %22763 = vst [vmem:[#allocation56_spill] sm:$0xff] %v19679_v40  ;;  %v8872_v22 = vrot.slane %v22764_v13, 3 }
 0x6a1   : > { %8909 = vmatpush1.msra.mxu0 %v19387_v3  ;;  %8987 = vmatprep.subr.mxu1 %v19292_v43  ;;  %22762 = vst [vmem:[#allocation93_spill] sm:$0xff] %v19675_v47  ;;  %v19693_v40 = vpop.f32.mrf.mxu0 }
 0x6a2   : > { %8910 = vmatprep.subr.mxu0 %v19396_v10  ;;  %8988 = vmatpush1.msra.mxu1 %v19301_v23  ;;  %v19689_v47 = vpop.f32.mrf.mxu1  ;;  %22767 = vst [vmem:[#allocation52_spill] sm:$0xff] %v19693_v40  ;;  %v8874_v44 = vsel %vm3060_vm3, %v8872_v22, %v8873_v9 }
 0x6a3   : > { %8911 = vmatpush1.msra.mxu0 %v19405_v60  ;;  %8989 = vmatprep.subr.mxu1 %v19311_v55  ;;  %22766 = vst [vmem:[#allocation48_spill] sm:$0xff] %v19689_v47  ;;  %v22769_v47 = vrot.slane %v17599_v51, 3  ;;  %v19707_v40 = vpop.f32.mrf.mxu0  ;;  %v7437_v51 = vadd.f32 %v19529_v48, %v19119_v14 }
 0x6a4   : > { %8912 = vmatprep.subr.mxu0 %v19414_v2  ;;  %8990 = vmatpush1.msra.mxu1 %v19320_v18  ;;  %v19701_v13 = vpop.f32.mrf.mxu1  ;;  %22770 = vst [vmem:[#allocation117_spill] sm:$0xff] %v19707_v40 }
 0x6a5   : > { %8913 = vmatpush1.msra.mxu0 %v19423_v34  ;;  %8991 = vmatprep.subr.mxu1 %v19332_v62  ;;  %22768 = vst [vmem:[#allocation116_spill] sm:$0xff] %v19701_v13  ;;  %v19722_v40 = vpop.f32.mrf.mxu0 }
 0x6a6   : > { %8914 = vmatprep.subr.mxu0 %v19430_v50  ;;  %8992 = vmatpush1.msra.mxu1 %v19341_v33  ;;  %22773 = vst [vmem:[#allocation74_spill] sm:$0xff] %v19722_v40  ;;  %v22775_v40 = vld [vmem:[#allocation87_spill] sm:$0xff] }
 0x6a7   : > { %8915 = vmatpush1.msra.mxu0 %v19437_v38  ;;  %8993 = vmatprep.subr.mxu1 %v19348_v54 }
 0x6a8   : > { %12678 = vmatprep.subr.msk.mxu0 %vm6463_vm10, %v19446_v6  ;;  %8994 = vmatpush1.msra.mxu1 %v19355_v58 }
 0x6a9   : > { %12679 = vmatpush2.msk.msra.mxu0 %vm6463_vm10, %v19455_v24  ;;  %8995 = vmatprep.subr.mxu1 %v19364_v15 }
 0x6aa   : > { %8940 = vmatprep.subr.mxu0 %v19462_v17  ;;  %8996 = vmatpush1.msra.mxu1 %v19373_v32 }
 0x6ab   : > { %8941 = vmatpush2.msra.mxu0 %v19470_v46  ;;  %8997 = vmatprep.subr.mxu1 %v19380_v53 }
 0x6ac   : > { %8942 = vmatprep.subr.mxu0 %v19480_v19  ;;  %8998 = vmatpush1.msra.mxu1 %v19387_v3 }
 0x6ad   : > { %8943 = vmatpush2.msra.mxu0 %v19489_v5  ;;  %8999 = vmatprep.subr.mxu1 %v19396_v10 }
 0x6ae   : > { %8944 = vmatprep.subr.mxu0 %v19496_v16  ;;  %9000 = vmatpush1.msra.mxu1 %v19405_v60 }
 0x6af   : > { %8945 = vmatpush2.msra.mxu0 %v19503_v21  ;;  %9001 = vmatprep.subr.mxu1 %v19414_v2 }
 0x6b0   : > { %8946 = vmatprep.subr.mxu0 %v19514_v31  ;;  %9002 = vmatpush1.msra.mxu1 %v19423_v34 }
 0x6b1   : > { %8947 = vmatpush2.msra.mxu0 %v19523_v28  ;;  %9003 = vmatprep.subr.mxu1 %v19430_v50  ;;  %v22771_v50 = vld [vmem:[#allocation100_spill] sm:$0xff] }
 0x6b2   : > { %8949 = vmatmul.mubr.f32.vlgmr.msra.gmra.mxu0 %v8874_v44  ;;  %9004 = vmatpush1.msra.mxu1 %v19437_v38  ;;  %v9053_v22 = vrot.slane %v22771_v50, 3  ;;  %v22143_v44 = vrot.slane %v22679_v57, 3 }
 0x6b3   : > { %9062 = vmatprep.subr.mxu0 %v19158_v56  ;;  %12681 = vmatprep.mubr.msk.f32.mxu0 %vm6458_vm11, %v22769_v47  ;;  %v19719_v47 = vpop.f32.mrf.mxu1 }
 0x6b4   : > { %12682 = vmatprep.subr.msk.mxu1 %vm6463_vm10, %v19446_v6  ;;  %9063 = vmatpush1.msra.mxu0 %v19168_v61  ;;  %22772 = vst [vmem:[#allocation8_spill] sm:$0xff] %v19719_v47  ;;  %v9055_v50 = vsel %vm3060_vm3, %v9053_v22, %v22143_v44  ;;  %v8962_v47 = vrot.slane %v22775_v40, 3  ;;  %v7439_v22 = vadd.f32 %v19543_v39, %v19133_v20 }
 0x6b5   : > { %12683 = vmatpush2.msk.msra.mxu1 %vm6463_vm10, %v19455_v24  ;;  %9064 = vmatprep.subr.mxu0 %v19176_v52  ;;  %v19731_v13 = vpop.f32.mrf.mxu1  ;;  %v7443_v20 = vadd.f32 %v19558_v8, %v19147_v29  ;;  %v7445_v39 = vadd.f32 %v19575_v59, %v19170_v7 }
 0x6b6   : > { %9029 = vmatprep.subr.mxu1 %v19462_v17  ;;  %9065 = vmatpush1.msra.mxu0 %v19187_v63  ;;  %22774 = vst [vmem:[#allocation119_spill] sm:$0xff] %v19731_v13 }
 0x6b7   : > { %8955 = vmatmul.mubr.f32.gmra.mxu0 %v8873_v9  ;;  %9030 = vmatpush2.msra.mxu1 %v19470_v46  ;;  %v8961_v9 = vrot.slane %v22690_v12, 3 }
 0x6b8   : > { %9066 = vmatprep.subr.mxu0 %v19201_v25  ;;  %9031 = vmatprep.subr.mxu1 %v19480_v19 }
 0x6b9   : > { %9067 = vmatpush1.msra.mxu0 %v19208_v49  ;;  %12688 = vmatprep.mubr.msk.f32.mxu0 %vm6458_vm11, %v9055_v50  ;;  %v19747_v50 = vpop.f32.mrf.mxu1 }
 0x6ba   : > { %9032 = vmatpush2.msra.mxu1 %v19489_v5  ;;  %9068 = vmatprep.subr.mxu0 %v19217_v0  ;;  %v8157_v57 = vpop.f32.mrf.mxu0  ;;  %22776 = vst [vmem:[#allocation11_spill] sm:$0xff] %v19747_v50 }
 0x6bb   : > { %9033 = vmatprep.subr.mxu1 %v19496_v16  ;;  %9069 = vmatpush1.msra.mxu0 %v19229_v27  ;;  %v19743_v14 = vadd.f32 %v8157_v57, %v7437_v51  ;;  %v8963_v51 = vsel %vm3060_vm3, %v8961_v9, %v8962_v47  ;;  %v19767_v8 = vpop.f32.mrf.mxu1  ;;  %v9142_v9 = vrot.slane %v22693_v4, 3  ;;  %v22804_v4 = vld [vmem:[#allocation72_spill] sm:$0xff] }
 0x6bc   : > { %9034 = vmatpush2.msra.mxu1 %v19503_v21  ;;  %9070 = vmatprep.subr.mxu0 %v19236_v37  ;;  %v8159_v48 = vpop.f32.mrf.mxu0  ;;  %22779 = vst [vmem:[#allocation75_spill] sm:$0xff] %v19767_v8  ;;  %v22797_v8 = vld [vmem:[#allocation103_spill] sm:$0xff] }
 0x6bd   : > { %9035 = vmatprep.subr.mxu1 %v19514_v31  ;;  %9071 = vmatpush1.msra.mxu0 %v19245_v36  ;;  %v19751_v44 = vadd.f32 %v8159_v48, %v7439_v22  ;;  %v22777_v22 = vrot.slane %v22676_v35, 3  ;;  %v22780_v48 = vld [vmem:[#allocation102_spill] sm:$0xff]  ;;  %v19780_v7 = vpop.f32.mrf.mxu1  ;;  %v9231_v13 = vrot.slane %v22797_v8, 3 }
 0x6be   : > { %9036 = vmatpush2.msra.mxu1 %v19523_v28  ;;  %9072 = vmatprep.subr.mxu0 %v19254_v11  ;;  %22782 = vst [vmem:[#allocation68_spill] sm:$0xff] %v19780_v7 }
 0x6bf   : > { %9038 = vmatmul.mubr.f32.vlgmr.msra.gmra.mxu1 %v8963_v51  ;;  %9073 = vmatpush1.msra.mxu0 %v19263_v42  ;;  %v8163_v57 = vpop.f32.mrf.mxu0  ;;  %v22144_v51 = vrot.slane %v22780_v48, 3 }
 0x6c0   : > { %9151 = vmatprep.subr.mxu1 %v19158_v56  ;;  %12685 = vmatprep.mubr.msk.f32.mxu1 %vm6458_vm11, %v22777_v22  ;;  %v19765_v29 = vadd.f32 %v8163_v57, %v7443_v20  ;;  %v22783_v57 = vld [vmem:[#allocation45_spill] sm:$0xff] }
 0x6c1   : > { %9074 = vmatprep.subr.mxu0 %v19273_v30  ;;  %9152 = vmatpush1.msra.mxu1 %v19168_v61  ;;  %v8165_v50 = vpop.f32.mrf.mxu0  ;;  %v9144_v20 = vsel %vm3060_vm3, %v9142_v9, %v22144_v51  ;;  %v22785_v22 = vld [vmem:[#allocation21_spill] sm:$0xff] }
 0x6c2   : > { %22778 = vst [vmem:[#allocation10_spill] sm:$0xff] %v19765_v29  ;;  %9075 = vmatpush1.msra.mxu0 %v19281_v41  ;;  %9153 = vmatprep.subr.mxu1 %v19176_v52  ;;  %v19775_v59 = vadd.f32 %v8165_v50, %v7445_v39  ;;  %v22784_v50 = vld [vmem:[#allocation115_spill] sm:$0xff]  ;;  %v7520_v7 = vadd.f32 %v19593_v45, %v22785_v22 }
 0x6c3   : > { %9076 = vmatprep.subr.mxu0 %v19292_v43  ;;  %9154 = vmatpush1.msra.mxu1 %v19187_v63  ;;  %v7518_v39 = vadd.f32 %v22784_v50, %v22783_v57  ;;  %v22788_v50 = vld [vmem:[#allocation41_spill] sm:$0xff] }
 0x6c4   : > { %22781 = vst [vmem:[#allocation66_spill] sm:$0xff] %v19775_v59  ;;  %9044 = vmatmul.mubr.f32.gmra.mxu1 %v8962_v47  ;;  %9077 = vmatpush1.msra.mxu0 %v19301_v23  ;;  %v7524_v45 = vadd.f32 %v19606_v26, %v22788_v50  ;;  %v22793_v50 = vld [vmem:[#allocation39_spill] sm:$0xff]  ;;  %v22803_v59 = vld [vmem:[#allocation44_spill] sm:$0xff] }
 0x6c5   : > { %9155 = vmatprep.subr.mxu1 %v19201_v25  ;;  %9078 = vmatprep.subr.mxu0 %v19311_v55  ;;  %v7601_v29 = vadd.f32 %v22804_v4, %v22803_v59 }
 0x6c6   : > { %9156 = vmatpush1.msra.mxu1 %v19208_v49  ;;  %12692 = vmatprep.mubr.msk.f32.mxu1 %vm6458_vm11, %v9144_v20 }
 0x6c7   : > { %9079 = vmatpush1.msra.mxu0 %v19320_v18  ;;  %9157 = vmatprep.subr.mxu1 %v19217_v0  ;;  %v8246_v47 = vpop.f32.mrf.mxu1 }
 0x6c8   : > { %9080 = vmatprep.subr.mxu0 %v19332_v62  ;;  %9158 = vmatpush1.msra.mxu1 %v19229_v27  ;;  %v19797_v9 = vadd.f32 %v8246_v47, %v7518_v39  ;;  %v22789_v47 = vld [vmem:[#allocation109_spill] sm:$0xff] }
 0x6c9   : > { %9081 = vmatpush1.msra.mxu0 %v19341_v33  ;;  %9159 = vmatprep.subr.mxu1 %v19236_v37  ;;  %v8248_v57 = vpop.f32.mrf.mxu1  ;;  %v7526_v22 = vadd.f32 %v19621_v1, %v22789_v47  ;;  %v22792_v1 = vld [vmem:[#allocation59_spill] sm:$0xff] }
 0x6ca   : > { %22786 = vst [vmem:[#allocation9_spill] sm:$0xff] %v19797_v9  ;;  %9082 = vmatprep.subr.mxu0 %v19348_v54  ;;  %9160 = vmatpush1.msra.mxu1 %v19245_v36  ;;  %v19803_v20 = vadd.f32 %v8248_v57, %v7520_v7 }
 0x6cb   : > { %9083 = vmatpush1.msra.mxu0 %v19355_v58  ;;  %9161 = vmatprep.subr.mxu1 %v19254_v11 }
 0x6cc   : > { %22787 = vst [vmem:[#allocation15_spill] sm:$0xff] %v19803_v20  ;;  %9084 = vmatprep.subr.mxu0 %v19364_v15  ;;  %9162 = vmatpush1.msra.mxu1 %v19263_v42  ;;  %v8252_v39 = vpop.f32.mrf.mxu1 }
 0x6cd   : > { %9085 = vmatpush1.msra.mxu0 %v19373_v32  ;;  %9163 = vmatprep.subr.mxu1 %v19273_v30  ;;  %v19815_v7 = vadd.f32 %v8252_v39, %v7524_v45  ;;  %v9050_v45 = vrot.slane %v22793_v50, 3  ;;  %v22794_v39 = vld [vmem:[#allocation38_spill] sm:$0xff] }
 0x6ce   : > { %9086 = vmatprep.subr.mxu0 %v19380_v53  ;;  %9164 = vmatpush1.msra.mxu1 %v19281_v41  ;;  %v8254_v26 = vpop.f32.mrf.mxu1  ;;  %v9051_v47 = vrot.slane %v22794_v39, 3  ;;  %v22798_v39 = vld [vmem:[#allocation82_spill] sm:$0xff] }
 0x6cf   : > { %22790 = vst [vmem:[#allocation80_spill] sm:$0xff] %v19815_v7  ;;  %9087 = vmatpush1.msra.mxu0 %v19387_v3  ;;  %9165 = vmatprep.subr.mxu1 %v19292_v43  ;;  %v19821_v57 = vadd.f32 %v8254_v26, %v7526_v22  ;;  %v22795_v26 = vld [vmem:[#allocation101_spill] sm:$0xff]  ;;  %v22146_v50 = vrot.slane %v22798_v39, 3 }
 0x6d0   : > { %9088 = vmatprep.subr.mxu0 %v19396_v10  ;;  %9166 = vmatpush1.msra.mxu1 %v19301_v23  ;;  %v9052_v22 = vsel %vm3060_vm3, %v9050_v45, %v9051_v47  ;;  %v22796_v51 = vrot.slane %v22795_v26, 3  ;;  %v22799_v45 = vld [vmem:[#allocation49_spill] sm:$0xff] }
 0x6d1   : > { %22791 = vst [vmem:[#allocation14_spill] sm:$0xff] %v19821_v57  ;;  %9089 = vmatpush1.msra.mxu0 %v19405_v60  ;;  %9167 = vmatprep.subr.mxu1 %v19311_v55  ;;  %v22801_v57 = vld [vmem:[#allocation88_spill] sm:$0xff] }
 0x6d2   : > { %9090 = vmatprep.subr.mxu0 %v19414_v2  ;;  %9168 = vmatpush1.msra.mxu1 %v19320_v18  ;;  %v9139_v7 = vrot.slane %v22801_v57, 3 }
 0x6d3   : > { %9091 = vmatpush1.msra.mxu0 %v19423_v34  ;;  %9169 = vmatprep.subr.mxu1 %v19332_v62 }
 0x6d4   : > { %9092 = vmatprep.subr.mxu0 %v22792_v1  ;;  %9170 = vmatpush1.msra.mxu1 %v19341_v33 }
 0x6d5   : > { %9093 = vmatpush1.msra.mxu0 %v19437_v38  ;;  %9171 = vmatprep.subr.mxu1 %v19348_v54 }
 0x6d6   : > { %12686 = vmatprep.subr.msk.mxu0 %vm6463_vm10, %v19446_v6  ;;  %9172 = vmatpush1.msra.mxu1 %v19355_v58 }
 0x6d7   : > { %12687 = vmatpush2.msk.msra.mxu0 %vm6463_vm10, %v19455_v24  ;;  %9173 = vmatprep.subr.mxu1 %v19364_v15 }
 0x6d8   : > { %9118 = vmatprep.subr.mxu0 %v19462_v17  ;;  %9174 = vmatpush1.msra.mxu1 %v19373_v32 }
 0x6d9   : > { %9119 = vmatpush2.msra.mxu0 %v19470_v46  ;;  %9175 = vmatprep.subr.mxu1 %v19380_v53 }
 0x6da   : > { %9120 = vmatprep.subr.mxu0 %v19480_v19  ;;  %9176 = vmatpush1.msra.mxu1 %v19387_v3 }
 0x6db   : > { %9121 = vmatpush2.msra.mxu0 %v19489_v5  ;;  %9177 = vmatprep.subr.mxu1 %v19396_v10 }
 0x6dc   : > { %9122 = vmatprep.subr.mxu0 %v19496_v16  ;;  %9178 = vmatpush1.msra.mxu1 %v19405_v60 }
 0x6dd   : > { %9123 = vmatpush2.msra.mxu0 %v19503_v21  ;;  %9179 = vmatprep.subr.mxu1 %v19414_v2 }
 0x6de   : > { %9124 = vmatprep.subr.mxu0 %v19514_v31  ;;  %9180 = vmatpush1.msra.mxu1 %v19423_v34 }
 0x6df   : > { %9125 = vmatpush2.msra.mxu0 %v19523_v28  ;;  %9181 = vmatprep.subr.mxu1 %v22792_v1 }
 0x6e0   : > { %9127 = vmatmul.mubr.f32.vlgmr.msra.gmra.mxu0 %v9052_v22  ;;  %9182 = vmatpush1.msra.mxu1 %v19437_v38  ;;  %v22800_v22 = vld [vmem:[#allocation6_spill] sm:$0xff] }
 0x6e1   : > { %9240 = vmatprep.subr.mxu0 %v19158_v56  ;;  %12689 = vmatprep.mubr.msk.f32.mxu0 %vm6458_vm11, %v22796_v51  ;;  %v9233_v51 = vsel %vm3060_vm3, %v9231_v13, %v22146_v50  ;;  %v7599_v8 = vadd.f32 %v22800_v22, %v22799_v45  ;;  %v22807_v22 = vld [vmem:[#allocation54_spill] sm:$0xff]  ;;  %v22808_v50 = vld [vmem:[#allocation36_spill] sm:$0xff] }
 0x6e2   : > { %12690 = vmatprep.subr.msk.mxu1 %vm6463_vm10, %v19446_v6  ;;  %9241 = vmatpush1.msra.mxu0 %v19168_v61  ;;  %v7605_v4 = vadd.f32 %v22808_v50, %v22807_v22  ;;  %v22813_v22 = vld [vmem:[#allocation46_spill] sm:$0xff] }
 0x6e3   : > { %12691 = vmatpush2.msk.msra.mxu1 %vm6463_vm10, %v19455_v24  ;;  %9242 = vmatprep.subr.mxu0 %v19176_v52 }
 0x6e4   : > { %9207 = vmatprep.subr.mxu1 %v19462_v17  ;;  %9243 = vmatpush1.msra.mxu0 %v19187_v63 }
 0x6e5   : > { %9133 = vmatmul.mubr.f32.gmra.mxu0 %v9051_v47  ;;  %9208 = vmatpush2.msra.mxu1 %v19470_v46  ;;  %v22802_v47 = vld [vmem:[#allocation43_spill] sm:$0xff] }
 0x6e6   : > { %9244 = vmatprep.subr.mxu0 %v19201_v25  ;;  %9209 = vmatprep.subr.mxu1 %v19480_v19  ;;  %v9140_v20 = vrot.slane %v22802_v47, 3 }
 0x6e7   : > { %9245 = vmatpush1.msra.mxu0 %v19208_v49  ;;  %12696 = vmatprep.mubr.msk.f32.mxu0 %vm6458_vm11, %v9233_v51 }
 0x6e8   : > { %9210 = vmatpush2.msra.mxu1 %v19489_v5  ;;  %9246 = vmatprep.subr.mxu0 %v19217_v0  ;;  %v8335_v9 = vpop.f32.mrf.mxu0 }
 0x6e9   : > { %9211 = vmatprep.subr.mxu1 %v19496_v16  ;;  %9247 = vmatpush1.msra.mxu0 %v19229_v27  ;;  %v19893_v13 = vadd.f32 %v8335_v9, %v7599_v8  ;;  %v9141_v8 = vsel %vm3060_vm3, %v9139_v7, %v9140_v20  ;;  %v22809_v9 = vld [vmem:[#allocation55_spill] sm:$0xff]  ;;  %v22812_v7 = vld [vmem:[#allocation105_spill] sm:$0xff] }
 0x6ea   : > { %9212 = vmatpush2.msra.mxu1 %v19503_v21  ;;  %9248 = vmatprep.subr.mxu0 %v19236_v37  ;;  %v8337_v51 = vpop.f32.mrf.mxu0 }
 0x6eb   : > { %22805 = vst [vmem:[#allocation67_spill] sm:$0xff] %v19893_v13  ;;  %9213 = vmatprep.subr.mxu1 %v19514_v31  ;;  %9249 = vmatpush1.msra.mxu0 %v19245_v36  ;;  %v19899_v45 = vadd.f32 %v8337_v51, %v7601_v29  ;;  %v22810_v13 = vld [vmem:[#allocation51_spill] sm:$0xff]  ;;  %v22811_v29 = vrot.slane %v22780_v48, 3  ;;  %v9320_v51 = vrot.slane %v22812_v7, 3 }
 0x6ec   : > { %9214 = vmatpush2.msra.mxu1 %v19523_v28  ;;  %9250 = vmatprep.subr.mxu0 %v19254_v11  ;;  %v7607_v47 = vadd.f32 %v22810_v13, %v22809_v9  ;;  %v22815_v13 = vld [vmem:[#allocation110_spill] sm:$0xff] }
 0x6ed   : > { %22806 = vst [vmem:[#allocation120_spill] sm:$0xff] %v19899_v45  ;;  %9216 = vmatmul.mubr.f32.vlgmr.msra.gmra.mxu1 %v9141_v8  ;;  %9251 = vmatpush1.msra.mxu0 %v19263_v42  ;;  %v8341_v59 = vpop.f32.mrf.mxu0  ;;  %v9321_v8 = vrot.slane %v22813_v22, 3  ;;  %v22822_v9 = vld [vmem:[#allocation50_spill] sm:$0xff] }
 0x6ee   : > { %9329 = vmatprep.subr.mxu1 %v19158_v56  ;;  %12693 = vmatprep.mubr.msk.f32.mxu1 %vm6458_vm11, %v22811_v29  ;;  %v19913_v50 = vadd.f32 %v8341_v59, %v7605_v4  ;;  %v22816_v4 = vld [vmem:[#allocation107_spill] sm:$0xff]  ;;  %v22821_v59 = vld [vmem:[#allocation61_spill] sm:$0xff] }
 0x6ef   : > { %9252 = vmatprep.subr.mxu0 %v19273_v30  ;;  %9330 = vmatpush1.msra.mxu1 %v19168_v61  ;;  %v8343_v45 = vpop.f32.mrf.mxu0  ;;  %v9322_v61 = vsel %vm3060_vm3, %v9320_v51, %v9321_v8  ;;  %v7686_v29 = vadd.f32 %v22822_v9, %v22821_v59  ;;  %v22824_v51 = vld [vmem:[#allocation53_spill] sm:$0xff]  ;;  %v20099_v59 = vld [vmem:[%s21942_s3 + $0x5e0] sm:$0xff] }
 0x6f0   : > { %9253 = vmatpush1.msra.mxu0 %v19281_v41  ;;  %9331 = vmatprep.subr.mxu1 %v19176_v52  ;;  %v19921_v56 = vadd.f32 %v8343_v45, %v7607_v47  ;;  %v7680_v52 = vadd.f32 %v22816_v4, %v22815_v13 }
 0x6f1   : > { %9254 = vmatprep.subr.mxu0 %v19292_v43  ;;  %9332 = vmatpush1.msra.mxu1 %v19187_v63 }
 0x6f2   : > { %22814 = vst [vmem:[#allocation81_spill] sm:$0xff] %v19921_v56  ;;  %9222 = vmatmul.mubr.f32.gmra.mxu1 %v9140_v20  ;;  %9255 = vmatpush1.msra.mxu0 %v19301_v23  ;;  %v22817_v20 = vld [vmem:[#allocation40_spill] sm:$0xff] }
 0x6f3   : > { %9333 = vmatprep.subr.mxu1 %v19201_v25  ;;  %9256 = vmatprep.subr.mxu0 %v19311_v55  ;;  %v22818_v25 = vld [vmem:[#allocation83_spill] sm:$0xff] }
 0x6f4   : > { %9334 = vmatpush1.msra.mxu1 %v19208_v49  ;;  %12700 = vmatprep.mubr.msk.f32.mxu1 %vm6458_vm11, %v9322_v61  ;;  %v7682_v47 = vadd.f32 %v22818_v25, %v22817_v20  ;;  %v22836_v20 = vld [vmem:[#allocation28_spill] sm:$0xff] }
 0x6f5   : > { %9257 = vmatpush1.msra.mxu0 %v19320_v18  ;;  %9335 = vmatprep.subr.mxu1 %v19217_v0  ;;  %v8424_v63 = vpop.f32.mrf.mxu1  ;;  %v22837_v25 = vld [vmem:[#allocation24_spill] sm:$0xff] }
 0x6f6   : > { %9258 = vmatprep.subr.mxu0 %v19332_v62  ;;  %9336 = vmatpush1.msra.mxu1 %v19229_v27  ;;  %v19941_v45 = vadd.f32 %v8424_v63, %v7680_v52  ;;  %v20081_v52 = vld [vmem:[%s21942_s3 + $0x5f0] sm:$0xff] }
 0x6f7   : > { %9259 = vmatpush1.msra.mxu0 %v19341_v33  ;;  %9337 = vmatprep.subr.mxu1 %v19236_v37  ;;  %v8426_v49 = vpop.f32.mrf.mxu1  ;;  %v22823_v37 = vld [vmem:[#allocation111_spill] sm:$0xff] }
 0x6f8   : > { %22819 = vst [vmem:[#allocation69_spill] sm:$0xff] %v19941_v45  ;;  %9260 = vmatprep.subr.mxu0 %v19348_v54  ;;  %9338 = vmatpush1.msra.mxu1 %v19245_v36  ;;  %v19947_v0 = vadd.f32 %v8426_v49, %v7682_v47  ;;  %v7688_v61 = vadd.f32 %v22824_v51, %v22823_v37  ;;  %v20090_v49 = vld [vmem:[%s21942_s3 + $0x5e8] sm:$0xff]  ;;  %v20113_v51 = vld [vmem:[%s21942_s3 + $0x5d8] sm:$0xff] }
 0x6f9   : > { %9261 = vmatpush1.msra.mxu0 %v19355_v58  ;;  %9339 = vmatprep.subr.mxu1 %v19254_v11  ;;  %v7763_v47 = vadd.f32 %v22837_v25, %v22836_v20  ;;  %v20168_v20 = vld [vmem:[%s21942_s3 + $0x5a8] sm:$0xff]  ;;  %v22849_v25 = vld [vmem:[#allocation93_spill] sm:$0xff]  ;;  %v22864_v45 = vld [vmem:[#allocation78_spill] sm:$0xff] }
 0x6fa   : > { %22820 = vst [vmem:[#allocation13_spill] sm:$0xff] %v19947_v0  ;;  %9262 = vmatprep.subr.mxu0 %v19364_v15  ;;  %9340 = vmatpush1.msra.mxu1 %v19263_v42  ;;  %v8430_v27 = vpop.f32.mrf.mxu1  ;;  %v22828_v42 = vld [vmem:[#allocation89_spill] sm:$0xff]  ;;  %v9669_v56 = vrot.slane %v22864_v45, 4 }
 0x6fb   : > { %9263 = vmatpush1.msra.mxu0 %v19373_v32  ;;  %9341 = vmatprep.subr.mxu1 %v19273_v30  ;;  %v19959_v36 = vadd.f32 %v8430_v27, %v7686_v29  ;;  %v9229_v30 = vrot.slane %v22828_v42, 3  ;;  %v22840_v29 = vld [vmem:[#allocation58_spill] sm:$0xff]  ;;  %v22841_v27 = vld [vmem:[#allocation108_spill] sm:$0xff] }
 0x6fc   : > { %9264 = vmatprep.subr.mxu0 %v19380_v53  ;;  %9342 = vmatpush1.msra.mxu1 %v19281_v41  ;;  %v8432_v13 = vpop.f32.mrf.mxu1  ;;  %v20039_v41 = vld [vmem:[%s21942_s3 + $0x618] sm:$0xff]  ;;  %v7767_v37 = vadd.f32 %v22841_v27, %v22840_v29 }
 0x6fd   : > { %22825 = vst [vmem:[#allocation118_spill] sm:$0xff] %v19959_v36  ;;  %9265 = vmatpush1.msra.mxu0 %v19387_v3  ;;  %9343 = vmatprep.subr.mxu1 %v19292_v43  ;;  %v19965_v11 = vadd.f32 %v8432_v13, %v7688_v61  ;;  %v22831_v43 = vld [vmem:[#allocation95_spill] sm:$0xff]  ;;  %v22842_v13 = vld [vmem:[#allocation113_spill] sm:$0xff]  ;;  %v20184_v29 = vld [vmem:[%s21942_s3 + $0x598] sm:$0xff] }
 0x6fe   : > { %9266 = vmatprep.subr.mxu0 %v19396_v10  ;;  %9344 = vmatpush1.msra.mxu1 %v19301_v23  ;;  %v9484_v23 = vrot.slane %v22831_v43, 4  ;;  %v22845_v43 = vld [vmem:[#allocation30_spill] sm:$0xff]  ;;  %v22863_v36 = vld [vmem:[#allocation76_spill] sm:$0xff] }
 0x6ff   : > { %22826 = vst [vmem:[#allocation5_spill] sm:$0xff] %v19965_v11  ;;  %9267 = vmatpush1.msra.mxu0 %v19405_v60  ;;  %9345 = vmatprep.subr.mxu1 %v19311_v55  ;;  %v20063_v55 = vld [vmem:[%s21942_s3 + $0x600] sm:$0xff]  ;;  %v9668_v0 = vrot.slane %v22863_v36, 4 }
 0x700   : > { %9268 = vmatprep.subr.mxu0 %v19414_v2  ;;  %9346 = vmatpush1.msra.mxu1 %v19320_v18  ;;  %v20349_v11 = vld [vmem:[%s21942_s3 + $0x640] sm:$0xff] }
 0x701   : > { %9269 = vmatpush1.msra.mxu0 %v19423_v34  ;;  %9347 = vmatprep.subr.mxu1 %v19332_v62  ;;  %v22833_v62 = vld [vmem:[#allocation64_spill] sm:$0xff]  ;;  %v9670_v36 = vsel %vm3982_vm4, %v9668_v0, %v9669_v56 }
 0x702   : > { %9270 = vmatprep.subr.mxu0 %v22792_v1  ;;  %9348 = vmatpush1.msra.mxu1 %v19341_v33  ;;  %v22827_v33 = vld [vmem:[#allocation42_spill] sm:$0xff] }
 0x703   : > { %9271 = vmatpush1.msra.mxu0 %v19437_v38  ;;  %9349 = vmatprep.subr.mxu1 %v19348_v54  ;;  %v9228_v18 = vrot.slane %v22827_v33, 3  ;;  %v20342_v33 = vld [vmem:[%s21942_s3 + $0x648] sm:$0xff] }
 0x704   : > { %12694 = vmatprep.subr.msk.mxu0 %vm6463_vm10, %v19446_v6  ;;  %9350 = vmatpush1.msra.mxu1 %v19355_v58  ;;  %v22834_v58 = vld [vmem:[#allocation47_spill] sm:$0xff] }
 0x705   : > { %12695 = vmatpush2.msk.msra.mxu0 %vm6463_vm10, %v19455_v24  ;;  %9351 = vmatprep.subr.mxu1 %v19364_v15  ;;  %v20012_v15 = vld [vmem:[%s21942_s3 + $0x630] sm:$0xff] }
 0x706   : > { %9296 = vmatprep.subr.mxu0 %v19462_v17  ;;  %9352 = vmatpush1.msra.mxu1 %v19373_v32  ;;  %v9230_v32 = vsel %vm3060_vm3, %v9228_v18, %v9229_v30 }
 0x707   : > { %9297 = vmatpush2.msra.mxu0 %v19470_v46  ;;  %9353 = vmatprep.subr.mxu1 %v19380_v53  ;;  %v20004_v53 = vld [vmem:[%s21942_s3 + $0x638] sm:$0xff] }
 0x708   : > { %9298 = vmatprep.subr.mxu0 %v19480_v19  ;;  %9354 = vmatpush1.msra.mxu1 %v19387_v3  ;;  %v22832_v3 = vld [vmem:[#allocation29_spill] sm:$0xff] }
 0x709   : > { %9299 = vmatpush2.msra.mxu0 %v19489_v5  ;;  %9355 = vmatprep.subr.mxu1 %v19396_v10  ;;  %v20018_v10 = vld [vmem:[%s21942_s3 + $0x628] sm:$0xff]  ;;  %v7761_v54 = vadd.f32 %v22833_v62, %v22832_v3 }
 0x70a   : > { %9300 = vmatprep.subr.mxu0 %v19496_v16  ;;  %9356 = vmatpush1.msra.mxu1 %v19405_v60  ;;  %v22830_v60 = vld [vmem:[#allocation17_spill] sm:$0xff]  ;;  %v22847_v62 = vld [vmem:[#allocation96_spill] sm:$0xff] }
 0x70b   : > { %9301 = vmatpush2.msra.mxu0 %v19503_v21  ;;  %9357 = vmatprep.subr.mxu1 %v19414_v2  ;;  %v20027_v2 = vld [vmem:[%s21942_s3 + $0x620] sm:$0xff] }
 0x70c   : > { %9302 = vmatprep.subr.mxu0 %v19514_v31  ;;  %9358 = vmatpush1.msra.mxu1 %v19423_v34  ;;  %v22829_v34 = vrot.slane %v22798_v39, 3 }
 0x70d   : > { %9303 = vmatpush2.msra.mxu0 %v19523_v28  ;;  %9359 = vmatprep.subr.mxu1 %v22792_v1  ;;  %v22835_v1 = vld [vmem:[#allocation25_spill] sm:$0xff] }
 0x70e   : > { %9305 = vmatmul.mubr.f32.vlgmr.msra.gmra.mxu0 %v9230_v32  ;;  %9360 = vmatpush1.msra.mxu1 %v19437_v38  ;;  %v22148_v38 = vrot.slane %v22830_v60, 4  ;;  %v9318_v4 = vrot.slane %v22835_v1, 3 }
 0x70f   : > { %9499 = vmatprep.subr.mxu0 %v20004_v53  ;;  %12697 = vmatprep.mubr.msk.f32.mxu0 %vm6458_vm11, %v22829_v34  ;;  %v20139_v34 = vld [vmem:[%s21942_s3 + $0x5c0] sm:$0xff] }
 0x710   : > { %12698 = vmatprep.subr.msk.mxu1 %vm6463_vm10, %v19446_v6  ;;  %9500 = vmatpush1.msra.mxu0 %v20012_v15  ;;  %v20046_v6 = vld [vmem:[%s21942_s3 + $0x610] sm:$0xff] }
 0x711   : > { %12699 = vmatpush2.msk.msra.mxu1 %vm6463_vm10, %v19455_v24  ;;  %9501 = vmatprep.subr.mxu0 %v20018_v10  ;;  %v20053_v24 = vld [vmem:[%s21942_s3 + $0x608] sm:$0xff] }
 0x712   : > { %9385 = vmatprep.subr.mxu1 %v19462_v17  ;;  %9502 = vmatpush1.msra.mxu0 %v20027_v2  ;;  %v9486_v17 = vsel %vm3982_vm4, %v9484_v23, %v22148_v38  ;;  %v22147_v23 = vrot.slane %v22845_v43, 4  ;;  %v20268_v38 = vld [vmem:[%s21942_s3 + $0x548] sm:$0xff] }
 0x713   : > { %9311 = vmatmul.mubr.f32.gmra.mxu0 %v9229_v30  ;;  %9386 = vmatpush2.msra.mxu1 %v19470_v46  ;;  %v9317_v46 = vrot.slane %v22834_v58, 3  ;;  %v20130_v30 = vld [vmem:[%s21942_s3 + $0x5c8] sm:$0xff]  ;;  %v22861_v58 = vld [vmem:[#allocation73_spill] sm:$0xff] }
 0x714   : > { %9503 = vmatprep.subr.mxu0 %v20039_v41  ;;  %9387 = vmatprep.subr.mxu1 %v19480_v19  ;;  %v20072_v19 = vld [vmem:[%s21942_s3 + $0x5f8] sm:$0xff]  ;;  %v9482_v42 = vrot.slane %v22861_v58, 4 }
 0x715   : > { %9504 = vmatpush1.msra.mxu0 %v20046_v6  ;;  %12746 = vmatprep.mubr.msk.f32.mxu0 %vm6458_vm11, %v9486_v17 }
 0x716   : > { %9388 = vmatpush2.msra.mxu1 %v19489_v5  ;;  %9505 = vmatprep.subr.mxu0 %v20053_v24  ;;  %v8513_v63 = vpop.f32.mrf.mxu0 }
 0x717   : > { %9389 = vmatprep.subr.mxu1 %v19496_v16  ;;  %9506 = vmatpush1.msra.mxu0 %v20063_v55  ;;  %v20092_v5 = vadd.f32 %v8513_v63, %v7761_v54  ;;  %v9579_v54 = vrot.slane %v22847_v62, 4  ;;  %v20209_v62 = vld [vmem:[%s21942_s3 + $0x580] sm:$0xff] }
 0x718   : > { %9390 = vmatpush2.msra.mxu1 %v19503_v21  ;;  %9507 = vmatprep.subr.mxu0 %v20072_v19  ;;  %v8515_v9 = vpop.f32.mrf.mxu0  ;;  %v9319_v21 = vsel %vm3060_vm3, %v9317_v46, %v9318_v4  ;;  %v20158_v46 = vld [vmem:[%s21942_s3 + $0x5b0] sm:$0xff]  ;;  %vm11314_vm3 = vcmask 1045509  }
 0x719   : > { %22838 = vst [vmem:[#allocation65_spill] sm:$0xff] %v20092_v5  ;;  %9391 = vmatprep.subr.mxu1 %v19514_v31  ;;  %9508 = vmatpush1.msra.mxu0 %v20081_v52  ;;  %v20103_v16 = vadd.f32 %v8515_v9, %v7763_v47  ;;  %v20119_v31 = vld [vmem:[%s21942_s3 + $0x5d0] sm:$0xff]  ;;  %v9581_v63 = vsel %vm3982_vm4, %v9579_v54, %v22147_v23  ;;  %v20177_v9 = vld [vmem:[%s21942_s3 + $0x5a0] sm:$0xff]  ;;  %v22860_v5 = vld [vmem:[#allocation26_spill] sm:$0xff] }
 0x71a   : > { %9392 = vmatpush2.msra.mxu1 %v19523_v28  ;;  %9509 = vmatprep.subr.mxu0 %v20090_v49  ;;  %v22843_v28 = vld [vmem:[#allocation121_spill] sm:$0xff]  ;;  %v20245_v23 = vld [vmem:[%s21942_s3 + $0x560] sm:$0xff]  ;;  %v9481_v1 = vrot.slane %v22860_v5, 4  ;;  %v22862_v5 = vrot.slane %v22830_v60, 4 }
 0x71b   : > { %22839 = vst [vmem:[#allocation23_spill] sm:$0xff] %v20103_v16  ;;  %9394 = vmatmul.mubr.f32.vlgmr.msra.gmra.mxu1 %v9319_v21  ;;  %9510 = vmatpush1.msra.mxu0 %v20099_v59  ;;  %v8519_v61 = vpop.f32.mrf.mxu0  ;;  %v7769_v18 = vadd.f32 %v22843_v28, %v22842_v13  ;;  %v22851_v21 = vld [vmem:[#allocation48_spill] sm:$0xff]  ;;  %v20193_v13 = vld [vmem:[%s21942_s3 + $0x590] sm:$0xff] }
 0x71c   : > { %9588 = vmatprep.subr.mxu1 %v20004_v53  ;;  %12701 = vmatprep.mubr.msk.f32.mxu1 %vm6458_vm11, %v9321_v8  ;;  %v20132_v32 = vadd.f32 %v8519_v61, %v7767_v37  ;;  %v20147_v8 = vld [vmem:[%s21942_s3 + $0x5b8] sm:$0xff]  ;;  %v22850_v37 = vld [vmem:[#allocation112_spill] sm:$0xff]  ;;  %v20333_v16 = vld [vmem:[%s21942_s3 + $0x650] sm:$0xff]  ;;  %v9483_v58 = vsel %vm3982_vm4, %v9481_v1, %v9482_v42 }
 0x71d   : > { %9511 = vmatprep.subr.mxu0 %v20113_v51  ;;  %9589 = vmatpush1.msra.mxu1 %v20012_v15  ;;  %v8521_v17 = vpop.f32.mrf.mxu0  ;;  %v7844_v61 = vadd.f32 %v22851_v21, %v22850_v37  ;;  %v22856_v21 = vld [vmem:[#allocation62_spill] sm:$0xff]  ;;  %v22865_v60 = vld [vmem:[#allocation85_spill] sm:$0xff] }
 0x71e   : > { %22844 = vst [vmem:[#allocation90_spill] sm:$0xff] %v20132_v32  ;;  %9512 = vmatpush1.msra.mxu0 %v20119_v31  ;;  %9590 = vmatprep.subr.mxu1 %v20018_v10  ;;  %v20149_v3 = vadd.f32 %v8521_v17, %v7769_v18  ;;  %v20202_v18 = vld [vmem:[%s21942_s3 + $0x588] sm:$0xff]  ;;  %v20326_v32 = vld [vmem:[%s21942_s3 + $0x658] sm:$0xff]  ;;  %v9577_v1 = vrot.slane %v22865_v60, 4 }
 0x71f   : > { %9513 = vmatprep.subr.mxu0 %v20130_v30  ;;  %9591 = vmatpush1.msra.mxu1 %v20027_v2 }
 0x720   : > { %22846 = vst [vmem:[#allocation7_spill] sm:$0xff] %v20149_v3  ;;  %9400 = vmatmul.mubr.f32.gmra.mxu1 %v9318_v4  ;;  %9514 = vmatpush1.msra.mxu0 %v20139_v34  ;;  %v22848_v4 = vld [vmem:[#allocation57_spill] sm:$0xff]  ;;  %v20319_v3 = vld [vmem:[%s21942_s3 + $0x660] sm:$0xff] }
 0x721   : > { %9592 = vmatprep.subr.mxu1 %v20039_v41  ;;  %9515 = vmatprep.subr.mxu0 %v20147_v8  ;;  %v7842_v47 = vadd.f32 %v22849_v25, %v22848_v4  ;;  %v22855_v4 = vld [vmem:[#allocation116_spill] sm:$0xff] }
 0x722   : > { %9593 = vmatpush1.msra.mxu1 %v20046_v6  ;;  %12750 = vmatprep.mubr.msk.f32.mxu1 %vm6458_vm11, %v9581_v63  ;;  %v22854_v63 = vld [vmem:[#allocation60_spill] sm:$0xff] }
 0x723   : > { %9516 = vmatpush1.msra.mxu0 %v20158_v46  ;;  %9594 = vmatprep.subr.mxu1 %v20053_v24  ;;  %v8602_v27 = vpop.f32.mrf.mxu1  ;;  %v7848_v25 = vadd.f32 %v22855_v4, %v22854_v63  ;;  %v20236_v63 = vld [vmem:[%s21942_s3 + $0x568] sm:$0xff] }
 0x724   : > { %9517 = vmatprep.subr.mxu0 %v20168_v20  ;;  %9595 = vmatpush1.msra.mxu1 %v20063_v55  ;;  %v20195_v28 = vadd.f32 %v8602_v27, %v7842_v47  ;;  %v20220_v47 = vld [vmem:[%s21942_s3 + $0x578] sm:$0xff]  ;;  %v20227_v27 = vld [vmem:[%s21942_s3 + $0x570] sm:$0xff] }
 0x725   : > { %9518 = vmatpush1.msra.mxu0 %v20177_v9  ;;  %9596 = vmatprep.subr.mxu1 %v20072_v19  ;;  %v8604_v17 = vpop.f32.mrf.mxu1 }
 0x726   : > { %22852 = vst [vmem:[#allocation22_spill] sm:$0xff] %v20195_v28  ;;  %9519 = vmatprep.subr.mxu0 %v20184_v29  ;;  %9597 = vmatpush1.msra.mxu1 %v20081_v52  ;;  %v20211_v54 = vadd.f32 %v8604_v17, %v7844_v61  ;;  %v22857_v61 = vld [vmem:[#allocation8_spill] sm:$0xff] }
 0x727   : > { %9520 = vmatpush1.msra.mxu0 %v20193_v13  ;;  %9598 = vmatprep.subr.mxu1 %v20090_v49  ;;  %v7850_v17 = vadd.f32 %v22857_v61, %v22856_v21  ;;  %v20252_v61 = vld [vmem:[%s21942_s3 + $0x558] sm:$0xff]  ;;  %v20312_v28 = vld [vmem:[%s21942_s3 + $0x668] sm:$0xff] }
 0x728   : > { %22853 = vst [vmem:[#allocation91_spill] sm:$0xff] %v20211_v54  ;;  %9521 = vmatprep.subr.mxu0 %v20202_v18  ;;  %9599 = vmatpush1.msra.mxu1 %v20099_v59  ;;  %v8608_v37 = vpop.f32.mrf.mxu1  ;;  %v20304_v54 = vld [vmem:[%s21942_s3 + $0x670] sm:$0xff] }
 0x729   : > { %9522 = vmatpush1.msra.mxu0 %v20209_v62  ;;  %9600 = vmatprep.subr.mxu1 %v20113_v51  ;;  %v20238_v4 = vadd.f32 %v8608_v37, %v7848_v25  ;;  %v20261_v37 = vld [vmem:[%s21942_s3 + $0x550] sm:$0xff] }
 0x72a   : > { %9523 = vmatprep.subr.mxu0 %v20220_v47  ;;  %9601 = vmatpush1.msra.mxu1 %v20119_v31  ;;  %v8610_v21 = vpop.f32.mrf.mxu1 }
 0x72b   : > { %22858 = vst [vmem:[#allocation79_spill] sm:$0xff] %v20238_v4  ;;  %9524 = vmatpush1.msra.mxu0 %v20227_v27  ;;  %9602 = vmatprep.subr.mxu1 %v20130_v30  ;;  %v20254_v25 = vadd.f32 %v8610_v21, %v7850_v17  ;;  %v20275_v17 = vld [vmem:[%s21942_s3 + $0x540] sm:$0xff]  ;;  %v20282_v21 = vld [vmem:[%s21942_s3 + $0x688] sm:$0x3]  ;;  %v20296_v4 = vld [vmem:[%s21942_s3 + $0x678] sm:$0xff] }
 0x72c   : > { %9525 = vmatprep.subr.mxu0 %v20236_v63  ;;  %9603 = vmatpush1.msra.mxu1 %v20139_v34 }
 0x72d   : > { %22859 = vst [vmem:[#allocation70_spill] sm:$0xff] %v20254_v25  ;;  %9526 = vmatpush1.msra.mxu0 %v20245_v23  ;;  %9604 = vmatprep.subr.mxu1 %v20147_v8  ;;  %v20289_v25 = vld [vmem:[%s21942_s3 + $0x680] sm:$0x3] }
 0x72e   : > { %9527 = vmatprep.subr.mxu0 %v20252_v61  ;;  %9605 = vmatpush1.msra.mxu1 %v20158_v46 }
 0x72f   : > { %9528 = vmatpush1.msra.mxu0 %v20261_v37  ;;  %9606 = vmatprep.subr.mxu1 %v20168_v20 }
 0x730   : > { %9529 = vmatprep.subr.mxu0 %v20268_v38  ;;  %9607 = vmatpush1.msra.mxu1 %v20177_v9 }
 0x731   : > { %9530 = vmatpush1.msra.mxu0 %v20275_v17  ;;  %9608 = vmatprep.subr.mxu1 %v20184_v29 }
 0x732   : > { %12744 = vmatprep.subr.msk.mxu0 %vm6463_vm10, %v20282_v21  ;;  %9609 = vmatpush1.msra.mxu1 %v20193_v13 }
 0x733   : > { %12745 = vmatpush2.msk.msra.mxu0 %vm6463_vm10, %v20289_v25  ;;  %9610 = vmatprep.subr.mxu1 %v20202_v18 }
 0x734   : > { %9555 = vmatprep.subr.mxu0 %v20296_v4  ;;  %9611 = vmatpush1.msra.mxu1 %v20209_v62 }
 0x735   : > { %9556 = vmatpush2.msra.mxu0 %v20304_v54  ;;  %9612 = vmatprep.subr.mxu1 %v20220_v47 }
 0x736   : > { %9557 = vmatprep.subr.mxu0 %v20312_v28  ;;  %9613 = vmatpush1.msra.mxu1 %v20227_v27 }
 0x737   : > { %9558 = vmatpush2.msra.mxu0 %v20319_v3  ;;  %9614 = vmatprep.subr.mxu1 %v20236_v63 }
 0x738   : > { %9559 = vmatprep.subr.mxu0 %v20326_v32  ;;  %9615 = vmatpush1.msra.mxu1 %v20245_v23 }
 0x739   : > { %9560 = vmatpush2.msra.mxu0 %v20333_v16  ;;  %9616 = vmatprep.subr.mxu1 %v20252_v61 }
 0x73a   : > { %9561 = vmatprep.subr.mxu0 %v20342_v33  ;;  %9617 = vmatpush1.msra.mxu1 %v20261_v37 }
 0x73b   : > { %9562 = vmatpush2.msra.mxu0 %v20349_v11  ;;  %9618 = vmatprep.subr.mxu1 %v20268_v38 }
 0x73c   : > { %9564 = vmatmul.mubr.f32.vlgmr.msra.gmra.mxu0 %v9483_v58  ;;  %9619 = vmatpush1.msra.mxu1 %v20275_v17 }
 0x73d   : > { %9677 = vmatprep.subr.mxu0 %v20004_v53  ;;  %12747 = vmatprep.mubr.msk.f32.mxu0 %vm6458_vm11, %v22862_v5  ;;  %v22867_v5 = vrot.slane %v22845_v43, 4 }
 0x73e   : > { %12748 = vmatprep.subr.msk.mxu1 %vm6463_vm10, %v20282_v21  ;;  %9678 = vmatpush1.msra.mxu0 %v20012_v15 }
 0x73f   : > { %12749 = vmatpush2.msk.msra.mxu1 %vm6463_vm10, %v20289_v25  ;;  %9679 = vmatprep.subr.mxu0 %v20018_v10 }
 0x740   : > { %9644 = vmatprep.subr.mxu1 %v20296_v4  ;;  %9680 = vmatpush1.msra.mxu0 %v20027_v2 }
 0x741   : > { %9570 = vmatmul.mubr.f32.gmra.mxu0 %v9482_v42  ;;  %9645 = vmatpush2.msra.mxu1 %v20304_v54  ;;  %v22866_v42 = vld [vmem:[#allocation31_spill] sm:$0xff] }
 0x742   : > { %9681 = vmatprep.subr.mxu0 %v20039_v41  ;;  %9646 = vmatprep.subr.mxu1 %v20312_v28  ;;  %v9576_v58 = vrot.slane %v22866_v42, 4  ;;  %v22149_v42 = vrot.slane %v22676_v35, 4 }
 0x743   : > { %9682 = vmatpush1.msra.mxu0 %v20046_v6  ;;  %12754 = vmatprep.mubr.msk.f32.mxu0 %vm6458_vm11, %v9670_v36  ;;  %v22868_v36 = vld [vmem:[#allocation18_spill] sm:$0xff] }
 0x744   : > { %9647 = vmatpush2.msra.mxu1 %v20319_v3  ;;  %9683 = vmatprep.subr.mxu0 %v20053_v24  ;;  %v9578_v0 = vsel %vm3982_vm4, %v9576_v58, %v9577_v1  ;;  %v9757_v60 = vrot.slane %v22868_v36, 4  ;;  %v22869_v58 = vld [vmem:[#allocation97_spill] sm:$0xff] }
 0x745   : > { %9648 = vmatprep.subr.mxu1 %v20326_v32  ;;  %9684 = vmatpush1.msra.mxu0 %v20063_v55 }
 0x746   : > { %9649 = vmatpush2.msra.mxu1 %v20333_v16  ;;  %9685 = vmatprep.subr.mxu0 %v20072_v19  ;;  %v9759_v43 = vsel %vm3982_vm4, %v9757_v60, %v22149_v42 }
 0x747   : > { %9650 = vmatprep.subr.mxu1 %v20342_v33  ;;  %9686 = vmatpush1.msra.mxu0 %v20081_v52 }
 0x748   : > { %9651 = vmatpush2.msra.mxu1 %v20349_v11  ;;  %9687 = vmatprep.subr.mxu0 %v20090_v49 }
 0x749   : > { %9653 = vmatmul.mubr.f32.vlgmr.msra.gmra.mxu1 %v9578_v0  ;;  %9688 = vmatpush1.msra.mxu0 %v20099_v59  ;;  %v9665_v0 = vrot.slane %v22869_v58, 4 }
 0x74a   : > { %9766 = vmatprep.subr.mxu1 %v20004_v53  ;;  %12751 = vmatprep.mubr.msk.f32.mxu1 %vm6458_vm11, %v22867_v5  ;;  %v22870_v5 = vld [vmem:[#allocation19_spill] sm:$0xff] }
 0x74b   : > { %9689 = vmatprep.subr.mxu0 %v20113_v51  ;;  %9767 = vmatpush1.msra.mxu1 %v20012_v15  ;;  %v9666_v36 = vrot.slane %v22870_v5, 4  ;;  %v22871_v5 = vld [vmem:[#allocation100_spill] sm:$0xff] }
 0x74c   : > { %9690 = vmatpush1.msra.mxu0 %v20119_v31  ;;  %9768 = vmatprep.subr.mxu1 %v20018_v10  ;;  %v9846_v42 = vrot.slane %v22871_v5, 4  ;;  %v9755_v5 = vrot.slane %v22775_v40, 4 }
 0x74d   : > { %9691 = vmatprep.subr.mxu0 %v20130_v30  ;;  %9769 = vmatpush1.msra.mxu1 %v20027_v2 }
 0x74e   : > { %9659 = vmatmul.mubr.f32.gmra.mxu1 %v9577_v1  ;;  %9692 = vmatpush1.msra.mxu0 %v20139_v34  ;;  %v20455_v1 = vpop.f32.mrf.mxu0 }
 0x74f   : > { %9770 = vmatprep.subr.mxu1 %v20039_v41  ;;  %9693 = vmatprep.subr.mxu0 %v20147_v8 }
 0x750   : > { %9771 = vmatpush1.msra.mxu1 %v20046_v6  ;;  %12758 = vmatprep.mubr.msk.f32.mxu1 %vm6458_vm11, %v9759_v43  ;;  %v20467_v60 = vpop.f32.mrf.mxu0  ;;  %v9667_v43 = vsel %vm3982_vm4, %v9665_v0, %v9666_v36  ;;  %v22150_v0 = vrot.slane %v22795_v26, 4 }
 0x751   : > { %9694 = vmatpush1.msra.mxu0 %v20158_v46  ;;  %9772 = vmatprep.subr.mxu1 %v20053_v24 }
 0x752   : > { %9695 = vmatprep.subr.mxu0 %v20168_v20  ;;  %9773 = vmatpush1.msra.mxu1 %v20063_v55  ;;  %v20479_v58 = vpop.f32.mrf.mxu0  ;;  %v9848_v45 = vsel %vm3982_vm4, %v9846_v42, %v22150_v0  ;;  %v22876_v0 = vrot.slane %v22676_v35, 4  ;;  %v22879_v35 = vld [vmem:[#allocation66_spill] sm:$0xff] }
 0x753   : > { %9696 = vmatpush1.msra.mxu0 %v20177_v9  ;;  %9774 = vmatprep.subr.mxu1 %v20072_v19 }
 0x754   : > { %9697 = vmatprep.subr.mxu0 %v20184_v29  ;;  %9775 = vmatpush1.msra.mxu1 %v20081_v52 }
 0x755   : > { %9698 = vmatpush1.msra.mxu0 %v20193_v13  ;;  %9776 = vmatprep.subr.mxu1 %v20090_v49 }
 0x756   : > { %9699 = vmatprep.subr.mxu0 %v20202_v18  ;;  %9777 = vmatpush1.msra.mxu1 %v20099_v59 }
 0x757   : > { %9700 = vmatpush1.msra.mxu0 %v20209_v62  ;;  %9778 = vmatprep.subr.mxu1 %v20113_v51 }
 0x758   : > { %9701 = vmatprep.subr.mxu0 %v20220_v47  ;;  %9779 = vmatpush1.msra.mxu1 %v20119_v31 }
 0x759   : > { %9702 = vmatpush1.msra.mxu0 %v20227_v27  ;;  %9780 = vmatprep.subr.mxu1 %v20130_v30 }
 0x75a   : > { %9703 = vmatprep.subr.mxu0 %v20236_v63  ;;  %9781 = vmatpush1.msra.mxu1 %v20139_v34 }
 0x75b   : > { %9704 = vmatpush1.msra.mxu0 %v20245_v23  ;;  %9782 = vmatprep.subr.mxu1 %v20147_v8 }
 0x75c   : > { %9705 = vmatprep.subr.mxu0 %v20252_v61  ;;  %9783 = vmatpush1.msra.mxu1 %v20158_v46 }
 0x75d   : > { %9706 = vmatpush1.msra.mxu0 %v20261_v37  ;;  %9784 = vmatprep.subr.mxu1 %v20168_v20 }
 0x75e   : > { %9707 = vmatprep.subr.mxu0 %v20268_v38  ;;  %9785 = vmatpush1.msra.mxu1 %v20177_v9 }
 0x75f   : > { %9708 = vmatpush1.msra.mxu0 %v20275_v17  ;;  %9786 = vmatprep.subr.mxu1 %v20184_v29 }
 0x760   : > { %12752 = vmatprep.subr.msk.mxu0 %vm6463_vm10, %v20282_v21  ;;  %9787 = vmatpush1.msra.mxu1 %v20193_v13 }
 0x761   : > { %12753 = vmatpush2.msk.msra.mxu0 %vm6463_vm10, %v20289_v25  ;;  %9788 = vmatprep.subr.mxu1 %v20202_v18 }
 0x762   : > { %9733 = vmatprep.subr.mxu0 %v20296_v4  ;;  %9789 = vmatpush1.msra.mxu1 %v20209_v62 }
 0x763   : > { %9734 = vmatpush2.msra.mxu0 %v20304_v54  ;;  %9790 = vmatprep.subr.mxu1 %v20220_v47 }
 0x764   : > { %9735 = vmatprep.subr.mxu0 %v20312_v28  ;;  %9791 = vmatpush1.msra.mxu1 %v20227_v27 }
 0x765   : > { %9736 = vmatpush2.msra.mxu0 %v20319_v3  ;;  %9792 = vmatprep.subr.mxu1 %v20236_v63 }
 0x766   : > { %9737 = vmatprep.subr.mxu0 %v20326_v32  ;;  %9793 = vmatpush1.msra.mxu1 %v20245_v23 }
 0x767   : > { %9738 = vmatpush2.msra.mxu0 %v20333_v16  ;;  %9794 = vmatprep.subr.mxu1 %v20252_v61 }
 0x768   : > { %9739 = vmatprep.subr.mxu0 %v20342_v33  ;;  %9795 = vmatpush1.msra.mxu1 %v20261_v37 }
 0x769   : > { %9740 = vmatpush2.msra.mxu0 %v20349_v11  ;;  %9796 = vmatprep.subr.mxu1 %v20268_v38 }
 0x76a   : > { %9742 = vmatmul.mubr.f32.vlgmr.msra.gmra.mxu0 %v9667_v43  ;;  %9797 = vmatpush1.msra.mxu1 %v20275_v17  ;;  %v20499_v43 = vpop.f32.mrf.mxu1 }
 0x76b   : > { %9855 = vmatprep.subr.mxu0 %v20004_v53  ;;  %12755 = vmatprep.mubr.msk.f32.mxu0 %vm6458_vm11, %v9669_v56  ;;  %v20492_v56 = vpop.f32.mrf.mxu0 }
 0x76c   : > { %12756 = vmatprep.subr.msk.mxu1 %vm6463_vm10, %v20282_v21  ;;  %9856 = vmatpush1.msra.mxu0 %v20012_v15  ;;  %22872 = vst [vmem:[#allocation27_spill] sm:$0xff] %v20492_v56 }
 0x76d   : > { %12757 = vmatpush2.msk.msra.mxu1 %vm6463_vm10, %v20289_v25  ;;  %9857 = vmatprep.subr.mxu0 %v20018_v10 }
 0x76e   : > { %9822 = vmatprep.subr.mxu1 %v20296_v4  ;;  %9858 = vmatpush1.msra.mxu0 %v20027_v2 }
 0x76f   : > { %9748 = vmatmul.mubr.f32.gmra.mxu0 %v9666_v36  ;;  %9823 = vmatpush2.msra.mxu1 %v20304_v54  ;;  %v9754_v36 = vrot.slane %v22690_v12, 4  ;;  %v20514_v12 = vpop.f32.mrf.mxu1 }
 0x770   : > { %9859 = vmatprep.subr.mxu0 %v20039_v41  ;;  %9824 = vmatprep.subr.mxu1 %v20312_v28  ;;  %22874 = vst [vmem:[#allocation86_spill] sm:$0xff] %v20514_v12 }
 0x771   : > { %9860 = vmatpush1.msra.mxu0 %v20046_v6  ;;  %12762 = vmatprep.mubr.msk.f32.mxu0 %vm6458_vm11, %v9848_v45 }
 0x772   : > { %9825 = vmatpush2.msra.mxu1 %v20319_v3  ;;  %9861 = vmatprep.subr.mxu0 %v20053_v24  ;;  %v8950_v56 = vpop.f32.mrf.mxu0 }
 0x773   : > { %9826 = vmatprep.subr.mxu1 %v20326_v32  ;;  %9862 = vmatpush1.msra.mxu0 %v20063_v55  ;;  %v20510_v42 = vadd.f32 %v8950_v56, %v19743_v14  ;;  %v9756_v14 = vsel %vm3982_vm4, %v9754_v36, %v9755_v5  ;;  %v22878_v36 = vld [vmem:[#allocation20_spill] sm:$0xff] }
 0x774   : > { %9827 = vmatpush2.msra.mxu1 %v20333_v16  ;;  %9863 = vmatprep.subr.mxu0 %v20072_v19  ;;  %v8952_v45 = vpop.f32.mrf.mxu0 }
 0x775   : > { %22873 = vst [vmem:[#allocation12_spill] sm:$0xff] %v20510_v42  ;;  %9828 = vmatprep.subr.mxu1 %v20342_v33  ;;  %9864 = vmatpush1.msra.mxu0 %v20081_v52  ;;  %v20519_v40 = vadd.f32 %v8952_v45, %v19751_v44  ;;  %v22877_v42 = vld [vmem:[#allocation10_spill] sm:$0xff]  ;;  %v20532_v44 = vpop.f32.mrf.mxu1  ;;  %v9935_v45 = vrot.slane %v22878_v36, 4 }
 0x776   : > { %9829 = vmatpush2.msra.mxu1 %v20349_v11  ;;  %9865 = vmatprep.subr.mxu0 %v20090_v49 }
 0x777   : > { %22875 = vst [vmem:[#allocation87_spill] sm:$0xff] %v20519_v40  ;;  %9831 = vmatmul.mubr.f32.vlgmr.msra.gmra.mxu1 %v9756_v14  ;;  %9866 = vmatpush1.msra.mxu0 %v20099_v59  ;;  %v8956_v56 = vpop.f32.mrf.mxu0  ;;  %v22151_v14 = vrot.slane %v22780_v48, 4 }
 0x778   : > { %9944 = vmatprep.subr.mxu1 %v20004_v53  ;;  %12759 = vmatprep.mubr.msk.f32.mxu1 %vm6458_vm11, %v22876_v0  ;;  %v20530_v12 = vadd.f32 %v8956_v56, %v22877_v42  ;;  %v20546_v42 = vpop.f32.mrf.mxu1 }
 0x779   : > { %9867 = vmatprep.subr.mxu0 %v20113_v51  ;;  %9945 = vmatpush1.msra.mxu1 %v20012_v15  ;;  %v8958_v40 = vpop.f32.mrf.mxu0  ;;  %v9937_v56 = vsel %vm3982_vm4, %v9935_v45, %v22151_v14 }
 0x77a   : > { %9868 = vmatpush1.msra.mxu0 %v20119_v31  ;;  %9946 = vmatprep.subr.mxu1 %v20018_v10  ;;  %v20541_v0 = vadd.f32 %v8958_v40, %v22879_v35  ;;  %v22881_v40 = vld [vmem:[#allocation9_spill] sm:$0xff]  ;;  %v22883_v35 = vld [vmem:[#allocation15_spill] sm:$0xff] }
 0x77b   : > { %9869 = vmatprep.subr.mxu0 %v20130_v30  ;;  %9947 = vmatpush1.msra.mxu1 %v20027_v2 }
 0x77c   : > { %22880 = vst [vmem:[#allocation102_spill] sm:$0xff] %v20541_v0  ;;  %9837 = vmatmul.mubr.f32.gmra.mxu1 %v9755_v5  ;;  %9870 = vmatpush1.msra.mxu0 %v20139_v34 }
 0x77d   : > { %9948 = vmatprep.subr.mxu1 %v20039_v41  ;;  %9871 = vmatprep.subr.mxu0 %v20147_v8 }
 0x77e   : > { %9949 = vmatpush1.msra.mxu1 %v20046_v6  ;;  %12766 = vmatprep.mubr.msk.f32.mxu1 %vm6458_vm11, %v9937_v56 }
 0x77f   : > { %9872 = vmatpush1.msra.mxu0 %v20158_v46  ;;  %9950 = vmatprep.subr.mxu1 %v20053_v24  ;;  %v9039_v5 = vpop.f32.mrf.mxu1 }
 0x780   : > { %9873 = vmatprep.subr.mxu0 %v20168_v20  ;;  %9951 = vmatpush1.msra.mxu1 %v20063_v55  ;;  %v20560_v36 = vadd.f32 %v9039_v5, %v22881_v40  ;;  %v22885_v40 = vld [vmem:[#allocation80_spill] sm:$0xff] }
 0x781   : > { %9874 = vmatpush1.msra.mxu0 %v20177_v9  ;;  %9952 = vmatprep.subr.mxu1 %v20072_v19  ;;  %v9041_v45 = vpop.f32.mrf.mxu1 }
 0x782   : > { %22882 = vst [vmem:[#allocation45_spill] sm:$0xff] %v20560_v36  ;;  %9875 = vmatprep.subr.mxu0 %v20184_v29  ;;  %9953 = vmatpush1.msra.mxu1 %v20081_v52  ;;  %v20567_v56 = vadd.f32 %v9041_v45, %v22883_v35  ;;  %v22887_v35 = vld [vmem:[#allocation14_spill] sm:$0xff]  ;;  %v22152_v36 = vrot.slane %v22798_v39, 4 }
 0x783   : > { %9876 = vmatpush1.msra.mxu0 %v20193_v13  ;;  %9954 = vmatprep.subr.mxu1 %v20090_v49 }
 0x784   : > { %22884 = vst [vmem:[#allocation115_spill] sm:$0xff] %v20567_v56  ;;  %9877 = vmatprep.subr.mxu0 %v20202_v18  ;;  %9955 = vmatpush1.msra.mxu1 %v20099_v59  ;;  %v9045_v5 = vpop.f32.mrf.mxu1 }
 0x785   : > { %9878 = vmatpush1.msra.mxu0 %v20209_v62  ;;  %9956 = vmatprep.subr.mxu1 %v20113_v51  ;;  %v20576_v14 = vadd.f32 %v9045_v5, %v22885_v40  ;;  %v22889_v5 = vld [vmem:[#allocation39_spill] sm:$0xff] }
 0x786   : > { %9879 = vmatprep.subr.mxu0 %v20220_v47  ;;  %9957 = vmatpush1.msra.mxu1 %v20119_v31  ;;  %v9047_v45 = vpop.f32.mrf.mxu1  ;;  %v9843_v40 = vrot.slane %v22889_v5, 4 }
 0x787   : > { %22886 = vst [vmem:[#allocation21_spill] sm:$0xff] %v20576_v14  ;;  %9880 = vmatpush1.msra.mxu0 %v20227_v27  ;;  %9958 = vmatprep.subr.mxu1 %v20130_v30  ;;  %v20583_v56 = vadd.f32 %v9047_v45, %v22887_v35  ;;  %v22890_v45 = vld [vmem:[#allocation38_spill] sm:$0xff] }
 0x788   : > { %9881 = vmatprep.subr.mxu0 %v20236_v63  ;;  %9959 = vmatpush1.msra.mxu1 %v20139_v34  ;;  %v9844_v35 = vrot.slane %v22890_v45, 4  ;;  %v22891_v45 = vrot.slane %v22795_v26, 4 }
 0x789   : > { %22888 = vst [vmem:[#allocation41_spill] sm:$0xff] %v20583_v56  ;;  %9882 = vmatpush1.msra.mxu0 %v20245_v23  ;;  %9960 = vmatprep.subr.mxu1 %v20147_v8  ;;  %v22892_v56 = vld [vmem:[#allocation103_spill] sm:$0xff] }
 0x78a   : > { %9883 = vmatprep.subr.mxu0 %v20252_v61  ;;  %9961 = vmatpush1.msra.mxu1 %v20158_v46  ;;  %v9845_v5 = vsel %vm3982_vm4, %v9843_v40, %v9844_v35  ;;  %v10024_v14 = vrot.slane %v22892_v56, 4  ;;  %v9932_v56 = vrot.slane %v22801_v57, 4  ;;  %v22893_v40 = vld [vmem:[#allocation43_spill] sm:$0xff]  ;;  %v22895_v57 = vld [vmem:[#allocation120_spill] sm:$0xff] }
 0x78b   : > { %9884 = vmatpush1.msra.mxu0 %v20261_v37  ;;  %9962 = vmatprep.subr.mxu1 %v20168_v20 }
 0x78c   : > { %9885 = vmatprep.subr.mxu0 %v20268_v38  ;;  %9963 = vmatpush1.msra.mxu1 %v20177_v9  ;;  %v10026_v26 = vsel %vm3982_vm4, %v10024_v14, %v22152_v36 }
 0x78d   : > { %9886 = vmatpush1.msra.mxu0 %v20275_v17  ;;  %9964 = vmatprep.subr.mxu1 %v20184_v29 }
 0x78e   : > { %12760 = vmatprep.subr.msk.mxu0 %vm6463_vm10, %v20282_v21  ;;  %9965 = vmatpush1.msra.mxu1 %v20193_v13 }
 0x78f   : > { %12761 = vmatpush2.msk.msra.mxu0 %vm6463_vm10, %v20289_v25  ;;  %9966 = vmatprep.subr.mxu1 %v20202_v18 }
 0x790   : > { %9911 = vmatprep.subr.mxu0 %v20296_v4  ;;  %9967 = vmatpush1.msra.mxu1 %v20209_v62 }
 0x791   : > { %9912 = vmatpush2.msra.mxu0 %v20304_v54  ;;  %9968 = vmatprep.subr.mxu1 %v20220_v47 }
 0x792   : > { %9913 = vmatprep.subr.mxu0 %v20312_v28  ;;  %9969 = vmatpush1.msra.mxu1 %v20227_v27 }
 0x793   : > { %9914 = vmatpush2.msra.mxu0 %v20319_v3  ;;  %9970 = vmatprep.subr.mxu1 %v20236_v63 }
 0x794   : > { %9915 = vmatprep.subr.mxu0 %v20326_v32  ;;  %9971 = vmatpush1.msra.mxu1 %v20245_v23 }
 0x795   : > { %9916 = vmatpush2.msra.mxu0 %v20333_v16  ;;  %9972 = vmatprep.subr.mxu1 %v20252_v61 }
 0x796   : > { %9917 = vmatprep.subr.mxu0 %v20342_v33  ;;  %9973 = vmatpush1.msra.mxu1 %v20261_v37 }
 0x797   : > { %9918 = vmatpush2.msra.mxu0 %v20349_v11  ;;  %9974 = vmatprep.subr.mxu1 %v20268_v38 }
 0x798   : > { %9920 = vmatmul.mubr.f32.vlgmr.msra.gmra.mxu0 %v9845_v5  ;;  %9975 = vmatpush1.msra.mxu1 %v20275_v17  ;;  %v9933_v5 = vrot.slane %v22893_v40, 4 }
 0x799   : > { %10033 = vmatprep.subr.mxu0 %v20004_v53  ;;  %12763 = vmatprep.mubr.msk.f32.mxu0 %vm6458_vm11, %v22891_v45  ;;  %v22894_v45 = vld [vmem:[#allocation67_spill] sm:$0xff] }
 0x79a   : > { %12764 = vmatprep.subr.msk.mxu1 %vm6463_vm10, %v20282_v21  ;;  %10034 = vmatpush1.msra.mxu0 %v20012_v15  ;;  %v9934_v40 = vsel %vm3982_vm4, %v9932_v56, %v9933_v5  ;;  %v10114_v56 = vrot.slane %v22813_v22, 4 }
 0x79b   : > { %12765 = vmatpush2.msk.msra.mxu1 %vm6463_vm10, %v20289_v25  ;;  %10035 = vmatprep.subr.mxu0 %v20018_v10 }
 0x79c   : > { %10000 = vmatprep.subr.mxu1 %v20296_v4  ;;  %10036 = vmatpush1.msra.mxu0 %v20027_v2 }
 0x79d   : > { %9926 = vmatmul.mubr.f32.gmra.mxu0 %v9844_v35  ;;  %10001 = vmatpush2.msra.mxu1 %v20304_v54 }
 0x79e   : > { %10037 = vmatprep.subr.mxu0 %v20039_v41  ;;  %10002 = vmatprep.subr.mxu1 %v20312_v28 }
 0x79f   : > { %10038 = vmatpush1.msra.mxu0 %v20046_v6  ;;  %12770 = vmatprep.mubr.msk.f32.mxu0 %vm6458_vm11, %v10026_v26 }
 0x7a0   : > { %10003 = vmatpush2.msra.mxu1 %v20319_v3  ;;  %10039 = vmatprep.subr.mxu0 %v20053_v24  ;;  %v9128_v35 = vpop.f32.mrf.mxu0 }
 0x7a1   : > { %10004 = vmatprep.subr.mxu1 %v20326_v32  ;;  %10040 = vmatpush1.msra.mxu0 %v20063_v55  ;;  %v20652_v0 = vadd.f32 %v9128_v35, %v22894_v45  ;;  %v22896_v45 = vrot.slane %v22780_v48, 4 }
 0x7a2   : > { %10005 = vmatpush2.msra.mxu1 %v20333_v16  ;;  %10041 = vmatprep.subr.mxu0 %v20072_v19  ;;  %v9130_v14 = vpop.f32.mrf.mxu0 }
 0x7a3   : > { %10006 = vmatprep.subr.mxu1 %v20342_v33  ;;  %10042 = vmatpush1.msra.mxu0 %v20081_v52  ;;  %v20659_v26 = vadd.f32 %v9130_v14, %v22895_v57  ;;  %v10113_v14 = vrot.slane %v22812_v7, 4 }
 0x7a4   : > { %10007 = vmatpush2.msra.mxu1 %v20349_v11  ;;  %10043 = vmatprep.subr.mxu0 %v20090_v49 }
 0x7a5   : > { %10009 = vmatmul.mubr.f32.vlgmr.msra.gmra.mxu1 %v9934_v40  ;;  %10044 = vmatpush1.msra.mxu0 %v20099_v59  ;;  %v9134_v35 = vpop.f32.mrf.mxu0 }
 0x7a6   : > { %10122 = vmatprep.subr.mxu1 %v20004_v53  ;;  %12767 = vmatprep.mubr.msk.f32.mxu1 %vm6458_vm11, %v22896_v45  ;;  %v20670_v36 = vadd.f32 %v9134_v35, %v19913_v50  ;;  %v22897_v53 = vld [vmem:[#allocation81_spill] sm:$0xff]  ;;  %v10115_v50 = vsel %vm3982_vm4, %v10113_v14, %v10114_v56  ;;  %v22915_v35 = vld [vmem:[#allocation70_spill] sm:$0xff] }
 0x7a7   : > { %10045 = vmatprep.subr.mxu0 %v20113_v51  ;;  %10123 = vmatpush1.msra.mxu1 %v20012_v15  ;;  %v9136_v57 = vpop.f32.mrf.mxu0  ;;  %v22898_v15 = vld [vmem:[#allocation69_spill] sm:$0xff]  ;;  %v22916_v14 = vld [vmem:[#allocation106_spill] sm:$0xff] }
 0x7a8   : > { %10046 = vmatpush1.msra.mxu0 %v20119_v31  ;;  %10124 = vmatprep.subr.mxu1 %v20018_v10  ;;  %v20679_v48 = vadd.f32 %v9136_v57, %v22897_v53  ;;  %v10231_v53 = vld [vmem:[%s21943_s4] sm:$0x3] }
 0x7a9   : > { %10047 = vmatprep.subr.mxu0 %v20130_v30  ;;  %10125 = vmatpush1.msra.mxu1 %v20027_v2 }
 0x7aa   : > { %10015 = vmatmul.mubr.f32.gmra.mxu1 %v9933_v5  ;;  %10048 = vmatpush1.msra.mxu0 %v20139_v34 }
 0x7ab   : > { %10126 = vmatprep.subr.mxu1 %v20039_v41  ;;  %10049 = vmatprep.subr.mxu0 %v20147_v8  ;;  %v22899_v41 = vld [vmem:[#allocation13_spill] sm:$0xff] }
 0x7ac   : > { %10127 = vmatpush1.msra.mxu1 %v20046_v6  ;;  %12774 = vmatprep.mubr.msk.f32.mxu1 %vm6458_vm11, %v10115_v50  ;;  %v22918_v50 = vld [vmem:[#allocation92_spill] sm:$0xff] }
 0x7ad   : > { %10050 = vmatpush1.msra.mxu0 %v20158_v46  ;;  %10128 = vmatprep.subr.mxu1 %v20053_v24  ;;  %v9217_v7 = vpop.f32.mrf.mxu1 }
 0x7ae   : > { %10051 = vmatprep.subr.mxu0 %v20168_v20  ;;  %10129 = vmatpush1.msra.mxu1 %v20063_v55  ;;  %v20696_v10 = vadd.f32 %v9217_v7, %v22898_v15  ;;  %v22900_v55 = vld [vmem:[#allocation118_spill] sm:$0xff]  ;;  %v22919_v7 = vld [vmem:[#allocation84_spill] sm:$0xff] }
 0x7af   : > { %10052 = vmatpush1.msra.mxu0 %v20177_v9  ;;  %10130 = vmatprep.subr.mxu1 %v20072_v19  ;;  %v9219_v2 = vpop.f32.mrf.mxu1  ;;  %v7277_v15 = vadd.f32 %v22919_v7, %v22918_v50  ;;  %v22934_v50 = vld [vmem:[#allocation77_spill] sm:$0xff]  ;;  %v22935_v7 = vld [vmem:[#allocation71_spill] sm:$0xff] }
 0x7b0   : > { %10053 = vmatprep.subr.mxu0 %v20184_v29  ;;  %10131 = vmatpush1.msra.mxu1 %v20081_v52  ;;  %v20703_v6 = vadd.f32 %v9219_v2, %v22899_v41  ;;  %v22920_v2 = vld [vmem:[#allocation56_spill] sm:$0xff] }
 0x7b1   : > { %10054 = vmatpush1.msra.mxu0 %v20193_v13  ;;  %10132 = vmatprep.subr.mxu1 %v20090_v49  ;;  %v22901_v49 = vld [vmem:[#allocation5_spill] sm:$0xff] }
 0x7b2   : > { %10055 = vmatprep.subr.mxu0 %v20202_v18  ;;  %10133 = vmatpush1.msra.mxu1 %v20099_v59  ;;  %v9223_v24 = vpop.f32.mrf.mxu1  ;;  %v22902_v59 = vld [vmem:[#allocation42_spill] sm:$0xff] }
 0x7b3   : > { %10056 = vmatpush1.msra.mxu0 %v20209_v62  ;;  %10134 = vmatprep.subr.mxu1 %v20113_v51  ;;  %v20712_v19 = vadd.f32 %v9223_v24, %v22900_v55  ;;  %v10021_v51 = vrot.slane %v22902_v59, 4  ;;  %v22921_v24 = vld [vmem:[#allocation52_spill] sm:$0xff] }
 0x7b4   : > { %10057 = vmatprep.subr.mxu0 %v20220_v47  ;;  %10135 = vmatpush1.msra.mxu1 %v20119_v31  ;;  %v9225_v52 = vpop.f32.mrf.mxu1  ;;  %v22903_v31 = vld [vmem:[#allocation89_spill] sm:$0xff]  ;;  %v8614_v55 = vadd.f32 %v22921_v24, %v7277_v15  ;;  %v7358_v15 = vadd.f32 %v22935_v7, %v22934_v50 }
 0x7b5   : > { %10058 = vmatpush1.msra.mxu0 %v20227_v27  ;;  %10136 = vmatprep.subr.mxu1 %v20130_v30  ;;  %v20719_v5 = vadd.f32 %v9225_v52, %v22901_v49  ;;  %v10022_v30 = vrot.slane %v22903_v31, 4  ;;  %v22922_v49 = vld [vmem:[#allocation122_spill] sm:$0xff]  ;;  %v22924_v31 = vld [vmem:[#allocation35_spill] sm:$0xff] }
 0x7b6   : > { %10059 = vmatprep.subr.mxu0 %v20236_v63  ;;  %10137 = vmatpush1.msra.mxu1 %v20139_v34  ;;  %v22923_v59 = vsub.s32 0, %v22922_v49 }
 0x7b7   : > { %10060 = vmatpush1.msra.mxu0 %v20245_v23  ;;  %10138 = vmatprep.subr.mxu1 %v20147_v8  ;;  %v10023_v34 = vsel %vm3982_vm4, %v10021_v51, %v10022_v30  ;;  %v22904_v8 = vrot.slane %v22798_v39, 4  ;;  %v22907_v39 = vld [vmem:[#allocation25_spill] sm:$0xff] }
 0x7b8   : > { %10061 = vmatprep.subr.mxu0 %v20252_v61  ;;  %10139 = vmatpush1.msra.mxu1 %v20158_v46  ;;  %v20818_v51 = vrot.slane %v10231_v53, %v22923_v59 }
 0x7b9   : > { %10062 = vmatpush1.msra.mxu0 %v20261_v37  ;;  %10140 = vmatprep.subr.mxu1 %v20168_v20  ;;  %v10111_v20 = vrot.slane %v22907_v39, 4  ;;  %v22926_v39 = vsub.s32 1, %v22922_v49 }
 0x7ba   : > { %10063 = vmatprep.subr.mxu0 %v20268_v38  ;;  %10141 = vmatpush1.msra.mxu1 %v20177_v9 }
 0x7bb   : > { %10064 = vmatpush1.msra.mxu0 %v20275_v17  ;;  %10142 = vmatprep.subr.mxu1 %v20184_v29  ;;  %v22908_v29 = vld [vmem:[#allocation65_spill] sm:$0xff] }
 0x7bc   : > { %12768 = vmatprep.subr.msk.mxu0 %vm6463_vm10, %v20282_v21  ;;  %10143 = vmatpush1.msra.mxu1 %v20193_v13 }
 0x7bd   : > { %12769 = vmatpush2.msk.msra.mxu0 %vm6463_vm10, %v20289_v25  ;;  %10144 = vmatprep.subr.mxu1 %v20202_v18 }
 0x7be   : > { %10089 = vmatprep.subr.mxu0 %v20296_v4  ;;  %10145 = vmatpush1.msra.mxu1 %v20209_v62  ;;  %v22909_v62 = vld [vmem:[#allocation23_spill] sm:$0xff] }
 0x7bf   : > { %10090 = vmatpush2.msra.mxu0 %v20304_v54  ;;  %10146 = vmatprep.subr.mxu1 %v20220_v47  ;;  %v22911_v47 = vld [vmem:[#allocation7_spill] sm:$0xff] }
 0x7c0   : > { %10091 = vmatprep.subr.mxu0 %v20312_v28  ;;  %10147 = vmatpush1.msra.mxu1 %v20227_v27 }
 0x7c1   : > { %10092 = vmatpush2.msra.mxu0 %v20319_v3  ;;  %10148 = vmatprep.subr.mxu1 %v20236_v63  ;;  %v22912_v63 = vld [vmem:[#allocation22_spill] sm:$0xff] }
 0x7c2   : > { %10093 = vmatprep.subr.mxu0 %v20326_v32  ;;  %10149 = vmatpush1.msra.mxu1 %v20245_v23  ;;  %v22906_v23 = vld [vmem:[#allocation47_spill] sm:$0xff] }
 0x7c3   : > { %10094 = vmatpush2.msra.mxu0 %v20333_v16  ;;  %10150 = vmatprep.subr.mxu1 %v20252_v61  ;;  %v10110_v46 = vrot.slane %v22906_v23, 4  ;;  %v9407_v23 = vadd.f32 %v20467_v60, %v8614_v55 }
 0x7c4   : > { %10095 = vmatprep.subr.mxu0 %v20342_v33  ;;  %10151 = vmatpush1.msra.mxu1 %v20261_v37 }
 0x7c5   : > { %10096 = vmatpush2.msra.mxu0 %v20349_v11  ;;  %10152 = vmatprep.subr.mxu1 %v20268_v38  ;;  %v22905_v38 = vmov 0.0  }
 0x7c6   : > { %10098 = vmatmul.mubr.f32.vlgmr.msra.gmra.mxu0 %v10023_v34  ;;  %10153 = vmatpush1.msra.mxu1 %v20275_v17  ;;  %v22914_v17 = vld [vmem:[#allocation79_spill] sm:$0xff] }
 0x7c7   : > { %12771 = vmatprep.mubr.msk.f32.mxu0 %vm6458_vm11, %v22904_v8  ;;  %12772 = vmatprep.subr.msk.mxu1 %vm6463_vm10, %v20282_v21 }
 0x7c8   : > { %12773 = vmatpush2.msk.msra.mxu1 %vm6463_vm10, %v20289_v25  ;;  %v22913_v25 = vld [vmem:[#allocation91_spill] sm:$0xff]  ;;  %vm12075_vm10 = vcmask 80896  }
 0x7c9   : > { %10178 = vmatprep.subr.mxu1 %v20296_v4 }
 0x7ca   : > { %10104 = vmatmul.mubr.f32.gmra.mxu0 %v10022_v30  ;;  %10179 = vmatpush2.msra.mxu1 %v20304_v54  ;;  %v22925_v30 = vld [vmem:[#allocation32_spill] sm:$0xff] }
 0x7cb   : > { %10180 = vmatprep.subr.mxu1 %v20312_v28  ;;  %10702 = vmatprep.mubr.f32.mxu0 %v22905_v38  ;;  %v10112_v28 = vsel %vm3982_vm4, %v10110_v46, %v10111_v20  ;;  %v7281_v34 = vadd.f32 %v22925_v30, %v22924_v31  ;;  %v22938_v30 = vld [vmem:[#allocation34_spill] sm:$0xff] }
 0x7cc   : > { %10181 = vmatpush2.msra.mxu1 %v20319_v3 }
 0x7cd   : > { %10182 = vmatprep.subr.mxu1 %v20326_v32  ;;  %v22910_v32 = vld [vmem:[#allocation90_spill] sm:$0xff] }
 0x7ce   : > { %10183 = vmatpush2.msra.mxu1 %v20333_v16  ;;  %v9306_v9 = vpop.f32.mrf.mxu0 }
 0x7cf   : > { %10184 = vmatprep.subr.mxu1 %v20342_v33  ;;  %v20777_v13 = vadd.f32 %v9306_v9, %v22908_v29  ;;  %v22927_v9 = vld [vmem:[#allocation98_spill] sm:$0xff] }
 0x7d0   : > { %10185 = vmatpush2.msra.mxu1 %v20349_v11  ;;  %v9308_v18 = vpop.f32.mrf.mxu0  ;;  %v22928_v29 = vld [vmem:[#allocation114_spill] sm:$0xff] }
 0x7d1   : > { %10187 = vmatmul.mubr.f32.vlgmr.msra.gmra.mxu1 %v10112_v28  ;;  %v20782_v54 = vadd.f32 %v9308_v18, %v22909_v62  ;;  %v7283_v28 = vadd.f32 %v22928_v29, %v22927_v9  ;;  %v22929_v18 = vld [vmem:[#allocation117_spill] sm:$0xff]  ;;  %v22941_v29 = vld [vmem:[#allocation99_spill] sm:$0xff] }
 0x7d2   : > { %12775 = vmatprep.mubr.msk.f32.mxu1 %vm6458_vm11, %v10114_v56  ;;  %v22917_v56 = vld [vmem:[#allocation33_spill] sm:$0xff] }
 0x7d3   : > { %v9312_v16 = vpop.f32.mrf.mxu0  ;;  %v7275_v57 = vadd.f32 %v22917_v56, %v22916_v14  ;;  %v22932_v14 = vld [vmem:[#allocation104_spill] sm:$0xff] }
 0x7d4   : > { %v20788_v3 = vadd.f32 %v9312_v16, %v22910_v32  ;;  %v22933_v56 = vld [vmem:[#allocation16_spill] sm:$0xff] }
 0x7d5   : > { %10193 = vmatmul.mubr.f32.gmra.mxu1 %v10111_v20  ;;  %v9314_v33 = vpop.f32.mrf.mxu0  ;;  %v8613_v41 = vadd.f32 %v22920_v2, %v7275_v57  ;;  %v20825_v20 = vrot.slane %v10231_v53, %v22926_v39  ;;  %v22936_v2 = vld [vmem:[#allocation119_spill] sm:$0xff] }
 0x7d6   : > { %v20791_v27 = vadd.f32 %v9314_v33, %v22911_v47  ;;  %10779 = vmatprep.mubr.f32.mxu1 %v22905_v38  ;;  %v22930_v33 = vld [vmem:[#allocation74_spill] sm:$0xff] }
 0x7d7   : > { %v9406_v52 = vadd.f32 %v20455_v1, %v8613_v41  ;;  %v8615_v1 = vadd.f32 %v22929_v18, %v7281_v34  ;;  %v8616_v47 = vadd.f32 %v22930_v33, %v7283_v28  ;;  %v22939_v34 = vld [vmem:[#allocation37_spill] sm:$0xff]  ;;  %v22942_v28 = vld [vmem:[#allocation63_spill] sm:$0xff] }
 0x7d8   : > { %v22943_v18 = vld [vmem:[#allocation75_spill] sm:$0xff] }
 0x7db   : > { %v9395_v11 = vpop.f32.mrf.mxu1 }
 0x7dc   : > { %v20795_v4 = vadd.f32 %v9395_v11, %v22912_v63  ;;  %v9408_v11 = vadd.f32 %v20479_v58, %v8615_v1  ;;  %v7356_v58 = vadd.f32 %v22933_v56, %v22932_v14 }
 0x7dd   : > { %v9397_v61 = vpop.f32.mrf.mxu1 }
 0x7de   : > { %v20798_v22 = vadd.f32 %v9397_v61, %v22913_v25  ;;  %v22931_v25 = vld [vmem:[#allocation27_spill] sm:$0xff]  ;;  %v8617_v41 = vadd.f32 %v22936_v2, %v7356_v58  ;;  %v22945_v2 = vld [vmem:[#allocation12_spill] sm:$0xff] }
 0x7e0   : > { %v9401_v37 = vpop.f32.mrf.mxu1  ;;  %v9410_v59 = vadd.f32 %v20499_v43, %v8617_v41  ;;  %v7364_v43 = vadd.f32 %v22942_v28, %v22941_v29  ;;  %v22947_v28 = vld [vmem:[#allocation102_spill] sm:$0xff] }
 0x7e1   : > { %v20801_v21 = vadd.f32 %v9401_v37, %v22914_v17  ;;  %v9409_v37 = vadd.f32 %v22931_v25, %v8616_v47  ;;  %v22944_v47 = vld [vmem:[#allocation68_spill] sm:$0xff] }
 0x7e2   : > { %v9403_v40 = vpop.f32.mrf.mxu1 }
 0x7e3   : > { %v20804_v45 = vadd.f32 %v9403_v40, %v22915_v35 }
 0x7fc   : > { %v9565_v8 = vpop.f32.mrf.mxu0 }
 0x7fd   : > { %v10199_v46 = vadd.f32 %v9565_v8, %v9406_v52  ;;  %v22937_v52 = vld [vmem:[#allocation11_spill] sm:$0xff]  ;;  %v7362_v8 = vadd.f32 %v22939_v34, %v22938_v30 }
 0x7fe   : > { %v9567_v62 = vpop.f32.mrf.mxu0  ;;  %v8618_v49 = vadd.f32 %v22937_v52, %v7358_v15 }
 0x7ff   : > { %v20831_v16 = vadd.f32 %v20818_v51, %v10199_v46  ;;  %v10200_v32 = vadd.f32 %v9567_v62, %v9407_v23  ;;  %v22940_v46 = vld [vmem:[#allocation86_spill] sm:$0xff]  ;;  %v8619_v1 = vadd.f32 %v22943_v18, %v7362_v8 }
 0x800   : > { %v9411_v39 = vadd.f32 %v22940_v46, %v8618_v49 }
 0x801   : > { %v10275_v60 = vmax.f32 %v20831_v16, 0.0  ;;  %v20837_v63 = vadd.f32 %v20825_v20, %v10200_v32  ;;  %v9571_v61 = vpop.f32.mrf.mxu0 }
 0x802   : > { %v10201_v17 = vadd.f32 %v9571_v61, %v9408_v11  ;;  %v8620_v11 = vadd.f32 %v22944_v47, %v7364_v43  ;;  %v9412_v61 = vadd.f32 %v20532_v44, %v8619_v1 }
 0x803   : > { %v10276_v40 = vmax.f32 %v20837_v63, 0.0  ;;  %v9573_v35 = vpop.f32.mrf.mxu0  ;;  %10339 = vrot.lane.b32.xlu0 %v10275_v60, %s13145_s13 }
 0x804   : > { %v20847_v57 = vadd.f32 %v20818_v51, %v10201_v17  ;;  %v10202_v53 = vadd.f32 %v9573_v35, %v9409_v37  ;;  %v9413_v35 = vadd.f32 %v20546_v42, %v8620_v11 }
 0x805   : > { %10341 = vrot.lane.b32.xlu1 %v10276_v40, %s13145_s13 }
 0x806   : > { %v10277_v24 = vmax.f32 %v20847_v57, 0.0  ;;  %v20857_v55 = vadd.f32 %v20825_v20, %v10202_v53 }
 0x808   : > { %v10278_v31 = vmax.f32 %v20857_v55, 0.0  ;;  %10343 = vrot.lane.b32.xlu0 %v10277_v24, %s13145_s13 }
 0x809   : > { %v9654_v23 = vpop.f32.mrf.mxu1 }
 0x80a   : > { %v10203_v9 = vadd.f32 %v9654_v23, %v9410_v59  ;;  %10345 = vrot.lane.b32.xlu1 %v10278_v31, %s13145_s13  ;;  %v22946_v59 = vld [vmem:[#allocation87_spill] sm:$0xff] }
 0x80b   : > { %v9656_v62 = vpop.f32.mrf.mxu1 }
 0x80c   : > { %v20875_v32 = vadd.f32 %v20818_v51, %v10203_v9  ;;  %v10204_v33 = vadd.f32 %v9656_v62, %v9411_v39 }
 0x80e   : > { %v10279_v25 = vmax.f32 %v20875_v32, 0.0  ;;  %v20881_v37 = vadd.f32 %v20825_v20, %v10204_v33  ;;  %v9660_v17 = vpop.f32.mrf.mxu1  ;;  %v22948_v33 = vld [vmem:[#allocation45_spill] sm:$0xff] }
 0x80f   : > { %v10205_v14 = vadd.f32 %v9660_v17, %v9412_v61  ;;  %v22949_v17 = vld [vmem:[#allocation115_spill] sm:$0xff] }
 0x810   : > { %v10280_v56 = vmax.f32 %v20881_v37, 0.0  ;;  %v9662_v58 = vpop.f32.mrf.mxu1  ;;  %10347 = vrot.lane.b32.xlu0 %v10279_v25, %s13145_s13 }
 0x811   : > { %v20889_v53 = vadd.f32 %v20818_v51, %v10205_v14  ;;  %v10206_v44 = vadd.f32 %v9662_v58, %v9413_v35 }
 0x812   : > { %10349 = vrot.lane.b32.xlu1 %v10280_v56, %s13145_s13 }
 0x813   : > { %v10281_v50 = vmax.f32 %v20889_v53, 0.0  ;;  %v20896_v42 = vadd.f32 %v20825_v20, %v10206_v44 }
 0x815   : > { %v10282_v7 = vmax.f32 %v20896_v42, 0.0  ;;  %10351 = vrot.lane.b32.xlu0 %v10281_v50, %s13145_s13 }
 0x817   : > { %10353 = vrot.lane.b32.xlu1 %v10282_v7, %s13145_s13 }
 0x82a   : > { %v9743_v15 = vpop.f32.mrf.mxu0 }
 0x82b   : > { %v10207_v41 = vadd.f32 %v9743_v15, %v22945_v2  ;;  %v22950_v15 = vld [vmem:[#allocation21_spill] sm:$0xff] }
 0x82c   : > { %v9745_v52 = vpop.f32.mrf.mxu0 }
 0x82d   : > { %v20907_v49 = vadd.f32 %v20818_v51, %v10207_v41  ;;  %v10208_v30 = vadd.f32 %v9745_v52, %v22946_v59 }
 0x82f   : > { %v10283_v34 = vmax.f32 %v20907_v49, 0.0  ;;  %v20912_v8 = vadd.f32 %v20825_v20, %v10208_v30  ;;  %v9749_v23 = vpop.f32.mrf.mxu0  ;;  %v22951_v30 = vld [vmem:[#allocation41_spill] sm:$0xff] }
 0x830   : > { %v10209_v46 = vadd.f32 %v9749_v23, %v20530_v12 }
 0x831   : > { %v10284_v39 = vmax.f32 %v20912_v8, 0.0  ;;  %v9751_v9 = vpop.f32.mrf.mxu0  ;;  %10355 = vrot.lane.b32.xlu0 %v10283_v34, %s13145_s13 }
 0x832   : > { %v20920_v29 = vadd.f32 %v20818_v51, %v10209_v46  ;;  %v10210_v43 = vadd.f32 %v9751_v9, %v22947_v28 }
 0x833   : > { %10357 = vrot.lane.b32.xlu1 %v10284_v39, %s13145_s13 }
 0x834   : > { %v10285_v18 = vmax.f32 %v20920_v29, 0.0  ;;  %v20928_v12 = vadd.f32 %v20825_v20, %v10210_v43 }
 0x836   : > { %v10286_v1 = vmax.f32 %v20928_v12, 0.0  ;;  %10359 = vrot.lane.b32.xlu0 %v10285_v18, %s13145_s13 }
 0x837   : > { %v9832_v62 = vpop.f32.mrf.mxu1 }
 0x838   : > { %v10211_v47 = vadd.f32 %v9832_v62, %v22948_v33  ;;  %10361 = vrot.lane.b32.xlu1 %v10286_v1, %s13145_s13 }
 0x839   : > { %v9834_v11 = vpop.f32.mrf.mxu1 }
 0x83a   : > { %v20939_v61 = vadd.f32 %v20818_v51, %v10211_v47  ;;  %v10212_v35 = vadd.f32 %v9834_v11, %v22949_v17 }
 0x83c   : > { %v10287_v14 = vmax.f32 %v20939_v61, 0.0  ;;  %v20944_v58 = vadd.f32 %v20825_v20, %v10212_v35  ;;  %v9838_v44 = vpop.f32.mrf.mxu1 }
 0x83d   : > { %v10213_v2 = vadd.f32 %v9838_v44, %v22950_v15 }
 0x83e   : > { %v10288_v41 = vmax.f32 %v20944_v58, 0.0  ;;  %v9840_v52 = vpop.f32.mrf.mxu1  ;;  %10363 = vrot.lane.b32.xlu0 %v10287_v14, %s13145_s13 }
 0x83f   : > { %v20952_v59 = vadd.f32 %v20818_v51, %v10213_v2  ;;  %v10214_v23 = vadd.f32 %v9840_v52, %v22951_v30 }
 0x840   : > { %10365 = vrot.lane.b32.xlu1 %v10288_v41, %s13145_s13 }
 0x841   : > { %v10289_v46 = vmax.f32 %v20952_v59, 0.0  ;;  %v20960_v9 = vadd.f32 %v20825_v20, %v10214_v23 }
 0x843   : > { %v10290_v28 = vmax.f32 %v20960_v9, 0.0  ;;  %10367 = vrot.lane.b32.xlu0 %v10289_v46, %s13145_s13 }
 0x845   : > { %10369 = vrot.lane.b32.xlu1 %v10290_v28, %s13145_s13 }
 0x858   : > { %v9921_v43 = vpop.f32.mrf.mxu0 }
 0x859   : > { %v10215_v62 = vadd.f32 %v9921_v43, %v20652_v0 }
 0x85a   : > { %v9923_v33 = vpop.f32.mrf.mxu0 }
 0x85b   : > { %v20971_v47 = vadd.f32 %v20818_v51, %v10215_v62  ;;  %v10216_v11 = vadd.f32 %v9923_v33, %v20659_v26 }
 0x85d   : > { %v22159_v17 = vmax.f32 %v20971_v47, 0.0  ;;  %v20976_v35 = vadd.f32 %v20825_v20, %v10216_v11  ;;  %v9927_v44 = vpop.f32.mrf.mxu0 }
 0x85e   : > { %v10217_v15 = vadd.f32 %v9927_v44, %v20670_v36 }
 0x85f   : > { %v22160_v2 = vmax.f32 %v20976_v35, 0.0  ;;  %v9929_v52 = vpop.f32.mrf.mxu0  ;;  %10371 = vrot.lane.b32.xlu0 %v22159_v17, %s13145_s13 }
 0x860   : > { %v20984_v0 = vadd.f32 %v20818_v51, %v10217_v15  ;;  %v10218_v26 = vadd.f32 %v9929_v52, %v20679_v48 }
 0x861   : > { %10373 = vrot.lane.b32.xlu1 %v22160_v2, %s13145_s13 }
 0x862   : > { %v22155_v30 = vmax.f32 %v20984_v0, 0.0  ;;  %v20992_v36 = vadd.f32 %v20825_v20, %v10218_v26 }
 0x864   : > { %v22158_v23 = vmax.f32 %v20992_v36, 0.0  ;;  %10375 = vrot.lane.b32.xlu0 %v22155_v30, %s13145_s13 }
 0x865   : > { %v10010_v43 = vpop.f32.mrf.mxu1 }
 0x866   : > { %v10219_v62 = vadd.f32 %v10010_v43, %v20696_v10  ;;  %10377 = vrot.lane.b32.xlu1 %v22158_v23, %s13145_s13 }
 0x867   : > { %v10012_v48 = vpop.f32.mrf.mxu1 }
 0x868   : > { %v21003_v33 = vadd.f32 %v20818_v51, %v10219_v62  ;;  %v10220_v11 = vadd.f32 %v10012_v48, %v20703_v6 }
 0x86a   : > { %v22153_v44 = vmax.f32 %v21003_v33, 0.0  ;;  %v21008_v15 = vadd.f32 %v20825_v20, %v10220_v11  ;;  %v10016_v52 = vpop.f32.mrf.mxu1 }
 0x86b   : > { %v10221_v26 = vadd.f32 %v10016_v52, %v20712_v19 }
 0x86c   : > { %v22154_v10 = vmax.f32 %v21008_v15, 0.0  ;;  %v10018_v43 = vpop.f32.mrf.mxu1  ;;  %10379 = vrot.lane.b32.xlu0 %v22153_v44, %s13145_s13 }
 0x86d   : > { %v21016_v62 = vadd.f32 %v20818_v51, %v10221_v26  ;;  %v10222_v6 = vadd.f32 %v10018_v43, %v20719_v5 }
 0x86e   : > { %10381 = vrot.lane.b32.xlu1 %v22154_v10, %s13145_s13 }
 0x86f   : > { %v22156_v48 = vmax.f32 %v21016_v62, 0.0  ;;  %v21024_v19 = vadd.f32 %v20825_v20, %v10222_v6 }
 0x871   : > { %v22157_v11 = vmax.f32 %v21024_v19, 0.0  ;;  %10383 = vrot.lane.b32.xlu0 %v22156_v48, %s13145_s13 }
 0x873   : > { %10385 = vrot.lane.b32.xlu1 %v22157_v11, %s13145_s13 }
 0x875   : > { %v10340_v5 = vpop.permute.xlu0 %10339 }
 0x877   : > { %v10342_v52 = vpop.permute.xlu1 %10341 }
 0x878   : > { %v10404_v26 = vsel %vm10403_vm12, %v10340_v5, %v10342_v52  ;;  %v10453_v43 = vmax.f32 %v10276_v40, %v10342_v52 }
 0x879   : > { %v10452_v6 = vmax.f32 %v10275_v60, %v10404_v26 }
 0x87a   : > { %v10344_v44 = vpop.permute.xlu0 %10343  ;;  %v10519_v23 = vrot.slane %v10453_v43, 1 }
 0x87b   : > { %v10516_v2 = vrot.slane %v10452_v6, 1 }
 0x87c   : > { %v10346_v10 = vpop.permute.xlu1 %10345 }
 0x87d   : > { %v10405_v30 = vsel %vm10403_vm12, %v10344_v44, %v10346_v10  ;;  %v10455_v48 = vmax.f32 %v10278_v31, %v10346_v10 }
 0x87e   : > { %v10454_v11 = vmax.f32 %v10277_v24, %v10405_v30 }
 0x87f   : > { %v10520_v17 = vrot.slane %v10455_v48, 1 }
 0x880   : > { %v10517_v5 = vrot.slane %v10454_v11, 1 }
 0x881   : > { %v10599_v63 = vmax.f32 %v10455_v48, %v10520_v17  ;;  %v10521_v40 = vsel %vm475_vm0, %v10519_v23, %v10520_v17  ;;  %v22952_v17 = vld [vmem:[#allocation94_spill] sm:$0xff] }
 0x882   : > { %v10598_v16 = vmax.f32 %v10454_v11, %v10517_v5  ;;  %v10597_v60 = vmax.f32 %v10453_v43, %v10521_v40  ;;  %v10518_v52 = vsel %vm475_vm0, %v10516_v2, %v10517_v5  ;;  %v10348_v26 = vpop.permute.xlu0 %10347 }
 0x883   : > { %12776 = vmatprep.subr.msk.mxu0 %vm10631_vm13, %v10599_v63  ;;  %v10596_v55 = vmax.f32 %v10452_v6, %v10518_v52 }
 0x884   : > { %v10350_v31 = vpop.permute.xlu1 %10349  ;;  %12777 = vmatpush1.msk.msra.mxu0 %vm10631_vm13, %v10598_v16 }
 0x885   : > { %10668 = vmatprep.subr.mxu0 %v10597_v60  ;;  %v10406_v30 = vsel %vm10403_vm12, %v10348_v26, %v10350_v31  ;;  %v10457_v2 = vmax.f32 %v10280_v56, %v10350_v31 }
 0x886   : > { %v10099_v57 = vpop.f32.mrf.mxu0  ;;  %10669 = vmatpush1.msra.mxu0 %v10596_v55 }
 0x887   : > { %v10223_v24 = vadd.f32 %v10099_v57, %v20777_v13  ;;  %12778 = vmatmul.mubr.msk.f32.vlgmr.msra.gmra.mxu0 %vm10628_vm14, %v22952_v17  ;;  %v10352_v48 = vpop.permute.xlu0 %10351  ;;  %v10456_v13 = vmax.f32 %v10279_v25, %v10406_v30  ;;  %v10525_v16 = vrot.slane %v10457_v2, 1 }
 0x888   : > { %v10101_v23 = vpop.f32.mrf.mxu0  ;;  %10856 = vmatprep.mubr.f32.mxu0 %v22905_v38 }
 0x889   : > { %v21055_v44 = vadd.f32 %v20818_v51, %v10223_v24  ;;  %v10224_v10 = vadd.f32 %v10101_v23, %v20782_v54  ;;  %v10354_v11 = vpop.permute.xlu1 %10353  ;;  %v10522_v52 = vrot.slane %v10456_v13, 1 }
 0x88a   : > { %v10105_v43 = vpop.f32.mrf.mxu0  ;;  %v10407_v6 = vsel %vm10403_vm12, %v10352_v48, %v10354_v11  ;;  %v10459_v5 = vmax.f32 %v10282_v7, %v10354_v11 }
 0x88b   : > { %v10299_v37 = vmax.f32 %v21055_v44, 0.0  ;;  %v21065_v56 = vadd.f32 %v20825_v20, %v10224_v10  ;;  %v10225_v63 = vadd.f32 %v10105_v43, %v20788_v3  ;;  %v10458_v54 = vmax.f32 %v10281_v50, %v10407_v6 }
 0x88c   : > { %v10107_v40 = vpop.f32.mrf.mxu0  ;;  %v10526_v60 = vrot.slane %v10459_v5, 1 }
 0x88d   : > { %v10300_v32 = vmax.f32 %v21065_v56, 0.0  ;;  %v21072_v25 = vadd.f32 %v20818_v51, %v10225_v63  ;;  %v10226_v42 = vadd.f32 %v10107_v40, %v20791_v27  ;;  %10387 = vrot.lane.b32.xlu0 %v10299_v37, %s13145_s13  ;;  %v10523_v7 = vrot.slane %v10458_v54, 1 }
 0x88e   : > { %v10603_v3 = vmax.f32 %v10459_v5, %v10526_v60  ;;  %v10527_v53 = vsel %vm475_vm0, %v10525_v16, %v10526_v60 }
 0x88f   : > { %v10301_v50 = vmax.f32 %v21072_v25, 0.0  ;;  %v21081_v26 = vadd.f32 %v20825_v20, %v10226_v42  ;;  %10389 = vrot.lane.b32.xlu1 %v10300_v32, %s13145_s13  ;;  %v10602_v55 = vmax.f32 %v10458_v54, %v10523_v7  ;;  %v10601_v27 = vmax.f32 %v10457_v2, %v10527_v53  ;;  %v12815_v25 = vld [vmem:[%s21944_s5 + $0x108] sm:$0xff] }
 0x890   : > { %12779 = vmatprep.subr.msk.mxu1 %vm10631_vm13, %v10603_v3  ;;  %v10524_v31 = vsel %vm475_vm0, %v10522_v52, %v10523_v7 }
 0x891   : > { %v10302_v57 = vmax.f32 %v21081_v26, 0.0  ;;  %v10188_v24 = vpop.f32.mrf.mxu1  ;;  %10391 = vrot.lane.b32.xlu0 %v10301_v50, %s13145_s13  ;;  %12780 = vmatpush1.msk.msra.mxu1 %vm10631_vm13, %v10602_v55  ;;  %v10600_v30 = vmax.f32 %v10456_v13, %v10524_v31 }
 0x892   : > { %10745 = vmatprep.subr.mxu1 %v10601_v27  ;;  %v10227_v10 = vadd.f32 %v10188_v24, %v20795_v4 }
 0x893   : > { %v10190_v23 = vpop.f32.mrf.mxu1  ;;  %10393 = vrot.lane.b32.xlu1 %v10302_v57, %s13145_s13  ;;  %10746 = vmatpush1.msra.mxu1 %v10600_v30 }
 0x894   : > { %12781 = vmatmul.mubr.msk.f32.vlgmr.msra.gmra.mxu1 %vm10628_vm14, %v22952_v17  ;;  %v10228_v43 = vadd.f32 %v10190_v23, %v20798_v22  ;;  %v21107_v5 = vadd.f32 %v20818_v51, %v10227_v10 }
 0x895   : > { %v10194_v2 = vpop.f32.mrf.mxu1  ;;  %10933 = vmatprep.mubr.f32.mxu1 %v22905_v38 }
 0x896   : > { %v10229_v48 = vadd.f32 %v10194_v2, %v20801_v21  ;;  %v21114_v4 = vadd.f32 %v20825_v20, %v10228_v43  ;;  %v10303_v22 = vmax.f32 %v21107_v5, 0.0  ;;  %v12810_v5 = vld [vmem:[%s21944_s5 + $0xe0] sm:$0xff] }
 0x897   : > { %v10196_v11 = vpop.f32.mrf.mxu1 }
 0x898   : > { %v21103_v13 = vadd.f32 %v20818_v51, %v10229_v48  ;;  %v10230_v6 = vadd.f32 %v10196_v11, %v20804_v45  ;;  %v10304_v45 = vmax.f32 %v21114_v4, 0.0 }
 0x89a   : > { %v10305_v63 = vmax.f32 %v21103_v13, 0.0  ;;  %v21111_v54 = vadd.f32 %v20825_v20, %v10230_v6 }
 0x89c   : > { %v10306_v21 = vmax.f32 %v21111_v54, 0.0  ;;  %10399 = vrot.lane.b32.xlu0 %v10305_v63, %s13145_s13  ;;  %v12812_v54 = vld [vmem:[%s21944_s5 + $0xf0] sm:$0xff] }
 0x89e   : > { %10401 = vrot.lane.b32.xlu1 %v10306_v21, %s13145_s13 }
 0x8a0   : > { %10395 = vrot.lane.b32.xlu0 %v10303_v22, %s13145_s13 }
 0x8a2   : > { %10397 = vrot.lane.b32.xlu1 %v10304_v45, %s13145_s13 }
 0x8a3   : > { %v10356_v51 = vpop.permute.xlu0 %10355 }
 0x8a5   : > { %v10358_v20 = vpop.permute.xlu1 %10357 }
 0x8a6   : > { %v10408_v40 = vsel %vm10403_vm12, %v10356_v51, %v10358_v20  ;;  %v10461_v16 = vmax.f32 %v10284_v39, %v10358_v20 }
 0x8a7   : > { %v10460_v60 = vmax.f32 %v10283_v34, %v10408_v40 }
 0x8a8   : > { %v10360_v42 = vpop.permute.xlu0 %10359  ;;  %v10531_v55 = vrot.slane %v10461_v16, 1 }
 0x8a9   : > { %v10528_v31 = vrot.slane %v10460_v60, 1 }
 0x8aa   : > { %v10362_v7 = vpop.permute.xlu1 %10361 }
 0x8ab   : > { %v10409_v52 = vsel %vm10403_vm12, %v10360_v42, %v10362_v7  ;;  %v10463_v3 = vmax.f32 %v10286_v1, %v10362_v7 }
 0x8ac   : > { %v10462_v53 = vmax.f32 %v10285_v18, %v10409_v52  ;;  %v22954_v52 = vmax.f32 %v20971_v47, 0.0 }
 0x8ad   : > { %v10532_v27 = vrot.slane %v10463_v3, 1 }
 0x8ae   : > { %v10529_v24 = vrot.slane %v10462_v53, 1 }
 0x8af   : > { %v10607_v30 = vmax.f32 %v10463_v3, %v10532_v27  ;;  %v10533_v8 = vsel %vm475_vm0, %v10531_v55, %v10532_v27 }
 0x8b0   : > { %v10606_v39 = vmax.f32 %v10462_v53, %v10529_v24  ;;  %v10605_v49 = vmax.f32 %v10461_v16, %v10533_v8  ;;  %v10530_v34 = vsel %vm475_vm0, %v10528_v31, %v10529_v24  ;;  %v10364_v23 = vpop.permute.xlu0 %10363  ;;  %v22955_v31 = vmax.f32 %v20992_v36, 0.0 }
 0x8b1   : > { %12782 = vmatprep.subr.msk.mxu0 %vm10631_vm13, %v10607_v30  ;;  %v10604_v2 = vmax.f32 %v10460_v60, %v10530_v34  ;;  %v22956_v30 = vmax.f32 %v20984_v0, 0.0 }
 0x8b2   : > { %v10366_v12 = vpop.permute.xlu1 %10365  ;;  %12783 = vmatpush1.msk.msra.mxu0 %vm10631_vm13, %v10606_v39 }
 0x8b3   : > { %10822 = vmatprep.subr.mxu0 %v10605_v49  ;;  %v10410_v29 = vsel %vm10403_vm12, %v10364_v23, %v10366_v12  ;;  %v10465_v18 = vmax.f32 %v10288_v41, %v10366_v12 }
 0x8b4   : > { %10823 = vmatpush1.msra.mxu0 %v10604_v2  ;;  %v10464_v1 = vmax.f32 %v10287_v14, %v10410_v29 }
 0x8b5   : > { %12784 = vmatmul.mubr.msk.f32.vlgmr.msra.gmra.mxu0 %vm10628_vm14, %v22952_v17  ;;  %v10368_v10 = vpop.permute.xlu0 %10367  ;;  %v10537_v51 = vrot.slane %v10465_v18, 1 }
 0x8b6   : > { %11010 = vmatprep.mubr.f32.mxu0 %v22905_v38  ;;  %v10534_v40 = vrot.slane %v10464_v1, 1 }
 0x8b7   : > { %v10370_v48 = vpop.permute.xlu1 %10369 }
 0x8b8   : > { %v10411_v11 = vsel %vm10403_vm12, %v10368_v10, %v10370_v48  ;;  %v10467_v43 = vmax.f32 %v10290_v28, %v10370_v48  ;;  %v22953_v28 = vmax.f32 %v20976_v35, 0.0  ;;  %v22957_v10 = vmax.f32 %v21008_v15, 0.0 }
 0x8b9   : > { %v10466_v6 = vmax.f32 %v10289_v46, %v10411_v11  ;;  %v22958_v11 = vmax.f32 %v21003_v33, 0.0 }
 0x8ba   : > { %v10538_v20 = vrot.slane %v10467_v43, 1 }
 0x8bb   : > { %v10535_v58 = vrot.slane %v10466_v6, 1 }
 0x8bc   : > { %v10611_v41 = vmax.f32 %v10467_v43, %v10538_v20  ;;  %v10539_v16 = vsel %vm475_vm0, %v10537_v51, %v10538_v20 }
 0x8bd   : > { %v10610_v60 = vmax.f32 %v10466_v6, %v10535_v58  ;;  %v10609_v61 = vmax.f32 %v10465_v18, %v10539_v16  ;;  %v10536_v14 = vsel %vm475_vm0, %v10534_v40, %v10535_v58  ;;  %v22959_v40 = vmax.f32 %v21024_v19, 0.0 }
 0x8be   : > { %12785 = vmatprep.subr.msk.mxu1 %vm10631_vm13, %v10611_v41  ;;  %v10608_v42 = vmax.f32 %v10464_v1, %v10536_v14  ;;  %v22960_v41 = vmax.f32 %v21016_v62, 0.0 }
 0x8bf   : > { %12786 = vmatpush1.msk.msra.mxu1 %vm10631_vm13, %v10610_v60 }
 0x8c0   : > { %10899 = vmatprep.subr.mxu1 %v10609_v61 }
 0x8c1   : > { %10900 = vmatpush1.msra.mxu1 %v10608_v42 }
 0x8c2   : > { %12787 = vmatmul.mubr.msk.f32.vlgmr.msra.gmra.mxu1 %vm10628_vm14, %v22952_v17 }
 0x8c3   : > { %11087 = vmatprep.mubr.f32.mxu1 %v22905_v38 }
 0x8d1   : > { %v10372_v59 = vpop.permute.xlu0 %10371 }
 0x8d3   : > { %v10374_v46 = vpop.permute.xlu1 %10373 }
 0x8d4   : > { %v10412_v9 = vsel %vm10403_vm12, %v10372_v59, %v10374_v46  ;;  %v10469_v7 = vmax.f32 %v22953_v28, %v10374_v46 }
 0x8d5   : > { %v10468_v3 = vmax.f32 %v22954_v52, %v10412_v9 }
 0x8d6   : > { %v10376_v53 = vpop.permute.xlu0 %10375  ;;  %v10543_v39 = vrot.slane %v10469_v7, 1 }
 0x8d7   : > { %v10540_v34 = vrot.slane %v10468_v3, 1 }
 0x8d8   : > { %v10378_v55 = vpop.permute.xlu1 %10377 }
 0x8d9   : > { %v10413_v27 = vsel %vm10403_vm12, %v10376_v53, %v10378_v55  ;;  %v10471_v24 = vmax.f32 %v22955_v31, %v10378_v55 }
 0x8da   : > { %v10470_v8 = vmax.f32 %v22956_v30, %v10413_v27 }
 0x8db   : > { %v10544_v49 = vrot.slane %v10471_v24, 1 }
 0x8dc   : > { %v10541_v23 = vrot.slane %v10470_v8, 1 }
 0x8dd   : > { %v10615_v2 = vmax.f32 %v10471_v24, %v10544_v49  ;;  %v10545_v35 = vsel %vm475_vm0, %v10543_v39, %v10544_v49 }
 0x8de   : > { %v10614_v12 = vmax.f32 %v10470_v8, %v10541_v23  ;;  %v10613_v47 = vmax.f32 %v10469_v7, %v10545_v35  ;;  %v10542_v29 = vsel %vm475_vm0, %v10540_v34, %v10541_v23  ;;  %v10380_v18 = vpop.permute.xlu0 %10379 }
 0x8df   : > { %12788 = vmatprep.subr.msk.mxu0 %vm10631_vm13, %v10615_v2  ;;  %v10612_v1 = vmax.f32 %v10468_v3, %v10542_v29 }
 0x8e0   : > { %v10382_v36 = vpop.permute.xlu1 %10381  ;;  %12789 = vmatpush1.msk.msra.mxu0 %vm10631_vm13, %v10614_v12 }
 0x8e1   : > { %10976 = vmatprep.subr.mxu0 %v10613_v47  ;;  %v10414_v0 = vsel %vm10403_vm12, %v10380_v18, %v10382_v36  ;;  %v10473_v48 = vmax.f32 %v22957_v10, %v10382_v36  ;;  %v12813_v47 = vld [vmem:[%s21944_s5 + $0xf8] sm:$0xff] }
 0x8e2   : > { %10977 = vmatpush1.msra.mxu0 %v10612_v1  ;;  %v10472_v43 = vmax.f32 %v22958_v11, %v10414_v0 }
 0x8e3   : > { %12790 = vmatmul.mubr.msk.f32.vlgmr.msra.gmra.mxu0 %vm10628_vm14, %v22952_v17  ;;  %v10384_v6 = vpop.permute.xlu0 %10383  ;;  %v10549_v60 = vrot.slane %v10473_v48, 1 }
 0x8e4   : > { %11164 = vmatprep.mubr.f32.mxu0 %v22905_v38  ;;  %v10546_v14 = vrot.slane %v10472_v43, 1 }
 0x8e5   : > { %v10386_v51 = vpop.permute.xlu1 %10385 }
 0x8e6   : > { %v10415_v20 = vsel %vm10403_vm12, %v10384_v6, %v10386_v51  ;;  %v10475_v58 = vmax.f32 %v22959_v40, %v10386_v51  ;;  %v12809_v6 = vld [vmem:[%s21944_s5 + $0xd8] sm:$0xff]  ;;  %v12808_v40 = vld [vmem:[%s21944_s5 + $0xd0] sm:$0xff] }
 0x8e7   : > { %v10474_v16 = vmax.f32 %v22960_v41, %v10415_v20  ;;  %v11263_v20 = vld [vmem:[%s21944_s5 + $0x78] sm:$0xff]  ;;  %v12807_v41 = vld [vmem:[%s21944_s5 + $0xc8] sm:$0xff] }
 0x8e8   : > { %v10550_v61 = vrot.slane %v10475_v58, 1 }
 0x8e9   : > { %v10547_v15 = vrot.slane %v10474_v16, 1 }
 0x8ea   : > { %v10619_v42 = vmax.f32 %v10475_v58, %v10550_v61  ;;  %v10551_v59 = vsel %vm475_vm0, %v10549_v60, %v10550_v61  ;;  %v11262_v58 = vld [vmem:[%s21944_s5 + $0x70] sm:$0xff]  ;;  %v11260_v60 = vld [vmem:[%s21944_s5 + $0x60] sm:$0xff]  ;;  %v11259_v61 = vld [vmem:[%s21944_s5 + $0x58] sm:$0xff] }
 0x8eb   : > { %v10618_v46 = vmax.f32 %v10474_v16, %v10547_v15  ;;  %v10617_v33 = vmax.f32 %v10473_v48, %v10551_v59  ;;  %v10548_v9 = vsel %vm475_vm0, %v10546_v14, %v10547_v15  ;;  %v12811_v48 = vld [vmem:[%s21944_s5 + $0xe8] sm:$0xff]  ;;  %v12805_v14 = vld [vmem:[%s21944_s5 + $0xb8] sm:$0xff]  ;;  %v11258_v15 = vld [vmem:[%s21944_s5 + $0x50] sm:$0xff] }
 0x8ec   : > { %12791 = vmatprep.subr.msk.mxu1 %vm10631_vm13, %v10619_v42  ;;  %v10616_v28 = vmax.f32 %v10472_v43, %v10548_v9  ;;  %v11261_v16 = vld [vmem:[%s21944_s5 + $0x68] sm:$0xff]  ;;  %v11256_v59 = vld [vmem:[%s21944_s5 + $0x40] sm:$0xff] }
 0x8ed   : > { %12792 = vmatpush1.msk.msra.mxu1 %vm10631_vm13, %v10618_v46  ;;  %v11257_v42 = vld [vmem:[%s21944_s5 + $0x48] sm:$0xff]  ;;  %v11255_v46 = vld [vmem:[%s21944_s5 + $0x38] sm:$0xff] }
 0x8ee   : > { %11053 = vmatprep.subr.mxu1 %v10617_v33  ;;  %v11254_v33 = vld [vmem:[%s21944_s5 + $0x30] sm:$0xff]  ;;  %v11253_v9 = vld [vmem:[%s21944_s5 + $0x28] sm:$0xff] }
 0x8ef   : > { %11054 = vmatpush1.msra.mxu1 %v10616_v28  ;;  %v12804_v28 = vld [vmem:[%s21944_s5 + $0xb0] sm:$0xff] }
 0x8f0   : > { %12793 = vmatmul.mubr.msk.f32.vlgmr.msra.gmra.mxu1 %vm10628_vm14, %v22952_v17 }
 0x8f1   : > { %11241 = vmatprep.mubr.f32.mxu1 %v22905_v38 }
 0x8ff   : > { %v10388_v62 = vpop.permute.xlu0 %10387 }
 0x901   : > { %v10390_v19 = vpop.permute.xlu1 %10389 }
 0x902   : > { %v10416_v7 = vsel %vm10403_vm12, %v10388_v62, %v10390_v19  ;;  %v10477_v52 = vmax.f32 %v10300_v32, %v10390_v19  ;;  %v11252_v62 = vld [vmem:[%s21944_s5 + $0x20] sm:$0xff]  ;;  %v12803_v19 = vld [vmem:[%s21944_s5 + $0xa8] sm:$0xff] }
 0x903   : > { %v10476_v3 = vmax.f32 %v10299_v37, %v10416_v7  ;;  %v10392_v53 = vpop.permute.xlu0 %10391  ;;  %v11251_v7 = vld [vmem:[%s21944_s5 + $0x18] sm:$0xff] }
 0x904   : > { %v10555_v30 = vrot.slane %v10477_v52, 1 }
 0x905   : > { %v10394_v55 = vpop.permute.xlu1 %10393  ;;  %v10552_v39 = vrot.slane %v10476_v3, 1 }
 0x906   : > { %v10417_v27 = vsel %vm10403_vm12, %v10392_v53, %v10394_v55  ;;  %v10479_v31 = vmax.f32 %v10302_v57, %v10394_v55  ;;  %v12814_v57 = vld [vmem:[%s21944_s5 + $0x100] sm:$0xff]  ;;  %v11250_v55 = vld [vmem:[%s21944_s5 + $0x10] sm:$0xff] }
 0x907   : > { %v10478_v24 = vmax.f32 %v10301_v50, %v10417_v27  ;;  %v12802_v53 = vld [vmem:[%s21944_s5 + $0xa0] sm:$0xff]  ;;  %v12801_v27 = vld [vmem:[%s21944_s5 + $0x98] sm:$0xff] }
 0x908   : > { %v10556_v8 = vrot.slane %v10479_v31, 1 }
 0x909   : > { %v10553_v49 = vrot.slane %v10478_v24, 1 }
 0x90a   : > { %v10623_v34 = vmax.f32 %v10479_v31, %v10556_v8  ;;  %v10557_v56 = vsel %vm475_vm0, %v10555_v30, %v10556_v8 }
 0x90b   : > { %v10622_v32 = vmax.f32 %v10478_v24, %v10553_v49  ;;  %v10621_v44 = vmax.f32 %v10477_v52, %v10557_v56  ;;  %v10554_v37 = vsel %vm475_vm0, %v10552_v39, %v10553_v49  ;;  %v11249_v24 = vld [vmem:[%s21944_s5 + $0x8] sm:$0xff]  ;;  %v12800_v39 = vld [vmem:[%s21944_s5 + $0x90] sm:$0xff]  ;;  %v11248_v49 = vld [vmem:[%s21944_s5] sm:$0xff] }
 0x90c   : > { %12794 = vmatprep.subr.msk.mxu0 %vm10631_vm13, %v10623_v34  ;;  %v10620_v23 = vmax.f32 %v10476_v3, %v10554_v37  ;;  %v12817_v34 = vld [vmem:[%s21944_s5 + $0x118] sm:$0xff]  ;;  %v11265_v56 = vld [vmem:[%s21944_s5 + $0x88] sm:$0xff] }
 0x90d   : > { %12795 = vmatpush1.msk.msra.mxu0 %vm10631_vm13, %v10622_v32  ;;  %v12816_v32 = vld [vmem:[%s21944_s5 + $0x110] sm:$0xff] }
 0x90e   : > { %11130 = vmatprep.subr.mxu0 %v10621_v44  ;;  %v10400_v26 = vpop.permute.xlu0 %10399  ;;  %v11264_v44 = vld [vmem:[%s21944_s5 + $0x80] sm:$0xff] }
 0x90f   : > { %11131 = vmatpush1.msra.mxu0 %v10620_v23 }
 0x910   : > { %v10402_v50 = vpop.permute.xlu1 %10401  ;;  %12796 = vmatmul.mubr.msk.f32.vlgmr.msra.gmra.mxu0 %vm10628_vm14, %v22952_v17  ;;  %11340 = vmatprep.subr.mxu0 %v22905_v38 }
 0x911   : > { %v10419_v2 = vsel %vm10403_vm12, %v10400_v26, %v10402_v50  ;;  %v10483_v35 = vmax.f32 %v10306_v21, %v10402_v50  ;;  %11341 = vmatpush1.msra.mxu0 %v12815_v25 }
 0x912   : > { %v10482_v12 = vmax.f32 %v10305_v63, %v10419_v2  ;;  %11342 = vmatprep.subr.mxu0 %v22905_v38  ;;  %v10396_v1 = vpop.permute.xlu0 %10395 }
 0x913   : > { %v10562_v29 = vrot.slane %v10483_v35, 1  ;;  %11343 = vmatpush1.msra.mxu0 %v12814_v57 }
 0x914   : > { %v10559_v18 = vrot.slane %v10482_v12, 1  ;;  %v10398_v36 = vpop.permute.xlu1 %10397  ;;  %11344 = vmatprep.subr.mxu0 %v22905_v38 }
 0x915   : > { %v10627_v21 = vmax.f32 %v10483_v35, %v10562_v29  ;;  %v10418_v13 = vsel %vm10403_vm12, %v10396_v1, %v10398_v36  ;;  %v10481_v63 = vmax.f32 %v10304_v45, %v10398_v36  ;;  %11345 = vmatpush1.msra.mxu0 %v12813_v47 }
 0x916   : > { %v10626_v0 = vmax.f32 %v10482_v12, %v10559_v18  ;;  %v10480_v10 = vmax.f32 %v10303_v22, %v10418_v13  ;;  %11346 = vmatprep.subr.mxu0 %v22905_v38 }
 0x917   : > { %v10561_v11 = vrot.slane %v10481_v63, 1  ;;  %12797 = vmatprep.subr.msk.mxu1 %vm10631_vm13, %v10627_v21  ;;  %11347 = vmatpush1.msra.mxu0 %v12812_v54 }
 0x918   : > { %v10558_v43 = vrot.slane %v10480_v10, 1  ;;  %12798 = vmatpush1.msk.msra.mxu1 %vm10631_vm13, %v10626_v0  ;;  %11348 = vmatprep.subr.mxu0 %v22905_v38 }
 0x919   : > { %v10563_v4 = vsel %vm475_vm0, %v10561_v11, %v10562_v29  ;;  %11349 = vmatpush1.msra.mxu0 %v12811_v48 }
 0x91a   : > { %v10560_v22 = vsel %vm475_vm0, %v10558_v43, %v10559_v18  ;;  %v10625_v45 = vmax.f32 %v10481_v63, %v10563_v4  ;;  %11350 = vmatprep.subr.mxu0 %v22905_v38  ;;  %vm11305_vm0 = vcmask 1042434  }
 0x91b   : > { %v10624_v51 = vmax.f32 %v10480_v10, %v10560_v22  ;;  %11351 = vmatpush1.msra.mxu0 %v12810_v5 }
 0x91c   : > { %11207 = vmatprep.subr.mxu1 %v10625_v45  ;;  %11352 = vmatprep.subr.mxu0 %v22905_v38 }
 0x91d   : > { %11208 = vmatpush1.msra.mxu1 %v10624_v51  ;;  %11353 = vmatpush1.msra.mxu0 %v12809_v6 }
 0x91e   : > { %12799 = vmatmul.mubr.msk.f32.vlgmr.msra.gmra.mxu1 %vm10628_vm14, %v22952_v17  ;;  %11441 = vmatprep.subr.mxu1 %v22905_v38  ;;  %v12806_v17 = vld [vmem:[%s21944_s5 + $0xc0] sm:$0xff] }
 0x91f   : > { %11442 = vmatpush1.msra.mxu1 %v11263_v20  ;;  %11354 = vmatprep.subr.mxu0 %v22905_v38 }
 0x920   : > { %11443 = vmatprep.subr.mxu1 %v22905_v38  ;;  %11355 = vmatpush1.msra.mxu0 %v12808_v40 }
 0x921   : > { %11444 = vmatpush1.msra.mxu1 %v11262_v58  ;;  %11356 = vmatprep.subr.mxu0 %v22905_v38 }
 0x922   : > { %11445 = vmatprep.subr.mxu1 %v22905_v38  ;;  %11357 = vmatpush1.msra.mxu0 %v12807_v41 }
 0x923   : > { %11446 = vmatpush1.msra.mxu1 %v11261_v16  ;;  %11358 = vmatprep.subr.mxu0 %v22905_v38 }
 0x924   : > { %11447 = vmatprep.subr.mxu1 %v22905_v38  ;;  %11359 = vmatpush1.msra.mxu0 %v12806_v17 }
 0x925   : > { %11448 = vmatpush1.msra.mxu1 %v11260_v60  ;;  %11360 = vmatprep.subr.mxu0 %v22905_v38 }
 0x926   : > { %11449 = vmatprep.subr.mxu1 %v22905_v38  ;;  %11361 = vmatpush1.msra.mxu0 %v12805_v14 }
 0x927   : > { %11450 = vmatpush1.msra.mxu1 %v11259_v61  ;;  %11362 = vmatprep.subr.mxu0 %v22905_v38 }
 0x928   : > { %11451 = vmatprep.subr.mxu1 %v22905_v38  ;;  %11363 = vmatpush1.msra.mxu0 %v12804_v28 }
 0x929   : > { %11452 = vmatpush1.msra.mxu1 %v11258_v15  ;;  %11364 = vmatprep.subr.mxu0 %v22905_v38 }
 0x92a   : > { %11453 = vmatprep.subr.mxu1 %v22905_v38  ;;  %11365 = vmatpush1.msra.mxu0 %v12803_v19 }
 0x92b   : > { %11454 = vmatpush1.msra.mxu1 %v11257_v42  ;;  %11366 = vmatprep.subr.mxu0 %v22905_v38 }
 0x92c   : > { %11455 = vmatprep.subr.mxu1 %v22905_v38  ;;  %11367 = vmatpush1.msra.mxu0 %v12802_v53 }
 0x92d   : > { %11456 = vmatpush1.msra.mxu1 %v11256_v59  ;;  %11368 = vmatprep.subr.mxu0 %v22905_v38 }
 0x92e   : > { %11457 = vmatprep.subr.mxu1 %v22905_v38  ;;  %11369 = vmatpush1.msra.mxu0 %v12801_v27 }
 0x92f   : > { %11458 = vmatpush1.msra.mxu1 %v11255_v46  ;;  %11370 = vmatprep.subr.mxu0 %v22905_v38 }
 0x930   : > { %11459 = vmatprep.subr.mxu1 %v22905_v38  ;;  %11371 = vmatpush1.msra.mxu0 %v12800_v39 }
 0x931   : > { %11460 = vmatpush1.msra.mxu1 %v11254_v33  ;;  %11400 = vmatprep.subr.mxu0 %v22905_v38 }
 0x932   : > { %11461 = vmatprep.subr.mxu1 %v22905_v38  ;;  %11401 = vmatpush2.msra.mxu0 %v12817_v34 }
 0x933   : > { %11462 = vmatpush1.msra.mxu1 %v11253_v9  ;;  %11402 = vmatprep.subr.mxu0 %v22905_v38 }
 0x934   : > { %11463 = vmatprep.subr.mxu1 %v22905_v38  ;;  %11403 = vmatpush2.msra.mxu0 %v12816_v32 }
 0x935   : > { %11464 = vmatpush1.msra.mxu1 %v11252_v62  ;;  %11561 = vmatprep.subr.mxu0 %v22905_v38 }
 0x936   : > { %11465 = vmatprep.subr.mxu1 %v22905_v38 }
 0x937   : > { %11466 = vmatpush1.msra.mxu1 %v11251_v7 }
 0x938   : > { %11467 = vmatprep.subr.mxu1 %v22905_v38 }
 0x939   : > { %11468 = vmatpush1.msra.mxu1 %v11250_v55 }
 0x93a   : > { %11469 = vmatprep.subr.mxu1 %v22905_v38 }
 0x93b   : > { %11470 = vmatpush1.msra.mxu1 %v11249_v24 }
 0x93c   : > { %11471 = vmatprep.subr.mxu1 %v22905_v38 }
 0x93d   : > { %11472 = vmatpush1.msra.mxu1 %v11248_v49 }
 0x93e   : > { %11501 = vmatprep.subr.mxu1 %v22905_v38 }
 0x93f   : > { %11502 = vmatpush2.msra.mxu1 %v11265_v56 }
 0x940   : > { %11503 = vmatprep.subr.mxu1 %v22905_v38 }
 0x941   : > { %11504 = vmatpush2.msra.mxu1 %v11264_v44 }
 0x942   : > { %11682 = vmatprep.subr.mxu1 %v22905_v38 }
 0x947   : > { %v21335_v52 = vpop.f32.mrf.mxu0 }
 0x948   : > { %v11772_v3 = vrot.slane %v21335_v52, 4  ;;  %v11301_v21 = vrot.slane %v21335_v52, 1 }
 0x949   : > { %v21384_v37 = vpop.f32.mrf.mxu0 }
 0x94a   : > { %v11544_v13 = vrot.slane %v21384_v37, 2  ;;  %v11665_v63 = vrot.slane %v21384_v37, 3  ;;  %v11322_v43 = vrot.slane %v21384_v37, 1 }
 0x954   : > { %v21349_v31 = vpop.f32.mrf.mxu1 }
 0x955   : > { %v11773_v30 = vrot.slane %v21349_v31, 3  ;;  %v11410_v0 = vrot.slane %v21349_v31, 7  ;;  %v11303_v4 = vsel %vm11302_vm15, %v21349_v31, %v11301_v21 }
 0x956   : > { %v21390_v50 = vpop.f32.mrf.mxu1 }
 0x957   : > { %v11774_v8 = vsel %vm11302_vm15, %v11773_v30, %v11772_v3  ;;  %v11545_v10 = vrot.slane %v21390_v50, 1  ;;  %v11666_v48 = vrot.slane %v21390_v50, 2  ;;  %v11424_v5 = vrot.slane %v21390_v50, 7 }
 0x958   : > { %v11411_v51 = vsel %vm11302_vm15, %v11410_v0, %v21335_v52  ;;  %v11323_v16 = vsel %vm11302_vm15, %v21390_v50, %v11322_v43 }
 0x959   : > { %v11546_v40 = vsel %vm11302_vm15, %v11545_v10, %v11544_v13  ;;  %v11667_v58 = vsel %vm11302_vm15, %v11666_v48, %v11665_v63  ;;  %v11425_v61 = vsel %vm11302_vm15, %v11424_v5, %v21384_v37 }
 0x975   : > { %v21386_v23 = vpop.f32.mrf.mxu0 }
 0x976   : > { %v11775_v26 = vrot.slane %v21386_v23, 2  ;;  %v11304_v22 = vrot.slane %v21386_v23, 7  ;;  %v11412_v45 = vrot.slane %v21386_v23, 6 }
 0x977   : > { %v21396_v12 = vpop.f32.mrf.mxu0 }
 0x978   : > { %v11776_v25 = vsel %vm11305_vm0, %v11775_v26, %v11774_v8  ;;  %v11668_v6 = vrot.slane %v21396_v12, 1  ;;  %v11324_v20 = vrot.slane %v21396_v12, 7  ;;  %v11426_v17 = vrot.slane %v21396_v12, 6 }
 0x979   : > { %v11306_v42 = vsel %vm11305_vm0, %v11304_v22, %v11303_v4  ;;  %v11413_v59 = vsel %vm11305_vm0, %v11412_v45, %v11411_v51  ;;  %v11547_v46 = vsel %vm11305_vm0, %v21396_v12, %v11546_v40 }
 0x97a   : > { %v11669_v33 = vsel %vm11305_vm0, %v11668_v6, %v11667_v58  ;;  %v11325_v9 = vsel %vm11305_vm0, %v11324_v20, %v11323_v16  ;;  %v11427_v7 = vsel %vm11305_vm0, %v11426_v17, %v11425_v61 }
 0x982   : > { %v21392_v57 = vpop.f32.mrf.mxu1 }
 0x983   : > { %v11777_v2 = vrot.slane %v21392_v57, 1  ;;  %v11307_v14 = vrot.slane %v21392_v57, 6  ;;  %v11414_v15 = vrot.slane %v21392_v57, 5 }
 0x984   : > { %v21402_v18 = vpop.f32.mrf.mxu1 }
 0x985   : > { %v11778_v35 = vsel %vm11308_vm1, %v11777_v2, %v11776_v25  ;;  %v11326_v28 = vrot.slane %v21402_v18, 6  ;;  %v11428_v62 = vrot.slane %v21402_v18, 5  ;;  %v11548_v19 = vrot.slane %v21402_v18, 7 }
 0x986   : > { %v11309_v27 = vsel %vm11308_vm1, %v11307_v14, %v11306_v42  ;;  %v11415_v24 = vsel %vm11308_vm1, %v11414_v15, %v11413_v59  ;;  %v11670_v30 = vsel %vm11308_vm1, %v21402_v18, %v11669_v33 }
 0x987   : > { %v11327_v44 = vsel %vm11308_vm1, %v11326_v28, %v11325_v9  ;;  %v11429_v26 = vsel %vm11308_vm1, %v11428_v62, %v11427_v7  ;;  %v11549_v25 = vsel %vm11308_vm1, %v11548_v19, %v11547_v46 }
 0x9a3   : > { %v21398_v47 = vpop.f32.mrf.mxu0 }
 0x9a4   : > { %v11779_v29 = vsel %vm11311_vm2, %v21398_v47, %v11778_v35  ;;  %v11310_v3 = vrot.slane %v21398_v47, 5  ;;  %v11416_v53 = vrot.slane %v21398_v47, 4 }
 0x9a5   : > { %v21414_v11 = vpop.f32.mrf.mxu0 }
 0x9a6   : > { %v11328_v8 = vrot.slane %v21414_v11, 5  ;;  %v11430_v39 = vrot.slane %v21414_v11, 4  ;;  %v11550_v49 = vrot.slane %v21414_v11, 6  ;;  %v11671_v34 = vrot.slane %v21414_v11, 7 }
 0x9a7   : > { %v11312_v35 = vsel %vm11311_vm2, %v11310_v3, %v11309_v27  ;;  %v12835_v27 = vld [vmem:[%s21944_s5 + $0x198] sm:$0xff] }
 0x9a8   : > { %v11329_v0 = vsel %vm11311_vm2, %v11328_v8, %v11327_v44  ;;  %v11431_v10 = vsel %vm11311_vm2, %v11430_v39, %v11429_v26  ;;  %v11551_v48 = vsel %vm11311_vm2, %v11550_v49, %v11549_v25  ;;  %v11672_v43 = vsel %vm11311_vm2, %v11671_v34, %v11670_v30  ;;  %v12853_v26 = vld [vmem:[%s21944_s5 + $0x220] sm:$0xff] }
 0x9b0   : > { %v21404_v1 = vpop.f32.mrf.mxu1 }
 0x9b1   : > { %v11780_v36 = vrot.slane %v21404_v1, 7  ;;  %v11313_v32 = vrot.slane %v21404_v1, 4  ;;  %v11418_v2 = vrot.slane %v21404_v1, 3 }
 0x9b2   : > { %v21459_v56 = vpop.f32.mrf.mxu1 }
 0x9b3   : > { %v11781_v54 = vsel %vm11314_vm3, %v11780_v36, %v11779_v29  ;;  %v11417_v29 = vsel %vm11311_vm2, %v11416_v53, %v11415_v24  ;;  %v11330_v36 = vrot.slane %v21459_v56, 4  ;;  %v11552_v21 = vrot.slane %v21459_v56, 5  ;;  %v12854_v24 = vld [vmem:[%s21944_s5 + $0x228] sm:$0xff] }
 0x9b4   : > { %v11673_v13 = vrot.slane %v21459_v56, 6  ;;  %v11315_v4 = vsel %vm11314_vm3, %v11313_v32, %v11312_v35  ;;  %v11419_v20 = vsel %vm11314_vm3, %v11418_v2, %v11417_v29  ;;  %v12833_v2 = vld [vmem:[%s21944_s5 + $0x188] sm:$0xff]  ;;  %v12852_v35 = vld [vmem:[%s21944_s5 + $0x218] sm:$0xff]  ;;  %v12832_v29 = vld [vmem:[%s21944_s5 + $0x180] sm:$0xff] }
 0x9b5   : > { %v11331_v40 = vsel %vm11314_vm3, %v11330_v36, %v11329_v0  ;;  %v11553_v16 = vsel %vm11314_vm3, %v11552_v21, %v11551_v48  ;;  %v12851_v36 = vld [vmem:[%s21944_s5 + $0x210] sm:$0xff]  ;;  %v12850_v21 = vld [vmem:[%s21944_s5 + $0x208] sm:$0xff]  ;;  %v12849_v0 = vld [vmem:[%s21944_s5 + $0x200] sm:$0xff] }
 0x9b6   : > { %v11674_v17 = vsel %vm11314_vm3, %v11673_v13, %v11672_v43  ;;  %v12830_v13 = vld [vmem:[%s21944_s5 + $0x170] sm:$0xff]  ;;  %v12848_v48 = vld [vmem:[%s21944_s5 + $0x1f8] sm:$0xff]  ;;  %v12828_v43 = vld [vmem:[%s21944_s5 + $0x160] sm:$0xff] }
 0x9d0   : > { %v21428_v41 = vpop.f32.mrf.mxu0 }
 0x9d1   : > { %v11782_v60 = vrot.slane %v21428_v41, 6  ;;  %v11316_v5 = vrot.slane %v21428_v41, 3  ;;  %v11420_v22 = vrot.slane %v21428_v41, 2 }
 0x9d2   : > { %v21472_v63 = vpop.f32.mrf.mxu0 }
 0x9d3   : > { %v11783_v55 = vsel %vm11317_vm5, %v11782_v60, %v11781_v54  ;;  %v11432_v54 = vrot.slane %v21459_v56, 3  ;;  %v11332_v45 = vrot.slane %v21472_v63, 3  ;;  %v11434_v6 = vrot.slane %v21472_v63, 2 }
 0x9d4   : > { %v11554_v60 = vrot.slane %v21472_v63, 4  ;;  %v11675_v59 = vrot.slane %v21472_v63, 5  ;;  %v11318_v9 = vsel %vm11317_vm5, %v11316_v5, %v11315_v4  ;;  %v11421_v19 = vsel %vm11317_vm5, %v11420_v22, %v11419_v20  ;;  %v12847_v5 = vld [vmem:[%s21944_s5 + $0x1f0] sm:$0xff] }
 0x9d5   : > { %v11433_v58 = vsel %vm11314_vm3, %v11432_v54, %v11431_v10  ;;  %v11333_v28 = vsel %vm11317_vm5, %v11332_v45, %v11331_v40  ;;  %v12831_v54 = vld [vmem:[%s21944_s5 + $0x178] sm:$0xff]  ;;  %v12829_v10 = vld [vmem:[%s21944_s5 + $0x168] sm:$0xff]  ;;  %v11530_v4 = vrot.slane %v21335_v52, 2  ;;  %v11531_v22 = vrot.slane %v21349_v31, 1 }
 0x9d6   : > { %v11435_v62 = vsel %vm11317_vm5, %v11434_v6, %v11433_v58  ;;  %v11555_v34 = vsel %vm11317_vm5, %v11554_v60, %v11553_v16  ;;  %v11676_v44 = vsel %vm11317_vm5, %v11675_v59, %v11674_v17  ;;  %v12827_v45 = vld [vmem:[%s21944_s5 + $0x158] sm:$0xff]  ;;  %v12846_v6 = vld [vmem:[%s21944_s5 + $0x1e8] sm:$0xff]  ;;  %v11651_v20 = vrot.slane %v21335_v52, 3  ;;  %v12826_v17 = vld [vmem:[%s21944_s5 + $0x150] sm:$0xff] }
 0x9d7   : > { %v11652_v40 = vrot.slane %v21349_v31, 2  ;;  %v11786_v58 = vrot.slane %v21384_v37, 4  ;;  %v11787_v16 = vrot.slane %v21390_v50, 3  ;;  %v12845_v52 = vld [vmem:[%s21944_s5 + $0x1e0] sm:$0xff]  ;;  %v11532_v31 = vsel %vm11302_vm15, %v11531_v22, %v11530_v4  ;;  %v12825_v50 = vld [vmem:[%s21944_s5 + $0x148] sm:$0xff]  ;;  %v12844_v60 = vld [vmem:[%s21944_s5 + $0x1d8] sm:$0xff] }
 0x9d8   : > { %v11654_v37 = vrot.slane %v21386_v23, 1  ;;  %v11534_v59 = vrot.slane %v21392_v57, 7  ;;  %v12872_v22 = vld [vmem:[%s21944_s5 + $0x2b0] sm:$0xff] }
 0x9de   : > { %v21483_v51 = vpop.f32.mrf.mxu1 }
 0x9df   : > { %v11319_v61 = vrot.slane %v21483_v51, 2  ;;  %v11422_v14 = vrot.slane %v21483_v51, 1  ;;  %v11784_v15 = vrot.slane %v21483_v51, 5 }
 0x9e0   : > { %v21494_v42 = vpop.f32.mrf.mxu1 }
 0x9e1   : > { %v11334_v46 = vrot.slane %v21494_v42, 2  ;;  %v11436_v33 = vrot.slane %v21494_v42, 1  ;;  %v11556_v7 = vrot.slane %v21494_v42, 3  ;;  %v11677_v30 = vrot.slane %v21494_v42, 4 }
 0x9e2   : > { %v21514_v8 = vsel %vm11320_vm6, %v11784_v15, %v11783_v55  ;;  %v11321_v39 = vsel %vm11320_vm6, %v11319_v61, %v11318_v9  ;;  %v11423_v49 = vsel %vm11320_vm6, %v11422_v14, %v11421_v19  ;;  %v12834_v55 = vld [vmem:[%s21944_s5 + $0x190] sm:$0xff]  ;;  %v11789_v61 = vrot.slane %v21396_v12, 2  ;;  %v12842_v19 = vld [vmem:[%s21944_s5 + $0x1c8] sm:$0xff] }
 0x9e3   : > { %v11335_v3 = vsel %vm11320_vm6, %v11334_v46, %v11333_v28  ;;  %v11437_v53 = vsel %vm11320_vm6, %v11436_v33, %v11435_v62  ;;  %v11557_v32 = vsel %vm11320_vm6, %v11556_v7, %v11555_v34  ;;  %v11678_v25 = vsel %vm11320_vm6, %v11677_v30, %v11676_v44  ;;  %v12824_v46 = vld [vmem:[%s21944_s5 + $0x140] sm:$0xff]  ;;  %v12843_v12 = vld [vmem:[%s21944_s5 + $0x1d0] sm:$0xff]  ;;  %v12823_v62 = vld [vmem:[%s21944_s5 + $0x138] sm:$0xff] }
 0x9e4   : > { %12818 = vmatprep.mubr.msk.f32.mxu0 %vm11337_vm7, %v11335_v3  ;;  %12819 = vmatprep.mubr.msk.f32.mxu1 %vm11337_vm7, %v11437_v53  ;;  %v11653_v14 = vsel %vm11302_vm15, %v11652_v40, %v11651_v20  ;;  %v11788_v15 = vsel %vm11302_vm15, %v11787_v16, %v11786_v58  ;;  %v11533_v33 = vsel %vm11305_vm0, %v21386_v23, %v11532_v31  ;;  %v11791_v28 = vrot.slane %v21402_v18, 1  ;;  %v12822_v53 = vld [vmem:[%s21944_s5 + $0x130] sm:$0xff]  ;;  %v12820_v44 = vld [vmem:[%s21944_s5 + $0x120] sm:$0xff]  ;;  %v12869_v20 = vld [vmem:[%s21944_s5 + $0x298] sm:$0xff] }
 0x9e5   : > { %11405 = vmatmul.mubr.f32.vlgmr.msra.gmra.mxu0 %v11321_v39  ;;  %11506 = vmatmul.mubr.f32.vlgmr.msra.gmra.mxu1 %v11423_v49  ;;  %v11655_v9 = vsel %vm11305_vm0, %v11654_v37, %v11653_v14  ;;  %v11536_v23 = vrot.slane %v21398_v47, 6  ;;  %v11790_v7 = vsel %vm11305_vm0, %v11789_v61, %v11788_v15  ;;  %v11535_v18 = vsel %vm11308_vm1, %v11534_v59, %v11533_v33  ;;  %v12821_v39 = vld [vmem:[%s21944_s5 + $0x128] sm:$0xff]  ;;  %v12840_v49 = vld [vmem:[%s21944_s5 + $0x1b8] sm:$0xff]  ;;  %v12868_v40 = vld [vmem:[%s21944_s5 + $0x290] sm:$0xff] }
 0x9e6   : > { %11562 = vmatpush1.msra.mxu0 %v12835_v27  ;;  %11683 = vmatpush1.msra.mxu1 %v12854_v24  ;;  %v11657_v3 = vrot.slane %v21398_v47, 7  ;;  %v12841_v27 = vld [vmem:[%s21944_s5 + $0x1c0] sm:$0xff]  ;;  %v11656_v24 = vsel %vm11308_vm1, %v21392_v57, %v11655_v9  ;;  %v11792_v30 = vsel %vm11308_vm1, %v11791_v28, %v11790_v7  ;;  %v11538_v47 = vrot.slane %v21404_v1, 5  ;;  %v12867_v58 = vld [vmem:[%s21944_s5 + $0x288] sm:$0xff]  ;;  %v11893_v9 = vld [vmem:[%s21946_s7 + $0x50] sm:$0xff] }
 0x9e7   : > { %11563 = vmatprep.subr.mxu0 %v22905_v38  ;;  %12838 = vmatprep.mubr.msk.f32.mxu0 %vm11337_vm7, %v11557_v32  ;;  %v11659_v57 = vrot.slane %v21404_v1, 6  ;;  %v11537_v34 = vsel %vm11311_vm2, %v11536_v23, %v11535_v18  ;;  %v11794_v32 = vrot.slane %v21459_v56, 7  ;;  %v11540_v56 = vrot.slane %v21428_v41, 4  ;;  %v12866_v16 = vld [vmem:[%s21944_s5 + $0x280] sm:$0xff]  ;;  %v12863_v31 = vld [vmem:[%s21944_s5 + $0x268] sm:$0xff]  ;;  %v11889_v23 = vld [vmem:[%s21946_s7 + $0x30] sm:$0xff] }
 0x9e8   : > { %11684 = vmatprep.subr.mxu1 %v22905_v38  ;;  %12857 = vmatprep.mubr.msk.f32.mxu1 %vm11337_vm7, %v11678_v25  ;;  %v11658_v1 = vsel %vm11311_vm2, %v11657_v3, %v11656_v24  ;;  %v11661_v25 = vrot.slane %v21428_v41, 5  ;;  %v11663_v41 = vrot.slane %v21483_v51, 4  ;;  %v12862_v37 = vld [vmem:[%s21944_s5 + $0x260] sm:$0xff]  ;;  %v12859_v61 = vld [vmem:[%s21944_s5 + $0x248] sm:$0xff]  ;;  %v11886_v3 = vld [vmem:[%s21946_s7 + $0x18] sm:$0xff] }
 0x9e9   : > { %11564 = vmatpush1.msra.mxu0 %v12834_v55  ;;  %11685 = vmatpush1.msra.mxu1 %v12853_v26  ;;  %v12839_v55 = vld [vmem:[%s21944_s5 + $0x1b0] sm:$0xff]  ;;  %v11793_v26 = vsel %vm11311_vm2, %v21414_v11, %v11792_v30  ;;  %v11539_v11 = vsel %vm11314_vm3, %v11538_v47, %v11537_v34  ;;  %v12858_v14 = vld [vmem:[%s21944_s5 + $0x240] sm:$0xff]  ;;  %v12875_v15 = vld [vmem:[%s21944_s5 + $0x2c8] sm:$0xff] }
 0x9ea   : > { %11565 = vmatprep.subr.mxu0 %v22905_v38  ;;  %11686 = vmatprep.subr.mxu1 %v22905_v38  ;;  %v12874_v59 = vld [vmem:[%s21944_s5 + $0x2c0] sm:$0xff]  ;;  %v11892_v28 = vld [vmem:[%s21946_s7 + $0x48] sm:$0xff] }
 0x9eb   : > { %11566 = vmatpush1.msra.mxu0 %v12833_v2  ;;  %11687 = vmatpush1.msra.mxu1 %v12852_v35  ;;  %v12837_v2 = vld [vmem:[%s21944_s5 + $0x1a8] sm:$0xff]  ;;  %v12856_v35 = vld [vmem:[%s21944_s5 + $0x238] sm:$0xff]  ;;  %v11895_v33 = vld [vmem:[%s21946_s7 + $0x60] sm:$0xff] }
 0x9ec   : > { %11567 = vmatprep.subr.mxu0 %v22905_v38  ;;  %11688 = vmatprep.subr.mxu1 %v22905_v38  ;;  %v11888_v7 = vld [vmem:[%s21946_s7 + $0x28] sm:$0xff]  ;;  %v11887_v18 = vld [vmem:[%s21946_s7 + $0x20] sm:$0xff] }
 0x9ed   : > { %11568 = vmatpush1.msra.mxu0 %v12832_v29  ;;  %11689 = vmatpush1.msra.mxu1 %v12851_v36  ;;  %v11796_v29 = vrot.slane %v21472_v63, 6  ;;  %v11542_v36 = vrot.slane %v21483_v51, 3  ;;  %v12855_v63 = vld [vmem:[%s21944_s5 + $0x230] sm:$0xff]  ;;  %v11798_v51 = vrot.slane %v21494_v42, 5  ;;  %v12873_v42 = vld [vmem:[%s21944_s5 + $0x2b8] sm:$0xff]  ;;  %v11883_v24 = vld [vmem:[%s21946_s7] sm:$0xff] }
 0x9ee   : > { %11569 = vmatprep.subr.mxu0 %v22905_v38  ;;  %11690 = vmatprep.subr.mxu1 %v22905_v38 }
 0x9ef   : > { %11570 = vmatpush1.msra.mxu0 %v12831_v54  ;;  %11691 = vmatpush1.msra.mxu1 %v12850_v21  ;;  %v11660_v54 = vsel %vm11314_vm3, %v11659_v57, %v11658_v1  ;;  %v12836_v21 = vld [vmem:[%s21944_s5 + $0x1a0] sm:$0xff] }
 0x9f0   : > { %11571 = vmatprep.subr.mxu0 %v22905_v38  ;;  %11692 = vmatprep.subr.mxu1 %v22905_v38 }
 0x9f1   : > { %11572 = vmatpush1.msra.mxu0 %v12830_v13  ;;  %11693 = vmatpush1.msra.mxu1 %v12849_v0  ;;  %v11795_v13 = vsel %vm11314_vm3, %v11794_v32, %v11793_v26  ;;  %v11541_v0 = vsel %vm11317_vm5, %v11540_v56, %v11539_v11 }
 0x9f2   : > { %11573 = vmatprep.subr.mxu0 %v22905_v38  ;;  %11694 = vmatprep.subr.mxu1 %v22905_v38 }
 0x9f3   : > { %11574 = vmatpush1.msra.mxu0 %v12829_v10  ;;  %11695 = vmatpush1.msra.mxu1 %v12848_v48  ;;  %v11662_v10 = vsel %vm11317_vm5, %v11661_v25, %v11660_v54  ;;  %v11543_v48 = vsel %vm11320_vm6, %v11542_v36, %v11541_v0  ;;  %v12877_v25 = vld [vmem:[%s21945_s6] ss:$0 sm:$0xff]  ;;  %v11990_v36 = vld [vmem:[%s21948_s9 + $0x50] sm:$0xf]  ;;  %v11983_v0 = vld [vmem:[%s21948_s9 + $0x18] sm:$0xff] }
 0x9f4   : > { %11575 = vmatprep.subr.mxu0 %v22905_v38  ;;  %11696 = vmatprep.subr.mxu1 %v22905_v38  ;;  %v11988_v54 = vld [vmem:[%s21948_s9 + $0x40] sm:$0xff] }
 0x9f5   : > { %11576 = vmatpush1.msra.mxu0 %v12828_v43  ;;  %11697 = vmatpush1.msra.mxu1 %v12847_v5  ;;  %v11664_v43 = vsel %vm11320_vm6, %v11663_v41, %v11662_v10  ;;  %v11797_v5 = vsel %vm11317_vm5, %v11796_v29, %v11795_v13  ;;  %v11989_v41 = vld [vmem:[%s21948_s9 + $0x48] sm:$0xff]  ;;  %v11982_v10 = vld [vmem:[%s21948_s9 + $0x10] sm:$0xff] }
 0x9f6   : > { %11577 = vmatprep.subr.mxu0 %v22905_v38  ;;  %11698 = vmatprep.subr.mxu1 %v22905_v38  ;;  %v11799_v4 = vsel %vm11320_vm6, %v11798_v51, %v11797_v5  ;;  %v11985_v13 = vld [vmem:[%s21948_s9 + $0x28] sm:$0xff]  ;;  %v11984_v51 = vld [vmem:[%s21948_s9 + $0x20] sm:$0xff] }
 0x9f7   : > { %11578 = vmatpush1.msra.mxu0 %v12827_v45  ;;  %11699 = vmatpush1.msra.mxu1 %v12846_v6  ;;  %v12871_v45 = vld [vmem:[%s21944_s5 + $0x2a8] sm:$0xff]  ;;  %v12870_v6 = vld [vmem:[%s21944_s5 + $0x2a0] sm:$0xff] }
 0x9f8   : > { %11579 = vmatprep.subr.mxu0 %v22905_v38  ;;  %11700 = vmatprep.subr.mxu1 %v22905_v38 }
 0x9f9   : > { %11580 = vmatpush1.msra.mxu0 %v12826_v17  ;;  %11701 = vmatpush1.msra.mxu1 %v12845_v52  ;;  %v12865_v17 = vld [vmem:[%s21944_s5 + $0x278] sm:$0xff]  ;;  %v12864_v52 = vld [vmem:[%s21944_s5 + $0x270] sm:$0xff] }
 0x9fa   : > { %11581 = vmatprep.subr.mxu0 %v22905_v38  ;;  %11702 = vmatprep.subr.mxu1 %v22905_v38 }
 0x9fb   : > { %11582 = vmatpush1.msra.mxu0 %v12825_v50  ;;  %11703 = vmatpush1.msra.mxu1 %v12844_v60  ;;  %v12861_v50 = vld [vmem:[%s21944_s5 + $0x258] sm:$0xff]  ;;  %v12860_v60 = vld [vmem:[%s21944_s5 + $0x250] sm:$0xff] }
 0x9fc   : > { %11583 = vmatprep.subr.mxu0 %v22905_v38  ;;  %11704 = vmatprep.subr.mxu1 %v22905_v38 }
 0x9fd   : > { %11584 = vmatpush1.msra.mxu0 %v12824_v46  ;;  %11705 = vmatpush1.msra.mxu1 %v12843_v12  ;;  %v11897_v46 = vld [vmem:[%s21946_s7 + $0x70] sm:$0xff]  ;;  %v11896_v12 = vld [vmem:[%s21946_s7 + $0x68] sm:$0xff] }
 0x9fe   : > { %11585 = vmatprep.subr.mxu0 %v22905_v38  ;;  %11706 = vmatprep.subr.mxu1 %v22905_v38 }
 0x9ff   : > { %11586 = vmatpush1.msra.mxu0 %v12823_v62  ;;  %11707 = vmatpush1.msra.mxu1 %v12842_v19  ;;  %v11891_v62 = vld [vmem:[%s21946_s7 + $0x40] sm:$0xff]  ;;  %v11890_v19 = vld [vmem:[%s21946_s7 + $0x38] sm:$0xff] }
 0xa00   : > { %11587 = vmatprep.subr.mxu0 %v22905_v38  ;;  %11708 = vmatprep.subr.mxu1 %v22905_v38 }
 0xa01   : > { %11588 = vmatpush1.msra.mxu0 %v12822_v53  ;;  %11709 = vmatpush1.msra.mxu1 %v12841_v27  ;;  %v11885_v53 = vld [vmem:[%s21946_s7 + $0x10] sm:$0xff]  ;;  %v11884_v27 = vld [vmem:[%s21946_s7 + $0x8] sm:$0xff] }
 0xa02   : > { %11589 = vmatprep.subr.mxu0 %v22905_v38  ;;  %11710 = vmatprep.subr.mxu1 %v22905_v38 }
 0xa03   : > { %11590 = vmatpush1.msra.mxu0 %v12821_v39  ;;  %11711 = vmatpush1.msra.mxu1 %v12840_v49 }
 0xa04   : > { %11591 = vmatprep.subr.mxu0 %v22905_v38  ;;  %11712 = vmatprep.subr.mxu1 %v22905_v38 }
 0xa05   : > { %11592 = vmatpush1.msra.mxu0 %v12820_v44  ;;  %11713 = vmatpush1.msra.mxu1 %v12839_v55 }
 0xa06   : > { %11621 = vmatprep.subr.mxu0 %v22905_v38  ;;  %11742 = vmatprep.subr.mxu1 %v22905_v38 }
 0xa07   : > { %11622 = vmatpush2.msra.mxu0 %v12837_v2  ;;  %11743 = vmatpush2.msra.mxu1 %v12856_v35 }
 0xa08   : > { %11623 = vmatprep.subr.mxu0 %v22905_v38  ;;  %11744 = vmatprep.subr.mxu1 %v22905_v38 }
 0xa09   : > { %11624 = vmatpush2.msra.mxu0 %v12836_v21  ;;  %11745 = vmatpush2.msra.mxu1 %v12855_v63  ;;  %v11987_v21 = vld [vmem:[%s21948_s9 + $0x38] sm:$0xff]  ;;  %v11986_v63 = vld [vmem:[%s21948_s9 + $0x30] sm:$0xff] }
 0xa0a   : > { %11626 = vmatmul.mubr.f32.vlgmr.msra.gmra.mxu0 %v11543_v48  ;;  %11747 = vmatmul.mubr.f32.vlgmr.msra.gmra.mxu1 %v11664_v43  ;;  %v11981_v48 = vld [vmem:[%s21948_s9 + $0x8] sm:$0xff]  ;;  %v11980_v43 = vld [vmem:[%s21948_s9] sm:$0xff] }
 0xa0b   : > { %11803 = vmatprep.subr.mxu0 %v22905_v38  ;;  %12876 = vmatprep.mubr.msk.f32.mxu0 %vm11337_vm7, %v11799_v4 }
 0xa0c   : > { %11804 = vmatpush1.msra.mxu0 %v12873_v42  ;;  %12916 = vmatprep.subr.mxu1 %v22905_v38  ;;  %v12878_v42 = vld [vmem:[%s21947_s8] ss:$0 sm:$0xff] }
 0xa0d   : > { %11805 = vmatprep.subr.mxu0 %v22905_v38  ;;  %12917 = vmatpush3.msra.mxu1 %v11897_v46 }
 0xa0e   : > { %11806 = vmatpush1.msra.mxu0 %v12872_v22  ;;  %12918 = vmatprep.subr.mxu1 %v22905_v38 }
 0xa0f   : > { %11807 = vmatprep.subr.mxu0 %v22905_v38  ;;  %12919 = vmatpush3.msra.mxu1 %v11896_v12 }
 0xa10   : > { %11808 = vmatpush1.msra.mxu0 %v12871_v45  ;;  %12920 = vmatprep.subr.mxu1 %v22905_v38 }
 0xa11   : > { %11809 = vmatprep.subr.mxu0 %v22905_v38  ;;  %12921 = vmatpush3.msra.mxu1 %v11895_v33 }
 0xa12   : > { %11810 = vmatpush1.msra.mxu0 %v12870_v6  ;;  %12922 = vmatprep.subr.mxu1 %v22905_v38 }
 0xa13   : > { %11811 = vmatprep.subr.mxu0 %v22905_v38  ;;  %12946 = vmatprep.mubr.msk.f32.mxu1 %vm13146_vm8, %v22905_v38 }
 0xa14   : > { %11812 = vmatpush1.msra.mxu0 %v12869_v20 }
 0xa15   : > { %11813 = vmatprep.subr.mxu0 %v22905_v38 }
 0xa16   : > { %11814 = vmatpush1.msra.mxu0 %v12868_v40 }
 0xa17   : > { %11815 = vmatprep.subr.mxu0 %v22905_v38 }
 0xa18   : > { %11816 = vmatpush1.msra.mxu0 %v12867_v58 }
 0xa19   : > { %11817 = vmatprep.subr.mxu0 %v22905_v38 }
 0xa1a   : > { %11818 = vmatpush1.msra.mxu0 %v12866_v16 }
 0xa1b   : > { %11819 = vmatprep.subr.mxu0 %v22905_v38 }
 0xa1c   : > { %11820 = vmatpush1.msra.mxu0 %v12865_v17 }
 0xa1d   : > { %11821 = vmatprep.subr.mxu0 %v22905_v38 }
 0xa1e   : > { %11822 = vmatpush1.msra.mxu0 %v12864_v52 }
 0xa1f   : > { %11823 = vmatprep.subr.mxu0 %v22905_v38 }
 0xa20   : > { %11824 = vmatpush1.msra.mxu0 %v12863_v31 }
 0xa21   : > { %11825 = vmatprep.subr.mxu0 %v22905_v38 }
 0xa22   : > { %11826 = vmatpush1.msra.mxu0 %v12862_v37 }
 0xa23   : > { %11827 = vmatprep.subr.mxu0 %v22905_v38 }
 0xa24   : > { %11828 = vmatpush1.msra.mxu0 %v12861_v50 }
 0xa25   : > { %11829 = vmatprep.subr.mxu0 %v22905_v38 }
 0xa26   : > { %11830 = vmatpush1.msra.mxu0 %v12860_v60 }
 0xa27   : > { %11831 = vmatprep.subr.mxu0 %v22905_v38 }
 0xa28   : > { %11832 = vmatpush1.msra.mxu0 %v12859_v61 }
 0xa29   : > { %11833 = vmatprep.subr.mxu0 %v22905_v38 }
 0xa2a   : > { %11834 = vmatpush1.msra.mxu0 %v12858_v14 }
 0xa2b   : > { %11863 = vmatprep.subr.mxu0 %v22905_v38 }
 0xa2c   : > { %11864 = vmatpush2.msra.mxu0 %v12875_v15 }
 0xa2d   : > { %11865 = vmatprep.subr.mxu0 %v22905_v38 }
 0xa2e   : > { %11866 = vmatpush2.msra.mxu0 %v12874_v59 }
 0xa2f   : > { %11868 = vmatmul.mubr.f32.vlgmr.msra.gmra.mxu0 %v21514_v8  ;;  %v11894_v8 = vld [vmem:[%s21946_s7 + $0x58] sm:$0xff] }
 0xa30   : > { %12923 = vmatpush3.msra.mxu1 %v11894_v8 }
 0xa31   : > { %12924 = vmatprep.subr.mxu1 %v22905_v38 }
 0xa32   : > { %12925 = vmatpush3.msra.mxu1 %v11893_v9 }
 0xa33   : > { %12926 = vmatprep.subr.mxu1 %v22905_v38 }
 0xa34   : > { %12927 = vmatpush3.msra.mxu1 %v11892_v28 }
 0xa35   : > { %12928 = vmatprep.subr.mxu1 %v22905_v38 }
 0xa36   : > { %12929 = vmatpush3.msra.mxu1 %v11891_v62 }
 0xa37   : > { %12930 = vmatprep.subr.mxu1 %v22905_v38 }
 0xa38   : > { %12931 = vmatpush3.msra.mxu1 %v11890_v19 }
 0xa39   : > { %12932 = vmatprep.subr.mxu1 %v22905_v38 }
 0xa3a   : > { %12933 = vmatpush3.msra.mxu1 %v11889_v23 }
 0xa3b   : > { %12934 = vmatprep.subr.mxu1 %v22905_v38 }
 0xa3c   : > { %12935 = vmatpush3.msra.mxu1 %v11888_v7 }
 0xa3d   : > { %12936 = vmatprep.subr.mxu1 %v22905_v38 }
 0xa3e   : > { %12937 = vmatpush3.msra.mxu1 %v11887_v18 }
 0xa3f   : > { %12938 = vmatprep.subr.mxu1 %v22905_v38 }
 0xa40   : > { %12939 = vmatpush3.msra.mxu1 %v11886_v3 }
 0xa41   : > { %12940 = vmatprep.subr.mxu1 %v22905_v38 }
 0xa42   : > { %12941 = vmatpush3.msra.mxu1 %v11885_v53 }
 0xa43   : > { %12942 = vmatprep.subr.mxu1 %v22905_v38 }
 0xa44   : > { %12943 = vmatpush3.msra.mxu1 %v11884_v27 }
 0xa45   : > { %12944 = vmatprep.subr.mxu1 %v22905_v38 }
 0xa46   : > { %12945 = vmatpush3.msra.mxu1 %v11883_v24 }
 0xa47   : > { %12949 = vmatprep.subr.mxu1 %v22905_v38 }
 0xaa5   : > { %v11406_v30 = vpop.f32.mrf.mxu0  ;;  %v11507_v47 = vpop.f32.mrf.mxu1 }
 0xaa6   : > { %v11508_v39 = vadd.f32 %v11507_v47, %v11406_v30 }
 0xaa7   : > { %v11408_v49 = vpop.f32.mrf.mxu0  ;;  %v11509_v57 = vpop.f32.mrf.mxu1 }
 0xaca   : > { %v11627_v34 = vpop.f32.mrf.mxu0  ;;  %v11748_v32 = vpop.f32.mrf.mxu1 }
 0xacb   : > { %v11631_v1 = vadd.f32 %v11627_v34, %v11508_v39 }
 0xacc   : > { %v11629_v44 = vpop.f32.mrf.mxu0  ;;  %v11750_v55 = vpop.f32.mrf.mxu1 }
 0xacd   : > { %v11752_v26 = vadd.f32 %v11748_v32, %v11631_v1 }
 0xaef   : > { %v11869_v56 = vpop.f32.mrf.mxu0 }
 0xaf0   : > { %v11873_v2 = vadd.f32 %v11869_v56, %v11752_v26 }
 0xaf1   : > { %v11871_v35 = vpop.f32.mrf.mxu0 }
 0xaf2   : > { %v11881_v11 = vadd.f32 %v12877_v25, %v11873_v2 }
 0xaf4   : > { %v11882_v29 = vmax.f32 %v11881_v11, 0.0 }
 0xaf6   : > { %12947 = vmatmul.mubr.msk.f32.vlgmr.msra.gmra.mxu1 %vm11905_vm9, %v11882_v29 }
 0xaf7   : > { %12950 = vmatpush3.msk.msra.mxu1 %vm3982_vm4, %v11990_v36  ;;  %12971 = vmatprep.mubr.msk.f32.mxu1 %vm13146_vm8, %v22905_v38  ;;  %vm11998_vm4 = vcmask 687104  }
 0xaf8   : > { %12951 = vmatprep.subr.mxu1 %v22905_v38 }
 0xaf9   : > { %12952 = vmatpush3.msra.mxu1 %v11989_v41 }
 0xafa   : > { %12953 = vmatprep.subr.mxu1 %v22905_v38 }
 0xafb   : > { %12954 = vmatpush3.msra.mxu1 %v11988_v54 }
 0xafc   : > { %12955 = vmatprep.subr.mxu1 %v22905_v38 }
 0xafd   : > { %12956 = vmatpush3.msra.mxu1 %v11987_v21 }
 0xafe   : > { %12957 = vmatprep.subr.mxu1 %v22905_v38 }
 0xaff   : > { %12958 = vmatpush3.msra.mxu1 %v11986_v63 }
 0xb00   : > { %12959 = vmatprep.subr.mxu1 %v22905_v38 }
 0xb01   : > { %12960 = vmatpush3.msra.mxu1 %v11985_v13 }
 0xb02   : > { %12961 = vmatprep.subr.mxu1 %v22905_v38 }
 0xb03   : > { %12962 = vmatpush3.msra.mxu1 %v11984_v51 }
 0xb04   : > { %12963 = vmatprep.subr.mxu1 %v22905_v38 }
 0xb05   : > { %12964 = vmatpush3.msra.mxu1 %v11983_v0 }
 0xb06   : > { %12965 = vmatprep.subr.mxu1 %v22905_v38 }
 0xb07   : > { %12966 = vmatpush3.msra.mxu1 %v11982_v10 }
 0xb08   : > { %12967 = vmatprep.subr.mxu1 %v22905_v38 }
 0xb09   : > { %12968 = vmatpush3.msra.mxu1 %v11981_v48 }
 0xb0a   : > { %12969 = vmatprep.subr.mxu1 %v22905_v38  ;;  %v12880_v38 = vld [vmem:[%s21949_s10] ss:$0 sm:$0xff] }
 0xb0b   : > { %12970 = vmatpush3.msra.mxu1 %v11980_v43 }
 0xbb6   : > { %v11975_v5 = vpop.f32.mrf.mxu1 }
 0xbb7   : > { %v11976_v4 = vadd.f32 %v12878_v42, %v11975_v5 }
 0xbb8   : > { %v12948_v22 = vpop.f32.mrf.mxu1 }
 0xbb9   : > { %v11979_v45 = vmax.f32 %v11976_v4, 0.0 }
 0xbbb   : > { %12972 = vmatmul.mubr.msk.f32.vlgmr.msra.gmra.mxu1 %vm11998_vm4, %v11979_v45 }
 0xc7b   : > { %v12071_v6 = vpop.f32.mrf.mxu1 }
 0xc7c   : > { %v12072_v20 = vadd.f32 %v12880_v38, %v12071_v6 }
 0xc7d   : > { %v12973_v40 = vpop.f32.mrf.mxu1 }
 0xc7e   : > { %12076 = vst.msk [vmem:[%s382_s24] sm:$0xff] %vm12075_vm10, %v12072_v20 }
 0xc7f   : > { %13094 = shalt.err (!%p13091_p3)
}
 0xc80   : > { %s13095_s13 = scalar_lea.hbm %s21904_s22, 128  ;;  %s13099_s24 = scalar_lea.hbm %s21950_s11, 256 }
 0xc81   : > { %p13096_p4 = scmp.ne.s32.totalorder %s21904_s22, %s13095_s13  ;;  %p13100_p9 = scmp.lt.s32.totalorder %s21904_s22, %s21950_s11 }
 0xc82   : > { %p13101_p10 = scmp.lt.s32.totalorder %s13099_s24, %s13095_s13 }
 0xc83   : > { %p13097_p7 = pnand %p13096_p4, %p13246_p5 }
 0xc84   : > { %p13102_p11 = por %p13101_p10, %p13100_p9 }
 0xc85   : > { %p13098_p8 = pneg %p13097_p7 }
 0xc87   : > { %p13103_p12 = pnand %p13102_p11, %p13098_p8 }
 0xc89   : > { %13106 = shalt.err (!%p13103_p12)
}
 0xc8a   : > { %12974 = dma.vmem_to_hbm [thread:$0]  (%p13246_p5), %s12092_s25, 128, %s21904_s22, %s12078_s0  }
 0xc8b PF: > { %p12980_p13 = scmp.ge.s32.totalorder %s13141_s20, 2  ;;  %s12103_s1 = sand.u32 1, %s13129_s17  }
 0xc8c   : > { %s12104_s21 = scalar_lea.sflag [#allocation3], %s12103_s1 }
 0xc8d   : > { %p12977_p0 = pnand %p12980_p13, %p13250_p6 }
 0xc8f   : > { %p12978_p1 = pneg %p12977_p0 }
 0xc91   : > { %13124 = dma.done.wait (%p12978_p1), %s12104_s21, 128  }
 0xc92   : > { %13126 = vsyncadd (%p12978_p1), %s12104_s21, 4294967168  ;;  %p21_p2 = scmp.ge.s32.totalorder %s13233_s23, 4   ;;  %s22961_s17 = smov %s13133_s18 }
 0xc93   : > { %s22962_s18 = smov %s13137_s19  ;;  %s22963_s19 = smov %s13244_s26 }
 0xc94   : > { %s22964_s20 = smov %s13233_s23  ;;  %23 = sbr.rel (!%p21_p2) target bundleno = 6 (0x6), region = 111 }
 0xc99   :  { %12109 = vsyncpa [#allocation3], 1 }
 0xc9a   :  { %12111 = vsyncpa [#allocation3 + $0x1], 1 }

</bundles_post_ra>
